<compile_context>
chip_gen: v6e
topology: v6e:2x2x1
jax: 0.10.0
libtpu: 0.0.40
codegen_flags: <defaults>
</compile_context>

<pallas_src>
import jax
import jax.numpy as jnp
from jax.experimental import pallas as pl
from jax.experimental.pallas import tpu as pltpu

HEADS = 8


# ------------------------------ fused kernel --------------------------------

def _gcnnet_kernel(
    x_ref,          # [N, F]       f32  node features
    adj_bias_ref,   # [N, N]       f32  additive GAT mask (0 edge / -1e30 none)
    ahat_ref,       # [N, N]       f32  GCN symmetric-normalized adjacency
    gmask_ref,      # [G, N]       f32  graph membership (rows = graphs)
    gmaskT_ref,     # [N, G]       f32  transposed membership (max pooling)
    gat_w_ref,      # [F, H*D]     bf16 GAT linear weight (all heads)
    att_ref,        # [H*D, 2H]    f32  merged block-structured [att_src||att_dst]
    gat_b_ref,      # [1, H*D]     f32
    gcn2_w_ref,     # [H*D, 512]   bf16 (BN1 scale folded into columns)
    gcn2_t_ref,     # [1, 512]     f32  (bias*bn_scale + bn_shift)
    gcn3_w_hbm,     # [512, 1024]  bf16 HBM ref (manual DMA), BN2 folded
    gcn3_t_ref,     # [1, 1024]    f32
    fc1_w_hbm,      # [2048, 256]  bf16 HBM ref (manual DMA)
    fc1_b_ref,      # [1, 256]     f32
    fc2_w_ref,      # [256, 2]     bf16
    fc2_b_ref,      # [1, 2]       f32
    out_ref,        # [G, 2]       f32
    # scratch
    xh_blk,         # [H*N, H*D]   f32  block-diagonal xh
    gcn3_buf,       # [512, 1024]  bf16 VMEM landing buffer
    fc1_buf,        # [2048, 256]  bf16 VMEM landing buffer
    dma_sem,        # DMA semaphores (2,)
):
    f32 = jnp.float32
    bf16 = jnp.bfloat16
    N = x_ref.shape[0]
    HD = gat_w_ref.shape[1]
    D = HD // HEADS
    G = gmask_ref.shape[0]
    C = gcn3_t_ref.shape[1]                     # 1024

    # Kick off the late-used weight DMAs so they hide behind GAT/conv2 compute.
    cp_gcn3 = pltpu.make_async_copy(gcn3_w_hbm, gcn3_buf, dma_sem.at[0])
    cp_gcn3.start()
    cp_fc1 = pltpu.make_async_copy(fc1_w_hbm, fc1_buf, dma_sem.at[1])
    cp_fc1.start()

    adj_bias = adj_bias_ref[...]                # [N, N] additive mask
    ahat = ahat_ref[...]

    # ---- conv1: GATConv(F, D, heads=8, concat) + ReLU ------------------------
    xh = jnp.dot(x_ref[...].astype(bf16), gat_w_ref[...],
                 preferred_element_type=f32)                        # [N, H*D]
    s_all = jnp.dot(xh, att_ref[...], preferred_element_type=f32)   # [N, 2H]
    s_src = s_all[:, :HEADS]                                        # a_src . x_j
    s_dst = s_all[:, HEADS:]                                        # a_dst . x_i
    s_srcT = jnp.transpose(s_src)                                   # [H, N]

    # Build the lane-packed attention matrix [N, H*N] and the block-diagonal
    # xh scratch [H*N, H*D], then one MXU push produces the head-concat output.
    xh_blk[...] = jnp.zeros_like(xh_blk)
    attn_cols = []
    for h in range(HEADS):                                # unrolled, H = 8
        e = s_dst[:, h:h + 1] + s_srcT[h:h + 1, :]        # e[i,j]
        e = jnp.where(e >= 0.0, e, 0.2 * e) + adj_bias    # LeakyReLU + edge mask
        m = jnp.max(e, axis=-1, keepdims=True)
        p = jnp.exp(e - m)                                # masked entries -> 0
        inv = pl.reciprocal(jnp.sum(p, axis=-1, keepdims=True), approx=True)
        attn_cols.append(p * inv)                         # softmax over in-edges
        xh_blk[h * N:(h + 1) * N, h * D:(h + 1) * D] = xh[:, h * D:(h + 1) * D]
    attn_all = jnp.concatenate(attn_cols, axis=-1)                  # [N, H*N]
    x1 = jnp.dot(attn_all, xh_blk[...], preferred_element_type=f32) \
        + gat_b_ref[...]                                            # head concat
    x1 = jnp.maximum(x1, 0.0)                                       # relu

    # TODO(synk): the reference forward computes `x1 = self.res_fc(x)` and then
    # discards it; the dead 256x1024 matmul is intentionally omitted here.

    # ---- conv2: GCNConv(H*D, 512) -> bn1 -> relu (BN folded into weights) ----
    h2 = jnp.dot(x1.astype(bf16), gcn2_w_ref[...], preferred_element_type=f32)
    h2 = jnp.dot(ahat, h2, preferred_element_type=f32) + gcn2_t_ref[...]
    h2 = jnp.maximum(h2, 0.0)

    # ---- conv3: GCNConv(512, 1024) -> bn2 -> relu ----------------------------
    cp_gcn3.wait()                               # weight DMA hidden behind above
    h3 = jnp.dot(h2.astype(bf16), gcn3_buf[...], preferred_element_type=f32)
    h3 = jnp.dot(ahat, h3, preferred_element_type=f32) + gcn3_t_ref[...]
    h3 = jnp.maximum(h3, 0.0)

    # ---- readout: global_max_pool / global_mean_pool -------------------------
    gm = gmask_ref[...]                                             # [G, N]
    cnt = jnp.sum(gm, axis=-1, keepdims=True)                       # [G, 1]
    mean = jnp.dot(gm, h3, preferred_element_type=f32) * \
        pl.reciprocal(cnt, approx=True)                             # [G, C]
    big_neg = jnp.float32(-3.0e38)
    maxes = []
    for g in range(G):                                    # unrolled, G = 2
        col = gmaskT_ref[:, g:g + 1]                                # [N, 1]
        masked = jnp.where(col > 0.0, h3, big_neg)
        maxes.append(jnp.max(masked, axis=0, keepdims=True))        # [1, C]
    mx = jnp.concatenate(maxes, axis=0)                             # [G, C]

    # ---- dropout (eval: identity) -> fc1 (split halves) + relu -> fc2 --------
    cp_fc1.wait()
    g1 = (jnp.dot(mx.astype(bf16), fc1_buf[0:C, :], preferred_element_type=f32)
          + jnp.dot(mean.astype(bf16), fc1_buf[C:2 * C, :],
                    preferred_element_type=f32)
          + fc1_b_ref[...])
    g1 = jnp.maximum(g1, 0.0)
    out = jnp.dot(g1.astype(bf16), fc2_w_ref[...],
                  preferred_element_type=f32) + fc2_b_ref[...]
    out_ref[...] = out.astype(out_ref.dtype)


# ------------------------------ pallas wrapper -------------------------------

def gcnnet_pallas(p, x, adj_bias, a_hat, gmask, num_graphs):
    N = x.shape[0]
    HD = p["gat_w"].shape[1]

    # Merged block-structured attention-score matrix: [H*D, 2H].
    eye_h = jnp.eye(HEADS, dtype=jnp.float32)
    asrc_mat = (p["gat_asrc"][:, :, None] * eye_h[:, None, :]).reshape(HD, HEADS)
    adst_mat = (p["gat_adst"][:, :, None] * eye_h[:, None, :]).reshape(HD, HEADS)
    att_mat = jnp.concatenate([asrc_mat, adst_mat], axis=1)        # [HD, 2H]

    # Eval-mode BatchNorm + GCN bias fully folded into weights / one shift.
    def bn_fold(gamma, beta, mean, var, eps=1e-5):
        s = gamma / jnp.sqrt(var + eps)
        return s, beta - mean * s

    bn1_s, bn1_t = bn_fold(p["bn1_gamma"], p["bn1_beta"], p["bn1_mean"], p["bn1_var"])
    bn2_s, bn2_t = bn_fold(p["bn2_gamma"], p["bn2_beta"], p["bn2_mean"], p["bn2_var"])
    gcn2_w = (p["gcn2_w"].astype(jnp.float32) * bn1_s[None, :]).astype(jnp.bfloat16)
    gcn2_t = (p["gcn2_b"] * bn1_s + bn1_t).reshape(1, -1)
    gcn3_w = (p["gcn3_w"].astype(jnp.float32) * bn2_s[None, :]).astype(jnp.bfloat16)
    gcn3_t = (p["gcn3_b"] * bn2_s + bn2_t).reshape(1, -1)

    out_channels = p["fc2_w"].shape[1]
    C = gcn3_w.shape[1]                                            # 1024

    vmem = pl.BlockSpec(memory_space=pltpu.MemorySpace.VMEM)
    hbm = pl.BlockSpec(memory_space=pl.ANY)

    # No grid: single fused invocation; small operands land whole in VMEM, the
    # two ~1 MiB weights stay in HBM and are DMA'd manually inside the kernel.
    return pl.pallas_call(
        _gcnnet_kernel,
        out_shape=jax.ShapeDtypeStruct((num_graphs, out_channels), jnp.float32),
        in_specs=[
            vmem,  # x
            vmem,  # adj_bias
            vmem,  # a_hat
            vmem,  # gmask
            vmem,  # gmask.T
            vmem,  # gat_w
            vmem,  # att_mat
            vmem,  # gat_b
            vmem,  # gcn2_w (folded)
            vmem,  # gcn2_t
            hbm,   # gcn3_w (folded)  -- manual DMA
            vmem,  # gcn3_t
            hbm,   # fc1_w            -- manual DMA
            vmem,  # fc1_b
            vmem,  # fc2_w
            vmem,  # fc2_b
        ],
        out_specs=pl.BlockSpec(memory_space=pltpu.MemorySpace.VMEM),
        scratch_shapes=[
            pltpu.VMEM((HEADS * N, HD), jnp.float32),   # block-diagonal xh
            pltpu.VMEM(gcn3_w.shape, jnp.bfloat16),     # gcn3 weight buffer
            pltpu.VMEM(p["fc1_w"].shape, jnp.bfloat16), # fc1 weight buffer
            pltpu.SemaphoreType.DMA((2,)),
        ],
        cost_estimate=pl.CostEstimate(
            flops=25_000_000, transcendentals=2_048, bytes_accessed=2_700_000),
    )(
        x, adj_bias, a_hat, gmask, gmask.T,
        p["gat_w"], att_mat, p["gat_b"].reshape(1, HD),
        gcn2_w, gcn2_t,
        gcn3_w, gcn3_t,
        p["fc1_w"], p["fc1_b"].reshape(1, -1),
        p["fc2_w"], p["fc2_b"].reshape(1, -1),
    )


# ------------------------- parameters (deterministic) ------------------------

def init_params(key, num_features=32):
    H, D = HEADS, num_features
    ks = jax.random.split(key, 7)

    def w(k, shape, scale, dtype=jnp.bfloat16):
        return (jax.random.normal(k, shape, jnp.float32) * scale).astype(dtype)

    return {
        # conv1: GATConv(F, F, heads=8, concat=True)
        "gat_w":    w(ks[0], (num_features, H * D), 0.10),
        "gat_asrc": w(ks[1], (H, D), 0.10, jnp.float32),
        "gat_adst": w(ks[2], (H, D), 0.10, jnp.float32),
        "gat_b":    jnp.zeros((H * D,), jnp.float32),
        # conv2 / conv3: GCNConv
        "gcn2_w":   w(ks[3], (H * D, 512), 0.05),
        "gcn2_b":   jnp.zeros((512,), jnp.float32),
        "gcn3_w":   w(ks[4], (512, 1024), 0.05),
        "gcn3_b":   jnp.zeros((1024,), jnp.float32),
        # eval-mode BatchNorm1d (running stats at init)
        "bn1_gamma": jnp.ones((512,), jnp.float32),
        "bn1_beta":  jnp.zeros((512,), jnp.float32),
        "bn1_mean":  jnp.zeros((512,), jnp.float32),
        "bn1_var":   jnp.ones((512,), jnp.float32),
        "bn2_gamma": jnp.ones((1024,), jnp.float32),
        "bn2_beta":  jnp.zeros((1024,), jnp.float32),
        "bn2_mean":  jnp.zeros((1024,), jnp.float32),
        "bn2_var":   jnp.ones((1024,), jnp.float32),
        # MLP head
        "fc1_w":    w(ks[5], (2 * 1024, 256), 0.02),
        "fc1_b":    jnp.zeros((256,), jnp.float32),
        "fc2_w":    w(ks[6], (256, 2), 0.05),
        "fc2_b":    jnp.zeros((2,), jnp.float32),
        # TODO(synk): res_fc (Linear(H*D, 1024)) and Set2Set exist in __init__
        # but their outputs are never used in forward(); omitted here.
    }


# --------------------------------- forward -----------------------------------

def gcnnet_forward(p, x, edge_index, edge_weights, batch, num_graphs):
    """Plain-JAX graph preprocessing + one fused Pallas kernel."""
    N = x.shape[0]
    src, dst = edge_index[0], edge_index[1]
    eye = jnp.eye(N, dtype=jnp.float32)

    # GAT: unweighted adjacency + self loops, as an additive softmax bias.
    adj_mask = jnp.zeros((N, N), jnp.float32).at[dst, src].set(1.0)
    adj_mask = jnp.maximum(adj_mask, eye)
    adj_bias = jnp.where(adj_mask > 0.0, 0.0, -1e30).astype(jnp.float32)

    # GCN: symmetric normalization of (weighted adjacency + I).
    w_adj = jnp.zeros((N, N), jnp.float32).at[dst, src].add(edge_weights) + eye
    deg = jnp.sum(w_adj, axis=1)
    dinv = jnp.where(deg > 0, 1.0 / jnp.sqrt(deg), 0.0)
    a_hat = dinv[:, None] * w_adj * dinv[None, :]

    # Graph membership mask for pooling.
    gmask = (batch[None, :] == jnp.arange(num_graphs)[:, None]).astype(jnp.float32)

    return gcnnet_pallas(p, x, adj_bias, a_hat, gmask, num_graphs)


# ----------------------------------- main -------------------------------------

if __name__ == "__main__":
    key = jax.random.PRNGKey(0)
    k_param, k_x, k_w = jax.random.split(key, 3)

    NUM_FEATURES = 32
    N_NODES = 16          # two graphs of 8 nodes each
    NUM_GRAPHS = 2

    params = init_params(k_param, NUM_FEATURES)
    x = jax.random.normal(k_x, (N_NODES, NUM_FEATURES), jnp.float32)

    # bidirectional path edges inside each graph (no self loops / duplicates)
    srcs, dsts = [], []
    for g in range(NUM_GRAPHS):
        base = g * 8
        for i in range(7):
            srcs += [base + i, base + i + 1]
            dsts += [base + i + 1, base + i]
    edge_index = jnp.array([srcs, dsts], dtype=jnp.int32)            # [2, 28]
    edge_weights = jax.random.uniform(k_w, (edge_index.shape[1],),
                                      jnp.float32, 0.5, 1.5)         # [28]
    batch = jnp.array([0] * 8 + [1] * 8, dtype=jnp.int32)            # [16]

    fwd = jax.jit(gcnnet_forward, static_argnums=(5,))
    out = fwd(params, x, edge_index, edge_weights, batch, NUM_GRAPHS)
    out = jax.block_until_ready(out)
    assert out.shape == (NUM_GRAPHS, 2) and out.dtype == jnp.float32
    assert bool(jnp.all(jnp.isfinite(out)))
    print("KERNEL_OK")
</pallas_src>

<mosaic_0001>
module attributes {stable_mosaic.version = 11 : i64} {
  func.func @_gcnnet_kernel(%arg0: memref<16x32xf32, #tpu.memory_space<vmem>>, %arg1: memref<16x16xf32, #tpu.memory_space<vmem>>, %arg2: memref<16x16xf32, #tpu.memory_space<vmem>>, %arg3: memref<2x16xf32, #tpu.memory_space<vmem>>, %arg4: memref<16x2xf32, #tpu.memory_space<vmem>>, %arg5: memref<32x256xbf16, #tpu.memory_space<vmem>>, %arg6: memref<256x16xf32, #tpu.memory_space<vmem>>, %arg7: memref<1x256xf32, #tpu.memory_space<vmem>>, %arg8: memref<256x512xbf16, #tpu.memory_space<vmem>>, %arg9: memref<1x512xf32, #tpu.memory_space<vmem>>, %arg10: memref<512x1024xbf16, #tpu.memory_space<any>>, %arg11: memref<1x1024xf32, #tpu.memory_space<vmem>>, %arg12: memref<2048x256xbf16, #tpu.memory_space<any>>, %arg13: memref<1x256xf32, #tpu.memory_space<vmem>>, %arg14: memref<256x2xbf16, #tpu.memory_space<vmem>>, %arg15: memref<1x2xf32, #tpu.memory_space<vmem>>, %arg16: memref<2x2xf32, #tpu.memory_space<vmem>>, %arg17: memref<128x256xf32, #tpu.memory_space<vmem>>, %arg18: memref<512x1024xbf16, #tpu.memory_space<vmem>>, %arg19: memref<2048x256xbf16, #tpu.memory_space<vmem>>, %arg20: memref<2x!tpu.dma_semaphore, #tpu.memory_space<semaphore_mem>>) attributes {dimension_semantics = [], scalar_prefetch = 0 : i64, scratch_operands = 4 : i64, tpu.core_type = #tpu.core_type<tc>} {
    %c0_i32 = arith.constant 0 : i32
    %0 = tpu.memref_slice %arg20[%c0_i32] : memref<2x!tpu.dma_semaphore, #tpu.memory_space<semaphore_mem>> -> memref<1x!tpu.dma_semaphore, #tpu.memory_space<semaphore_mem>>
    %1 = tpu.memref_squeeze %0 : memref<1x!tpu.dma_semaphore, #tpu.memory_space<semaphore_mem>> -> memref<!tpu.dma_semaphore, #tpu.memory_space<semaphore_mem>>
    tpu.enqueue_dma source(%arg10 : memref<512x1024xbf16, #tpu.memory_space<any>>) target(%arg18 : memref<512x1024xbf16, #tpu.memory_space<vmem>>) target_semaphore(%1 : memref<!tpu.dma_semaphore, #tpu.memory_space<semaphore_mem>>)
    %c1_i32 = arith.constant 1 : i32
    %2 = tpu.memref_slice %arg20[%c1_i32] : memref<2x!tpu.dma_semaphore, #tpu.memory_space<semaphore_mem>> -> memref<1x!tpu.dma_semaphore, #tpu.memory_space<semaphore_mem>>
    %3 = tpu.memref_squeeze %2 : memref<1x!tpu.dma_semaphore, #tpu.memory_space<semaphore_mem>> -> memref<!tpu.dma_semaphore, #tpu.memory_space<semaphore_mem>>
    tpu.enqueue_dma source(%arg12 : memref<2048x256xbf16, #tpu.memory_space<any>>) target(%arg19 : memref<2048x256xbf16, #tpu.memory_space<vmem>>) target_semaphore(%3 : memref<!tpu.dma_semaphore, #tpu.memory_space<semaphore_mem>>)
    %c0 = arith.constant 0 : index
    %c0_0 = arith.constant 0 : index
    %4 = vector.load %arg1[%c0, %c0_0] : memref<16x16xf32, #tpu.memory_space<vmem>>, vector<16x16xf32>
    %c0_1 = arith.constant 0 : index
    %c0_2 = arith.constant 0 : index
    %5 = vector.load %arg2[%c0_1, %c0_2] : memref<16x16xf32, #tpu.memory_space<vmem>>, vector<16x16xf32>
    %c0_3 = arith.constant 0 : index
    %c0_4 = arith.constant 0 : index
    %6 = vector.load %arg0[%c0_3, %c0_4] : memref<16x32xf32, #tpu.memory_space<vmem>>, vector<16x32xf32>
    %7 = arith.truncf %6 : vector<16x32xf32> to vector<16x32xbf16>
    %c0_5 = arith.constant 0 : index
    %c0_6 = arith.constant 0 : index
    %8 = vector.load %arg5[%c0_5, %c0_6] : memref<32x256xbf16, #tpu.memory_space<vmem>>, vector<32x256xbf16>
    %cst = arith.constant dense<0.000000e+00> : vector<16x256xf32>
    %9 = tpu.matmul %7, %8, %cst {dimension_numbers = #tpu.dot_dimension_numbers<[1], [0], [0], [1], [0, 0, 1, 1], [], []>} : vector<16x32xbf16>, vector<32x256xbf16>, vector<16x256xf32> -> vector<16x256xf32>
    %c0_7 = arith.constant 0 : index
    %c0_8 = arith.constant 0 : index
    %10 = vector.load %arg6[%c0_7, %c0_8] : memref<256x16xf32, #tpu.memory_space<vmem>>, vector<256x16xf32>
    %cst_9 = arith.constant dense<0.000000e+00> : vector<16x16xf32>
    %11 = tpu.matmul %9, %10, %cst_9 {dimension_numbers = #tpu.dot_dimension_numbers<[1], [0], [0], [1], [0, 0, 1, 1], [], []>} : vector<16x256xf32>, vector<256x16xf32>, vector<16x16xf32> -> vector<16x16xf32>
    %12 = vector.extract_strided_slice %11 {offsets = [0, 0], sizes = [16, 8], strides = [1, 1]} : vector<16x16xf32> to vector<16x8xf32>
    %13 = vector.extract_strided_slice %11 {offsets = [0, 8], sizes = [16, 8], strides = [1, 1]} : vector<16x16xf32> to vector<16x8xf32>
    %14 = tpu.transpose %12, [1, 0] : vector<16x8xf32> -> vector<8x16xf32>
    %cst_10 = arith.constant 0.000000e+00 : f32
    %15 = vector.broadcast %cst_10 : f32 to vector<128x256xf32>
    %c0_11 = arith.constant 0 : index
    %c0_12 = arith.constant 0 : index
    %16 = vector.load %arg17[%c0_11, %c0_12] : memref<128x256xf32, #tpu.memory_space<vmem>>, vector<128x256xf32>
    tpu.vector_store %arg17[%c0_11, %c0_12], %15 {strides = array<i32>} : memref<128x256xf32, #tpu.memory_space<vmem>>, vector<128x256xf32>,
    %17 = vector.extract_strided_slice %13 {offsets = [0, 0], sizes = [16, 1], strides = [1, 1]} : vector<16x8xf32> to vector<16x1xf32>
    %18 = vector.extract_strided_slice %14 {offsets = [0, 0], sizes = [1, 16], strides = [1, 1]} : vector<8x16xf32> to vector<1x16xf32>
    %19 = vector.broadcast %17 : vector<16x1xf32> to vector<16x16xf32>
    %20 = vector.broadcast %18 : vector<1x16xf32> to vector<16x16xf32>
    %21 = arith.addf %19, %20 : vector<16x16xf32>
    %cst_13 = arith.constant 0.000000e+00 : f32
    %22 = vector.broadcast %cst_13 : f32 to vector<16x16xf32>
    %23 = arith.cmpf oge, %21, %22 : vector<16x16xf32>
    %cst_14 = arith.constant 2.000000e-01 : f32
    %24 = vector.broadcast %cst_14 : f32 to vector<16x16xf32>
    %25 = arith.mulf %24, %21 : vector<16x16xf32>
    %26 = arith.select %23, %21, %25 : vector<16x16xi1>, vector<16x16xf32>
    %27 = arith.addf %26, %4 : vector<16x16xf32>
    %cst_15 = arith.constant dense<0xFF800000> : vector<16xf32>
    %28 = vector.multi_reduction <maximumf>, %27, %cst_15 [1] : vector<16x16xf32> to vector<16xf32>
    %29 = vector.shape_cast %28 : vector<16xf32> to vector<16x1xf32>
    %30 = vector.broadcast %29 : vector<16x1xf32> to vector<16x16xf32>
    %31 = arith.subf %27, %30 : vector<16x16xf32>
    %32 = math.exp %31 : vector<16x16xf32>
    %cst_16 = arith.constant dense<0.000000e+00> : vector<16xf32>
    %33 = vector.multi_reduction <add>, %32, %cst_16 [1] : vector<16x16xf32> to vector<16xf32>
    %34 = vector.shape_cast %33 : vector<16xf32> to vector<16x1xf32>
    %35 = tpu.reciprocal %34 {approx = true} : vector<16x1xf32> -> vector<16x1xf32>
    %36 = vector.broadcast %35 : vector<16x1xf32> to vector<16x16xf32>
    %37 = arith.mulf %32, %36 : vector<16x16xf32>
    %38 = vector.extract_strided_slice %9 {offsets = [0, 0], sizes = [16, 32], strides = [1, 1]} : vector<16x256xf32> to vector<16x32xf32>
    %c0_17 = arith.constant 0 : index
    %c0_18 = arith.constant 0 : index
    %39 = vector.load %arg17[%c0_17, %c0_18] : memref<128x256xf32, #tpu.memory_space<vmem>>, vector<16x32xf32>
    tpu.vector_store %arg17[%c0_17, %c0_18], %38 {strides = array<i32>} : memref<128x256xf32, #tpu.memory_space<vmem>>, vector<16x32xf32>,
    %40 = vector.extract_strided_slice %13 {offsets = [0, 1], sizes = [16, 1], strides = [1, 1]} : vector<16x8xf32> to vector<16x1xf32>
    %41 = vector.extract_strided_slice %14 {offsets = [1, 0], sizes = [1, 16], strides = [1, 1]} : vector<8x16xf32> to vector<1x16xf32>
    %42 = vector.broadcast %40 : vector<16x1xf32> to vector<16x16xf32>
    %43 = vector.broadcast %41 : vector<1x16xf32> to vector<16x16xf32>
    %44 = arith.addf %42, %43 : vector<16x16xf32>
    %cst_19 = arith.constant 0.000000e+00 : f32
    %45 = vector.broadcast %cst_19 : f32 to vector<16x16xf32>
    %46 = arith.cmpf oge, %44, %45 : vector<16x16xf32>
    %cst_20 = arith.constant 2.000000e-01 : f32
    %47 = vector.broadcast %cst_20 : f32 to vector<16x16xf32>
    %48 = arith.mulf %47, %44 : vector<16x16xf32>
    %49 = arith.select %46, %44, %48 : vector<16x16xi1>, vector<16x16xf32>
    %50 = arith.addf %49, %4 : vector<16x16xf32>
    %cst_21 = arith.constant dense<0xFF800000> : vector<16xf32>
    %51 = vector.multi_reduction <maximumf>, %50, %cst_21 [1] : vector<16x16xf32> to vector<16xf32>
    %52 = vector.shape_cast %51 : vector<16xf32> to vector<16x1xf32>
    %53 = vector.broadcast %52 : vector<16x1xf32> to vector<16x16xf32>
    %54 = arith.subf %50, %53 : vector<16x16xf32>
    %55 = math.exp %54 : vector<16x16xf32>
    %cst_22 = arith.constant dense<0.000000e+00> : vector<16xf32>
    %56 = vector.multi_reduction <add>, %55, %cst_22 [1] : vector<16x16xf32> to vector<16xf32>
    %57 = vector.shape_cast %56 : vector<16xf32> to vector<16x1xf32>
    %58 = tpu.reciprocal %57 {approx = true} : vector<16x1xf32> -> vector<16x1xf32>
    %59 = vector.broadcast %58 : vector<16x1xf32> to vector<16x16xf32>
    %60 = arith.mulf %55, %59 : vector<16x16xf32>
    %61 = vector.extract_strided_slice %9 {offsets = [0, 32], sizes = [16, 32], strides = [1, 1]} : vector<16x256xf32> to vector<16x32xf32>
    %c16 = arith.constant 16 : index
    %c32 = arith.constant 32 : index
    %62 = vector.load %arg17[%c16, %c32] : memref<128x256xf32, #tpu.memory_space<vmem>>, vector<16x32xf32>
    tpu.vector_store %arg17[%c16, %c32], %61 {strides = array<i32>} : memref<128x256xf32, #tpu.memory_space<vmem>>, vector<16x32xf32>,
    %63 = vector.extract_strided_slice %13 {offsets = [0, 2], sizes = [16, 1], strides = [1, 1]} : vector<16x8xf32> to vector<16x1xf32>
    %64 = vector.extract_strided_slice %14 {offsets = [2, 0], sizes = [1, 16], strides = [1, 1]} : vector<8x16xf32> to vector<1x16xf32>
    %65 = vector.broadcast %63 : vector<16x1xf32> to vector<16x16xf32>
    %66 = vector.broadcast %64 : vector<1x16xf32> to vector<16x16xf32>
    %67 = arith.addf %65, %66 : vector<16x16xf32>
    %cst_23 = arith.constant 0.000000e+00 : f32
    %68 = vector.broadcast %cst_23 : f32 to vector<16x16xf32>
    %69 = arith.cmpf oge, %67, %68 : vector<16x16xf32>
    %cst_24 = arith.constant 2.000000e-01 : f32
    %70 = vector.broadcast %cst_24 : f32 to vector<16x16xf32>
    %71 = arith.mulf %70, %67 : vector<16x16xf32>
    %72 = arith.select %69, %67, %71 : vector<16x16xi1>, vector<16x16xf32>
    %73 = arith.addf %72, %4 : vector<16x16xf32>
    %cst_25 = arith.constant dense<0xFF800000> : vector<16xf32>
    %74 = vector.multi_reduction <maximumf>, %73, %cst_25 [1] : vector<16x16xf32> to vector<16xf32>
    %75 = vector.shape_cast %74 : vector<16xf32> to vector<16x1xf32>
    %76 = vector.broadcast %75 : vector<16x1xf32> to vector<16x16xf32>
    %77 = arith.subf %73, %76 : vector<16x16xf32>
    %78 = math.exp %77 : vector<16x16xf32>
    %cst_26 = arith.constant dense<0.000000e+00> : vector<16xf32>
    %79 = vector.multi_reduction <add>, %78, %cst_26 [1] : vector<16x16xf32> to vector<16xf32>
    %80 = vector.shape_cast %79 : vector<16xf32> to vector<16x1xf32>
    %81 = tpu.reciprocal %80 {approx = true} : vector<16x1xf32> -> vector<16x1xf32>
    %82 = vector.broadcast %81 : vector<16x1xf32> to vector<16x16xf32>
    %83 = arith.mulf %78, %82 : vector<16x16xf32>
    %84 = vector.extract_strided_slice %9 {offsets = [0, 64], sizes = [16, 32], strides = [1, 1]} : vector<16x256xf32> to vector<16x32xf32>
    %c32_27 = arith.constant 32 : index
    %c64 = arith.constant 64 : index
    %85 = vector.load %arg17[%c32_27, %c64] : memref<128x256xf32, #tpu.memory_space<vmem>>, vector<16x32xf32>
    tpu.vector_store %arg17[%c32_27, %c64], %84 {strides = array<i32>} : memref<128x256xf32, #tpu.memory_space<vmem>>, vector<16x32xf32>,
    %86 = vector.extract_strided_slice %13 {offsets = [0, 3], sizes = [16, 1], strides = [1, 1]} : vector<16x8xf32> to vector<16x1xf32>
    %87 = vector.extract_strided_slice %14 {offsets = [3, 0], sizes = [1, 16], strides = [1, 1]} : vector<8x16xf32> to vector<1x16xf32>
    %88 = vector.broadcast %86 : vector<16x1xf32> to vector<16x16xf32>
    %89 = vector.broadcast %87 : vector<1x16xf32> to vector<16x16xf32>
    %90 = arith.addf %88, %89 : vector<16x16xf32>
    %cst_28 = arith.constant 0.000000e+00 : f32
    %91 = vector.broadcast %cst_28 : f32 to vector<16x16xf32>
    %92 = arith.cmpf oge, %90, %91 : vector<16x16xf32>
    %cst_29 = arith.constant 2.000000e-01 : f32
    %93 = vector.broadcast %cst_29 : f32 to vector<16x16xf32>
    %94 = arith.mulf %93, %90 : vector<16x16xf32>
    %95 = arith.select %92, %90, %94 : vector<16x16xi1>, vector<16x16xf32>
    %96 = arith.addf %95, %4 : vector<16x16xf32>
    %cst_30 = arith.constant dense<0xFF800000> : vector<16xf32>
    %97 = vector.multi_reduction <maximumf>, %96, %cst_30 [1] : vector<16x16xf32> to vector<16xf32>
    %98 = vector.shape_cast %97 : vector<16xf32> to vector<16x1xf32>
    %99 = vector.broadcast %98 : vector<16x1xf32> to vector<16x16xf32>
    %100 = arith.subf %96, %99 : vector<16x16xf32>
    %101 = math.exp %100 : vector<16x16xf32>
    %cst_31 = arith.constant dense<0.000000e+00> : vector<16xf32>
    %102 = vector.multi_reduction <add>, %101, %cst_31 [1] : vector<16x16xf32> to vector<16xf32>
    %103 = vector.shape_cast %102 : vector<16xf32> to vector<16x1xf32>
    %104 = tpu.reciprocal %103 {approx = true} : vector<16x1xf32> -> vector<16x1xf32>
    %105 = vector.broadcast %104 : vector<16x1xf32> to vector<16x16xf32>
    %106 = arith.mulf %101, %105 : vector<16x16xf32>
    %107 = vector.extract_strided_slice %9 {offsets = [0, 96], sizes = [16, 32], strides = [1, 1]} : vector<16x256xf32> to vector<16x32xf32>
    %c48 = arith.constant 48 : index
    %c96 = arith.constant 96 : index
    %108 = vector.load %arg17[%c48, %c96] : memref<128x256xf32, #tpu.memory_space<vmem>>, vector<16x32xf32>
    tpu.vector_store %arg17[%c48, %c96], %107 {strides = array<i32>} : memref<128x256xf32, #tpu.memory_space<vmem>>, vector<16x32xf32>,
    %109 = vector.extract_strided_slice %13 {offsets = [0, 4], sizes = [16, 1], strides = [1, 1]} : vector<16x8xf32> to vector<16x1xf32>
    %110 = vector.extract_strided_slice %14 {offsets = [4, 0], sizes = [1, 16], strides = [1, 1]} : vector<8x16xf32> to vector<1x16xf32>
    %111 = vector.broadcast %109 : vector<16x1xf32> to vector<16x16xf32>
    %112 = vector.broadcast %110 : vector<1x16xf32> to vector<16x16xf32>
    %113 = arith.addf %111, %112 : vector<16x16xf32>
    %cst_32 = arith.constant 0.000000e+00 : f32
    %114 = vector.broadcast %cst_32 : f32 to vector<16x16xf32>
    %115 = arith.cmpf oge, %113, %114 : vector<16x16xf32>
    %cst_33 = arith.constant 2.000000e-01 : f32
    %116 = vector.broadcast %cst_33 : f32 to vector<16x16xf32>
    %117 = arith.mulf %116, %113 : vector<16x16xf32>
    %118 = arith.select %115, %113, %117 : vector<16x16xi1>, vector<16x16xf32>
    %119 = arith.addf %118, %4 : vector<16x16xf32>
    %cst_34 = arith.constant dense<0xFF800000> : vector<16xf32>
    %120 = vector.multi_reduction <maximumf>, %119, %cst_34 [1] : vector<16x16xf32> to vector<16xf32>
    %121 = vector.shape_cast %120 : vector<16xf32> to vector<16x1xf32>
    %122 = vector.broadcast %121 : vector<16x1xf32> to vector<16x16xf32>
    %123 = arith.subf %119, %122 : vector<16x16xf32>
    %124 = math.exp %123 : vector<16x16xf32>
    %cst_35 = arith.constant dense<0.000000e+00> : vector<16xf32>
    %125 = vector.multi_reduction <add>, %124, %cst_35 [1] : vector<16x16xf32> to vector<16xf32>
    %126 = vector.shape_cast %125 : vector<16xf32> to vector<16x1xf32>
    %127 = tpu.reciprocal %126 {approx = true} : vector<16x1xf32> -> vector<16x1xf32>
    %128 = vector.broadcast %127 : vector<16x1xf32> to vector<16x16xf32>
    %129 = arith.mulf %124, %128 : vector<16x16xf32>
    %130 = vector.extract_strided_slice %9 {offsets = [0, 128], sizes = [16, 32], strides = [1, 1]} : vector<16x256xf32> to vector<16x32xf32>
    %c64_36 = arith.constant 64 : index
    %c128 = arith.constant 128 : index
    %131 = vector.load %arg17[%c64_36, %c128] : memref<128x256xf32, #tpu.memory_space<vmem>>, vector<16x32xf32>
    tpu.vector_store %arg17[%c64_36, %c128], %130 {strides = array<i32>} : memref<128x256xf32, #tpu.memory_space<vmem>>, vector<16x32xf32>,
    %132 = vector.extract_strided_slice %13 {offsets = [0, 5], sizes = [16, 1], strides = [1, 1]} : vector<16x8xf32> to vector<16x1xf32>
    %133 = vector.extract_strided_slice %14 {offsets = [5, 0], sizes = [1, 16], strides = [1, 1]} : vector<8x16xf32> to vector<1x16xf32>
    %134 = vector.broadcast %132 : vector<16x1xf32> to vector<16x16xf32>
    %135 = vector.broadcast %133 : vector<1x16xf32> to vector<16x16xf32>
    %136 = arith.addf %134, %135 : vector<16x16xf32>
    %cst_37 = arith.constant 0.000000e+00 : f32
    %137 = vector.broadcast %cst_37 : f32 to vector<16x16xf32>
    %138 = arith.cmpf oge, %136, %137 : vector<16x16xf32>
    %cst_38 = arith.constant 2.000000e-01 : f32
    %139 = vector.broadcast %cst_38 : f32 to vector<16x16xf32>
    %140 = arith.mulf %139, %136 : vector<16x16xf32>
    %141 = arith.select %138, %136, %140 : vector<16x16xi1>, vector<16x16xf32>
    %142 = arith.addf %141, %4 : vector<16x16xf32>
    %cst_39 = arith.constant dense<0xFF800000> : vector<16xf32>
    %143 = vector.multi_reduction <maximumf>, %142, %cst_39 [1] : vector<16x16xf32> to vector<16xf32>
    %144 = vector.shape_cast %143 : vector<16xf32> to vector<16x1xf32>
    %145 = vector.broadcast %144 : vector<16x1xf32> to vector<16x16xf32>
    %146 = arith.subf %142, %145 : vector<16x16xf32>
    %147 = math.exp %146 : vector<16x16xf32>
    %cst_40 = arith.constant dense<0.000000e+00> : vector<16xf32>
    %148 = vector.multi_reduction <add>, %147, %cst_40 [1] : vector<16x16xf32> to vector<16xf32>
    %149 = vector.shape_cast %148 : vector<16xf32> to vector<16x1xf32>
    %150 = tpu.reciprocal %149 {approx = true} : vector<16x1xf32> -> vector<16x1xf32>
    %151 = vector.broadcast %150 : vector<16x1xf32> to vector<16x16xf32>
    %152 = arith.mulf %147, %151 : vector<16x16xf32>
    %153 = vector.extract_strided_slice %9 {offsets = [0, 160], sizes = [16, 32], strides = [1, 1]} : vector<16x256xf32> to vector<16x32xf32>
    %c80 = arith.constant 80 : index
    %c160 = arith.constant 160 : index
    %154 = vector.load %arg17[%c80, %c160] : memref<128x256xf32, #tpu.memory_space<vmem>>, vector<16x32xf32>
    tpu.vector_store %arg17[%c80, %c160], %153 {strides = array<i32>} : memref<128x256xf32, #tpu.memory_space<vmem>>, vector<16x32xf32>,
    %155 = vector.extract_strided_slice %13 {offsets = [0, 6], sizes = [16, 1], strides = [1, 1]} : vector<16x8xf32> to vector<16x1xf32>
    %156 = vector.extract_strided_slice %14 {offsets = [6, 0], sizes = [1, 16], strides = [1, 1]} : vector<8x16xf32> to vector<1x16xf32>
    %157 = vector.broadcast %155 : vector<16x1xf32> to vector<16x16xf32>
    %158 = vector.broadcast %156 : vector<1x16xf32> to vector<16x16xf32>
    %159 = arith.addf %157, %158 : vector<16x16xf32>
    %cst_41 = arith.constant 0.000000e+00 : f32
    %160 = vector.broadcast %cst_41 : f32 to vector<16x16xf32>
    %161 = arith.cmpf oge, %159, %160 : vector<16x16xf32>
    %cst_42 = arith.constant 2.000000e-01 : f32
    %162 = vector.broadcast %cst_42 : f32 to vector<16x16xf32>
    %163 = arith.mulf %162, %159 : vector<16x16xf32>
    %164 = arith.select %161, %159, %163 : vector<16x16xi1>, vector<16x16xf32>
    %165 = arith.addf %164, %4 : vector<16x16xf32>
    %cst_43 = arith.constant dense<0xFF800000> : vector<16xf32>
    %166 = vector.multi_reduction <maximumf>, %165, %cst_43 [1] : vector<16x16xf32> to vector<16xf32>
    %167 = vector.shape_cast %166 : vector<16xf32> to vector<16x1xf32>
    %168 = vector.broadcast %167 : vector<16x1xf32> to vector<16x16xf32>
    %169 = arith.subf %165, %168 : vector<16x16xf32>
    %170 = math.exp %169 : vector<16x16xf32>
    %cst_44 = arith.constant dense<0.000000e+00> : vector<16xf32>
    %171 = vector.multi_reduction <add>, %170, %cst_44 [1] : vector<16x16xf32> to vector<16xf32>
    %172 = vector.shape_cast %171 : vector<16xf32> to vector<16x1xf32>
    %173 = tpu.reciprocal %172 {approx = true} : vector<16x1xf32> -> vector<16x1xf32>
    %174 = vector.broadcast %173 : vector<16x1xf32> to vector<16x16xf32>
    %175 = arith.mulf %170, %174 : vector<16x16xf32>
    %176 = vector.extract_strided_slice %9 {offsets = [0, 192], sizes = [16, 32], strides = [1, 1]} : vector<16x256xf32> to vector<16x32xf32>
    %c96_45 = arith.constant 96 : index
    %c192 = arith.constant 192 : index
    %177 = vector.load %arg17[%c96_45, %c192] : memref<128x256xf32, #tpu.memory_space<vmem>>, vector<16x32xf32>
    tpu.vector_store %arg17[%c96_45, %c192], %176 {strides = array<i32>} : memref<128x256xf32, #tpu.memory_space<vmem>>, vector<16x32xf32>,
    %178 = vector.extract_strided_slice %13 {offsets = [0, 7], sizes = [16, 1], strides = [1, 1]} : vector<16x8xf32> to vector<16x1xf32>
    %179 = vector.extract_strided_slice %14 {offsets = [7, 0], sizes = [1, 16], strides = [1, 1]} : vector<8x16xf32> to vector<1x16xf32>
    %180 = vector.broadcast %178 : vector<16x1xf32> to vector<16x16xf32>
    %181 = vector.broadcast %179 : vector<1x16xf32> to vector<16x16xf32>
    %182 = arith.addf %180, %181 : vector<16x16xf32>
    %cst_46 = arith.constant 0.000000e+00 : f32
    %183 = vector.broadcast %cst_46 : f32 to vector<16x16xf32>
    %184 = arith.cmpf oge, %182, %183 : vector<16x16xf32>
    %cst_47 = arith.constant 2.000000e-01 : f32
    %185 = vector.broadcast %cst_47 : f32 to vector<16x16xf32>
    %186 = arith.mulf %185, %182 : vector<16x16xf32>
    %187 = arith.select %184, %182, %186 : vector<16x16xi1>, vector<16x16xf32>
    %188 = arith.addf %187, %4 : vector<16x16xf32>
    %cst_48 = arith.constant dense<0xFF800000> : vector<16xf32>
    %189 = vector.multi_reduction <maximumf>, %188, %cst_48 [1] : vector<16x16xf32> to vector<16xf32>
    %190 = vector.shape_cast %189 : vector<16xf32> to vector<16x1xf32>
    %191 = vector.broadcast %190 : vector<16x1xf32> to vector<16x16xf32>
    %192 = arith.subf %188, %191 : vector<16x16xf32>
    %193 = math.exp %192 : vector<16x16xf32>
    %cst_49 = arith.constant dense<0.000000e+00> : vector<16xf32>
    %194 = vector.multi_reduction <add>, %193, %cst_49 [1] : vector<16x16xf32> to vector<16xf32>
    %195 = vector.shape_cast %194 : vector<16xf32> to vector<16x1xf32>
    %196 = tpu.reciprocal %195 {approx = true} : vector<16x1xf32> -> vector<16x1xf32>
    %197 = vector.broadcast %196 : vector<16x1xf32> to vector<16x16xf32>
    %198 = arith.mulf %193, %197 : vector<16x16xf32>
    %199 = vector.extract_strided_slice %9 {offsets = [0, 224], sizes = [16, 32], strides = [1, 1]} : vector<16x256xf32> to vector<16x32xf32>
    %c112 = arith.constant 112 : index
    %c224 = arith.constant 224 : index
    %200 = vector.load %arg17[%c112, %c224] : memref<128x256xf32, #tpu.memory_space<vmem>>, vector<16x32xf32>
    tpu.vector_store %arg17[%c112, %c224], %199 {strides = array<i32>} : memref<128x256xf32, #tpu.memory_space<vmem>>, vector<16x32xf32>,
    %201 = tpu.concatenate %37, %60, %83, %106, %129, %152, %175, %198 in 1 : vector<16x16xf32>, vector<16x16xf32>, vector<16x16xf32>, vector<16x16xf32>, vector<16x16xf32>, vector<16x16xf32>, vector<16x16xf32>, vector<16x16xf32> -> vector<16x128xf32>
    %c0_50 = arith.constant 0 : index
    %c0_51 = arith.constant 0 : index
    %202 = vector.load %arg17[%c0_50, %c0_51] : memref<128x256xf32, #tpu.memory_space<vmem>>, vector<128x256xf32>
    %cst_52 = arith.constant dense<0.000000e+00> : vector<16x256xf32>
    %203 = tpu.matmul %201, %202, %cst_52 {dimension_numbers = #tpu.dot_dimension_numbers<[1], [0], [0], [1], [0, 0, 1, 1], [], []>} : vector<16x128xf32>, vector<128x256xf32>, vector<16x256xf32> -> vector<16x256xf32>
    %c0_53 = arith.constant 0 : index
    %c0_54 = arith.constant 0 : index
    %204 = vector.load %arg7[%c0_53, %c0_54] : memref<1x256xf32, #tpu.memory_space<vmem>>, vector<1x256xf32>
    %205 = vector.broadcast %204 : vector<1x256xf32> to vector<16x256xf32>
    %206 = arith.addf %203, %205 : vector<16x256xf32>
    %cst_55 = arith.constant 0.000000e+00 : f32
    %207 = vector.broadcast %cst_55 : f32 to vector<16x256xf32>
    %208 = arith.maximumf %206, %207 : vector<16x256xf32>
    %209 = arith.truncf %208 : vector<16x256xf32> to vector<16x256xbf16>
    %c0_56 = arith.constant 0 : index
    %c0_57 = arith.constant 0 : index
    %210 = vector.load %arg8[%c0_56, %c0_57] : memref<256x512xbf16, #tpu.memory_space<vmem>>, vector<256x512xbf16>
    %cst_58 = arith.constant dense<0.000000e+00> : vector<16x512xf32>
    %211 = tpu.matmul %209, %210, %cst_58 {dimension_numbers = #tpu.dot_dimension_numbers<[1], [0], [0], [1], [0, 0, 1, 1], [], []>} : vector<16x256xbf16>, vector<256x512xbf16>, vector<16x512xf32> -> vector<16x512xf32>
    %cst_59 = arith.constant dense<0.000000e+00> : vector<16x512xf32>
    %212 = tpu.matmul %5, %211, %cst_59 {dimension_numbers = #tpu.dot_dimension_numbers<[1], [0], [0], [1], [0, 0, 1, 1], [], []>} : vector<16x16xf32>, vector<16x512xf32>, vector<16x512xf32> -> vector<16x512xf32>
    %c0_60 = arith.constant 0 : index
    %c0_61 = arith.constant 0 : index
    %213 = vector.load %arg9[%c0_60, %c0_61] : memref<1x512xf32, #tpu.memory_space<vmem>>, vector<1x512xf32>
    %214 = vector.broadcast %213 : vector<1x512xf32> to vector<16x512xf32>
    %215 = arith.addf %212, %214 : vector<16x512xf32>
    %cst_62 = arith.constant 0.000000e+00 : f32
    %216 = vector.broadcast %cst_62 : f32 to vector<16x512xf32>
    %217 = arith.maximumf %215, %216 : vector<16x512xf32>
    %c0_i32_63 = arith.constant 0 : i32
    %218 = tpu.memref_slice %arg20[%c0_i32_63] : memref<2x!tpu.dma_semaphore, #tpu.memory_space<semaphore_mem>> -> memref<1x!tpu.dma_semaphore, #tpu.memory_space<semaphore_mem>>
    %219 = tpu.memref_squeeze %218 : memref<1x!tpu.dma_semaphore, #tpu.memory_space<semaphore_mem>> -> memref<!tpu.dma_semaphore, #tpu.memory_space<semaphore_mem>>
    tpu.wait_dma2 semaphore(%219 : memref<!tpu.dma_semaphore, #tpu.memory_space<semaphore_mem>>) src(%arg10 : memref<512x1024xbf16, #tpu.memory_space<any>>) dst(%arg18 : memref<512x1024xbf16, #tpu.memory_space<vmem>>)
    %220 = arith.truncf %217 : vector<16x512xf32> to vector<16x512xbf16>
    %c0_64 = arith.constant 0 : index
    %c0_65 = arith.constant 0 : index
    %221 = vector.load %arg18[%c0_64, %c0_65] : memref<512x1024xbf16, #tpu.memory_space<vmem>>, vector<512x1024xbf16>
    %cst_66 = arith.constant dense<0.000000e+00> : vector<16x1024xf32>
    %222 = tpu.matmul %220, %221, %cst_66 {dimension_numbers = #tpu.dot_dimension_numbers<[1], [0], [0], [1], [0, 0, 1, 1], [], []>} : vector<16x512xbf16>, vector<512x1024xbf16>, vector<16x1024xf32> -> vector<16x1024xf32>
    %cst_67 = arith.constant dense<0.000000e+00> : vector<16x1024xf32>
    %223 = tpu.matmul %5, %222, %cst_67 {dimension_numbers = #tpu.dot_dimension_numbers<[1], [0], [0], [1], [0, 0, 1, 1], [], []>} : vector<16x16xf32>, vector<16x1024xf32>, vector<16x1024xf32> -> vector<16x1024xf32>
    %c0_68 = arith.constant 0 : index
    %c0_69 = arith.constant 0 : index
    %224 = vector.load %arg11[%c0_68, %c0_69] : memref<1x1024xf32, #tpu.memory_space<vmem>>, vector<1x1024xf32>
    %225 = vector.broadcast %224 : vector<1x1024xf32> to vector<16x1024xf32>
    %226 = arith.addf %223, %225 : vector<16x1024xf32>
    %cst_70 = arith.constant 0.000000e+00 : f32
    %227 = vector.broadcast %cst_70 : f32 to vector<16x1024xf32>
    %228 = arith.maximumf %226, %227 : vector<16x1024xf32>
    %c0_71 = arith.constant 0 : index
    %c0_72 = arith.constant 0 : index
    %229 = vector.load %arg3[%c0_71, %c0_72] : memref<2x16xf32, #tpu.memory_space<vmem>>, vector<2x16xf32>
    %cst_73 = arith.constant dense<0.000000e+00> : vector<2xf32>
    %230 = vector.multi_reduction <add>, %229, %cst_73 [1] : vector<2x16xf32> to vector<2xf32>
    %231 = vector.shape_cast %230 : vector<2xf32> to vector<2x1xf32>
    %cst_74 = arith.constant dense<0.000000e+00> : vector<2x1024xf32>
    %232 = tpu.matmul %229, %228, %cst_74 {dimension_numbers = #tpu.dot_dimension_numbers<[1], [0], [0], [1], [0, 0, 1, 1], [], []>} : vector<2x16xf32>, vector<16x1024xf32>, vector<2x1024xf32> -> vector<2x1024xf32>
    %233 = tpu.reciprocal %231 {approx = true} : vector<2x1xf32> -> vector<2x1xf32>
    %234 = vector.broadcast %233 : vector<2x1xf32> to vector<2x1024xf32>
    %235 = arith.mulf %232, %234 : vector<2x1024xf32>
    %c0_75 = arith.constant 0 : index
    %c0_76 = arith.constant 0 : index
    %236 = vector.load %arg4[%c0_75, %c0_76] : memref<16x2xf32, #tpu.memory_space<vmem>>, vector<16x1xf32>
    %cst_77 = arith.constant 0.000000e+00 : f32
    %237 = vector.broadcast %cst_77 : f32 to vector<16x1xf32>
    %238 = arith.cmpf ogt, %236, %237 : vector<16x1xf32>
    %cst_78 = arith.constant -3.000000e+38 : f32
    %239 = vector.shape_cast %238 : vector<16x1xi1> to vector<16x1xi1>
    %240 = vector.broadcast %239 : vector<16x1xi1> to vector<16x1024xi1>
    %241 = vector.broadcast %cst_78 : f32 to vector<16x1024xf32>
    %242 = arith.select %240, %228, %241 : vector<16x1024xi1>, vector<16x1024xf32>
    %cst_79 = arith.constant dense<0xFF800000> : vector<1024xf32>
    %243 = vector.multi_reduction <maximumf>, %242, %cst_79 [0] : vector<16x1024xf32> to vector<1024xf32>
    %244 = vector.shape_cast %243 : vector<1024xf32> to vector<1x1024xf32>
    %c0_80 = arith.constant 0 : index
    %c1 = arith.constant 1 : index
    %245 = vector.load %arg4[%c0_80, %c1] : memref<16x2xf32, #tpu.memory_space<vmem>>, vector<16x1xf32>
    %cst_81 = arith.constant 0.000000e+00 : f32
    %246 = vector.broadcast %cst_81 : f32 to vector<16x1xf32>
    %247 = arith.cmpf ogt, %245, %246 : vector<16x1xf32>
    %cst_82 = arith.constant -3.000000e+38 : f32
    %248 = vector.shape_cast %247 : vector<16x1xi1> to vector<16x1xi1>
    %249 = vector.broadcast %248 : vector<16x1xi1> to vector<16x1024xi1>
    %250 = vector.broadcast %cst_82 : f32 to vector<16x1024xf32>
    %251 = arith.select %249, %228, %250 : vector<16x1024xi1>, vector<16x1024xf32>
    %cst_83 = arith.constant dense<0xFF800000> : vector<1024xf32>
    %252 = vector.multi_reduction <maximumf>, %251, %cst_83 [0] : vector<16x1024xf32> to vector<1024xf32>
    %253 = vector.shape_cast %252 : vector<1024xf32> to vector<1x1024xf32>
    %254 = tpu.concatenate %244, %253 in 0 : vector<1x1024xf32>, vector<1x1024xf32> -> vector<2x1024xf32>
    %c1_i32_84 = arith.constant 1 : i32
    %255 = tpu.memref_slice %arg20[%c1_i32_84] : memref<2x!tpu.dma_semaphore, #tpu.memory_space<semaphore_mem>> -> memref<1x!tpu.dma_semaphore, #tpu.memory_space<semaphore_mem>>
    %256 = tpu.memref_squeeze %255 : memref<1x!tpu.dma_semaphore, #tpu.memory_space<semaphore_mem>> -> memref<!tpu.dma_semaphore, #tpu.memory_space<semaphore_mem>>
    tpu.wait_dma2 semaphore(%256 : memref<!tpu.dma_semaphore, #tpu.memory_space<semaphore_mem>>) src(%arg12 : memref<2048x256xbf16, #tpu.memory_space<any>>) dst(%arg19 : memref<2048x256xbf16, #tpu.memory_space<vmem>>)
    %257 = arith.truncf %254 : vector<2x1024xf32> to vector<2x1024xbf16>
    %c0_85 = arith.constant 0 : index
    %c0_86 = arith.constant 0 : index
    %258 = vector.load %arg19[%c0_85, %c0_86] : memref<2048x256xbf16, #tpu.memory_space<vmem>>, vector<1024x256xbf16>
    %cst_87 = arith.constant dense<0.000000e+00> : vector<2x256xf32>
    %259 = tpu.matmul %257, %258, %cst_87 {dimension_numbers = #tpu.dot_dimension_numbers<[1], [0], [0], [1], [0, 0, 1, 1], [], []>} : vector<2x1024xbf16>, vector<1024x256xbf16>, vector<2x256xf32> -> vector<2x256xf32>
    %260 = arith.truncf %235 : vector<2x1024xf32> to vector<2x1024xbf16>
    %c1024 = arith.constant 1024 : index
    %c0_88 = arith.constant 0 : index
    %261 = vector.load %arg19[%c1024, %c0_88] : memref<2048x256xbf16, #tpu.memory_space<vmem>>, vector<1024x256xbf16>
    %cst_89 = arith.constant dense<0.000000e+00> : vector<2x256xf32>
    %262 = tpu.matmul %260, %261, %cst_89 {dimension_numbers = #tpu.dot_dimension_numbers<[1], [0], [0], [1], [0, 0, 1, 1], [], []>} : vector<2x1024xbf16>, vector<1024x256xbf16>, vector<2x256xf32> -> vector<2x256xf32>
    %263 = arith.addf %259, %262 : vector<2x256xf32>
    %c0_90 = arith.constant 0 : index
    %c0_91 = arith.constant 0 : index
    %264 = vector.load %arg13[%c0_90, %c0_91] : memref<1x256xf32, #tpu.memory_space<vmem>>, vector<1x256xf32>
    %265 = vector.broadcast %264 : vector<1x256xf32> to vector<2x256xf32>
    %266 = arith.addf %263, %265 : vector<2x256xf32>
    %cst_92 = arith.constant 0.000000e+00 : f32
    %267 = vector.broadcast %cst_92 : f32 to vector<2x256xf32>
    %268 = arith.maximumf %266, %267 : vector<2x256xf32>
    %269 = arith.truncf %268 : vector<2x256xf32> to vector<2x256xbf16>
    %c0_93 = arith.constant 0 : index
    %c0_94 = arith.constant 0 : index
    %270 = vector.load %arg14[%c0_93, %c0_94] : memref<256x2xbf16, #tpu.memory_space<vmem>>, vector<256x2xbf16>
    %cst_95 = arith.constant dense<0.000000e+00> : vector<2x2xf32>
    %271 = tpu.matmul %269, %270, %cst_95 {dimension_numbers = #tpu.dot_dimension_numbers<[1], [0], [0], [1], [0, 0, 1, 1], [], []>} : vector<2x256xbf16>, vector<256x2xbf16>, vector<2x2xf32> -> vector<2x2xf32>
    %c0_96 = arith.constant 0 : index
    %c0_97 = arith.constant 0 : index
    %272 = vector.load %arg15[%c0_96, %c0_97] : memref<1x2xf32, #tpu.memory_space<vmem>>, vector<1x2xf32>
    %273 = vector.broadcast %272 : vector<1x2xf32> to vector<2x2xf32>
    %274 = arith.addf %271, %273 : vector<2x2xf32>
    %c0_98 = arith.constant 0 : index
    %c0_99 = arith.constant 0 : index
    %275 = vector.load %arg16[%c0_98, %c0_99] : memref<2x2xf32, #tpu.memory_space<vmem>>, vector<2x2xf32>
    tpu.vector_store %arg16[%c0_98, %c0_99], %274 {strides = array<i32>} : memref<2x2xf32, #tpu.memory_space<vmem>>, vector<2x2xf32>,
    return
  }
}

</mosaic_0001>

<bundles_post_ra>
// kernel: gcnnet_forward.1
= control target key start
LH: loop header
LB: loop body
LE: loop exit
PB: predicated region body
PF: predicated region fallthrough
CT: control target
= control target key end

     0   :  { %s13134_s0 = inlined_call_operand.vmem [shape: f32[16,32], index: 0, kind: input, shape index: {}]   ;;  %s13135_s1 = inlined_call_operand.vmem [shape: f32[16,16], index: 1, kind: input, shape index: {}]   ;;  %s13136_s2 = inlined_call_operand.vmem [shape: f32[16,16], index: 2, kind: input, shape index: {}]   ;;  %s13137_s3 = inlined_call_operand.vmem [shape: f32[2,16], index: 3, kind: input, shape index: {}]   ;;  %s13138_s4 = inlined_call_operand.vmem [shape: f32[16,2], index: 4, kind: input, shape index: {}]   ;;  %s13139_s5 = inlined_call_operand.vmem [shape: bf16[32,256], index: 5, kind: input, shape index: {}]   ;;  %s13140_s6 = inlined_call_operand.vmem [shape: f32[256,16], index: 6, kind: input, shape index: {}]   ;;  %s13141_s7 = inlined_call_operand.vmem [shape: f32[1,256], index: 7, kind: input, shape index: {}]   ;;  %s13142_s8 = inlined_call_operand.vmem [shape: bf16[256,512], index: 8, kind: input, shape index: {}]   ;;  %s13143_s9 = inlined_call_operand.vmem [shape: f32[1,512], index: 9, kind: input, shape index: {}]   ;;  %s13144_s10 = inlined_call_operand.vmem [shape: bf16[512,1024], index: 10, kind: input, shape index: {}]   ;;  %s13145_s11 = inlined_call_operand.vmem [shape: f32[1,1024], index: 11, kind: input, shape index: {}]   ;;  %s13146_s12 = inlined_call_operand.vmem [shape: bf16[2048,256], index: 12, kind: input, shape index: {}]   ;;  %s13147_s13 = inlined_call_operand.vmem [shape: f32[1,256], index: 13, kind: input, shape index: {}]   ;;  %s13148_s14 = inlined_call_operand.vmem [shape: bf16[256,2], index: 14, kind: input, shape index: {}]   ;;  %s13149_s15 = inlined_call_operand.vmem [shape: f32[1,2], index: 15, kind: input, shape index: {}]   ;;  %s13150_s16 = inlined_call_operand.hbm [shape: f32[2,2], index: 16, kind: output, shape index: {}]  }
   0x1   :  { %13650 = sst [smem:[#allocation505_spill]] %s13134_s0 }
   0x2   :  { %21 = vsyncpa [#allocation7], 0  ;;  %v8548_v0 = vld [vmem:[%s13144_s10] sm:$0xff]  ;;  %v8553_v1 = vld [vmem:[%s13144_s10 + $0x8] sm:$0xff] }
   0x3   :  { %13651 = vst [vmem:[#allocation13_spill] sm:$0xff] %v8548_v0  ;;  %13652 = vst [vmem:[#allocation14_spill] sm:$0xff] %v8553_v1  ;;  %v8558_v2 = vld [vmem:[%s13144_s10 + $0x10] sm:$0xff]  ;;  %v8563_v3 = vld [vmem:[%s13144_s10 + $0x18] sm:$0xff] }
   0x4   :  { %13653 = vst [vmem:[#allocation15_spill] sm:$0xff] %v8558_v2  ;;  %13654 = vst [vmem:[#allocation16_spill] sm:$0xff] %v8563_v3  ;;  %v8568_v4 = vld [vmem:[%s13144_s10 + $0x20] sm:$0xff]  ;;  %v8573_v5 = vld [vmem:[%s13144_s10 + $0x28] sm:$0xff] }
   0x5   :  { %13655 = vst [vmem:[#allocation17_spill] sm:$0xff] %v8568_v4  ;;  %13656 = vst [vmem:[#allocation18_spill] sm:$0xff] %v8573_v5  ;;  %v8578_v6 = vld [vmem:[%s13144_s10 + $0x30] sm:$0xff]  ;;  %v8583_v7 = vld [vmem:[%s13144_s10 + $0x38] sm:$0xff] }
   0x6   :  { %13657 = vst [vmem:[#allocation19_spill] sm:$0xff] %v8578_v6  ;;  %13658 = vst [vmem:[#allocation20_spill] sm:$0xff] %v8583_v7  ;;  %v8588_v8 = vld [vmem:[%s13144_s10 + $0x40] sm:$0xff]  ;;  %v8593_v9 = vld [vmem:[%s13144_s10 + $0x48] sm:$0xff] }
   0x7   :  { %13659 = vst [vmem:[#allocation21_spill] sm:$0xff] %v8588_v8  ;;  %13660 = vst [vmem:[#allocation22_spill] sm:$0xff] %v8593_v9  ;;  %v8598_v10 = vld [vmem:[%s13144_s10 + $0x50] sm:$0xff]  ;;  %v8603_v11 = vld [vmem:[%s13144_s10 + $0x58] sm:$0xff] }
   0x8   :  { %13661 = vst [vmem:[#allocation23_spill] sm:$0xff] %v8598_v10  ;;  %13662 = vst [vmem:[#allocation24_spill] sm:$0xff] %v8603_v11  ;;  %v8608_v12 = vld [vmem:[%s13144_s10 + $0x60] sm:$0xff]  ;;  %v8613_v13 = vld [vmem:[%s13144_s10 + $0x68] sm:$0xff] }
   0x9   :  { %13663 = vst [vmem:[#allocation25_spill] sm:$0xff] %v8608_v12  ;;  %13664 = vst [vmem:[#allocation26_spill] sm:$0xff] %v8613_v13  ;;  %v8618_v14 = vld [vmem:[%s13144_s10 + $0x70] sm:$0xff]  ;;  %v8623_v15 = vld [vmem:[%s13144_s10 + $0x78] sm:$0xff] }
   0xa   :  { %13665 = vst [vmem:[#allocation27_spill] sm:$0xff] %v8618_v14  ;;  %13666 = vst [vmem:[#allocation28_spill] sm:$0xff] %v8623_v15  ;;  %v8628_v16 = vld [vmem:[%s13144_s10 + $0x80] sm:$0xff]  ;;  %v8633_v17 = vld [vmem:[%s13144_s10 + $0x88] sm:$0xff] }
   0xb   :  { %13667 = vst [vmem:[#allocation29_spill] sm:$0xff] %v8628_v16  ;;  %13668 = vst [vmem:[#allocation30_spill] sm:$0xff] %v8633_v17  ;;  %v8638_v18 = vld [vmem:[%s13144_s10 + $0x90] sm:$0xff]  ;;  %v8643_v19 = vld [vmem:[%s13144_s10 + $0x98] sm:$0xff] }
   0xc   :  { %13669 = vst [vmem:[#allocation31_spill] sm:$0xff] %v8638_v18  ;;  %13670 = vst [vmem:[#allocation32_spill] sm:$0xff] %v8643_v19  ;;  %v8648_v20 = vld [vmem:[%s13144_s10 + $0xa0] sm:$0xff]  ;;  %v8653_v21 = vld [vmem:[%s13144_s10 + $0xa8] sm:$0xff] }
   0xd   :  { %13671 = vst [vmem:[#allocation33_spill] sm:$0xff] %v8648_v20  ;;  %13672 = vst [vmem:[#allocation34_spill] sm:$0xff] %v8653_v21  ;;  %v8658_v22 = vld [vmem:[%s13144_s10 + $0xb0] sm:$0xff]  ;;  %v8663_v23 = vld [vmem:[%s13144_s10 + $0xb8] sm:$0xff] }
   0xe   :  { %13673 = vst [vmem:[#allocation35_spill] sm:$0xff] %v8658_v22  ;;  %13674 = vst [vmem:[#allocation36_spill] sm:$0xff] %v8663_v23  ;;  %v8668_v24 = vld [vmem:[%s13144_s10 + $0xc0] sm:$0xff]  ;;  %v8673_v25 = vld [vmem:[%s13144_s10 + $0xc8] sm:$0xff] }
   0xf   :  { %13675 = vst [vmem:[#allocation37_spill] sm:$0xff] %v8673_v25  ;;  %v8678_v26 = vld [vmem:[%s13144_s10 + $0xd0] sm:$0xff]  ;;  %v8683_v27 = vld [vmem:[%s13144_s10 + $0xd8] sm:$0xff]  ;;  %v8688_v28 = vld [vmem:[%s13144_s10 + $0xe0] sm:$0xff] }
  0x10   :  { %13676 = vst [vmem:[#allocation38_spill] sm:$0xff] %v8678_v26  ;;  %13677 = vst [vmem:[#allocation39_spill] sm:$0xff] %v8683_v27  ;;  %v8693_v29 = vld [vmem:[%s13144_s10 + $0xe8] sm:$0xff]  ;;  %v8698_v30 = vld [vmem:[%s13144_s10 + $0xf0] sm:$0xff] }
  0x11   :  { %13678 = vst [vmem:[#allocation40_spill] sm:$0xff] %v8693_v29  ;;  %13679 = vst [vmem:[#allocation41_spill] sm:$0xff] %v8698_v30  ;;  %v8703_v31 = vld [vmem:[%s13144_s10 + $0xf8] sm:$0xff]  ;;  %v8708_v32 = vld [vmem:[%s13144_s10 + $0x100] sm:$0xff] }
  0x12   :  { %13680 = vst [vmem:[#allocation42_spill] sm:$0xff] %v8703_v31  ;;  %v8713_v33 = vld [vmem:[%s13144_s10 + $0x108] sm:$0xff]  ;;  %v8718_v34 = vld [vmem:[%s13144_s10 + $0x110] sm:$0xff]  ;;  %v8723_v35 = vld [vmem:[%s13144_s10 + $0x118] sm:$0xff] }
  0x13   :  { %13681 = vst [vmem:[#allocation43_spill] sm:$0xff] %v8713_v33  ;;  %13682 = vst [vmem:[#allocation44_spill] sm:$0xff] %v8718_v34  ;;  %v8728_v36 = vld [vmem:[%s13144_s10 + $0x120] sm:$0xff]  ;;  %v8733_v37 = vld [vmem:[%s13144_s10 + $0x128] sm:$0xff] }
  0x14   :  { %13683 = vst [vmem:[#allocation45_spill] sm:$0xff] %v8723_v35  ;;  %13684 = vst [vmem:[#allocation46_spill] sm:$0xff] %v8733_v37  ;;  %v8738_v38 = vld [vmem:[%s13144_s10 + $0x130] sm:$0xff]  ;;  %v8743_v39 = vld [vmem:[%s13144_s10 + $0x138] sm:$0xff] }
  0x15   :  { %13685 = vst [vmem:[#allocation47_spill] sm:$0xff] %v8738_v38  ;;  %13686 = vst [vmem:[#allocation48_spill] sm:$0xff] %v8743_v39  ;;  %v8748_v40 = vld [vmem:[%s13144_s10 + $0x140] sm:$0xff]  ;;  %v8753_v41 = vld [vmem:[%s13144_s10 + $0x148] sm:$0xff] }
  0x16   :  { %13687 = vst [vmem:[#allocation49_spill] sm:$0xff] %v8753_v41  ;;  %v8758_v42 = vld [vmem:[%s13144_s10 + $0x150] sm:$0xff]  ;;  %v8763_v43 = vld [vmem:[%s13144_s10 + $0x158] sm:$0xff]  ;;  %v8768_v44 = vld [vmem:[%s13144_s10 + $0x160] sm:$0xff] }
  0x17   :  { %13688 = vst [vmem:[#allocation50_spill] sm:$0xff] %v8758_v42  ;;  %13689 = vst [vmem:[#allocation51_spill] sm:$0xff] %v8763_v43  ;;  %v8773_v45 = vld [vmem:[%s13144_s10 + $0x168] sm:$0xff]  ;;  %v8778_v46 = vld [vmem:[%s13144_s10 + $0x170] sm:$0xff] }
  0x18   :  { %13690 = vst [vmem:[#allocation52_spill] sm:$0xff] %v8773_v45  ;;  %13691 = vst [vmem:[#allocation53_spill] sm:$0xff] %v8778_v46  ;;  %v8783_v47 = vld [vmem:[%s13144_s10 + $0x178] sm:$0xff]  ;;  %v8788_v48 = vld [vmem:[%s13144_s10 + $0x180] sm:$0xff] }
  0x19   :  { %13692 = vst [vmem:[#allocation54_spill] sm:$0xff] %v8783_v47  ;;  %v8793_v49 = vld [vmem:[%s13144_s10 + $0x188] sm:$0xff]  ;;  %v8798_v50 = vld [vmem:[%s13144_s10 + $0x190] sm:$0xff]  ;;  %v8803_v51 = vld [vmem:[%s13144_s10 + $0x198] sm:$0xff] }
  0x1a   :  { %13693 = vst [vmem:[#allocation55_spill] sm:$0xff] %v8793_v49  ;;  %13694 = vst [vmem:[#allocation56_spill] sm:$0xff] %v8798_v50  ;;  %v8808_v52 = vld [vmem:[%s13144_s10 + $0x1a0] sm:$0xff]  ;;  %v8813_v53 = vld [vmem:[%s13144_s10 + $0x1a8] sm:$0xff] }
  0x1b   :  { %13695 = vst [vmem:[#allocation57_spill] sm:$0xff] %v8803_v51  ;;  %13696 = vst [vmem:[#allocation58_spill] sm:$0xff] %v8813_v53  ;;  %v8818_v54 = vld [vmem:[%s13144_s10 + $0x1b0] sm:$0xff]  ;;  %v8823_v55 = vld [vmem:[%s13144_s10 + $0x1b8] sm:$0xff] }
  0x1c   :  { %13697 = vst [vmem:[#allocation59_spill] sm:$0xff] %v8818_v54  ;;  %13698 = vst [vmem:[#allocation60_spill] sm:$0xff] %v8823_v55  ;;  %v8828_v56 = vld [vmem:[%s13144_s10 + $0x1c0] sm:$0xff]  ;;  %v8833_v57 = vld [vmem:[%s13144_s10 + $0x1c8] sm:$0xff] }
  0x1d   :  { %13699 = vst [vmem:[#allocation61_spill] sm:$0xff] %v8833_v57  ;;  %v8838_v58 = vld [vmem:[%s13144_s10 + $0x1d0] sm:$0xff]  ;;  %v8843_v59 = vld [vmem:[%s13144_s10 + $0x1d8] sm:$0xff]  ;;  %v8848_v60 = vld [vmem:[%s13144_s10 + $0x1e0] sm:$0xff] }
  0x1e   :  { %13700 = vst [vmem:[#allocation62_spill] sm:$0xff] %v8838_v58  ;;  %13701 = vst [vmem:[#allocation63_spill] sm:$0xff] %v8843_v59  ;;  %v8853_v61 = vld [vmem:[%s13144_s10 + $0x1e8] sm:$0xff]  ;;  %v8858_v62 = vld [vmem:[%s13144_s10 + $0x1f0] sm:$0xff] }
  0x1f   :  { %13702 = vst [vmem:[#allocation64_spill] sm:$0xff] %v8853_v61  ;;  %13703 = vst [vmem:[#allocation65_spill] sm:$0xff] %v8858_v62  ;;  %v8863_v63 = vld [vmem:[%s13144_s10 + $0x1f8] sm:$0xff]  ;;  %v8868_v3 = vld [vmem:[%s13144_s10 + $0x200] sm:$0xff] }
  0x20   :  { %13704 = vst [vmem:[#allocation66_spill] sm:$0xff] %v8863_v63  ;;  %13705 = vst [vmem:[#allocation67_spill] sm:$0xff] %v8868_v3  ;;  %v8873_v7 = vld [vmem:[%s13144_s10 + $0x208] sm:$0xff]  ;;  %v8878_v11 = vld [vmem:[%s13144_s10 + $0x210] sm:$0xff] }
  0x21   :  { %13706 = vst [vmem:[#allocation68_spill] sm:$0xff] %v8873_v7  ;;  %13707 = vst [vmem:[#allocation69_spill] sm:$0xff] %v8878_v11  ;;  %v8883_v15 = vld [vmem:[%s13144_s10 + $0x218] sm:$0xff]  ;;  %v8888_v19 = vld [vmem:[%s13144_s10 + $0x220] sm:$0xff] }
  0x22   :  { %13708 = vst [vmem:[#allocation70_spill] sm:$0xff] %v8883_v15  ;;  %13709 = vst [vmem:[#allocation71_spill] sm:$0xff] %v8888_v19  ;;  %v8893_v23 = vld [vmem:[%s13144_s10 + $0x228] sm:$0xff]  ;;  %v8898_v27 = vld [vmem:[%s13144_s10 + $0x230] sm:$0xff] }
  0x23   :  { %13710 = vst [vmem:[#allocation72_spill] sm:$0xff] %v8893_v23  ;;  %13711 = vst [vmem:[#allocation73_spill] sm:$0xff] %v8898_v27  ;;  %v8903_v31 = vld [vmem:[%s13144_s10 + $0x238] sm:$0xff]  ;;  %v8908_v15 = vld [vmem:[%s13144_s10 + $0x240] sm:$0xff] }
  0x24   :  { %13712 = vst [vmem:[#allocation74_spill] sm:$0xff] %v8903_v31  ;;  %13713 = vst [vmem:[#allocation75_spill] sm:$0xff] %v8908_v15  ;;  %v8913_v35 = vld [vmem:[%s13144_s10 + $0x248] sm:$0xff]  ;;  %v8918_v39 = vld [vmem:[%s13144_s10 + $0x250] sm:$0xff] }
  0x25   :  { %13714 = vst [vmem:[#allocation76_spill] sm:$0xff] %v8913_v35  ;;  %13715 = vst [vmem:[#allocation77_spill] sm:$0xff] %v8918_v39  ;;  %v8923_v43 = vld [vmem:[%s13144_s10 + $0x258] sm:$0xff]  ;;  %v8928_v31 = vld [vmem:[%s13144_s10 + $0x260] sm:$0xff] }
  0x26   :  { %13716 = vst [vmem:[#allocation78_spill] sm:$0xff] %v8923_v43  ;;  %13717 = vst [vmem:[#allocation79_spill] sm:$0xff] %v8928_v31  ;;  %v8933_v47 = vld [vmem:[%s13144_s10 + $0x268] sm:$0xff]  ;;  %v8938_v51 = vld [vmem:[%s13144_s10 + $0x270] sm:$0xff] }
  0x27   :  { %13718 = vst [vmem:[#allocation80_spill] sm:$0xff] %v8933_v47  ;;  %13719 = vst [vmem:[#allocation81_spill] sm:$0xff] %v8938_v51  ;;  %v8943_v55 = vld [vmem:[%s13144_s10 + $0x278] sm:$0xff]  ;;  %v8948_v43 = vld [vmem:[%s13144_s10 + $0x280] sm:$0xff] }
  0x28   :  { %13720 = vst [vmem:[#allocation82_spill] sm:$0xff] %v8943_v55  ;;  %13721 = vst [vmem:[#allocation83_spill] sm:$0xff] %v8948_v43  ;;  %v8953_v59 = vld [vmem:[%s13144_s10 + $0x288] sm:$0xff]  ;;  %v8958_v63 = vld [vmem:[%s13144_s10 + $0x290] sm:$0xff] }
  0x29   :  { %13722 = vst [vmem:[#allocation84_spill] sm:$0xff] %v8953_v59  ;;  %13723 = vst [vmem:[#allocation85_spill] sm:$0xff] %v8958_v63  ;;  %v8963_v11 = vld [vmem:[%s13144_s10 + $0x298] sm:$0xff]  ;;  %v8968_v55 = vld [vmem:[%s13144_s10 + $0x2a0] sm:$0xff] }
  0x2a   :  { %13724 = vst [vmem:[#allocation86_spill] sm:$0xff] %v8963_v11  ;;  %13725 = vst [vmem:[#allocation87_spill] sm:$0xff] %v8968_v55  ;;  %v8973_v27 = vld [vmem:[%s13144_s10 + $0x2a8] sm:$0xff]  ;;  %v8978_v39 = vld [vmem:[%s13144_s10 + $0x2b0] sm:$0xff] }
  0x2b   :  { %13726 = vst [vmem:[#allocation88_spill] sm:$0xff] %v8973_v27  ;;  %13727 = vst [vmem:[#allocation89_spill] sm:$0xff] %v8978_v39  ;;  %v8983_v51 = vld [vmem:[%s13144_s10 + $0x2b8] sm:$0xff]  ;;  %v8988_v11 = vld [vmem:[%s13144_s10 + $0x2c0] sm:$0xff] }
  0x2c   :  { %13728 = vst [vmem:[#allocation90_spill] sm:$0xff] %v8983_v51  ;;  %13729 = vst [vmem:[#allocation91_spill] sm:$0xff] %v8988_v11  ;;  %v8993_v63 = vld [vmem:[%s13144_s10 + $0x2c8] sm:$0xff]  ;;  %v8998_v2 = vld [vmem:[%s13144_s10 + $0x2d0] sm:$0xff] }
  0x2d   :  { %13730 = vst [vmem:[#allocation92_spill] sm:$0xff] %v8993_v63  ;;  %13731 = vst [vmem:[#allocation93_spill] sm:$0xff] %v8998_v2  ;;  %v9003_v39 = vld [vmem:[%s13144_s10 + $0x2d8] sm:$0xff]  ;;  %v9008_v51 = vld [vmem:[%s13144_s10 + $0x2e0] sm:$0xff] }
  0x2e   :  { %13732 = vst [vmem:[#allocation94_spill] sm:$0xff] %v9003_v39  ;;  %13733 = vst [vmem:[#allocation95_spill] sm:$0xff] %v9008_v51  ;;  %v9013_v6 = vld [vmem:[%s13144_s10 + $0x2e8] sm:$0xff]  ;;  %v9018_v10 = vld [vmem:[%s13144_s10 + $0x2f0] sm:$0xff] }
  0x2f   :  { %13734 = vst [vmem:[#allocation96_spill] sm:$0xff] %v9013_v6  ;;  %13735 = vst [vmem:[#allocation97_spill] sm:$0xff] %v9018_v10  ;;  %v9023_v2 = vld [vmem:[%s13144_s10 + $0x2f8] sm:$0xff]  ;;  %v9028_v39 = vld [vmem:[%s13144_s10 + $0x300] sm:$0xff] }
  0x30   :  { %13736 = vst [vmem:[#allocation98_spill] sm:$0xff] %v9023_v2  ;;  %13737 = vst [vmem:[#allocation99_spill] sm:$0xff] %v9028_v39  ;;  %v9033_v14 = vld [vmem:[%s13144_s10 + $0x308] sm:$0xff]  ;;  %v9038_v18 = vld [vmem:[%s13144_s10 + $0x310] sm:$0xff] }
  0x31   :  { %13738 = vst [vmem:[#allocation100_spill] sm:$0xff] %v9033_v14  ;;  %13739 = vst [vmem:[#allocation101_spill] sm:$0xff] %v9038_v18  ;;  %v9043_v10 = vld [vmem:[%s13144_s10 + $0x318] sm:$0xff]  ;;  %v9048_v2 = vld [vmem:[%s13144_s10 + $0x320] sm:$0xff] }
  0x32   :  { %13740 = vst [vmem:[#allocation102_spill] sm:$0xff] %v9043_v10  ;;  %13741 = vst [vmem:[#allocation103_spill] sm:$0xff] %v9048_v2  ;;  %v9053_v22 = vld [vmem:[%s13144_s10 + $0x328] sm:$0xff]  ;;  %v9058_v26 = vld [vmem:[%s13144_s10 + $0x330] sm:$0xff] }
  0x33   :  { %13742 = vst [vmem:[#allocation104_spill] sm:$0xff] %v9053_v22  ;;  %13743 = vst [vmem:[#allocation105_spill] sm:$0xff] %v9058_v26  ;;  %v9063_v18 = vld [vmem:[%s13144_s10 + $0x338] sm:$0xff]  ;;  %v9068_v10 = vld [vmem:[%s13144_s10 + $0x340] sm:$0xff] }
  0x34   :  { %13744 = vst [vmem:[#allocation106_spill] sm:$0xff] %v9063_v18  ;;  %13745 = vst [vmem:[#allocation107_spill] sm:$0xff] %v9068_v10  ;;  %v9073_v30 = vld [vmem:[%s13144_s10 + $0x348] sm:$0xff]  ;;  %v9078_v34 = vld [vmem:[%s13144_s10 + $0x350] sm:$0xff] }
  0x35   :  { %13746 = vst [vmem:[#allocation108_spill] sm:$0xff] %v9073_v30  ;;  %13747 = vst [vmem:[#allocation109_spill] sm:$0xff] %v9078_v34  ;;  %v9083_v26 = vld [vmem:[%s13144_s10 + $0x358] sm:$0xff]  ;;  %v9088_v18 = vld [vmem:[%s13144_s10 + $0x360] sm:$0xff] }
  0x36   :  { %13748 = vst [vmem:[#allocation110_spill] sm:$0xff] %v9083_v26  ;;  %13749 = vst [vmem:[#allocation111_spill] sm:$0xff] %v9088_v18  ;;  %v9093_v38 = vld [vmem:[%s13144_s10 + $0x368] sm:$0xff]  ;;  %v9098_v42 = vld [vmem:[%s13144_s10 + $0x370] sm:$0xff] }
  0x37   :  { %13750 = vst [vmem:[#allocation112_spill] sm:$0xff] %v9093_v38  ;;  %13751 = vst [vmem:[#allocation113_spill] sm:$0xff] %v9098_v42  ;;  %v9103_v34 = vld [vmem:[%s13144_s10 + $0x378] sm:$0xff]  ;;  %v9108_v26 = vld [vmem:[%s13144_s10 + $0x380] sm:$0xff] }
  0x38   :  { %13752 = vst [vmem:[#allocation114_spill] sm:$0xff] %v9103_v34  ;;  %13753 = vst [vmem:[#allocation115_spill] sm:$0xff] %v9108_v26  ;;  %v9113_v46 = vld [vmem:[%s13144_s10 + $0x388] sm:$0xff]  ;;  %v9118_v50 = vld [vmem:[%s13144_s10 + $0x390] sm:$0xff] }
  0x39   :  { %13754 = vst [vmem:[#allocation116_spill] sm:$0xff] %v9113_v46  ;;  %13755 = vst [vmem:[#allocation117_spill] sm:$0xff] %v9118_v50  ;;  %v9123_v42 = vld [vmem:[%s13144_s10 + $0x398] sm:$0xff]  ;;  %v9128_v34 = vld [vmem:[%s13144_s10 + $0x3a0] sm:$0xff] }
  0x3a   :  { %13756 = vst [vmem:[#allocation118_spill] sm:$0xff] %v9123_v42  ;;  %13757 = vst [vmem:[#allocation119_spill] sm:$0xff] %v9128_v34  ;;  %v9133_v54 = vld [vmem:[%s13144_s10 + $0x3a8] sm:$0xff]  ;;  %v9138_v58 = vld [vmem:[%s13144_s10 + $0x3b0] sm:$0xff] }
  0x3b   :  { %13758 = vst [vmem:[#allocation120_spill] sm:$0xff] %v9133_v54  ;;  %13759 = vst [vmem:[#allocation121_spill] sm:$0xff] %v9138_v58  ;;  %v9143_v50 = vld [vmem:[%s13144_s10 + $0x3b8] sm:$0xff]  ;;  %v9148_v42 = vld [vmem:[%s13144_s10 + $0x3c0] sm:$0xff] }
  0x3c   :  { %13760 = vst [vmem:[#allocation122_spill] sm:$0xff] %v9143_v50  ;;  %13761 = vst [vmem:[#allocation123_spill] sm:$0xff] %v9148_v42  ;;  %v9153_v62 = vld [vmem:[%s13144_s10 + $0x3c8] sm:$0xff]  ;;  %v9158_v7 = vld [vmem:[%s13144_s10 + $0x3d0] sm:$0xff] }
  0x3d   :  { %13762 = vst [vmem:[#allocation124_spill] sm:$0xff] %v9153_v62  ;;  %13763 = vst [vmem:[#allocation125_spill] sm:$0xff] %v9158_v7  ;;  %v9163_v58 = vld [vmem:[%s13144_s10 + $0x3d8] sm:$0xff]  ;;  %v9168_v50 = vld [vmem:[%s13144_s10 + $0x3e0] sm:$0xff] }
  0x3e   :  { %13764 = vst [vmem:[#allocation126_spill] sm:$0xff] %v9163_v58  ;;  %13765 = vst [vmem:[#allocation127_spill] sm:$0xff] %v9168_v50  ;;  %v9173_v23 = vld [vmem:[%s13144_s10 + $0x3e8] sm:$0xff]  ;;  %v9178_v35 = vld [vmem:[%s13144_s10 + $0x3f0] sm:$0xff] }
  0x3f   :  { %13766 = vst [vmem:[#allocation128_spill] sm:$0xff] %v9173_v23  ;;  %13767 = vst [vmem:[#allocation129_spill] sm:$0xff] %v9178_v35  ;;  %v9183_v7 = vld [vmem:[%s13144_s10 + $0x3f8] sm:$0xff]  ;;  %v9188_v58 = vld [vmem:[%s13144_s10 + $0x400] sm:$0xff] }
  0x40   :  { %13768 = vst [vmem:[#allocation130_spill] sm:$0xff] %v9183_v7  ;;  %13769 = vst [vmem:[#allocation131_spill] sm:$0xff] %v9188_v58  ;;  %v9193_v47 = vld [vmem:[%s13144_s10 + $0x408] sm:$0xff]  ;;  %v9198_v59 = vld [vmem:[%s13144_s10 + $0x410] sm:$0xff] }
  0x41   :  { %13770 = vst [vmem:[#allocation132_spill] sm:$0xff] %v9193_v47  ;;  %13771 = vst [vmem:[#allocation133_spill] sm:$0xff] %v9198_v59  ;;  %v9203_v35 = vld [vmem:[%s13144_s10 + $0x418] sm:$0xff]  ;;  %v9208_v7 = vld [vmem:[%s13144_s10 + $0x420] sm:$0xff] }
  0x42   :  { %13772 = vst [vmem:[#allocation134_spill] sm:$0xff] %v9203_v35  ;;  %13773 = vst [vmem:[#allocation135_spill] sm:$0xff] %v9208_v7  ;;  %v9213_v27 = vld [vmem:[%s13144_s10 + $0x428] sm:$0xff]  ;;  %v9218_v63 = vld [vmem:[%s13144_s10 + $0x430] sm:$0xff] }
  0x43   :  { %13774 = vst [vmem:[#allocation136_spill] sm:$0xff] %v9213_v27  ;;  %13775 = vst [vmem:[#allocation137_spill] sm:$0xff] %v9218_v63  ;;  %v9223_v59 = vld [vmem:[%s13144_s10 + $0x438] sm:$0xff]  ;;  %v9228_v35 = vld [vmem:[%s13144_s10 + $0x440] sm:$0xff] }
  0x44   :  { %13776 = vst [vmem:[#allocation138_spill] sm:$0xff] %v9223_v59  ;;  %13777 = vst [vmem:[#allocation139_spill] sm:$0xff] %v9228_v35  ;;  %v9233_v6 = vld [vmem:[%s13144_s10 + $0x448] sm:$0xff]  ;;  %v9238_v14 = vld [vmem:[%s13144_s10 + $0x450] sm:$0xff] }
  0x45   :  { %13778 = vst [vmem:[#allocation140_spill] sm:$0xff] %v9233_v6  ;;  %13779 = vst [vmem:[#allocation141_spill] sm:$0xff] %v9238_v14  ;;  %v9243_v63 = vld [vmem:[%s13144_s10 + $0x458] sm:$0xff]  ;;  %v9248_v59 = vld [vmem:[%s13144_s10 + $0x460] sm:$0xff] }
  0x46   :  { %13780 = vst [vmem:[#allocation142_spill] sm:$0xff] %v9243_v63  ;;  %13781 = vst [vmem:[#allocation143_spill] sm:$0xff] %v9248_v59  ;;  %v9253_v22 = vld [vmem:[%s13144_s10 + $0x468] sm:$0xff]  ;;  %v9258_v30 = vld [vmem:[%s13144_s10 + $0x470] sm:$0xff] }
  0x47   :  { %13782 = vst [vmem:[#allocation144_spill] sm:$0xff] %v9253_v22  ;;  %13783 = vst [vmem:[#allocation145_spill] sm:$0xff] %v9258_v30  ;;  %v9263_v14 = vld [vmem:[%s13144_s10 + $0x478] sm:$0xff]  ;;  %v9268_v63 = vld [vmem:[%s13144_s10 + $0x480] sm:$0xff] }
  0x48   :  { %13784 = vst [vmem:[#allocation146_spill] sm:$0xff] %v9263_v14  ;;  %13785 = vst [vmem:[#allocation147_spill] sm:$0xff] %v9268_v63  ;;  %v9273_v38 = vld [vmem:[%s13144_s10 + $0x488] sm:$0xff]  ;;  %v9278_v46 = vld [vmem:[%s13144_s10 + $0x490] sm:$0xff] }
  0x49   :  { %13786 = vst [vmem:[#allocation148_spill] sm:$0xff] %v9273_v38  ;;  %13787 = vst [vmem:[#allocation149_spill] sm:$0xff] %v9278_v46  ;;  %v9283_v30 = vld [vmem:[%s13144_s10 + $0x498] sm:$0xff]  ;;  %v9288_v14 = vld [vmem:[%s13144_s10 + $0x4a0] sm:$0xff] }
  0x4a   :  { %13788 = vst [vmem:[#allocation150_spill] sm:$0xff] %v9283_v30  ;;  %13789 = vst [vmem:[#allocation151_spill] sm:$0xff] %v9288_v14  ;;  %v9293_v54 = vld [vmem:[%s13144_s10 + $0x4a8] sm:$0xff]  ;;  %v9298_v62 = vld [vmem:[%s13144_s10 + $0x4b0] sm:$0xff] }
  0x4b   :  { %13790 = vst [vmem:[#allocation152_spill] sm:$0xff] %v9293_v54  ;;  %13791 = vst [vmem:[#allocation153_spill] sm:$0xff] %v9298_v62  ;;  %v9303_v46 = vld [vmem:[%s13144_s10 + $0x4b8] sm:$0xff]  ;;  %v9308_v30 = vld [vmem:[%s13144_s10 + $0x4c0] sm:$0xff] }
  0x4c   :  { %13792 = vst [vmem:[#allocation154_spill] sm:$0xff] %v9303_v46  ;;  %v9313_v23 = vld [vmem:[%s13144_s10 + $0x4c8] sm:$0xff]  ;;  %v9318_v47 = vld [vmem:[%s13144_s10 + $0x4d0] sm:$0xff]  ;;  %v9323_v62 = vld [vmem:[%s13144_s10 + $0x4d8] sm:$0xff] }
  0x4d   :  { %13793 = vst [vmem:[#allocation155_spill] sm:$0xff] %v9313_v23  ;;  %13794 = vst [vmem:[#allocation156_spill] sm:$0xff] %v9318_v47  ;;  %v9328_v46 = vld [vmem:[%s13144_s10 + $0x4e0] sm:$0xff]  ;;  %v9333_v27 = vld [vmem:[%s13144_s10 + $0x4e8] sm:$0xff] }
  0x4e   :  { %13795 = vst [vmem:[#allocation157_spill] sm:$0xff] %v9323_v62  ;;  %13796 = vst [vmem:[#allocation158_spill] sm:$0xff] %v9333_v27  ;;  %v9338_v1 = vld [vmem:[%s13144_s10 + $0x4f0] sm:$0xff]  ;;  %v9343_v47 = vld [vmem:[%s13144_s10 + $0x4f8] sm:$0xff] }
  0x4f   :  { %13797 = vst [vmem:[#allocation159_spill] sm:$0xff] %v9338_v1  ;;  %13798 = vst [vmem:[#allocation160_spill] sm:$0xff] %v9343_v47  ;;  %v9348_v62 = vld [vmem:[%s13144_s10 + $0x500] sm:$0xff]  ;;  %v9353_v5 = vld [vmem:[%s13144_s10 + $0x508] sm:$0xff] }
  0x50   :  { %13799 = vst [vmem:[#allocation161_spill] sm:$0xff] %v9353_v5  ;;  %v9358_v6 = vld [vmem:[%s13144_s10 + $0x510] sm:$0xff]  ;;  %v9363_v1 = vld [vmem:[%s13144_s10 + $0x518] sm:$0xff]  ;;  %v9368_v47 = vld [vmem:[%s13144_s10 + $0x520] sm:$0xff] }
  0x51   :  { %13800 = vst [vmem:[#allocation162_spill] sm:$0xff] %v9358_v6  ;;  %13801 = vst [vmem:[#allocation163_spill] sm:$0xff] %v9363_v1  ;;  %v9373_v22 = vld [vmem:[%s13144_s10 + $0x528] sm:$0xff]  ;;  %v9378_v9 = vld [vmem:[%s13144_s10 + $0x530] sm:$0xff] }
  0x52   :  { %13802 = vst [vmem:[#allocation164_spill] sm:$0xff] %v9373_v22  ;;  %13803 = vst [vmem:[#allocation165_spill] sm:$0xff] %v9378_v9  ;;  %v9383_v6 = vld [vmem:[%s13144_s10 + $0x538] sm:$0xff]  ;;  %v9388_v1 = vld [vmem:[%s13144_s10 + $0x540] sm:$0xff] }
  0x53   :  { %13804 = vst [vmem:[#allocation166_spill] sm:$0xff] %v9383_v6  ;;  %v9393_v13 = vld [vmem:[%s13144_s10 + $0x548] sm:$0xff]  ;;  %v9398_v38 = vld [vmem:[%s13144_s10 + $0x550] sm:$0xff]  ;;  %v9403_v9 = vld [vmem:[%s13144_s10 + $0x558] sm:$0xff] }
  0x54   :  { %13805 = vst [vmem:[#allocation167_spill] sm:$0xff] %v9393_v13  ;;  %13806 = vst [vmem:[#allocation168_spill] sm:$0xff] %v9398_v38  ;;  %v9408_v6 = vld [vmem:[%s13144_s10 + $0x560] sm:$0xff]  ;;  %v9413_v54 = vld [vmem:[%s13144_s10 + $0x568] sm:$0xff] }
  0x55   :  { %13807 = vst [vmem:[#allocation169_spill] sm:$0xff] %v9403_v9  ;;  %13808 = vst [vmem:[#allocation170_spill] sm:$0xff] %v9413_v54  ;;  %v9418_v17 = vld [vmem:[%s13144_s10 + $0x570] sm:$0xff]  ;;  %v9423_v38 = vld [vmem:[%s13144_s10 + $0x578] sm:$0xff] }
  0x56   :  { %13809 = vst [vmem:[#allocation171_spill] sm:$0xff] %v9418_v17  ;;  %13810 = vst [vmem:[#allocation172_spill] sm:$0xff] %v9423_v38  ;;  %v9428_v9 = vld [vmem:[%s13144_s10 + $0x580] sm:$0xff]  ;;  %v9433_v21 = vld [vmem:[%s13144_s10 + $0x588] sm:$0xff] }
  0x57   :  { %13811 = vst [vmem:[#allocation173_spill] sm:$0xff] %v9433_v21  ;;  %v9438_v23 = vld [vmem:[%s13144_s10 + $0x590] sm:$0xff]  ;;  %v9443_v17 = vld [vmem:[%s13144_s10 + $0x598] sm:$0xff]  ;;  %v9448_v38 = vld [vmem:[%s13144_s10 + $0x5a0] sm:$0xff] }
  0x58   :  { %13812 = vst [vmem:[#allocation174_spill] sm:$0xff] %v9438_v23  ;;  %13813 = vst [vmem:[#allocation175_spill] sm:$0xff] %v9443_v17  ;;  %v9453_v27 = vld [vmem:[%s13144_s10 + $0x5a8] sm:$0xff]  ;;  %v9458_v25 = vld [vmem:[%s13144_s10 + $0x5b0] sm:$0xff] }
  0x59   :  { %13814 = vst [vmem:[#allocation176_spill] sm:$0xff] %v9453_v27  ;;  %13815 = vst [vmem:[#allocation177_spill] sm:$0xff] %v9458_v25  ;;  %v9463_v23 = vld [vmem:[%s13144_s10 + $0x5b8] sm:$0xff]  ;;  %v9468_v17 = vld [vmem:[%s13144_s10 + $0x5c0] sm:$0xff] }
  0x5a   :  { %13816 = vst [vmem:[#allocation178_spill] sm:$0xff] %v9463_v23  ;;  %v9473_v29 = vld [vmem:[%s13144_s10 + $0x5c8] sm:$0xff]  ;;  %v9478_v5 = vld [vmem:[%s13144_s10 + $0x5d0] sm:$0xff]  ;;  %v9483_v25 = vld [vmem:[%s13144_s10 + $0x5d8] sm:$0xff] }
  0x5b   :  { %13817 = vst [vmem:[#allocation179_spill] sm:$0xff] %v9473_v29  ;;  %13818 = vst [vmem:[#allocation180_spill] sm:$0xff] %v9478_v5  ;;  %v9488_v23 = vld [vmem:[%s13144_s10 + $0x5e0] sm:$0xff]  ;;  %v9493_v22 = vld [vmem:[%s13144_s10 + $0x5e8] sm:$0xff] }
  0x5c   :  { %13819 = vst [vmem:[#allocation181_spill] sm:$0xff] %v9483_v25  ;;  %13820 = vst [vmem:[#allocation182_spill] sm:$0xff] %v9493_v22  ;;  %v9498_v33 = vld [vmem:[%s13144_s10 + $0x5f0] sm:$0xff]  ;;  %v9503_v5 = vld [vmem:[%s13144_s10 + $0x5f8] sm:$0xff] }
  0x5d   :  { %13821 = vst [vmem:[#allocation183_spill] sm:$0xff] %v9498_v33  ;;  %13822 = vst [vmem:[#allocation184_spill] sm:$0xff] %v9503_v5  ;;  %v9508_v25 = vld [vmem:[%s13144_s10 + $0x600] sm:$0xff]  ;;  %v9513_v37 = vld [vmem:[%s13144_s10 + $0x608] sm:$0xff] }
  0x5e   :  { %13823 = vst [vmem:[#allocation185_spill] sm:$0xff] %v9508_v25  ;;  %13824 = vst [vmem:[#allocation186_spill] sm:$0xff] %v9513_v37  ;;  %v9518_v13 = vld [vmem:[%s13144_s10 + $0x610] sm:$0xff]  ;;  %v9523_v33 = vld [vmem:[%s13144_s10 + $0x618] sm:$0xff] }
  0x5f   :  { %13825 = vst [vmem:[#allocation187_spill] sm:$0xff] %v9518_v13  ;;  %13826 = vst [vmem:[#allocation188_spill] sm:$0xff] %v9523_v33  ;;  %v9528_v5 = vld [vmem:[%s13144_s10 + $0x620] sm:$0xff]  ;;  %v9533_v54 = vld [vmem:[%s13144_s10 + $0x628] sm:$0xff] }
  0x60   :  { %13827 = vst [vmem:[#allocation189_spill] sm:$0xff] %v9528_v5  ;;  %13828 = vst [vmem:[#allocation190_spill] sm:$0xff] %v9533_v54  ;;  %v9538_v37 = vld [vmem:[%s13144_s10 + $0x630] sm:$0xff]  ;;  %v9543_v13 = vld [vmem:[%s13144_s10 + $0x638] sm:$0xff] }
  0x61   :  { %13829 = vst [vmem:[#allocation191_spill] sm:$0xff] %v9538_v37  ;;  %13830 = vst [vmem:[#allocation192_spill] sm:$0xff] %v9543_v13  ;;  %v9548_v33 = vld [vmem:[%s13144_s10 + $0x640] sm:$0xff]  ;;  %v9553_v41 = vld [vmem:[%s13144_s10 + $0x648] sm:$0xff] }
  0x62   :  { %13831 = vst [vmem:[#allocation193_spill] sm:$0xff] %v9548_v33  ;;  %13832 = vst [vmem:[#allocation194_spill] sm:$0xff] %v9553_v41  ;;  %v9558_v54 = vld [vmem:[%s13144_s10 + $0x650] sm:$0xff]  ;;  %v9563_v37 = vld [vmem:[%s13144_s10 + $0x658] sm:$0xff] }
  0x63   :  { %13833 = vst [vmem:[#allocation195_spill] sm:$0xff] %v9558_v54  ;;  %13834 = vst [vmem:[#allocation196_spill] sm:$0xff] %v9563_v37  ;;  %v9568_v13 = vld [vmem:[%s13144_s10 + $0x660] sm:$0xff]  ;;  %v9573_v45 = vld [vmem:[%s13144_s10 + $0x668] sm:$0xff] }
  0x64   :  { %13835 = vst [vmem:[#allocation197_spill] sm:$0xff] %v9568_v13  ;;  %13836 = vst [vmem:[#allocation198_spill] sm:$0xff] %v9573_v45  ;;  %v9578_v41 = vld [vmem:[%s13144_s10 + $0x670] sm:$0xff]  ;;  %v9583_v54 = vld [vmem:[%s13144_s10 + $0x678] sm:$0xff] }
  0x65   :  { %13837 = vst [vmem:[#allocation199_spill] sm:$0xff] %v9578_v41  ;;  %13838 = vst [vmem:[#allocation200_spill] sm:$0xff] %v9583_v54  ;;  %v9588_v37 = vld [vmem:[%s13144_s10 + $0x680] sm:$0xff]  ;;  %v9593_v21 = vld [vmem:[%s13144_s10 + $0x688] sm:$0xff] }
  0x66   :  { %13839 = vst [vmem:[#allocation201_spill] sm:$0xff] %v9588_v37  ;;  %13840 = vst [vmem:[#allocation202_spill] sm:$0xff] %v9593_v21  ;;  %v9598_v45 = vld [vmem:[%s13144_s10 + $0x690] sm:$0xff]  ;;  %v9603_v41 = vld [vmem:[%s13144_s10 + $0x698] sm:$0xff] }
  0x67   :  { %13841 = vst [vmem:[#allocation203_spill] sm:$0xff] %v9598_v45  ;;  %13842 = vst [vmem:[#allocation204_spill] sm:$0xff] %v9603_v41  ;;  %v9608_v54 = vld [vmem:[%s13144_s10 + $0x6a0] sm:$0xff]  ;;  %v9613_v27 = vld [vmem:[%s13144_s10 + $0x6a8] sm:$0xff] }
  0x68   :  { %13843 = vst [vmem:[#allocation205_spill] sm:$0xff] %v9608_v54  ;;  %13844 = vst [vmem:[#allocation206_spill] sm:$0xff] %v9613_v27  ;;  %v9618_v21 = vld [vmem:[%s13144_s10 + $0x6b0] sm:$0xff]  ;;  %v9623_v45 = vld [vmem:[%s13144_s10 + $0x6b8] sm:$0xff] }
  0x69   :  { %13845 = vst [vmem:[#allocation207_spill] sm:$0xff] %v9618_v21  ;;  %13846 = vst [vmem:[#allocation208_spill] sm:$0xff] %v9623_v45  ;;  %v9628_v41 = vld [vmem:[%s13144_s10 + $0x6c0] sm:$0xff]  ;;  %v9633_v49 = vld [vmem:[%s13144_s10 + $0x6c8] sm:$0xff] }
  0x6a   :  { %13847 = vst [vmem:[#allocation209_spill] sm:$0xff] %v9628_v41  ;;  %13848 = vst [vmem:[#allocation210_spill] sm:$0xff] %v9633_v49  ;;  %v9638_v27 = vld [vmem:[%s13144_s10 + $0x6d0] sm:$0xff]  ;;  %v9643_v21 = vld [vmem:[%s13144_s10 + $0x6d8] sm:$0xff] }
  0x6b   :  { %13849 = vst [vmem:[#allocation211_spill] sm:$0xff] %v9638_v27  ;;  %13850 = vst [vmem:[#allocation212_spill] sm:$0xff] %v9643_v21  ;;  %v9648_v45 = vld [vmem:[%s13144_s10 + $0x6e0] sm:$0xff]  ;;  %v9653_v53 = vld [vmem:[%s13144_s10 + $0x6e8] sm:$0xff] }
  0x6c   :  { %13851 = vst [vmem:[#allocation213_spill] sm:$0xff] %v9648_v45  ;;  %13852 = vst [vmem:[#allocation214_spill] sm:$0xff] %v9653_v53  ;;  %v9658_v49 = vld [vmem:[%s13144_s10 + $0x6f0] sm:$0xff]  ;;  %v9663_v27 = vld [vmem:[%s13144_s10 + $0x6f8] sm:$0xff] }
  0x6d   :  { %13853 = vst [vmem:[#allocation215_spill] sm:$0xff] %v9658_v49  ;;  %13854 = vst [vmem:[#allocation216_spill] sm:$0xff] %v9663_v27  ;;  %v9668_v21 = vld [vmem:[%s13144_s10 + $0x700] sm:$0xff]  ;;  %v9673_v29 = vld [vmem:[%s13144_s10 + $0x708] sm:$0xff] }
  0x6e   :  { %13855 = vst [vmem:[#allocation217_spill] sm:$0xff] %v9668_v21  ;;  %13856 = vst [vmem:[#allocation218_spill] sm:$0xff] %v9673_v29  ;;  %v9678_v53 = vld [vmem:[%s13144_s10 + $0x710] sm:$0xff]  ;;  %v9683_v49 = vld [vmem:[%s13144_s10 + $0x718] sm:$0xff] }
  0x6f   :  { %13857 = vst [vmem:[#allocation219_spill] sm:$0xff] %v9678_v53  ;;  %13858 = vst [vmem:[#allocation220_spill] sm:$0xff] %v9683_v49  ;;  %v9688_v27 = vld [vmem:[%s13144_s10 + $0x720] sm:$0xff]  ;;  %v9693_v22 = vld [vmem:[%s13144_s10 + $0x728] sm:$0xff] }
  0x70   :  { %13859 = vst [vmem:[#allocation221_spill] sm:$0xff] %v9688_v27  ;;  %13860 = vst [vmem:[#allocation222_spill] sm:$0xff] %v9693_v22  ;;  %v9698_v29 = vld [vmem:[%s13144_s10 + $0x730] sm:$0xff]  ;;  %v9703_v53 = vld [vmem:[%s13144_s10 + $0x738] sm:$0xff] }
  0x71   :  { %13861 = vst [vmem:[#allocation223_spill] sm:$0xff] %v9698_v29  ;;  %13862 = vst [vmem:[#allocation224_spill] sm:$0xff] %v9703_v53  ;;  %v9708_v49 = vld [vmem:[%s13144_s10 + $0x740] sm:$0xff]  ;;  %v9713_v57 = vld [vmem:[%s13144_s10 + $0x748] sm:$0xff] }
  0x72   :  { %13863 = vst [vmem:[#allocation225_spill] sm:$0xff] %v9708_v49  ;;  %13864 = vst [vmem:[#allocation226_spill] sm:$0xff] %v9713_v57  ;;  %v9718_v22 = vld [vmem:[%s13144_s10 + $0x750] sm:$0xff]  ;;  %v9723_v29 = vld [vmem:[%s13144_s10 + $0x758] sm:$0xff] }
  0x73   :  { %13865 = vst [vmem:[#allocation227_spill] sm:$0xff] %v9718_v22  ;;  %13866 = vst [vmem:[#allocation228_spill] sm:$0xff] %v9723_v29  ;;  %v9728_v53 = vld [vmem:[%s13144_s10 + $0x760] sm:$0xff]  ;;  %v9733_v61 = vld [vmem:[%s13144_s10 + $0x768] sm:$0xff] }
  0x74   :  { %13867 = vst [vmem:[#allocation229_spill] sm:$0xff] %v9728_v53  ;;  %13868 = vst [vmem:[#allocation230_spill] sm:$0xff] %v9733_v61  ;;  %v9738_v57 = vld [vmem:[%s13144_s10 + $0x770] sm:$0xff]  ;;  %v9743_v22 = vld [vmem:[%s13144_s10 + $0x778] sm:$0xff] }
  0x75   :  { %13869 = vst [vmem:[#allocation231_spill] sm:$0xff] %v9738_v57  ;;  %13870 = vst [vmem:[#allocation232_spill] sm:$0xff] %v9743_v22  ;;  %v9748_v29 = vld [vmem:[%s13144_s10 + $0x780] sm:$0xff]  ;;  %v9753_v25 = vld [vmem:[%s13144_s10 + $0x788] sm:$0xff] }
  0x76   :  { %13871 = vst [vmem:[#allocation233_spill] sm:$0xff] %v9748_v29  ;;  %13872 = vst [vmem:[#allocation234_spill] sm:$0xff] %v9753_v25  ;;  %v9758_v61 = vld [vmem:[%s13144_s10 + $0x790] sm:$0xff]  ;;  %v9763_v57 = vld [vmem:[%s13144_s10 + $0x798] sm:$0xff] }
  0x77   :  { %13873 = vst [vmem:[#allocation235_spill] sm:$0xff] %v9758_v61  ;;  %13874 = vst [vmem:[#allocation236_spill] sm:$0xff] %v9763_v57  ;;  %v9768_v22 = vld [vmem:[%s13144_s10 + $0x7a0] sm:$0xff]  ;;  %v9773_v5 = vld [vmem:[%s13144_s10 + $0x7a8] sm:$0xff] }
  0x78   :  { %13875 = vst [vmem:[#allocation237_spill] sm:$0xff] %v9768_v22  ;;  %13876 = vst [vmem:[#allocation238_spill] sm:$0xff] %v9773_v5  ;;  %v9778_v25 = vld [vmem:[%s13144_s10 + $0x7b0] sm:$0xff]  ;;  %v9783_v61 = vld [vmem:[%s13144_s10 + $0x7b8] sm:$0xff] }
  0x79   :  { %13877 = vst [vmem:[#allocation239_spill] sm:$0xff] %v9778_v25  ;;  %13878 = vst [vmem:[#allocation240_spill] sm:$0xff] %v9783_v61  ;;  %v9788_v57 = vld [vmem:[%s13144_s10 + $0x7c0] sm:$0xff]  ;;  %v9793_v3 = vld [vmem:[%s13144_s10 + $0x7c8] sm:$0xff] }
  0x7a   :  { %13879 = vst [vmem:[#allocation241_spill] sm:$0xff] %v9788_v57  ;;  %13880 = vst [vmem:[#allocation242_spill] sm:$0xff] %v9793_v3  ;;  %v9798_v5 = vld [vmem:[%s13144_s10 + $0x7d0] sm:$0xff]  ;;  %v9803_v25 = vld [vmem:[%s13144_s10 + $0x7d8] sm:$0xff] }
  0x7b   :  { %13881 = vst [vmem:[#allocation243_spill] sm:$0xff] %v9798_v5  ;;  %13882 = vst [vmem:[#allocation244_spill] sm:$0xff] %v9803_v25  ;;  %v9808_v61 = vld [vmem:[%s13144_s10 + $0x7e0] sm:$0xff]  ;;  %v9813_v19 = vld [vmem:[%s13144_s10 + $0x7e8] sm:$0xff] }
  0x7c   :  { %13883 = vst [vmem:[#allocation245_spill] sm:$0xff] %v9808_v61  ;;  %13884 = vst [vmem:[#allocation246_spill] sm:$0xff] %v9813_v19  ;;  %v9818_v3 = vld [vmem:[%s13144_s10 + $0x7f0] sm:$0xff]  ;;  %v9823_v5 = vld [vmem:[%s13144_s10 + $0x7f8] sm:$0xff] }
  0x7d   :  { %13885 = vst [vmem:[#allocation247_spill] sm:$0xff] %v9818_v3  ;;  %13886 = vst [vmem:[#allocation248_spill] sm:$0xff] %v9823_v5 }
  0x7e   :  { %603 = vsyncadd [#allocation5], 32768  ;;  %v9828_v25 = vld [vmem:[%s13146_s12] sm:$0xff]  ;;  %v9833_v19 = vld [vmem:[%s13146_s12 + $0x8] sm:$0xff] }
  0x7f   :  { %13887 = vst [vmem:[#allocation249_spill] sm:$0xff] %v9828_v25  ;;  %13888 = vst [vmem:[#allocation250_spill] sm:$0xff] %v9833_v19  ;;  %v9838_v3 = vld [vmem:[%s13146_s12 + $0x10] sm:$0xff]  ;;  %v9843_v5 = vld [vmem:[%s13146_s12 + $0x18] sm:$0xff] }
  0x80   :  { %13889 = vst [vmem:[#allocation251_spill] sm:$0xff] %v9838_v3  ;;  %13890 = vst [vmem:[#allocation252_spill] sm:$0xff] %v9843_v5  ;;  %v9848_v33 = vld [vmem:[%s13146_s12 + $0x20] sm:$0xff]  ;;  %v9853_v25 = vld [vmem:[%s13146_s12 + $0x28] sm:$0xff] }
  0x81   :  { %13891 = vst [vmem:[#allocation253_spill] sm:$0xff] %v9848_v33  ;;  %13892 = vst [vmem:[#allocation254_spill] sm:$0xff] %v9853_v25  ;;  %v9858_v19 = vld [vmem:[%s13146_s12 + $0x30] sm:$0xff]  ;;  %v9863_v3 = vld [vmem:[%s13146_s12 + $0x38] sm:$0xff] }
  0x82   :  { %13893 = vst [vmem:[#allocation255_spill] sm:$0xff] %v9858_v19  ;;  %13894 = vst [vmem:[#allocation256_spill] sm:$0xff] %v9863_v3  ;;  %v9868_v5 = vld [vmem:[%s13146_s12 + $0x40] sm:$0xff]  ;;  %v9873_v33 = vld [vmem:[%s13146_s12 + $0x48] sm:$0xff] }
  0x83   :  { %13895 = vst [vmem:[#allocation257_spill] sm:$0xff] %v9868_v5  ;;  %13896 = vst [vmem:[#allocation258_spill] sm:$0xff] %v9873_v33  ;;  %v9878_v25 = vld [vmem:[%s13146_s12 + $0x50] sm:$0xff]  ;;  %v9883_v19 = vld [vmem:[%s13146_s12 + $0x58] sm:$0xff] }
  0x84   :  { %13897 = vst [vmem:[#allocation259_spill] sm:$0xff] %v9878_v25  ;;  %13898 = vst [vmem:[#allocation260_spill] sm:$0xff] %v9883_v19  ;;  %v9888_v3 = vld [vmem:[%s13146_s12 + $0x60] sm:$0xff]  ;;  %v9893_v5 = vld [vmem:[%s13146_s12 + $0x68] sm:$0xff] }
  0x85   :  { %13899 = vst [vmem:[#allocation261_spill] sm:$0xff] %v9888_v3  ;;  %13900 = vst [vmem:[#allocation262_spill] sm:$0xff] %v9893_v5  ;;  %v9898_v33 = vld [vmem:[%s13146_s12 + $0x70] sm:$0xff]  ;;  %v9903_v25 = vld [vmem:[%s13146_s12 + $0x78] sm:$0xff] }
  0x86   :  { %13901 = vst [vmem:[#allocation263_spill] sm:$0xff] %v9898_v33  ;;  %13902 = vst [vmem:[#allocation264_spill] sm:$0xff] %v9903_v25  ;;  %v9908_v19 = vld [vmem:[%s13146_s12 + $0x80] sm:$0xff]  ;;  %v9913_v3 = vld [vmem:[%s13146_s12 + $0x88] sm:$0xff] }
  0x87   :  { %13903 = vst [vmem:[#allocation265_spill] sm:$0xff] %v9908_v19  ;;  %13904 = vst [vmem:[#allocation266_spill] sm:$0xff] %v9913_v3  ;;  %v9918_v5 = vld [vmem:[%s13146_s12 + $0x90] sm:$0xff]  ;;  %v9923_v33 = vld [vmem:[%s13146_s12 + $0x98] sm:$0xff] }
  0x88   :  { %13905 = vst [vmem:[#allocation267_spill] sm:$0xff] %v9918_v5  ;;  %13906 = vst [vmem:[#allocation268_spill] sm:$0xff] %v9923_v33  ;;  %v9928_v25 = vld [vmem:[%s13146_s12 + $0xa0] sm:$0xff]  ;;  %v9933_v19 = vld [vmem:[%s13146_s12 + $0xa8] sm:$0xff] }
  0x89   :  { %13907 = vst [vmem:[#allocation269_spill] sm:$0xff] %v9928_v25  ;;  %13908 = vst [vmem:[#allocation270_spill] sm:$0xff] %v9933_v19  ;;  %v9938_v3 = vld [vmem:[%s13146_s12 + $0xb0] sm:$0xff]  ;;  %v9943_v5 = vld [vmem:[%s13146_s12 + $0xb8] sm:$0xff] }
  0x8a   :  { %13909 = vst [vmem:[#allocation271_spill] sm:$0xff] %v9938_v3  ;;  %13910 = vst [vmem:[#allocation272_spill] sm:$0xff] %v9943_v5  ;;  %v9948_v33 = vld [vmem:[%s13146_s12 + $0xc0] sm:$0xff]  ;;  %v9953_v25 = vld [vmem:[%s13146_s12 + $0xc8] sm:$0xff] }
  0x8b   :  { %13911 = vst [vmem:[#allocation273_spill] sm:$0xff] %v9948_v33  ;;  %13912 = vst [vmem:[#allocation274_spill] sm:$0xff] %v9953_v25  ;;  %v9958_v19 = vld [vmem:[%s13146_s12 + $0xd0] sm:$0xff]  ;;  %v9963_v3 = vld [vmem:[%s13146_s12 + $0xd8] sm:$0xff] }
  0x8c   :  { %13913 = vst [vmem:[#allocation275_spill] sm:$0xff] %v9958_v19  ;;  %13914 = vst [vmem:[#allocation276_spill] sm:$0xff] %v9963_v3  ;;  %v9968_v5 = vld [vmem:[%s13146_s12 + $0xe0] sm:$0xff]  ;;  %v9973_v33 = vld [vmem:[%s13146_s12 + $0xe8] sm:$0xff] }
  0x8d   :  { %13915 = vst [vmem:[#allocation277_spill] sm:$0xff] %v9968_v5  ;;  %13916 = vst [vmem:[#allocation278_spill] sm:$0xff] %v9973_v33  ;;  %v9978_v25 = vld [vmem:[%s13146_s12 + $0xf0] sm:$0xff]  ;;  %v9983_v19 = vld [vmem:[%s13146_s12 + $0xf8] sm:$0xff] }
  0x8e   :  { %13917 = vst [vmem:[#allocation279_spill] sm:$0xff] %v9978_v25  ;;  %13918 = vst [vmem:[#allocation280_spill] sm:$0xff] %v9983_v19  ;;  %v9988_v3 = vld [vmem:[%s13146_s12 + $0x100] sm:$0xff]  ;;  %v9993_v5 = vld [vmem:[%s13146_s12 + $0x108] sm:$0xff] }
  0x8f   :  { %13919 = vst [vmem:[#allocation281_spill] sm:$0xff] %v9988_v3  ;;  %13920 = vst [vmem:[#allocation282_spill] sm:$0xff] %v9993_v5  ;;  %v9998_v33 = vld [vmem:[%s13146_s12 + $0x110] sm:$0xff]  ;;  %v10003_v25 = vld [vmem:[%s13146_s12 + $0x118] sm:$0xff] }
  0x90   :  { %13921 = vst [vmem:[#allocation283_spill] sm:$0xff] %v9998_v33  ;;  %13922 = vst [vmem:[#allocation284_spill] sm:$0xff] %v10003_v25  ;;  %v10008_v19 = vld [vmem:[%s13146_s12 + $0x120] sm:$0xff]  ;;  %v10013_v3 = vld [vmem:[%s13146_s12 + $0x128] sm:$0xff] }
  0x91   :  { %13923 = vst [vmem:[#allocation285_spill] sm:$0xff] %v10008_v19  ;;  %13924 = vst [vmem:[#allocation286_spill] sm:$0xff] %v10013_v3  ;;  %v10018_v5 = vld [vmem:[%s13146_s12 + $0x130] sm:$0xff]  ;;  %v10023_v33 = vld [vmem:[%s13146_s12 + $0x138] sm:$0xff] }
  0x92   :  { %13925 = vst [vmem:[#allocation287_spill] sm:$0xff] %v10018_v5  ;;  %13926 = vst [vmem:[#allocation288_spill] sm:$0xff] %v10023_v33  ;;  %v10028_v25 = vld [vmem:[%s13146_s12 + $0x140] sm:$0xff]  ;;  %v10033_v19 = vld [vmem:[%s13146_s12 + $0x148] sm:$0xff] }
  0x93   :  { %13927 = vst [vmem:[#allocation289_spill] sm:$0xff] %v10028_v25  ;;  %13928 = vst [vmem:[#allocation290_spill] sm:$0xff] %v10033_v19  ;;  %v10038_v3 = vld [vmem:[%s13146_s12 + $0x150] sm:$0xff]  ;;  %v10043_v5 = vld [vmem:[%s13146_s12 + $0x158] sm:$0xff] }
  0x94   :  { %13929 = vst [vmem:[#allocation291_spill] sm:$0xff] %v10038_v3  ;;  %13930 = vst [vmem:[#allocation292_spill] sm:$0xff] %v10043_v5  ;;  %v10048_v33 = vld [vmem:[%s13146_s12 + $0x160] sm:$0xff]  ;;  %v10053_v25 = vld [vmem:[%s13146_s12 + $0x168] sm:$0xff] }
  0x95   :  { %13931 = vst [vmem:[#allocation293_spill] sm:$0xff] %v10048_v33  ;;  %13932 = vst [vmem:[#allocation294_spill] sm:$0xff] %v10053_v25  ;;  %v10058_v19 = vld [vmem:[%s13146_s12 + $0x170] sm:$0xff]  ;;  %v10063_v3 = vld [vmem:[%s13146_s12 + $0x178] sm:$0xff] }
  0x96   :  { %13933 = vst [vmem:[#allocation295_spill] sm:$0xff] %v10058_v19  ;;  %13934 = vst [vmem:[#allocation296_spill] sm:$0xff] %v10063_v3  ;;  %v10068_v5 = vld [vmem:[%s13146_s12 + $0x180] sm:$0xff]  ;;  %v10073_v33 = vld [vmem:[%s13146_s12 + $0x188] sm:$0xff] }
  0x97   :  { %13935 = vst [vmem:[#allocation297_spill] sm:$0xff] %v10068_v5  ;;  %13936 = vst [vmem:[#allocation298_spill] sm:$0xff] %v10073_v33  ;;  %v10078_v25 = vld [vmem:[%s13146_s12 + $0x190] sm:$0xff]  ;;  %v10083_v19 = vld [vmem:[%s13146_s12 + $0x198] sm:$0xff] }
  0x98   :  { %13937 = vst [vmem:[#allocation299_spill] sm:$0xff] %v10078_v25  ;;  %13938 = vst [vmem:[#allocation300_spill] sm:$0xff] %v10083_v19  ;;  %v10088_v3 = vld [vmem:[%s13146_s12 + $0x1a0] sm:$0xff]  ;;  %v10093_v5 = vld [vmem:[%s13146_s12 + $0x1a8] sm:$0xff] }
  0x99   :  { %13939 = vst [vmem:[#allocation301_spill] sm:$0xff] %v10088_v3  ;;  %13940 = vst [vmem:[#allocation302_spill] sm:$0xff] %v10093_v5  ;;  %v10098_v33 = vld [vmem:[%s13146_s12 + $0x1b0] sm:$0xff]  ;;  %v10103_v25 = vld [vmem:[%s13146_s12 + $0x1b8] sm:$0xff] }
  0x9a   :  { %13941 = vst [vmem:[#allocation303_spill] sm:$0xff] %v10098_v33  ;;  %13942 = vst [vmem:[#allocation304_spill] sm:$0xff] %v10103_v25  ;;  %v10108_v19 = vld [vmem:[%s13146_s12 + $0x1c0] sm:$0xff]  ;;  %v10113_v3 = vld [vmem:[%s13146_s12 + $0x1c8] sm:$0xff] }
  0x9b   :  { %13943 = vst [vmem:[#allocation305_spill] sm:$0xff] %v10108_v19  ;;  %13944 = vst [vmem:[#allocation306_spill] sm:$0xff] %v10113_v3  ;;  %v10118_v5 = vld [vmem:[%s13146_s12 + $0x1d0] sm:$0xff]  ;;  %v10123_v33 = vld [vmem:[%s13146_s12 + $0x1d8] sm:$0xff] }
  0x9c   :  { %13945 = vst [vmem:[#allocation307_spill] sm:$0xff] %v10118_v5  ;;  %13946 = vst [vmem:[#allocation308_spill] sm:$0xff] %v10123_v33  ;;  %v10128_v25 = vld [vmem:[%s13146_s12 + $0x1e0] sm:$0xff]  ;;  %v10133_v19 = vld [vmem:[%s13146_s12 + $0x1e8] sm:$0xff] }
  0x9d   :  { %13947 = vst [vmem:[#allocation309_spill] sm:$0xff] %v10128_v25  ;;  %13948 = vst [vmem:[#allocation310_spill] sm:$0xff] %v10133_v19  ;;  %v10138_v3 = vld [vmem:[%s13146_s12 + $0x1f0] sm:$0xff]  ;;  %v10143_v5 = vld [vmem:[%s13146_s12 + $0x1f8] sm:$0xff] }
  0x9e   :  { %13949 = vst [vmem:[#allocation311_spill] sm:$0xff] %v10138_v3  ;;  %13950 = vst [vmem:[#allocation312_spill] sm:$0xff] %v10143_v5  ;;  %v10148_v33 = vld [vmem:[%s13146_s12 + $0x200] sm:$0xff]  ;;  %v10153_v25 = vld [vmem:[%s13146_s12 + $0x208] sm:$0xff] }
  0x9f   :  { %13951 = vst [vmem:[#allocation313_spill] sm:$0xff] %v10148_v33  ;;  %13952 = vst [vmem:[#allocation314_spill] sm:$0xff] %v10153_v25  ;;  %v10158_v19 = vld [vmem:[%s13146_s12 + $0x210] sm:$0xff]  ;;  %v10163_v3 = vld [vmem:[%s13146_s12 + $0x218] sm:$0xff] }
  0xa0   :  { %13953 = vst [vmem:[#allocation315_spill] sm:$0xff] %v10158_v19  ;;  %13954 = vst [vmem:[#allocation316_spill] sm:$0xff] %v10163_v3  ;;  %v10168_v5 = vld [vmem:[%s13146_s12 + $0x220] sm:$0xff]  ;;  %v10173_v33 = vld [vmem:[%s13146_s12 + $0x228] sm:$0xff] }
  0xa1   :  { %13955 = vst [vmem:[#allocation317_spill] sm:$0xff] %v10168_v5  ;;  %13956 = vst [vmem:[#allocation318_spill] sm:$0xff] %v10173_v33  ;;  %v10178_v25 = vld [vmem:[%s13146_s12 + $0x230] sm:$0xff]  ;;  %v10183_v19 = vld [vmem:[%s13146_s12 + $0x238] sm:$0xff] }
  0xa2   :  { %13957 = vst [vmem:[#allocation319_spill] sm:$0xff] %v10178_v25  ;;  %13958 = vst [vmem:[#allocation320_spill] sm:$0xff] %v10183_v19  ;;  %v10188_v3 = vld [vmem:[%s13146_s12 + $0x240] sm:$0xff]  ;;  %v10193_v5 = vld [vmem:[%s13146_s12 + $0x248] sm:$0xff] }
  0xa3   :  { %13959 = vst [vmem:[#allocation321_spill] sm:$0xff] %v10188_v3  ;;  %13960 = vst [vmem:[#allocation322_spill] sm:$0xff] %v10193_v5  ;;  %v10198_v33 = vld [vmem:[%s13146_s12 + $0x250] sm:$0xff]  ;;  %v10203_v25 = vld [vmem:[%s13146_s12 + $0x258] sm:$0xff] }
  0xa4   :  { %13961 = vst [vmem:[#allocation323_spill] sm:$0xff] %v10198_v33  ;;  %13962 = vst [vmem:[#allocation324_spill] sm:$0xff] %v10203_v25  ;;  %v10208_v19 = vld [vmem:[%s13146_s12 + $0x260] sm:$0xff]  ;;  %v10213_v3 = vld [vmem:[%s13146_s12 + $0x268] sm:$0xff] }
  0xa5   :  { %13963 = vst [vmem:[#allocation325_spill] sm:$0xff] %v10208_v19  ;;  %13964 = vst [vmem:[#allocation326_spill] sm:$0xff] %v10213_v3  ;;  %v10218_v5 = vld [vmem:[%s13146_s12 + $0x270] sm:$0xff]  ;;  %v10223_v33 = vld [vmem:[%s13146_s12 + $0x278] sm:$0xff] }
  0xa6   :  { %13965 = vst [vmem:[#allocation327_spill] sm:$0xff] %v10218_v5  ;;  %13966 = vst [vmem:[#allocation328_spill] sm:$0xff] %v10223_v33  ;;  %v10228_v25 = vld [vmem:[%s13146_s12 + $0x280] sm:$0xff]  ;;  %v10233_v19 = vld [vmem:[%s13146_s12 + $0x288] sm:$0xff] }
  0xa7   :  { %13967 = vst [vmem:[#allocation329_spill] sm:$0xff] %v10228_v25  ;;  %13968 = vst [vmem:[#allocation330_spill] sm:$0xff] %v10233_v19  ;;  %v10238_v3 = vld [vmem:[%s13146_s12 + $0x290] sm:$0xff]  ;;  %v10243_v5 = vld [vmem:[%s13146_s12 + $0x298] sm:$0xff] }
  0xa8   :  { %13969 = vst [vmem:[#allocation331_spill] sm:$0xff] %v10238_v3  ;;  %13970 = vst [vmem:[#allocation332_spill] sm:$0xff] %v10243_v5  ;;  %v10248_v33 = vld [vmem:[%s13146_s12 + $0x2a0] sm:$0xff]  ;;  %v10253_v25 = vld [vmem:[%s13146_s12 + $0x2a8] sm:$0xff] }
  0xa9   :  { %13971 = vst [vmem:[#allocation333_spill] sm:$0xff] %v10248_v33  ;;  %13972 = vst [vmem:[#allocation334_spill] sm:$0xff] %v10253_v25  ;;  %v10258_v19 = vld [vmem:[%s13146_s12 + $0x2b0] sm:$0xff]  ;;  %v10263_v3 = vld [vmem:[%s13146_s12 + $0x2b8] sm:$0xff] }
  0xaa   :  { %13973 = vst [vmem:[#allocation335_spill] sm:$0xff] %v10258_v19  ;;  %13974 = vst [vmem:[#allocation336_spill] sm:$0xff] %v10263_v3  ;;  %v10268_v5 = vld [vmem:[%s13146_s12 + $0x2c0] sm:$0xff]  ;;  %v10273_v33 = vld [vmem:[%s13146_s12 + $0x2c8] sm:$0xff] }
  0xab   :  { %13975 = vst [vmem:[#allocation337_spill] sm:$0xff] %v10268_v5  ;;  %13976 = vst [vmem:[#allocation338_spill] sm:$0xff] %v10273_v33  ;;  %v10278_v25 = vld [vmem:[%s13146_s12 + $0x2d0] sm:$0xff]  ;;  %v10283_v19 = vld [vmem:[%s13146_s12 + $0x2d8] sm:$0xff] }
  0xac   :  { %13977 = vst [vmem:[#allocation339_spill] sm:$0xff] %v10278_v25  ;;  %13978 = vst [vmem:[#allocation340_spill] sm:$0xff] %v10283_v19  ;;  %v10288_v3 = vld [vmem:[%s13146_s12 + $0x2e0] sm:$0xff]  ;;  %v10293_v5 = vld [vmem:[%s13146_s12 + $0x2e8] sm:$0xff] }
  0xad   :  { %13979 = vst [vmem:[#allocation341_spill] sm:$0xff] %v10288_v3  ;;  %13980 = vst [vmem:[#allocation342_spill] sm:$0xff] %v10293_v5  ;;  %v10298_v33 = vld [vmem:[%s13146_s12 + $0x2f0] sm:$0xff]  ;;  %v10303_v25 = vld [vmem:[%s13146_s12 + $0x2f8] sm:$0xff] }
  0xae   :  { %13981 = vst [vmem:[#allocation343_spill] sm:$0xff] %v10298_v33  ;;  %13982 = vst [vmem:[#allocation344_spill] sm:$0xff] %v10303_v25  ;;  %v10308_v19 = vld [vmem:[%s13146_s12 + $0x300] sm:$0xff]  ;;  %v10313_v3 = vld [vmem:[%s13146_s12 + $0x308] sm:$0xff] }
  0xaf   :  { %13983 = vst [vmem:[#allocation345_spill] sm:$0xff] %v10308_v19  ;;  %13984 = vst [vmem:[#allocation346_spill] sm:$0xff] %v10313_v3  ;;  %v10318_v5 = vld [vmem:[%s13146_s12 + $0x310] sm:$0xff]  ;;  %v10323_v33 = vld [vmem:[%s13146_s12 + $0x318] sm:$0xff] }
  0xb0   :  { %13985 = vst [vmem:[#allocation347_spill] sm:$0xff] %v10318_v5  ;;  %13986 = vst [vmem:[#allocation348_spill] sm:$0xff] %v10323_v33  ;;  %v10328_v25 = vld [vmem:[%s13146_s12 + $0x320] sm:$0xff]  ;;  %v10333_v19 = vld [vmem:[%s13146_s12 + $0x328] sm:$0xff] }
  0xb1   :  { %13987 = vst [vmem:[#allocation349_spill] sm:$0xff] %v10328_v25  ;;  %13988 = vst [vmem:[#allocation350_spill] sm:$0xff] %v10333_v19  ;;  %v10338_v3 = vld [vmem:[%s13146_s12 + $0x330] sm:$0xff]  ;;  %v10343_v5 = vld [vmem:[%s13146_s12 + $0x338] sm:$0xff] }
  0xb2   :  { %13989 = vst [vmem:[#allocation351_spill] sm:$0xff] %v10338_v3  ;;  %13990 = vst [vmem:[#allocation352_spill] sm:$0xff] %v10343_v5  ;;  %v10348_v33 = vld [vmem:[%s13146_s12 + $0x340] sm:$0xff]  ;;  %v10353_v25 = vld [vmem:[%s13146_s12 + $0x348] sm:$0xff] }
  0xb3   :  { %13991 = vst [vmem:[#allocation353_spill] sm:$0xff] %v10348_v33  ;;  %13992 = vst [vmem:[#allocation354_spill] sm:$0xff] %v10353_v25  ;;  %v10358_v19 = vld [vmem:[%s13146_s12 + $0x350] sm:$0xff]  ;;  %v10363_v3 = vld [vmem:[%s13146_s12 + $0x358] sm:$0xff] }
  0xb4   :  { %13993 = vst [vmem:[#allocation355_spill] sm:$0xff] %v10358_v19  ;;  %13994 = vst [vmem:[#allocation356_spill] sm:$0xff] %v10363_v3  ;;  %v10368_v5 = vld [vmem:[%s13146_s12 + $0x360] sm:$0xff]  ;;  %v10373_v33 = vld [vmem:[%s13146_s12 + $0x368] sm:$0xff] }
  0xb5   :  { %13995 = vst [vmem:[#allocation357_spill] sm:$0xff] %v10368_v5  ;;  %13996 = vst [vmem:[#allocation358_spill] sm:$0xff] %v10373_v33  ;;  %v10378_v25 = vld [vmem:[%s13146_s12 + $0x370] sm:$0xff]  ;;  %v10383_v19 = vld [vmem:[%s13146_s12 + $0x378] sm:$0xff] }
  0xb6   :  { %13997 = vst [vmem:[#allocation359_spill] sm:$0xff] %v10378_v25  ;;  %13998 = vst [vmem:[#allocation360_spill] sm:$0xff] %v10383_v19  ;;  %v10388_v3 = vld [vmem:[%s13146_s12 + $0x380] sm:$0xff]  ;;  %v10393_v5 = vld [vmem:[%s13146_s12 + $0x388] sm:$0xff] }
  0xb7   :  { %13999 = vst [vmem:[#allocation361_spill] sm:$0xff] %v10388_v3  ;;  %14000 = vst [vmem:[#allocation362_spill] sm:$0xff] %v10393_v5  ;;  %v10398_v33 = vld [vmem:[%s13146_s12 + $0x390] sm:$0xff]  ;;  %v10403_v25 = vld [vmem:[%s13146_s12 + $0x398] sm:$0xff] }
  0xb8   :  { %14001 = vst [vmem:[#allocation363_spill] sm:$0xff] %v10398_v33  ;;  %14002 = vst [vmem:[#allocation364_spill] sm:$0xff] %v10403_v25  ;;  %v10408_v19 = vld [vmem:[%s13146_s12 + $0x3a0] sm:$0xff]  ;;  %v10413_v3 = vld [vmem:[%s13146_s12 + $0x3a8] sm:$0xff] }
  0xb9   :  { %14003 = vst [vmem:[#allocation365_spill] sm:$0xff] %v10408_v19  ;;  %14004 = vst [vmem:[#allocation366_spill] sm:$0xff] %v10413_v3  ;;  %v10418_v5 = vld [vmem:[%s13146_s12 + $0x3b0] sm:$0xff]  ;;  %v10423_v33 = vld [vmem:[%s13146_s12 + $0x3b8] sm:$0xff] }
  0xba   :  { %14005 = vst [vmem:[#allocation367_spill] sm:$0xff] %v10418_v5  ;;  %14006 = vst [vmem:[#allocation368_spill] sm:$0xff] %v10423_v33  ;;  %v10428_v25 = vld [vmem:[%s13146_s12 + $0x3c0] sm:$0xff]  ;;  %v10433_v19 = vld [vmem:[%s13146_s12 + $0x3c8] sm:$0xff] }
  0xbb   :  { %14007 = vst [vmem:[#allocation369_spill] sm:$0xff] %v10428_v25  ;;  %14008 = vst [vmem:[#allocation370_spill] sm:$0xff] %v10433_v19  ;;  %v10438_v3 = vld [vmem:[%s13146_s12 + $0x3d0] sm:$0xff]  ;;  %v10443_v5 = vld [vmem:[%s13146_s12 + $0x3d8] sm:$0xff] }
  0xbc   :  { %14009 = vst [vmem:[#allocation371_spill] sm:$0xff] %v10438_v3  ;;  %14010 = vst [vmem:[#allocation372_spill] sm:$0xff] %v10443_v5  ;;  %v10448_v33 = vld [vmem:[%s13146_s12 + $0x3e0] sm:$0xff]  ;;  %v10453_v25 = vld [vmem:[%s13146_s12 + $0x3e8] sm:$0xff] }
  0xbd   :  { %14011 = vst [vmem:[#allocation373_spill] sm:$0xff] %v10448_v33  ;;  %14012 = vst [vmem:[#allocation374_spill] sm:$0xff] %v10453_v25  ;;  %v10458_v19 = vld [vmem:[%s13146_s12 + $0x3f0] sm:$0xff]  ;;  %v10463_v3 = vld [vmem:[%s13146_s12 + $0x3f8] sm:$0xff] }
  0xbe   :  { %14013 = vst [vmem:[#allocation375_spill] sm:$0xff] %v10458_v19  ;;  %14014 = vst [vmem:[#allocation376_spill] sm:$0xff] %v10463_v3  ;;  %v10468_v5 = vld [vmem:[%s13146_s12 + $0x400] sm:$0xff]  ;;  %v10473_v33 = vld [vmem:[%s13146_s12 + $0x408] sm:$0xff] }
  0xbf   :  { %14015 = vst [vmem:[#allocation377_spill] sm:$0xff] %v10468_v5  ;;  %14016 = vst [vmem:[#allocation378_spill] sm:$0xff] %v10473_v33  ;;  %v10478_v25 = vld [vmem:[%s13146_s12 + $0x410] sm:$0xff]  ;;  %v10483_v19 = vld [vmem:[%s13146_s12 + $0x418] sm:$0xff] }
  0xc0   :  { %14017 = vst [vmem:[#allocation379_spill] sm:$0xff] %v10478_v25  ;;  %14018 = vst [vmem:[#allocation380_spill] sm:$0xff] %v10483_v19  ;;  %v10488_v3 = vld [vmem:[%s13146_s12 + $0x420] sm:$0xff]  ;;  %v10493_v5 = vld [vmem:[%s13146_s12 + $0x428] sm:$0xff] }
  0xc1   :  { %14019 = vst [vmem:[#allocation381_spill] sm:$0xff] %v10488_v3  ;;  %14020 = vst [vmem:[#allocation382_spill] sm:$0xff] %v10493_v5  ;;  %v10498_v33 = vld [vmem:[%s13146_s12 + $0x430] sm:$0xff]  ;;  %v10503_v25 = vld [vmem:[%s13146_s12 + $0x438] sm:$0xff] }
  0xc2   :  { %14021 = vst [vmem:[#allocation383_spill] sm:$0xff] %v10498_v33  ;;  %14022 = vst [vmem:[#allocation384_spill] sm:$0xff] %v10503_v25  ;;  %v10508_v19 = vld [vmem:[%s13146_s12 + $0x440] sm:$0xff]  ;;  %v10513_v3 = vld [vmem:[%s13146_s12 + $0x448] sm:$0xff] }
  0xc3   :  { %14023 = vst [vmem:[#allocation385_spill] sm:$0xff] %v10508_v19  ;;  %14024 = vst [vmem:[#allocation386_spill] sm:$0xff] %v10513_v3  ;;  %v10518_v5 = vld [vmem:[%s13146_s12 + $0x450] sm:$0xff]  ;;  %v10523_v33 = vld [vmem:[%s13146_s12 + $0x458] sm:$0xff] }
  0xc4   :  { %14025 = vst [vmem:[#allocation387_spill] sm:$0xff] %v10518_v5  ;;  %14026 = vst [vmem:[#allocation388_spill] sm:$0xff] %v10523_v33  ;;  %v10528_v25 = vld [vmem:[%s13146_s12 + $0x460] sm:$0xff]  ;;  %v10533_v19 = vld [vmem:[%s13146_s12 + $0x468] sm:$0xff] }
  0xc5   :  { %14027 = vst [vmem:[#allocation389_spill] sm:$0xff] %v10528_v25  ;;  %14028 = vst [vmem:[#allocation390_spill] sm:$0xff] %v10533_v19  ;;  %v10538_v3 = vld [vmem:[%s13146_s12 + $0x470] sm:$0xff]  ;;  %v10543_v5 = vld [vmem:[%s13146_s12 + $0x478] sm:$0xff] }
  0xc6   :  { %14029 = vst [vmem:[#allocation391_spill] sm:$0xff] %v10538_v3  ;;  %14030 = vst [vmem:[#allocation392_spill] sm:$0xff] %v10543_v5  ;;  %v10548_v33 = vld [vmem:[%s13146_s12 + $0x480] sm:$0xff]  ;;  %v10553_v25 = vld [vmem:[%s13146_s12 + $0x488] sm:$0xff] }
  0xc7   :  { %14031 = vst [vmem:[#allocation393_spill] sm:$0xff] %v10548_v33  ;;  %14032 = vst [vmem:[#allocation394_spill] sm:$0xff] %v10553_v25  ;;  %v10558_v19 = vld [vmem:[%s13146_s12 + $0x490] sm:$0xff]  ;;  %v10563_v3 = vld [vmem:[%s13146_s12 + $0x498] sm:$0xff] }
  0xc8   :  { %14033 = vst [vmem:[#allocation395_spill] sm:$0xff] %v10558_v19  ;;  %14034 = vst [vmem:[#allocation396_spill] sm:$0xff] %v10563_v3  ;;  %v10568_v5 = vld [vmem:[%s13146_s12 + $0x4a0] sm:$0xff]  ;;  %v10573_v33 = vld [vmem:[%s13146_s12 + $0x4a8] sm:$0xff] }
  0xc9   :  { %14035 = vst [vmem:[#allocation397_spill] sm:$0xff] %v10568_v5  ;;  %14036 = vst [vmem:[#allocation398_spill] sm:$0xff] %v10573_v33  ;;  %v10578_v25 = vld [vmem:[%s13146_s12 + $0x4b0] sm:$0xff]  ;;  %v10583_v19 = vld [vmem:[%s13146_s12 + $0x4b8] sm:$0xff] }
  0xca   :  { %14037 = vst [vmem:[#allocation399_spill] sm:$0xff] %v10578_v25  ;;  %14038 = vst [vmem:[#allocation400_spill] sm:$0xff] %v10583_v19  ;;  %v10588_v3 = vld [vmem:[%s13146_s12 + $0x4c0] sm:$0xff]  ;;  %v10593_v5 = vld [vmem:[%s13146_s12 + $0x4c8] sm:$0xff] }
  0xcb   :  { %14039 = vst [vmem:[#allocation401_spill] sm:$0xff] %v10588_v3  ;;  %14040 = vst [vmem:[#allocation402_spill] sm:$0xff] %v10593_v5  ;;  %v10598_v33 = vld [vmem:[%s13146_s12 + $0x4d0] sm:$0xff]  ;;  %v10603_v25 = vld [vmem:[%s13146_s12 + $0x4d8] sm:$0xff] }
  0xcc   :  { %14041 = vst [vmem:[#allocation403_spill] sm:$0xff] %v10598_v33  ;;  %14042 = vst [vmem:[#allocation404_spill] sm:$0xff] %v10603_v25  ;;  %v10608_v19 = vld [vmem:[%s13146_s12 + $0x4e0] sm:$0xff]  ;;  %v10613_v3 = vld [vmem:[%s13146_s12 + $0x4e8] sm:$0xff] }
  0xcd   :  { %14043 = vst [vmem:[#allocation405_spill] sm:$0xff] %v10608_v19  ;;  %14044 = vst [vmem:[#allocation406_spill] sm:$0xff] %v10613_v3  ;;  %v10618_v5 = vld [vmem:[%s13146_s12 + $0x4f0] sm:$0xff]  ;;  %v10623_v33 = vld [vmem:[%s13146_s12 + $0x4f8] sm:$0xff] }
  0xce   :  { %14045 = vst [vmem:[#allocation407_spill] sm:$0xff] %v10618_v5  ;;  %14046 = vst [vmem:[#allocation408_spill] sm:$0xff] %v10623_v33  ;;  %v10628_v25 = vld [vmem:[%s13146_s12 + $0x500] sm:$0xff]  ;;  %v10633_v19 = vld [vmem:[%s13146_s12 + $0x508] sm:$0xff] }
  0xcf   :  { %14047 = vst [vmem:[#allocation409_spill] sm:$0xff] %v10628_v25  ;;  %14048 = vst [vmem:[#allocation410_spill] sm:$0xff] %v10633_v19  ;;  %v10638_v3 = vld [vmem:[%s13146_s12 + $0x510] sm:$0xff]  ;;  %v10643_v5 = vld [vmem:[%s13146_s12 + $0x518] sm:$0xff] }
  0xd0   :  { %14049 = vst [vmem:[#allocation411_spill] sm:$0xff] %v10638_v3  ;;  %14050 = vst [vmem:[#allocation412_spill] sm:$0xff] %v10643_v5  ;;  %v10648_v33 = vld [vmem:[%s13146_s12 + $0x520] sm:$0xff]  ;;  %v10653_v25 = vld [vmem:[%s13146_s12 + $0x528] sm:$0xff] }
  0xd1   :  { %14051 = vst [vmem:[#allocation413_spill] sm:$0xff] %v10648_v33  ;;  %14052 = vst [vmem:[#allocation414_spill] sm:$0xff] %v10653_v25  ;;  %v10658_v19 = vld [vmem:[%s13146_s12 + $0x530] sm:$0xff]  ;;  %v10663_v3 = vld [vmem:[%s13146_s12 + $0x538] sm:$0xff] }
  0xd2   :  { %14053 = vst [vmem:[#allocation415_spill] sm:$0xff] %v10658_v19  ;;  %14054 = vst [vmem:[#allocation416_spill] sm:$0xff] %v10663_v3  ;;  %v10668_v5 = vld [vmem:[%s13146_s12 + $0x540] sm:$0xff]  ;;  %v10673_v33 = vld [vmem:[%s13146_s12 + $0x548] sm:$0xff] }
  0xd3   :  { %14055 = vst [vmem:[#allocation417_spill] sm:$0xff] %v10668_v5  ;;  %14056 = vst [vmem:[#allocation418_spill] sm:$0xff] %v10673_v33  ;;  %v10678_v25 = vld [vmem:[%s13146_s12 + $0x550] sm:$0xff]  ;;  %v10683_v19 = vld [vmem:[%s13146_s12 + $0x558] sm:$0xff] }
  0xd4   :  { %14057 = vst [vmem:[#allocation419_spill] sm:$0xff] %v10678_v25  ;;  %14058 = vst [vmem:[#allocation420_spill] sm:$0xff] %v10683_v19  ;;  %v10688_v3 = vld [vmem:[%s13146_s12 + $0x560] sm:$0xff]  ;;  %v10693_v5 = vld [vmem:[%s13146_s12 + $0x568] sm:$0xff] }
  0xd5   :  { %14059 = vst [vmem:[#allocation421_spill] sm:$0xff] %v10688_v3  ;;  %14060 = vst [vmem:[#allocation422_spill] sm:$0xff] %v10693_v5  ;;  %v10698_v33 = vld [vmem:[%s13146_s12 + $0x570] sm:$0xff]  ;;  %v10703_v25 = vld [vmem:[%s13146_s12 + $0x578] sm:$0xff] }
  0xd6   :  { %14061 = vst [vmem:[#allocation423_spill] sm:$0xff] %v10698_v33  ;;  %14062 = vst [vmem:[#allocation424_spill] sm:$0xff] %v10703_v25  ;;  %v10708_v19 = vld [vmem:[%s13146_s12 + $0x580] sm:$0xff]  ;;  %v10713_v3 = vld [vmem:[%s13146_s12 + $0x588] sm:$0xff] }
  0xd7   :  { %14063 = vst [vmem:[#allocation425_spill] sm:$0xff] %v10708_v19  ;;  %14064 = vst [vmem:[#allocation426_spill] sm:$0xff] %v10713_v3  ;;  %v10718_v5 = vld [vmem:[%s13146_s12 + $0x590] sm:$0xff]  ;;  %v10723_v33 = vld [vmem:[%s13146_s12 + $0x598] sm:$0xff] }
  0xd8   :  { %14065 = vst [vmem:[#allocation427_spill] sm:$0xff] %v10718_v5  ;;  %14066 = vst [vmem:[#allocation428_spill] sm:$0xff] %v10723_v33  ;;  %v10728_v25 = vld [vmem:[%s13146_s12 + $0x5a0] sm:$0xff]  ;;  %v10733_v19 = vld [vmem:[%s13146_s12 + $0x5a8] sm:$0xff] }
  0xd9   :  { %14067 = vst [vmem:[#allocation429_spill] sm:$0xff] %v10728_v25  ;;  %14068 = vst [vmem:[#allocation430_spill] sm:$0xff] %v10733_v19  ;;  %v10738_v3 = vld [vmem:[%s13146_s12 + $0x5b0] sm:$0xff]  ;;  %v10743_v5 = vld [vmem:[%s13146_s12 + $0x5b8] sm:$0xff] }
  0xda   :  { %14069 = vst [vmem:[#allocation431_spill] sm:$0xff] %v10738_v3  ;;  %14070 = vst [vmem:[#allocation432_spill] sm:$0xff] %v10743_v5  ;;  %v10748_v33 = vld [vmem:[%s13146_s12 + $0x5c0] sm:$0xff]  ;;  %v10753_v25 = vld [vmem:[%s13146_s12 + $0x5c8] sm:$0xff] }
  0xdb   :  { %14071 = vst [vmem:[#allocation433_spill] sm:$0xff] %v10748_v33  ;;  %14072 = vst [vmem:[#allocation434_spill] sm:$0xff] %v10753_v25  ;;  %v10758_v19 = vld [vmem:[%s13146_s12 + $0x5d0] sm:$0xff]  ;;  %v10763_v3 = vld [vmem:[%s13146_s12 + $0x5d8] sm:$0xff] }
  0xdc   :  { %14073 = vst [vmem:[#allocation435_spill] sm:$0xff] %v10758_v19  ;;  %14074 = vst [vmem:[#allocation436_spill] sm:$0xff] %v10763_v3  ;;  %v10768_v5 = vld [vmem:[%s13146_s12 + $0x5e0] sm:$0xff]  ;;  %v10773_v33 = vld [vmem:[%s13146_s12 + $0x5e8] sm:$0xff] }
  0xdd   :  { %14075 = vst [vmem:[#allocation437_spill] sm:$0xff] %v10768_v5  ;;  %14076 = vst [vmem:[#allocation438_spill] sm:$0xff] %v10773_v33  ;;  %v10778_v25 = vld [vmem:[%s13146_s12 + $0x5f0] sm:$0xff]  ;;  %v10783_v19 = vld [vmem:[%s13146_s12 + $0x5f8] sm:$0xff] }
  0xde   :  { %14077 = vst [vmem:[#allocation439_spill] sm:$0xff] %v10778_v25  ;;  %14078 = vst [vmem:[#allocation440_spill] sm:$0xff] %v10783_v19  ;;  %v10788_v3 = vld [vmem:[%s13146_s12 + $0x600] sm:$0xff]  ;;  %v10793_v5 = vld [vmem:[%s13146_s12 + $0x608] sm:$0xff] }
  0xdf   :  { %14079 = vst [vmem:[#allocation441_spill] sm:$0xff] %v10788_v3  ;;  %14080 = vst [vmem:[#allocation442_spill] sm:$0xff] %v10793_v5  ;;  %v10798_v33 = vld [vmem:[%s13146_s12 + $0x610] sm:$0xff]  ;;  %v10803_v25 = vld [vmem:[%s13146_s12 + $0x618] sm:$0xff] }
  0xe0   :  { %14081 = vst [vmem:[#allocation443_spill] sm:$0xff] %v10798_v33  ;;  %14082 = vst [vmem:[#allocation444_spill] sm:$0xff] %v10803_v25  ;;  %v10808_v19 = vld [vmem:[%s13146_s12 + $0x620] sm:$0xff]  ;;  %v10813_v3 = vld [vmem:[%s13146_s12 + $0x628] sm:$0xff] }
  0xe1   :  { %14083 = vst [vmem:[#allocation445_spill] sm:$0xff] %v10808_v19  ;;  %14084 = vst [vmem:[#allocation446_spill] sm:$0xff] %v10813_v3  ;;  %v10818_v5 = vld [vmem:[%s13146_s12 + $0x630] sm:$0xff]  ;;  %v10823_v33 = vld [vmem:[%s13146_s12 + $0x638] sm:$0xff] }
  0xe2   :  { %14085 = vst [vmem:[#allocation447_spill] sm:$0xff] %v10818_v5  ;;  %14086 = vst [vmem:[#allocation448_spill] sm:$0xff] %v10823_v33  ;;  %v10828_v25 = vld [vmem:[%s13146_s12 + $0x640] sm:$0xff]  ;;  %v10833_v19 = vld [vmem:[%s13146_s12 + $0x648] sm:$0xff] }
  0xe3   :  { %14087 = vst [vmem:[#allocation449_spill] sm:$0xff] %v10828_v25  ;;  %14088 = vst [vmem:[#allocation450_spill] sm:$0xff] %v10833_v19  ;;  %v10838_v3 = vld [vmem:[%s13146_s12 + $0x650] sm:$0xff]  ;;  %v10843_v5 = vld [vmem:[%s13146_s12 + $0x658] sm:$0xff] }
  0xe4   :  { %14089 = vst [vmem:[#allocation451_spill] sm:$0xff] %v10838_v3  ;;  %14090 = vst [vmem:[#allocation452_spill] sm:$0xff] %v10843_v5  ;;  %v10848_v33 = vld [vmem:[%s13146_s12 + $0x660] sm:$0xff]  ;;  %v10853_v25 = vld [vmem:[%s13146_s12 + $0x668] sm:$0xff] }
  0xe5   :  { %14091 = vst [vmem:[#allocation453_spill] sm:$0xff] %v10848_v33  ;;  %14092 = vst [vmem:[#allocation454_spill] sm:$0xff] %v10853_v25  ;;  %v10858_v19 = vld [vmem:[%s13146_s12 + $0x670] sm:$0xff]  ;;  %v10863_v3 = vld [vmem:[%s13146_s12 + $0x678] sm:$0xff] }
  0xe6   :  { %14093 = vst [vmem:[#allocation455_spill] sm:$0xff] %v10858_v19  ;;  %14094 = vst [vmem:[#allocation456_spill] sm:$0xff] %v10863_v3  ;;  %v10868_v5 = vld [vmem:[%s13146_s12 + $0x680] sm:$0xff]  ;;  %v10873_v33 = vld [vmem:[%s13146_s12 + $0x688] sm:$0xff] }
  0xe7   :  { %14095 = vst [vmem:[#allocation457_spill] sm:$0xff] %v10868_v5  ;;  %14096 = vst [vmem:[#allocation458_spill] sm:$0xff] %v10873_v33  ;;  %v10878_v25 = vld [vmem:[%s13146_s12 + $0x690] sm:$0xff]  ;;  %v10883_v19 = vld [vmem:[%s13146_s12 + $0x698] sm:$0xff] }
  0xe8   :  { %14097 = vst [vmem:[#allocation459_spill] sm:$0xff] %v10878_v25  ;;  %14098 = vst [vmem:[#allocation460_spill] sm:$0xff] %v10883_v19  ;;  %v10888_v3 = vld [vmem:[%s13146_s12 + $0x6a0] sm:$0xff]  ;;  %v10893_v5 = vld [vmem:[%s13146_s12 + $0x6a8] sm:$0xff] }
  0xe9   :  { %14099 = vst [vmem:[#allocation461_spill] sm:$0xff] %v10888_v3  ;;  %14100 = vst [vmem:[#allocation462_spill] sm:$0xff] %v10893_v5  ;;  %v10898_v33 = vld [vmem:[%s13146_s12 + $0x6b0] sm:$0xff]  ;;  %v10903_v25 = vld [vmem:[%s13146_s12 + $0x6b8] sm:$0xff] }
  0xea   :  { %14101 = vst [vmem:[#allocation463_spill] sm:$0xff] %v10898_v33  ;;  %14102 = vst [vmem:[#allocation464_spill] sm:$0xff] %v10903_v25  ;;  %v10908_v19 = vld [vmem:[%s13146_s12 + $0x6c0] sm:$0xff]  ;;  %v10913_v3 = vld [vmem:[%s13146_s12 + $0x6c8] sm:$0xff] }
  0xeb   :  { %14103 = vst [vmem:[#allocation465_spill] sm:$0xff] %v10908_v19  ;;  %14104 = vst [vmem:[#allocation466_spill] sm:$0xff] %v10913_v3  ;;  %v10918_v5 = vld [vmem:[%s13146_s12 + $0x6d0] sm:$0xff]  ;;  %v10923_v33 = vld [vmem:[%s13146_s12 + $0x6d8] sm:$0xff] }
  0xec   :  { %14105 = vst [vmem:[#allocation467_spill] sm:$0xff] %v10918_v5  ;;  %14106 = vst [vmem:[#allocation468_spill] sm:$0xff] %v10923_v33  ;;  %v10928_v25 = vld [vmem:[%s13146_s12 + $0x6e0] sm:$0xff]  ;;  %v10933_v19 = vld [vmem:[%s13146_s12 + $0x6e8] sm:$0xff] }
  0xed   :  { %14107 = vst [vmem:[#allocation469_spill] sm:$0xff] %v10928_v25  ;;  %14108 = vst [vmem:[#allocation470_spill] sm:$0xff] %v10933_v19  ;;  %v10938_v3 = vld [vmem:[%s13146_s12 + $0x6f0] sm:$0xff]  ;;  %v10943_v5 = vld [vmem:[%s13146_s12 + $0x6f8] sm:$0xff] }
  0xee   :  { %14109 = vst [vmem:[#allocation471_spill] sm:$0xff] %v10938_v3  ;;  %14110 = vst [vmem:[#allocation472_spill] sm:$0xff] %v10943_v5  ;;  %v10948_v33 = vld [vmem:[%s13146_s12 + $0x700] sm:$0xff]  ;;  %v10953_v25 = vld [vmem:[%s13146_s12 + $0x708] sm:$0xff] }
  0xef   :  { %14111 = vst [vmem:[#allocation473_spill] sm:$0xff] %v10948_v33  ;;  %14112 = vst [vmem:[#allocation474_spill] sm:$0xff] %v10953_v25  ;;  %v10958_v19 = vld [vmem:[%s13146_s12 + $0x710] sm:$0xff]  ;;  %v10963_v3 = vld [vmem:[%s13146_s12 + $0x718] sm:$0xff] }
  0xf0   :  { %14113 = vst [vmem:[#allocation475_spill] sm:$0xff] %v10958_v19  ;;  %14114 = vst [vmem:[#allocation476_spill] sm:$0xff] %v10963_v3  ;;  %v10968_v5 = vld [vmem:[%s13146_s12 + $0x720] sm:$0xff]  ;;  %v10973_v33 = vld [vmem:[%s13146_s12 + $0x728] sm:$0xff] }
  0xf1   :  { %14115 = vst [vmem:[#allocation477_spill] sm:$0xff] %v10968_v5  ;;  %14116 = vst [vmem:[#allocation478_spill] sm:$0xff] %v10973_v33  ;;  %v10978_v25 = vld [vmem:[%s13146_s12 + $0x730] sm:$0xff]  ;;  %v10983_v19 = vld [vmem:[%s13146_s12 + $0x738] sm:$0xff] }
  0xf2   :  { %14117 = vst [vmem:[#allocation479_spill] sm:$0xff] %v10978_v25  ;;  %14118 = vst [vmem:[#allocation480_spill] sm:$0xff] %v10983_v19  ;;  %v10988_v3 = vld [vmem:[%s13146_s12 + $0x740] sm:$0xff]  ;;  %v10993_v5 = vld [vmem:[%s13146_s12 + $0x748] sm:$0xff] }
  0xf3   :  { %14119 = vst [vmem:[#allocation481_spill] sm:$0xff] %v10988_v3  ;;  %14120 = vst [vmem:[#allocation482_spill] sm:$0xff] %v10993_v5  ;;  %v10998_v33 = vld [vmem:[%s13146_s12 + $0x750] sm:$0xff]  ;;  %v11003_v25 = vld [vmem:[%s13146_s12 + $0x758] sm:$0xff] }
  0xf4   :  { %14121 = vst [vmem:[#allocation483_spill] sm:$0xff] %v10998_v33  ;;  %14122 = vst [vmem:[#allocation484_spill] sm:$0xff] %v11003_v25  ;;  %v11008_v19 = vld [vmem:[%s13146_s12 + $0x760] sm:$0xff]  ;;  %v11013_v3 = vld [vmem:[%s13146_s12 + $0x768] sm:$0xff] }
  0xf5   :  { %14123 = vst [vmem:[#allocation485_spill] sm:$0xff] %v11008_v19  ;;  %14124 = vst [vmem:[#allocation486_spill] sm:$0xff] %v11013_v3  ;;  %v11018_v5 = vld [vmem:[%s13146_s12 + $0x770] sm:$0xff]  ;;  %v11023_v33 = vld [vmem:[%s13146_s12 + $0x778] sm:$0xff] }
  0xf6   :  { %14125 = vst [vmem:[#allocation487_spill] sm:$0xff] %v11018_v5  ;;  %14126 = vst [vmem:[#allocation488_spill] sm:$0xff] %v11023_v33  ;;  %v11028_v25 = vld [vmem:[%s13146_s12 + $0x780] sm:$0xff]  ;;  %v11033_v19 = vld [vmem:[%s13146_s12 + $0x788] sm:$0xff] }
  0xf7   :  { %14127 = vst [vmem:[#allocation489_spill] sm:$0xff] %v11028_v25  ;;  %14128 = vst [vmem:[#allocation490_spill] sm:$0xff] %v11033_v19  ;;  %v11038_v3 = vld [vmem:[%s13146_s12 + $0x790] sm:$0xff]  ;;  %v11043_v5 = vld [vmem:[%s13146_s12 + $0x798] sm:$0xff] }
  0xf8   :  { %14129 = vst [vmem:[#allocation491_spill] sm:$0xff] %v11038_v3  ;;  %14130 = vst [vmem:[#allocation492_spill] sm:$0xff] %v11043_v5  ;;  %v11048_v33 = vld [vmem:[%s13146_s12 + $0x7a0] sm:$0xff]  ;;  %v11053_v25 = vld [vmem:[%s13146_s12 + $0x7a8] sm:$0xff] }
  0xf9   :  { %14131 = vst [vmem:[#allocation493_spill] sm:$0xff] %v11048_v33  ;;  %14132 = vst [vmem:[#allocation494_spill] sm:$0xff] %v11053_v25  ;;  %v11058_v19 = vld [vmem:[%s13146_s12 + $0x7b0] sm:$0xff]  ;;  %v11063_v3 = vld [vmem:[%s13146_s12 + $0x7b8] sm:$0xff] }
  0xfa   :  { %14133 = vst [vmem:[#allocation495_spill] sm:$0xff] %v11058_v19  ;;  %14134 = vst [vmem:[#allocation496_spill] sm:$0xff] %v11063_v3  ;;  %v11068_v5 = vld [vmem:[%s13146_s12 + $0x7c0] sm:$0xff]  ;;  %v11073_v33 = vld [vmem:[%s13146_s12 + $0x7c8] sm:$0xff] }
  0xfb   :  { %14135 = vst [vmem:[#allocation497_spill] sm:$0xff] %v11068_v5  ;;  %14136 = vst [vmem:[#allocation498_spill] sm:$0xff] %v11073_v33  ;;  %v11078_v25 = vld [vmem:[%s13146_s12 + $0x7d0] sm:$0xff]  ;;  %v11083_v19 = vld [vmem:[%s13146_s12 + $0x7d8] sm:$0xff] }
  0xfc   :  { %14137 = vst [vmem:[#allocation499_spill] sm:$0xff] %v11078_v25  ;;  %14138 = vst [vmem:[#allocation500_spill] sm:$0xff] %v11083_v19  ;;  %v11088_v3 = vld [vmem:[%s13146_s12 + $0x7e0] sm:$0xff]  ;;  %v11093_v5 = vld [vmem:[%s13146_s12 + $0x7e8] sm:$0xff] }
  0xfd   :  { %14139 = vst [vmem:[#allocation501_spill] sm:$0xff] %v11088_v3  ;;  %14140 = vst [vmem:[#allocation502_spill] sm:$0xff] %v11093_v5  ;;  %v11098_v33 = vld [vmem:[%s13146_s12 + $0x7f0] sm:$0xff]  ;;  %v11103_v25 = vld [vmem:[%s13146_s12 + $0x7f8] sm:$0xff] }
  0xfe   :  { %14141 = vst [vmem:[#allocation503_spill] sm:$0xff] %v11098_v33  ;;  %14142 = vst [vmem:[#allocation504_spill] sm:$0xff] %v11103_v25 }
  0xff   :  { %1157 = vsyncadd [#allocation5 + $0x1], 32768  ;;  %v8226_v19 = vld [vmem:[%s13139_s5 + $0x14] ss:$8 sps:$4 sm:$0xff]   ;;  %v8228_v3 = vld [vmem:[%s13139_s5 + $0x10] ss:$8 sps:$4 sm:$0xff]  }
 0x100   :  { %v13607_v5 = vmov 0   ;;  %v8229_v33 = vld [vmem:[%s13139_s5 + $0x4] ss:$8 sps:$4 sm:$0xff]   ;;  %1205 = vmatprep.subr.bf16.mxu1 %v8226_v19  ;;  %v8231_v25 = vld [vmem:[%s13139_s5] ss:$8 sps:$4 sm:$0xff]   ;;  %s14143_s0 = sld [smem:[#allocation505_spill]] }
 0x101   :  { %1225 = vmatprep.mubr.bf16.mxu1 %v13607_v5  ;;  %1206 = vmatpush1.bf16.msra.mxu1 %v8228_v3  ;;  %v1267_v5 = vld [vmem:[%s13140_s6 + $0xf8] sm:$0xff]  ;;  %vm1189_vm0 = vcmask 261120   ;;  %v1266_v19 = vld [vmem:[%s13140_s6 + $0xf0] sm:$0xff]  ;;  %vm1500_vm1 = vcmask 523520   ;;  %vm1547_vm2 = vcmask 785920   ;;  %vm1594_vm3 = vcmask 1048320  }
 0x102   :  { %1207 = vmatprep.subr.bf16.mxu1 %v8229_v33  ;;  %v1251_v3 = vld [vmem:[%s13140_s6 + $0x78] sm:$0xff]  ;;  %v1250_v33 = vld [vmem:[%s13140_s6 + $0x70] sm:$0xff]  ;;  %v8447_v43 = vmov 14   ;;  %v8449_v41 = vmov 15   ;;  %vm1431_vm4 = vcmask 130048   ;;  %s8452_s30 = smov 96  }
 0x103   :  { %v1262_v37 = vld [vmem:[%s13140_s6 + $0xd0] sm:$0xff]  ;;  %s8453_s10 = smov 16   ;;  %s8455_s17 = smov 112  }
 0x104   :  { %s8456_s18 = smov 48   ;;  %s8457_s26 = smov 64  }
 0x105   :  { %1208 = vmatpush1.bf16.msra.mxu1 %v8231_v25  ;;  %v1248_v25 = vld [vmem:[%s13140_s6 + $0x60] sm:$0xff] }
 0x106   :  { %v1162_v13 = vld [vmem:[%s14143_s0] sm:$0xff]  ;;  %v1163_v15 = vld [vmem:[%s14143_s0 + $0x8] sm:$0xff]  ;;  %8111 = vmatprep.subr.mxu1 %v1267_v5  ;;  %s8454_s0 = smov 32  }
 0x107   :  { %v1164_v31 = vpack.c.bf16 %v1163_v15, %v1162_v13  ;;  %v1265_v13 = vld [vmem:[%s13140_s6 + $0xe8] sm:$0xff]  ;;  %v1264_v15 = vld [vmem:[%s13140_s6 + $0xe0] sm:$0xff] }
 0x108   :  { %v1249_v5 = vld [vmem:[%s13140_s6 + $0x68] sm:$0xff] }
 0x109   :  { %7499 = vmatmul.mubr.msk.bf16.vlgmr.msra.gmra.mxu1 %vm1189_vm0, %v1164_v31  ;;  %v1263_v31 = vld [vmem:[%s13140_s6 + $0xd8] sm:$0xff] }
 0x10a   :  { %8112 = vmatpush3.msra.mxu1 %v1251_v3  ;;  %v1247_v3 = vld [vmem:[%s13140_s6 + $0x58] sm:$0xff] }
 0x10b   :  { %8113 = vmatprep.subr.mxu1 %v1266_v19  ;;  %v1246_v19 = vld [vmem:[%s13140_s6 + $0x50] sm:$0xff] }
 0x10c   :  { %8114 = vmatpush3.msra.mxu1 %v1250_v33  ;;  %v1261_v33 = vld [vmem:[%s13140_s6 + $0xc8] sm:$0xff] }
 0x10d   :  { %8115 = vmatprep.subr.mxu1 %v1265_v13  ;;  %v1245_v13 = vld [vmem:[%s13140_s6 + $0x48] sm:$0xff] }
 0x10e   :  { %8116 = vmatpush3.msra.mxu1 %v1249_v5  ;;  %v1260_v5 = vld [vmem:[%s13140_s6 + $0xc0] sm:$0xff] }
 0x10f   :  { %8117 = vmatprep.subr.mxu1 %v1264_v15  ;;  %v1244_v15 = vld [vmem:[%s13140_s6 + $0x40] sm:$0xff] }
 0x110   :  { %8118 = vmatpush3.msra.mxu1 %v1248_v25  ;;  %v1259_v25 = vld [vmem:[%s13140_s6 + $0xb8] sm:$0xff] }
 0x111   :  { %8119 = vmatprep.subr.mxu1 %v1263_v31  ;;  %v1243_v31 = vld [vmem:[%s13140_s6 + $0x38] sm:$0xff] }
 0x112   :  { %8120 = vmatpush3.msra.mxu1 %v1247_v3  ;;  %v1258_v3 = vld [vmem:[%s13140_s6 + $0xb0] sm:$0xff] }
 0x113   :  { %8121 = vmatprep.subr.mxu1 %v1262_v37  ;;  %v1242_v37 = vld [vmem:[%s13140_s6 + $0x30] sm:$0xff] }
 0x114   :  { %8122 = vmatpush3.msra.mxu1 %v1246_v19  ;;  %v1257_v19 = vld [vmem:[%s13140_s6 + $0xa8] sm:$0xff] }
 0x115   :  { %8123 = vmatprep.subr.mxu1 %v1261_v33  ;;  %v1241_v33 = vld [vmem:[%s13140_s6 + $0x28] sm:$0xff] }
 0x116   :  { %8124 = vmatpush3.msra.mxu1 %v1245_v13  ;;  %v1256_v13 = vld [vmem:[%s13140_s6 + $0xa0] sm:$0xff] }
 0x117   :  { %8125 = vmatprep.subr.mxu1 %v1260_v5  ;;  %v1240_v5 = vld [vmem:[%s13140_s6 + $0x20] sm:$0xff] }
 0x118   :  { %8126 = vmatpush3.msra.mxu1 %v1244_v15  ;;  %v1255_v15 = vld [vmem:[%s13140_s6 + $0x98] sm:$0xff] }
 0x119   :  { %8127 = vmatprep.subr.mxu1 %v1259_v25  ;;  %v1239_v25 = vld [vmem:[%s13140_s6 + $0x18] sm:$0xff] }
 0x11a   :  { %8128 = vmatpush3.msra.mxu1 %v1243_v31  ;;  %v1254_v31 = vld [vmem:[%s13140_s6 + $0x90] sm:$0xff] }
 0x11b   :  { %8129 = vmatprep.subr.mxu1 %v1258_v3  ;;  %v1238_v3 = vld [vmem:[%s13140_s6 + $0x10] sm:$0xff] }
 0x11c   :  { %8130 = vmatpush3.msra.mxu1 %v1242_v37  ;;  %v1253_v37 = vld [vmem:[%s13140_s6 + $0x88] sm:$0xff] }
 0x11d   :  { %8131 = vmatprep.subr.mxu1 %v1257_v19  ;;  %v13613_v19 = vmov 0.0  }
 0x11e   :  { %8132 = vmatpush3.msra.mxu1 %v1241_v33  ;;  %1375 = vst [vmem:[#allocation2] sm:$0xff] %v13613_v19  ;;  %1379 = vst [vmem:[#allocation2 + $0x20] sm:$0xff] %v13613_v19  ;;  %v1237_v33 = vld [vmem:[%s13140_s6 + $0x8] sm:$0xff]  ;;  %1964 = vmatprep.mubr.f32.mxu0 %v13613_v19 }
 0x11f   :  { %8133 = vmatprep.subr.mxu1 %v1256_v13  ;;  %1383 = vst [vmem:[#allocation2 + $0x40] sm:$0xff] %v13613_v19  ;;  %1387 = vst [vmem:[#allocation2 + $0x60] sm:$0xff] %v13613_v19  ;;  %v1252_v13 = vld [vmem:[%s13140_s6 + $0x80] sm:$0xff] }
 0x120   :  { %8134 = vmatpush3.msra.mxu1 %v1240_v5  ;;  %1376 = vst [vmem:[#allocation2 + $0x8] sm:$0xff] %v13613_v19  ;;  %1377 = vst [vmem:[#allocation2 + $0x10] sm:$0xff] %v13613_v19  ;;  %v1236_v5 = vld [vmem:[%s13140_s6] sm:$0xff] }
 0x121   :  { %8135 = vmatprep.subr.mxu1 %v1255_v15  ;;  %1381 = vst [vmem:[#allocation2 + $0x30] sm:$0xff] %v13613_v19  ;;  %1385 = vst [vmem:[#allocation2 + $0x50] sm:$0xff] %v13613_v19 }
 0x122   :  { %8136 = vmatpush3.msra.mxu1 %v1239_v25  ;;  %1389 = vst [vmem:[#allocation2 + $0x70] sm:$0xff] %v13613_v19  ;;  %1392 = vst [vmem:[#allocation2 + $0x88] sm:$0xff] %v13613_v19 }
 0x123   :  { %8137 = vmatprep.subr.mxu1 %v1254_v31  ;;  %1394 = vst [vmem:[#allocation2 + $0x98] sm:$0xff] %v13613_v19  ;;  %1396 = vst [vmem:[#allocation2 + $0xa8] sm:$0xff] %v13613_v19 }
 0x124   :  { %8138 = vmatpush3.msra.mxu1 %v1238_v3  ;;  %1398 = vst [vmem:[#allocation2 + $0xb8] sm:$0xff] %v13613_v19  ;;  %1400 = vst [vmem:[#allocation2 + $0xc8] sm:$0xff] %v13613_v19 }
 0x125   :  { %1402 = vst [vmem:[#allocation2 + $0xd8] sm:$0xff] %v13613_v19  ;;  %1404 = vst [vmem:[#allocation2 + $0xe8] sm:$0xff] %v13613_v19  ;;  %8139 = vmatprep.subr.mxu1 %v1253_v37 }
 0x126   :  { %1406 = vst [vmem:[#allocation2 + $0xf8] sm:$0xff] %v13613_v19  ;;  %8140 = vmatpush3.msra.mxu1 %v1237_v33 }
 0x127   :  { %8141 = vmatprep.subr.mxu1 %v1252_v13 }
 0x128   :  { %8142 = vmatpush3.msra.mxu1 %v1236_v5 }
 0x1c9   :  { %v1227_v15 = vpop.f32.mrf.mxu1 }
 0x1ca   :  { %1454 = vst.msk [vmem:[#allocation2] sm:$0xff] %vm1189_vm0, %v1227_v15 }
 0x1cb   :  { %1501 = vst.msk [vmem:[#allocation2 + $0x20] sm:$0xff] %vm1500_vm1, %v1227_v15  ;;  %v1229_v25 = vpop.f32.mrf.mxu1 }
 0x1cc   :  { %1548 = vst.msk [vmem:[#allocation2 + $0x40] sm:$0xff] %vm1547_vm2, %v1227_v15  ;;  %1733 = vst.msk [vmem:[#allocation2 + $0xc8] sm:$0xff] %vm1547_vm2, %v1229_v25  ;;  %1332 = vmatprep.mubr.f32.mxu1 %v1229_v25 }
 0x1cd   :  { %1595 = vst.msk [vmem:[#allocation2 + $0x60] sm:$0xff] %vm1594_vm3, %v1227_v15  ;;  %1779 = vst.msk [vmem:[#allocation2 + $0xe8] sm:$0xff] %vm1594_vm3, %v1229_v25  ;;  %v1231_v31 = vpop.f32.mrf.mxu1  ;;  %1333 = vmatmul.mubr.f32.vlgmr.msra.gmra.mxu1 %v1227_v15 }
 0x1ce   :  { %1641 = vst.msk [vmem:[#allocation2 + $0x88] sm:$0xff] %vm1189_vm0, %v1229_v25  ;;  %1455 = vst.msk [vmem:[#allocation2 + $0x10] sm:$0xff] %vm1189_vm0, %v1231_v31 }
 0x1cf   :  { %1687 = vst.msk [vmem:[#allocation2 + $0xa8] sm:$0xff] %vm1500_vm1, %v1229_v25  ;;  %1502 = vst.msk [vmem:[#allocation2 + $0x30] sm:$0xff] %vm1500_vm1, %v1231_v31  ;;  %v1233_v3 = vpop.f32.mrf.mxu1 }
 0x1d0   :  { %1549 = vst.msk [vmem:[#allocation2 + $0x50] sm:$0xff] %vm1547_vm2, %v1231_v31  ;;  %1734 = vst.msk [vmem:[#allocation2 + $0xd8] sm:$0xff] %vm1547_vm2, %v1233_v3  ;;  %1337 = vmatprep.mubr.f32.mxu1 %v1233_v3 }
 0x1d1   :  { %1596 = vst.msk [vmem:[#allocation2 + $0x70] sm:$0xff] %vm1594_vm3, %v1231_v31  ;;  %1780 = vst.msk [vmem:[#allocation2 + $0xf8] sm:$0xff] %vm1594_vm3, %v1233_v3  ;;  %1338 = vmatmul.mubr.f32.gmra.mxu1 %v1231_v31 }
 0x1d2   :  { %1642 = vst.msk [vmem:[#allocation2 + $0x98] sm:$0xff] %vm1189_vm0, %v1233_v3 }
 0x1d3   :  { %1688 = vst.msk [vmem:[#allocation2 + $0xb8] sm:$0xff] %vm1500_vm1, %v1233_v3  ;;  %v1881_v5 = vld [vmem:[#allocation2 + $0xc8] sm:$0xff] }
 0x1d4   :  { %v1885_v33 = vld [vmem:[#allocation2 + $0xe8] sm:$0xff] }
 0x1d5   :  { %v1873_v3 = vld [vmem:[#allocation2 + $0x88] sm:$0xff] }
 0x1d6   :  { %v1877_v25 = vld [vmem:[#allocation2 + $0xa8] sm:$0xff] }
 0x1d7   :  { %v1883_v13 = vld [vmem:[#allocation2 + $0xd8] sm:$0xff] }
 0x1d8   :  { %v1887_v37 = vld [vmem:[#allocation2 + $0xf8] sm:$0xff] }
 0x1d9   :  { %1900 = vmatprep.subr.mxu0 %v1887_v37  ;;  %v1875_v31 = vld [vmem:[#allocation2 + $0x98] sm:$0xff]  ;;  %v1870_v37 = vld [vmem:[#allocation2 + $0x70] sm:$0xff] }
 0x1da   :  { %1901 = vmatpush1.msra.mxu0 %v13613_v19  ;;  %v1879_v15 = vld [vmem:[#allocation2 + $0xb8] sm:$0xff] }
 0x1db   :  { %1902 = vmatprep.subr.mxu0 %v1885_v33  ;;  %v1868_v33 = vld [vmem:[#allocation2 + $0x60] sm:$0xff] }
 0x1dc   :  { %1903 = vmatpush1.msra.mxu0 %v13613_v19 }
 0x1dd   :  { %1904 = vmatprep.subr.mxu0 %v1883_v13  ;;  %v1866_v13 = vld [vmem:[#allocation2 + $0x50] sm:$0xff] }
 0x1de   :  { %1905 = vmatpush1.msra.mxu0 %v13613_v19 }
 0x1df   :  { %1906 = vmatprep.subr.mxu0 %v1881_v5  ;;  %v1864_v5 = vld [vmem:[#allocation2 + $0x40] sm:$0xff] }
 0x1e0   :  { %1907 = vmatpush1.msra.mxu0 %v13613_v19 }
 0x1e1   :  { %1908 = vmatprep.subr.mxu0 %v1879_v15  ;;  %v1862_v15 = vld [vmem:[#allocation2 + $0x30] sm:$0xff] }
 0x1e2   :  { %1909 = vmatpush1.msra.mxu0 %v13613_v19 }
 0x1e3   :  { %1910 = vmatprep.subr.mxu0 %v1877_v25  ;;  %v1860_v25 = vld [vmem:[#allocation2 + $0x20] sm:$0xff] }
 0x1e4   :  { %1911 = vmatpush1.msra.mxu0 %v13613_v19 }
 0x1e5   :  { %1912 = vmatprep.subr.mxu0 %v1875_v31  ;;  %v1858_v31 = vld [vmem:[#allocation2 + $0x10] sm:$0xff] }
 0x1e6   :  { %1913 = vmatpush1.msra.mxu0 %v13613_v19 }
 0x1e7   :  { %1914 = vmatprep.subr.mxu0 %v1873_v3  ;;  %v1856_v3 = vld [vmem:[#allocation2] sm:$0xff] }
 0x1e8   :  { %1915 = vmatpush1.msra.mxu0 %v13613_v19 }
 0x1e9   :  { %1916 = vmatprep.subr.mxu0 %v13613_v19 }
 0x1ea   :  { %1917 = vmatpush1.msra.mxu0 %v1870_v37  ;;  %v8443_v37 = vmov 11  }
 0x1eb   :  { %1918 = vmatprep.subr.mxu0 %v13613_v19  ;;  %8192 = vset.pattern.permute.xlu1 %v8443_v37 }
 0x1ec   :  { %1919 = vmatpush1.msra.mxu0 %v1868_v33  ;;  %v8444_v33 = vmov 9  }
 0x1ed   :  { %1920 = vmatprep.subr.mxu0 %v13613_v19  ;;  %8190 = vset.pattern.permute.xlu0 %v8444_v33 }
 0x1ee   :  { %1921 = vmatpush1.msra.mxu0 %v1866_v13 }
 0x1ef   :  { %1922 = vmatprep.subr.mxu0 %v13613_v19 }
 0x1f0   :  { %1923 = vmatpush1.msra.mxu0 %v1864_v5 }
 0x1f1   :  { %1924 = vmatprep.subr.mxu0 %v13613_v19 }
 0x1f2   :  { %1925 = vmatpush1.msra.mxu0 %v1862_v15  ;;  %v8445_v15 = vmov 12  }
 0x1f3   :  { %1926 = vmatprep.subr.mxu0 %v13613_v19 }
 0x1f4   :  { %1927 = vmatpush1.msra.mxu0 %v1860_v25  ;;  %v8446_v25 = vmov 10  }
 0x1f5   :  { %1928 = vmatprep.subr.mxu0 %v13613_v19 }
 0x1f6   :  { %1929 = vmatpush1.msra.mxu0 %v1858_v31 }
 0x1f7   :  { %1930 = vmatprep.subr.mxu0 %v13613_v19  ;;  %v8448_v19 = vmov 13  }
 0x1f8   :  { %1931 = vmatpush1.msra.mxu0 %v1856_v3 }
 0x28d   :  { %v8143_v13 = vpop.f32.mrf.mxu1 }
 0x28f   :  { %v8144_v5 = vpop.f32.mrf.mxu1 }
 0x290   :  { %v8145_v54 = vadd.f32 %v8144_v5, %v8143_v13  ;;  %v8450_v13 = vmov 8  }
 0x291   :  { %v8146_v31 = vpop.f32.mrf.mxu1 }
 0x292   :  { %1551 = vperm.xlu1 %8192, %v8145_v54   ;;  %1457 = vperm.xlu0 %8190, %v8145_v54  }
 0x293   :  { %v8147_v3 = vpop.f32.mrf.mxu1 }
 0x294   :  { %v8148_v55 = vadd.f32 %v8147_v3, %v8146_v31 }
 0x296   :  { %8193 = vset.pattern.permute.xlu1 %v8445_v15  ;;  %8191 = vset.pattern.permute.xlu0 %v8446_v25 }
 0x297   :  { %1598 = vperm.xlu1 %8193, %v8145_v54   ;;  %1504 = vperm.xlu0 %8191, %v8145_v54  }
 0x29b   :  { %8195 = vset.pattern.permute.xlu1 %v8447_v43  ;;  %8194 = vset.pattern.permute.xlu0 %v8448_v19 }
 0x29c   :  { %1690 = vperm.xlu1 %8195, %v8145_v54   ;;  %1644 = vperm.xlu0 %8194, %v8145_v54  }
 0x2a0   :  { %8196 = vset.pattern.permute.xlu1 %v8449_v41  ;;  %8199 = vset.pattern.permute.xlu0 %v8443_v37 }
 0x2a1   :  { %1736 = vperm.xlu1 %8196, %v8145_v54   ;;  %1555 = vperm.xlu0 %8199, %v8148_v55  }
 0x2a5   :  { %8197 = vset.pattern.permute.xlu1 %v8444_v33  ;;  %8201 = vset.pattern.permute.xlu0 %v8448_v19 }
 0x2a6   :  { %1461 = vperm.xlu1 %8197, %v8148_v55   ;;  %1648 = vperm.xlu0 %8201, %v8148_v55  }
 0x2aa   :  { %8198 = vset.pattern.permute.xlu1 %v8446_v25 }
 0x2ab   :  { %1508 = vperm.xlu1 %8198, %v8148_v55  }
 0x2af   :  { %8200 = vset.pattern.permute.xlu1 %v8445_v15 }
 0x2b0   :  { %1602 = vperm.xlu1 %8200, %v8148_v55  }
 0x2b4   :  { %8202 = vset.pattern.permute.xlu1 %v8447_v43 }
 0x2b5   :  { %1694 = vperm.xlu1 %8202, %v8148_v55  }
 0x2b9   :  { %8203 = vset.pattern.permute.xlu1 %v8449_v41 }
 0x2ba   :  { %1740 = vperm.xlu1 %8203, %v8148_v55  }
 0x2be   :  { %8204 = vset.pattern.permute.xlu1 %v8450_v13 }
 0x2bf   :  { %1409 = vperm.xlu1 %8204, %v8145_v54  }
 0x2c3   :  { %1414 = vperm.xlu1 %8204, %v8148_v55  }
 0x2c4   :  { %1343 = vxpose.xlu0.b32.start [1/2] (short) (narrow) %v8145_v54, 8  ;;  %v1417_v54 = vlaneseq }
 0x2c6   :  { %v11285_v11 = vshrl.u32 %v1417_v54, 7 }
 0x2c8   :  { %1344 = vxpose.xlu0.b32.end [2/2] (short) (narrow) %v8148_v55, 8  ;;  %v11290_v27 = vsub.s32 2, %v11285_v11  ;;  %v11293_v39 = vsub.s32 1, %v11285_v11  ;;  %v13638_v2 = vsub.s32 5, %v11285_v11  ;;  %v11297_v49 = vsub.s32 3, %v11285_v11 }
 0x2c9   :  { %v13641_v53 = vsub.s32 7, %v11285_v11  ;;  %v11302_v54 = vsub.s32 0, %v11285_v11  ;;  %v14144_v57 = vsub.s32 4, %v11285_v11 }
 0x2f1   :  { %8225 = vset.pattern.permute.xlu0 %v8449_v41 }
 0x30d   :  { %v1552_v37 = vpop.permute.xlu1 %1551  ;;  %v1458_v15 = vpop.permute.xlu0 %1457 }
 0x312   :  { %v1599_v33 = vpop.permute.xlu1 %1598  ;;  %v1505_v31 = vpop.permute.xlu0 %1504 }
 0x317   :  { %v11271_v19 = vpop.permute.xlu1 %1690  ;;  %v1645_v13 = vpop.permute.xlu0 %1644 }
 0x31c   :  { %v11273_v5 = vpop.permute.xlu1 %1736  ;;  %v11283_v55 = vpop.permute.xlu0 %1555 }
 0x321   :  { %v11275_v25 = vpop.permute.xlu1 %1461  ;;  %v1649_v51 = vpop.permute.xlu0 %1648 }
 0x326   :  { %v11277_v43 = vpop.permute.xlu1 %1508 }
 0x32b   :  { %v11279_v3 = vpop.permute.xlu1 %1602 }
 0x330   :  { %v11281_v45 = vpop.permute.xlu1 %1694 }
 0x335   :  { %v1741_v41 = vpop.permute.xlu1 %1740 }
 0x33a   :  { %v11287_v21 = vpop.permute.xlu1 %1409 }
 0x33e   :  { %v1415_v58 = vpop.permute.xlu1 %1414 }
 0x340   :  { %v1359_v18 = vpop.trf.xlu0 }
 0x341   :  { %v11305_v29 = vrot.slane %v1359_v18, %v11290_v27  ;;  %v11308_v22 = vrot.slane %v1359_v18, %v11293_v39  ;;  %v1654_v26 = vrot.slane %v1359_v18, %v13638_v2  ;;  %v11313_v34 = vrot.slane %v1359_v18, %v11297_v49 }
 0x342   :  { %v1746_v10 = vrot.slane %v1359_v18, %v13641_v53  ;;  %v11319_v61 = vrot.slane %v1359_v18, %v14144_v57  ;;  %v11322_v42 = vrot.slane %v1359_v18, %v11302_v54  ;;  %v11331_v53 = vld [vmem:[%s13135_s1] sm:$0xff]  ;;  %v11336_v57 = vld [vmem:[%s13135_s1 + $0x8] sm:$0xff]  ;;  %s8451_s1 = smov 80  }
 0x343   :  { %v1515_v7 = vadd.f32 %v11305_v29, %v1505_v31  ;;  %v1468_v2 = vadd.f32 %v11308_v22, %v1458_v15  ;;  %v1656_v0 = vadd.f32 %v1654_v26, %v1649_v51  ;;  %v1562_v4 = vadd.f32 %v11313_v34, %v1552_v37 }
 0x344   :  { %v1748_v35 = vadd.f32 %v1746_v10, %v1741_v41  ;;  %v1609_v50 = vadd.f32 %v11319_v61, %v1599_v33  ;;  %v1422_v31 = vadd.f32 %v11322_v42, %v1415_v58  ;;  %v1655_v59 = vadd.f32 %v1654_v26, %v1645_v13 }
 0x345   :  { %vm1517_vm5 = vcmp.ge.f32.partialorder %v1515_v7, 0.0  ;;  %v1519_v51 = vmul.f32 0.2, %v1515_v7  ;;  %vm1470_vm6 = vcmp.ge.f32.partialorder %v1468_v2, 0.0  ;;  %v1472_v37 = vmul.f32 0.2, %v1468_v2 }
 0x346   :  { %vm1658_vm7 = vcmp.ge.f32.partialorder %v1656_v0, 0.0  ;;  %v1660_v15 = vmul.f32 0.2, %v1656_v0  ;;  %vm1564_vm8 = vcmp.ge.f32.partialorder %v1562_v4, 0.0  ;;  %v1566_v8 = vmul.f32 0.2, %v1562_v4 }
 0x347   :  { %v1521_v12 = vsel %vm1517_vm5, %v1515_v7, %v1519_v51  ;;  %v1474_v63 = vsel %vm1470_vm6, %v1468_v2, %v1472_v37  ;;  %vm1750_vm9 = vcmp.ge.f32.partialorder %v1748_v35, 0.0  ;;  %v1752_v14 = vmul.f32 0.2, %v1748_v35 }
 0x348   :  { %v11341_v16 = vadd.f32 %v1521_v12, %v11331_v53  ;;  %v11344_v33 = vadd.f32 %v1474_v63, %v11331_v53  ;;  %v1662_v58 = vsel %vm1658_vm7, %v1656_v0, %v1660_v15  ;;  %v1568_v26 = vsel %vm1564_vm8, %v1562_v4, %v1566_v8 }
 0x349   :  { %v11347_v13 = vadd.f32 %v1662_v58, %v11336_v57  ;;  %vm1611_vm10 = vcmp.ge.f32.partialorder %v1609_v50, 0.0  ;;  %v14145_v41 = vsub.s32 6, %v11285_v11  ;;  %v11358_v12 = vadd.f32 %v1568_v26, %v11331_v53 }
 0x34a   :  { %v1525_v2 = vsel %vm1431_vm4, %v11341_v16, -inf  ;;  %v1478_v7 = vsel %vm1431_vm4, %v11344_v33, -inf  ;;  %v1613_v63 = vmul.f32 0.2, %v1609_v50  ;;  %v1754_v0 = vsel %vm1750_vm9, %v1748_v35, %v1752_v14 }
 0x34b   :  { %v11351_v20 = vrot.slane %v1359_v18, %v14145_v41  ;;  %1526 = vmax.xlane.f32.xlu0 %v1525_v2  ;;  %1479 = vmax.xlane.f32.xlu1 %v1478_v7  ;;  %v1426_v4 = vmul.f32 0.2, %v1422_v31  ;;  %vm1424_vm11 = vcmp.ge.f32.partialorder %v1422_v31, 0.0  ;;  %vm1657_vm12 = vcmp.ge.f32.partialorder %v1655_v59, 0.0 }
 0x34c   :  { %v1615_v8 = vsel %vm1611_vm10, %v1609_v50, %v1613_v63  ;;  %v1659_v51 = vmul.f32 0.2, %v1655_v59  ;;  %v1668_v37 = vsel %vm1431_vm4, %v11347_v13, -inf  ;;  %v1572_v15 = vsel %vm1431_vm4, %v11358_v12, -inf }
 0x34d   :  { %v1701_v18 = vadd.f32 %v11351_v20, %v11271_v19  ;;  %v11367_v58 = vadd.f32 %v1754_v0, %v11336_v57  ;;  %v11370_v26 = vadd.f32 %v1615_v8, %v11331_v53  ;;  %v1428_v14 = vsel %vm1424_vm11, %v1422_v31, %v1426_v4 }
 0x34e   :  { %v1661_v35 = vsel %vm1657_vm12, %v1655_v59, %v1659_v51  ;;  %v1747_v41 = vadd.f32 %v1746_v10, %v11273_v5  ;;  %v11378_v7 = vadd.f32 %v1428_v14, %v11336_v57  ;;  %v1469_v10 = vadd.f32 %v11308_v22, %v11275_v25 }
 0x34f   :  { %1669 = vmax.xlane.f32.xlu0 %v1668_v37  ;;  %1573 = vmax.xlane.f32.xlu1 %v1572_v15  ;;  %v1705_v50 = vmul.f32 0.2, %v1701_v18  ;;  %vm1703_vm13 = vcmp.ge.f32.partialorder %v1701_v18, 0.0  ;;  %v1760_v19 = vsel %vm1431_vm4, %v11367_v58, -inf  ;;  %v1619_v2 = vsel %vm1431_vm4, %v11370_v26, -inf }
 0x350   :  { %v11381_v63 = vadd.f32 %v1661_v35, %v11331_v53  ;;  %v1751_v59 = vmul.f32 0.2, %v1747_v41  ;;  %vm1749_vm14 = vcmp.ge.f32.partialorder %v1747_v41, 0.0  ;;  %v1435_v5 = vsel %vm1431_vm4, %v11378_v7, -inf }
 0x351   :  { %v1707_v31 = vsel %vm1703_vm13, %v1701_v18, %v1705_v50  ;;  %v1473_v51 = vmul.f32 0.2, %v1469_v10  ;;  %v1516_v18 = vadd.f32 %v11305_v29, %v11277_v43  ;;  %vm1471_vm15 = vcmp.ge.f32.partialorder %v1469_v10, 0.0 }
 0x352   :  { %v1665_v0 = vsel %vm1431_vm4, %v11381_v63, -inf  ;;  %v11390_v4 = vadd.f32 %v1707_v31, %v11331_v53  ;;  %v1753_v8 = vsel %vm1749_vm14, %v1747_v41, %v1751_v59  ;;  %v1563_v14 = vadd.f32 %v11313_v34, %v11283_v55 }
 0x353   :  { %1761 = vmax.xlane.f32.xlu0 %v1760_v19  ;;  %1620 = vmax.xlane.f32.xlu1 %v1619_v2  ;;  %v11397_v25 = vadd.f32 %v1753_v8, %v11331_v53  ;;  %v1475_v37 = vsel %vm1471_vm15, %v1469_v10, %v1473_v51  ;;  %v1520_v15 = vmul.f32 0.2, %v1516_v18  ;;  %vm1518_vm1 = vcmp.ge.f32.partialorder %v1516_v18, 0.0 }
 0x354   :  { %v1711_v22 = vsel %vm1431_vm4, %v11390_v4, -inf  ;;  %v11404_v50 = vadd.f32 %v1475_v37, %v11336_v57  ;;  %v1567_v43 = vmul.f32 0.2, %v1563_v14  ;;  %v1610_v41 = vadd.f32 %v11319_v61, %v11279_v3 }
 0x355   :  { %v1757_v35 = vsel %vm1431_vm4, %v11397_v25, -inf  ;;  %v1522_v29 = vsel %vm1518_vm1, %v1516_v18, %v1520_v15  ;;  %vm1565_vm2 = vcmp.ge.f32.partialorder %v1563_v14, 0.0  ;;  %v1702_v31 = vadd.f32 %v11351_v20, %v11281_v45 }
 0x356   :  { %v1481_v19 = vsel %vm1431_vm4, %v11404_v50, -inf  ;;  %v11411_v2 = vadd.f32 %v1522_v29, %v11336_v57  ;;  %v1569_v34 = vsel %vm1565_vm2, %v1563_v14, %v1567_v43  ;;  %v1614_v55 = vmul.f32 0.2, %v1610_v41 }
 0x357   :  { %1436 = vmax.xlane.f32.xlu0 %v1435_v5  ;;  %1666 = vmax.xlane.f32.xlu1 %v1665_v0  ;;  %vm1612_vm3 = vcmp.ge.f32.partialorder %v1610_v41, 0.0  ;;  %v11418_v10 = vadd.f32 %v1569_v34, %v11336_v57  ;;  %v1706_v3 = vmul.f32 0.2, %v1702_v31  ;;  %v1421_v5 = vadd.f32 %v11322_v42, %v11287_v21 }
 0x358   :  { %v1528_v59 = vsel %vm1431_vm4, %v11411_v2, -inf  ;;  %v1616_v61 = vsel %vm1612_vm3, %v1610_v41, %v1614_v55  ;;  %vm1704_vm5 = vcmp.ge.f32.partialorder %v1702_v31, 0.0  ;;  %vm1841_vm7 = vcmask 392192  }
 0x359   :  { %v1575_v0 = vsel %vm1431_vm4, %v11418_v10, -inf  ;;  %v11425_v8 = vadd.f32 %v1616_v61, %v11336_v57  ;;  %v1708_v20 = vsel %vm1704_vm5, %v1702_v31, %v1706_v3  ;;  %v1425_v45 = vmul.f32 0.2, %v1421_v5 }
 0x35a   :  { %vm1423_vm6 = vcmp.ge.f32.partialorder %v1421_v5, 0.0  ;;  %v11430_v18 = vadd.f32 %v1708_v20, %v11336_v57  ;;  %vm1844_vm8 = vcmask 523264   ;;  %vm1847_vm9 = vcmask 654336  }
 0x35b   :  { %1712 = vmax.xlane.f32.xlu1 %v1711_v22  ;;  %v1622_v51 = vsel %vm1431_vm4, %v11425_v8, -inf  ;;  %v1427_v22 = vsel %vm1423_vm6, %v1421_v5, %v1425_v45  ;;  %vm1850_vm10 = vcmask 785408   ;;  %vm1853_vm11 = vcmask 916480  }
 0x35c   :  { %v1714_v21 = vsel %vm1431_vm4, %v11430_v18, -inf  ;;  %v11435_v42 = vadd.f32 %v1427_v22, %v11331_v53 }
 0x35e   :  { %v1432_v37 = vsel %vm1431_vm4, %v11435_v42, -inf }
 0x35f   :  { %1758 = vmax.xlane.f32.xlu1 %v1757_v35 }
 0x363   :  { %1482 = vmax.xlane.f32.xlu1 %v1481_v19 }
 0x367   :  { %1529 = vmax.xlane.f32.xlu1 %v1528_v59 }
 0x36b   :  { %1576 = vmax.xlane.f32.xlu1 %v1575_v0 }
 0x36f   :  { %1623 = vmax.xlane.f32.xlu1 %v1622_v51 }
 0x373   :  { %1715 = vmax.xlane.f32.xlu1 %v1714_v21 }
 0x377   :  { %1433 = vmax.xlane.f32.xlu1 %v1432_v37 }
 0x3d4   :  { %v1527_v15 = vpop.xlane.xlu0 %1526  ;;  %v1480_v14 = vpop.xlane.xlu1 %1479 }
 0x3d5   :  { %v1531_v35 = vsub.f32 %v11341_v16, %v1527_v15  ;;  %v1484_v57 = vsub.f32 %v11344_v33, %v1480_v14 }
 0x3d7   :  { %v1533_v29 = vmul.f32 1.442695, %v1531_v35  ;;  %v1486_v43 = vmul.f32 1.442695, %v1484_v57 }
 0x3d8   :  { %v1574_v41 = vpop.xlane.xlu1 %1573  ;;  %v1670_v61 = vpop.xlane.xlu0 %1669 }
 0x3d9   :  { %8328 = vpow2.f32 %v1533_v29  ;;  %v1578_v19 = vsub.f32 %v11358_v12, %v1574_v41  ;;  %v1672_v51 = vsub.f32 %v11347_v13, %v1670_v61 }
 0x3da   :  { %8330 = vpow2.f32 %v1486_v43 }
 0x3db   :  { %v1580_v53 = vmul.f32 1.442695, %v1578_v19  ;;  %v1675_v15 = vmul.f32 1.442695, %v1672_v51 }
 0x3dc   :  { %v1621_v34 = vpop.xlane.xlu1 %1620  ;;  %v1762_v20 = vpop.xlane.xlu0 %1761 }
 0x3dd   :  { %v1625_v55 = vsub.f32 %v11370_v26, %v1621_v34  ;;  %8332 = vpow2.f32 %v1580_v53  ;;  %v1764_v14 = vsub.f32 %v11367_v58, %v1762_v20 }
 0x3df   :  { %v1627_v31 = vmul.f32 1.442695, %v1625_v55 }
 0x3e0   :  { %v1667_v59 = vpop.xlane.xlu1 %1666  ;;  %v1437_v13 = vpop.xlane.xlu0 %1436 }
 0x3e1   :  { %v1671_v3 = vsub.f32 %v11381_v63, %v1667_v59  ;;  %8334 = vpow2.f32 %v1627_v31  ;;  %v1439_v19 = vsub.f32 %v11378_v7, %v1437_v13 }
 0x3e3   :  { %v1673_v16 = vmul.f32 1.442695, %v1671_v3 }
 0x3e4   :  { %v1713_v33 = vpop.xlane.xlu1 %1712 }
 0x3e5   :  { %v1717_v5 = vsub.f32 %v11390_v4, %v1713_v33  ;;  %8336 = vpow2.f32 %v1673_v16 }
 0x3e6   :  { %v11445_v0 = vpop.eup %8328 }
 0x3e7   :  { %v11447_v12 = vpop.eup %8330  ;;  %v1719_v45 = vmul.f32 1.442695, %v1717_v5  ;;  %v1537_v26 = vsel %vm1431_vm4, %v11445_v0, 0.0 }
 0x3e8   :  { %1538 = vadd.xlane.f32.xlu0 %v1537_v26  ;;  %v1759_v22 = vpop.xlane.xlu1 %1758  ;;  %v1490_v63 = vsel %vm1431_vm4, %v11447_v12, 0.0 }
 0x3e9   :  { %8338 = vpow2.f32 %v1719_v45  ;;  %v1763_v4 = vsub.f32 %v11397_v25, %v1759_v22  ;;  %1491 = vadd.xlane.f32.xlu1 %v1490_v63  ;;  %v1767_v25 = vmul.f32 1.442695, %v1764_v14 }
 0x3ea   :  { %v11455_v21 = vpop.eup %8332 }
 0x3eb   :  { %v1765_v37 = vmul.f32 1.442695, %v1763_v4  ;;  %v1584_v57 = vsel %vm1431_vm4, %v11455_v21, 0.0 }
 0x3ec   :  { %v1483_v35 = vpop.xlane.xlu1 %1482 }
 0x3ed   :  { %8340 = vpow2.f32 %v1765_v37  ;;  %v1485_v29 = vsub.f32 %v11404_v50, %v1483_v35  ;;  %1585 = vadd.xlane.f32.xlu1 %v1584_v57  ;;  %v1442_v50 = vmul.f32 1.442695, %v1439_v19 }
 0x3ee   :  { %v11461_v43 = vpop.eup %8334  ;;  %8342 = vpow2.f32 %v1675_v15 }
 0x3ef   :  { %v1488_v41 = vmul.f32 1.442695, %v1485_v29  ;;  %v1631_v53 = vsel %vm1431_vm4, %v11461_v43, 0.0 }
 0x3f0   :  { %v1530_v58 = vpop.xlane.xlu1 %1529  ;;  %1632 = vadd.xlane.f32.xlu0 %v1631_v53 }
 0x3f1   :  { %8344 = vpow2.f32 %v1488_v41  ;;  %v1532_v34 = vsub.f32 %v11411_v2, %v1530_v58 }
 0x3f2   :  { %v11467_v55 = vpop.eup %8336  ;;  %8346 = vpow2.f32 %v1767_v25 }
 0x3f3   :  { %v1535_v31 = vmul.f32 1.442695, %v1532_v34  ;;  %v1677_v59 = vsel %vm1431_vm4, %v11467_v55, 0.0 }
 0x3f4   :  { %v1577_v61 = vpop.xlane.xlu1 %1576  ;;  %1678 = vadd.xlane.f32.xlu0 %v1677_v59 }
 0x3f5   :  { %8348 = vpow2.f32 %v1535_v31  ;;  %v1579_v7 = vsub.f32 %v11418_v10, %v1577_v61 }
 0x3f6   :  { %v11472_v3 = vpop.eup %8338  ;;  %8350 = vpow2.f32 %v1442_v50 }
 0x3f7   :  { %v1582_v16 = vmul.f32 1.442695, %v1579_v7  ;;  %v1723_v33 = vsel %vm1431_vm4, %v11472_v3, 0.0 }
 0x3f8   :  { %v1624_v2 = vpop.xlane.xlu1 %1623  ;;  %1724 = vadd.xlane.f32.xlu0 %v1723_v33 }
 0x3f9   :  { %8352 = vpow2.f32 %v1582_v16  ;;  %v1626_v5 = vsub.f32 %v11425_v8, %v1624_v2 }
 0x3fa   :  { %v11477_v20 = vpop.eup %8340 }
 0x3fb   :  { %v1629_v45 = vmul.f32 1.442695, %v1626_v5  ;;  %v1769_v26 = vsel %vm1431_vm4, %v11477_v20, 0.0  ;;  %v11481_v10 = vpop.eup %8342 }
 0x3fc   :  { %v1716_v51 = vpop.xlane.xlu1 %1715  ;;  %1770 = vadd.xlane.f32.xlu0 %v1769_v26  ;;  %v1680_v8 = vsel %vm1431_vm4, %v11481_v10, 0.0 }
 0x3fd   :  { %8354 = vpow2.f32 %v1629_v45  ;;  %v1718_v22 = vsub.f32 %v11430_v18, %v1716_v51 }
 0x3fe   :  { %v11484_v63 = vpop.eup %8344 }
 0x3ff   :  { %v1721_v4 = vmul.f32 1.442695, %v1718_v22  ;;  %v1493_v37 = vsel %vm1431_vm4, %v11484_v63, 0.0  ;;  %v11490_v14 = vpop.eup %8346 }
 0x400   :  { %1494 = vadd.xlane.f32.xlu1 %v1493_v37  ;;  %v1434_v15 = vpop.xlane.xlu1 %1433  ;;  %1681 = vadd.xlane.f32.xlu0 %v1680_v8  ;;  %v1772_v29 = vsel %vm1431_vm4, %v11490_v14, 0.0 }
 0x401   :  { %8356 = vpow2.f32 %v1721_v4  ;;  %v1438_v35 = vsub.f32 %v11435_v42, %v1434_v15 }
 0x402   :  { %v11493_v57 = vpop.eup %8348 }
 0x403   :  { %v1440_v18 = vmul.f32 1.442695, %v1438_v35  ;;  %v1540_v13 = vsel %vm1431_vm4, %v11493_v57, 0.0  ;;  %v11499_v41 = vpop.eup %8350 }
 0x404   :  { %1541 = vadd.xlane.f32.xlu1 %v1540_v13  ;;  %1773 = vadd.xlane.f32.xlu0 %v1772_v29  ;;  %v1447_v42 = vsel %vm1431_vm4, %v11499_v41, 0.0 }
 0x405   :  { %8358 = vpow2.f32 %v1440_v18 }
 0x406   :  { %v11501_v25 = vpop.eup %8352 }
 0x407   :  { %v1587_v19 = vsel %vm1431_vm4, %v11501_v25, 0.0 }
 0x408   :  { %1588 = vadd.xlane.f32.xlu1 %v1587_v19  ;;  %1448 = vadd.xlane.f32.xlu0 %v1447_v42 }
 0x40a   :  { %v11507_v53 = vpop.eup %8354 }
 0x40b   :  { %v1634_v58 = vsel %vm1431_vm4, %v11507_v53, 0.0 }
 0x40c   :  { %1635 = vadd.xlane.f32.xlu1 %v1634_v58 }
 0x40e   :  { %v11511_v34 = vpop.eup %8356 }
 0x40f   :  { %v1726_v31 = vsel %vm1431_vm4, %v11511_v34, 0.0 }
 0x410   :  { %1727 = vadd.xlane.f32.xlu1 %v1726_v31 }
 0x412   :  { %v11515_v50 = vpop.eup %8358 }
 0x413   :  { %v1444_v59 = vsel %vm1431_vm4, %v11515_v50, 0.0 }
 0x414   :  { %1445 = vadd.xlane.f32.xlu1 %v1444_v59 }
 0x471   :  { %v1539_v61 = vpop.xlane.xlu0 %1538 }
 0x472   :  { %v1492_v33 = vpop.xlane.xlu1 %1491 }
 0x476   :  { %v1586_v5 = vpop.xlane.xlu1 %1585 }
 0x479   :  { %v1633_v7 = vpop.xlane.xlu0 %1632 }
 0x47d   :  { %v1679_v16 = vpop.xlane.xlu0 %1678 }
 0x47e   :  { %8360 = vrcp.f32 %v1679_v16 }
 0x481   :  { %v1725_v2 = vpop.xlane.xlu0 %1724 }
 0x482   :  { %8362 = vrcp.f32 %v1725_v2 }
 0x483   :  { %8364 = vrcp.f32 %v1492_v33 }
 0x485   :  { %v1771_v4 = vpop.xlane.xlu0 %1770 }
 0x489   :  { %v1495_v45 = vpop.xlane.xlu1 %1494  ;;  %v1682_v18 = vpop.xlane.xlu0 %1681 }
 0x48a   :  { %8366 = vrcp.f32 %v1495_v45 }
 0x48b   :  { %v8361_v26 = vpop.eup %8360  ;;  %8368 = vrcp.f32 %v1539_v61 }
 0x48c   :  { %v1685_v22 = vmul.f32 %v8361_v26, %v11467_v55 }
 0x48d   :  { %v1542_v51 = vpop.xlane.xlu1 %1541  ;;  %v1774_v59 = vpop.xlane.xlu0 %1773 }
 0x48e   :  { %8370 = vrcp.f32 %v1542_v51  ;;  %1815 = vrot.lane.b32.xlu0 %v1685_v22, %s8451_s1 }
 0x48f   :  { %v8363_v37 = vpop.eup %8362  ;;  %8372 = vrcp.f32 %v1586_v5 }
 0x490   :  { %8374 = vrcp.f32 %v1771_v4  ;;  %v1731_v15 = vmul.f32 %v8363_v37, %v11472_v3  ;;  %v8365_v35 = vpop.eup %8364  ;;  %v8237_v37 = vld [vmem:[%s13142_s8 + $0xec] ss:$16 sps:$4 sm:$0xff]  }
 0x491   :  { %v1589_v8 = vpop.xlane.xlu1 %1588  ;;  %v1498_v29 = vmul.f32 %v8365_v35, %v11447_v12  ;;  %2410 = vmatprep.subr.bf16.mxu0 %v8237_v37 }
 0x492   :  { %8376 = vrcp.f32 %v1589_v8  ;;  %1823 = vrot.lane.b32.xlu1 %v1731_v15, %s8452_s30  ;;  %v8238_v15 = vld [vmem:[%s13142_s8 + $0xc0] ss:$16 sps:$4 sm:$0xff]  }
 0x493   :  { %8378 = vrcp.f32 %v1633_v7 }
 0x495   :  { %v1636_v13 = vpop.xlane.xlu1 %1635 }
 0x496   :  { %8380 = vrcp.f32 %v1636_v13 }
 0x497   :  { %v8367_v55 = vpop.eup %8366  ;;  %8382 = vrcp.f32 %v1682_v18  ;;  %v8246_v18 = vld [vmem:[%s13142_s8 + $0xa4] ss:$16 sps:$4 sm:$0xff]  }
 0x498   :  { %v1499_v19 = vmul.f32 %v8367_v55, %v11484_v63  ;;  %v8369_v42 = vpop.eup %8368 }
 0x499   :  { %v1728_v58 = vpop.xlane.xlu1 %1727  ;;  %v1545_v61 = vmul.f32 %v8369_v42, %v11445_v0  ;;  %v8264_v42 = vld [vmem:[%s13142_s8 + $0x44] ss:$16 sps:$4 sm:$0xff]  }
 0x49a   :  { %8384 = vrcp.f32 %v1728_v58  ;;  %v8205_v31 = vpack.i.bf16 %v1499_v19, %v1498_v29  ;;  %v8250_v29 = vld [vmem:[%s13142_s8 + $0x80] ss:$16 sps:$4 sm:$0xff]   ;;  %v8258_v19 = vld [vmem:[%s13142_s8 + $0x64] ss:$16 sps:$4 sm:$0xff]  }
 0x49b   :  { %v8371_v3 = vpop.eup %8370  ;;  %8386 = vrcp.f32 %v1774_v59  ;;  %v8262_v58 = vld [vmem:[%s13142_s8 + $0x40] ss:$16 sps:$4 sm:$0xff]   ;;  %v8276_v59 = vld [vmem:[%s13142_s8 + $0x4] ss:$16 sps:$4 sm:$0xff]  }
 0x49c   :  { %8206 = vrot.lane.b32.xlu1 %v8205_v31, %s8453_s10  ;;  %v1546_v7 = vmul.f32 %v8371_v3, %v11493_v57  ;;  %v8373_v16 = vpop.eup %8372  ;;  %v8270_v31 = vld [vmem:[%s13142_s8 + $0x24] ss:$16 sps:$4 sm:$0xff]   ;;  %v8268_v3 = vld [vmem:[%s13142_s8 + $0x20] ss:$16 sps:$4 sm:$0xff]  }
 0x49d   :  { %v8375_v33 = vpop.eup %8374  ;;  %v1592_v63 = vmul.f32 %v8373_v16, %v11455_v21  ;;  %v8232_v21 = vld [vmem:[%s13142_s8 + $0xe0] ss:$16 sps:$4 sm:$0xff]  }
 0x49e   :  { %v8210_v2 = vpack.i.bf16 %v1546_v7, %v1545_v61  ;;  %v1777_v26 = vmul.f32 %v8375_v33, %v11477_v20  ;;  %v8274_v61 = vld [vmem:[%s13142_s8] ss:$16 sps:$4 sm:$0xff]   ;;  %v8282_v7 = vld [vmem:[%s13142_s8 + $0x1e4] ss:$16 sps:$4 sm:$0xff]  }
 0x49f   :  { %v8377_v12 = vpop.eup %8376  ;;  %v8280_v16 = vld [vmem:[%s13142_s8 + $0x1e0] ss:$16 sps:$4 sm:$0xff]   ;;  %v8288_v33 = vld [vmem:[%s13142_s8 + $0x1c4] ss:$16 sps:$4 sm:$0xff]  }
 0x4a0   :  { %8211 = vrot.lane.b32.xlu0 %v8210_v2, %s8454_s0  ;;  %v1593_v5 = vmul.f32 %v8377_v12, %v11501_v25  ;;  %v8379_v45 = vpop.eup %8378  ;;  %v8234_v25 = vld [vmem:[%s13142_s8 + $0xe4] ss:$16 sps:$4 sm:$0xff]   ;;  %v8286_v2 = vld [vmem:[%s13142_s8 + $0x1c0] ss:$16 sps:$4 sm:$0xff]  }
 0x4a1   :  { %v1639_v0 = vmul.f32 %v8379_v45, %v11461_v43  ;;  %v8240_v43 = vld [vmem:[%s13142_s8 + $0xc4] ss:$16 sps:$4 sm:$0xff]   ;;  %2367 = vmatprep.subr.bf16.mxu1 %v8234_v25  ;;  %v8298_v45 = vld [vmem:[%s13142_s8 + $0x180] ss:$16 sps:$4 sm:$0xff]  }
 0x4a2   :  { %v8215_v51 = vpack.i.bf16 %v1593_v5, %v1592_v63  ;;  %2368 = vmatpush1.bf16.msra.mxu1 %v8232_v21  ;;  %v8294_v12 = vld [vmem:[%s13142_s8 + $0x1a4] ss:$16 sps:$4 sm:$0xff]   ;;  %v8292_v63 = vld [vmem:[%s13142_s8 + $0x1a0] ss:$16 sps:$4 sm:$0xff]  }
 0x4a3   :  { %v8381_v22 = vpop.eup %8380  ;;  %2369 = vmatprep.subr.bf16.mxu1 %v8240_v43  ;;  %v8300_v5 = vld [vmem:[%s13142_s8 + $0x184] ss:$16 sps:$4 sm:$0xff]  }
 0x4a4   :  { %1831 = vrot.lane.b32.xlu0 %v1777_v26, %s8455_s17  ;;  %8216 = vrot.lane.b32.xlu1 %v8215_v51, %s8456_s18  ;;  %v1640_v57 = vmul.f32 %v8381_v22, %v11507_v53  ;;  %v8383_v20 = vpop.eup %8382  ;;  %v8306_v26 = vld [vmem:[%s13142_s8 + $0x164] ss:$16 sps:$4 sm:$0xff]   ;;  %v8304_v51 = vld [vmem:[%s13142_s8 + $0x160] ss:$16 sps:$4 sm:$0xff]   ;;  %v1449_v22 = vpop.xlane.xlu0 %1448 }
 0x4a5   :  { %v1686_v35 = vmul.f32 %v8383_v20, %v11481_v10  ;;  %v8252_v10 = vld [vmem:[%s13142_s8 + $0x84] ss:$16 sps:$4 sm:$0xff]   ;;  %8388 = vrcp.f32 %v1449_v22 }
 0x4a6   :  { %v8220_v4 = vpack.i.bf16 %v1640_v57, %v1639_v0  ;;  %2370 = vmatpush1.bf16.msra.mxu1 %v8238_v15  ;;  %v1446_v0 = vpop.xlane.xlu1 %1445 }
 0x4a7   :  { %v8385_v8 = vpop.eup %8384  ;;  %2371 = vmatprep.subr.bf16.mxu1 %v8246_v18  ;;  %8390 = vrcp.f32 %v1446_v0  ;;  %v8241_v0 = vld [vmem:[%s13142_s8 + $0xc8] ss:$16 sps:$4 sm:$0xff]  }
 0x4a8   :  { %8221 = vrot.lane.b32.xlu1 %v8220_v4, %s8457_s26  ;;  %v1732_v53 = vmul.f32 %v8385_v8, %v11511_v34  ;;  %v8387_v13 = vpop.eup %8386  ;;  %v8244_v34 = vld [vmem:[%s13142_s8 + $0xa0] ss:$16 sps:$4 sm:$0xff]  }
 0x4a9   :  { %v1778_v55 = vmul.f32 %v8387_v13, %v11490_v14  ;;  %v8256_v14 = vld [vmem:[%s13142_s8 + $0x60] ss:$16 sps:$4 sm:$0xff]  }
 0x4aa   :  { %1825 = vrot.lane.b32.xlu0 %v1732_v53, %s8452_s30  ;;  %2372 = vmatpush1.bf16.msra.mxu1 %v8244_v34 }
 0x4ab   :  { %2373 = vmatprep.subr.bf16.mxu1 %v8252_v10 }
 0x4ac   :  { %1817 = vrot.lane.b32.xlu1 %v1686_v35, %s8451_s1 }
 0x4ae   :  { %2374 = vmatpush1.bf16.msra.mxu1 %v8250_v29 }
 0x4af   :  { %2375 = vmatprep.subr.bf16.mxu1 %v8258_v19 }
 0x4b0   :  { %1833 = vrot.lane.b32.xlu1 %v1778_v55, %s8455_s17 }
 0x4b2   :  { %2376 = vmatpush1.bf16.msra.mxu1 %v8256_v14  ;;  %v8389_v20 = vpop.eup %8388 }
 0x4b3   :  { %2377 = vmatprep.subr.bf16.mxu1 %v8264_v42  ;;  %v1453_v13 = vmul.f32 %v8389_v20, %v11499_v41  ;;  %v8255_v20 = vld [vmem:[%s13142_s8 + $0x8c] ss:$16 sps:$4 sm:$0xff]  }
 0x4b4   :  { %v8391_v37 = vpop.eup %8390 }
 0x4b5   :  { %v1452_v18 = vmul.f32 %v8391_v37, %v11515_v50  ;;  %v8261_v37 = vld [vmem:[%s13142_s8 + $0x6c] ss:$16 sps:$4 sm:$0xff]  }
 0x4b6   :  { %2378 = vmatpush1.bf16.msra.mxu1 %v8262_v58 }
 0x4b7   :  { %2379 = vmatprep.subr.bf16.mxu1 %v8270_v31 }
 0x4ba   :  { %2380 = vmatpush1.bf16.msra.mxu1 %v8268_v3 }
 0x4bb   :  { %2381 = vmatprep.subr.bf16.mxu1 %v8276_v59 }
 0x4be   :  { %2382 = vmatpush1.bf16.msra.mxu1 %v8274_v61 }
 0x4bf   :  { %2383 = vmatprep.subr.bf16.mxu1 %v8282_v7 }
 0x4c2   :  { %2384 = vmatpush2.bf16.msra.mxu1 %v8280_v16 }
 0x4c3   :  { %2385 = vmatprep.subr.bf16.mxu1 %v8288_v33  ;;  %v8235_v33 = vld [vmem:[%s13142_s8 + $0xe8] ss:$16 sps:$4 sm:$0xff]  }
 0x4c6   :  { %2386 = vmatpush2.bf16.msra.mxu1 %v8286_v2 }
 0x4c7   :  { %2387 = vmatprep.subr.bf16.mxu1 %v8294_v12 }
 0x4ca   :  { %2388 = vmatpush2.bf16.msra.mxu1 %v8292_v63  ;;  %v8243_v63 = vld [vmem:[%s13142_s8 + $0xcc] ss:$16 sps:$4 sm:$0xff]  }
 0x4cb   :  { %2389 = vmatprep.subr.bf16.mxu1 %v8300_v5 }
 0x4ce   :  { %2390 = vmatpush2.bf16.msra.mxu1 %v8298_v45 }
 0x4cf   :  { %2391 = vmatprep.subr.bf16.mxu1 %v8306_v26 }
 0x4d2   :  { %2392 = vmatpush2.bf16.msra.mxu1 %v8304_v51  ;;  %v11634_v51 = vld [vmem:[#allocation2 + $0x8] sm:$0xff] }
 0x500   :  { %v1816_v21 = vpop.permute.xlu0 %1815 }
 0x504   :  { %v1824_v57 = vpop.permute.xlu1 %1823 }
 0x50e   :  { %v8207_v25 = vpop.permute.xlu1 %8206 }
 0x50f   :  { %v8209_v43 = vunpack.i.h.bf16 %v8207_v25  ;;  %v8208_v8 = vunpack.i.l.bf16 %v8207_v25  ;;  %v8247_v25 = vld [vmem:[%s13142_s8 + $0xa8] ss:$16 sps:$4 sm:$0xff]  }
 0x511   :  { %v1838_v10 = vsel %vm1431_vm4, %v1453_v13, %v8209_v43  ;;  %v1837_v29 = vsel %vm1431_vm4, %v1452_v18, %v8208_v8  ;;  %v8259_v43 = vld [vmem:[%s13142_s8 + $0x68] ss:$16 sps:$4 sm:$0xff]   ;;  %v8267_v8 = vld [vmem:[%s13142_s8 + $0x4c] ss:$16 sps:$4 sm:$0xff]  }
 0x512   :  { %v8212_v4 = vpop.permute.xlu0 %8211  ;;  %v8279_v18 = vld [vmem:[%s13142_s8 + $0xc] ss:$16 sps:$4 sm:$0xff]   ;;  %v8277_v13 = vld [vmem:[%s13142_s8 + $0x8] ss:$16 sps:$4 sm:$0xff]  }
 0x513   :  { %v8214_v15 = vunpack.i.h.bf16 %v8212_v4  ;;  %v8213_v35 = vunpack.i.l.bf16 %v8212_v4  ;;  %v8253_v4 = vld [vmem:[%s13142_s8 + $0x88] ss:$16 sps:$4 sm:$0xff]  }
 0x515   :  { %v1839_v14 = vsel %vm1189_vm0, %v1837_v29, %v8213_v35  ;;  %v1840_v42 = vsel %vm1189_vm0, %v1838_v10, %v8214_v15  ;;  %v8273_v15 = vld [vmem:[%s13142_s8 + $0x2c] ss:$16 sps:$4 sm:$0xff]   ;;  %v8271_v35 = vld [vmem:[%s13142_s8 + $0x28] ss:$16 sps:$4 sm:$0xff]  }
 0x516   :  { %v8217_v53 = vpop.permute.xlu1 %8216  ;;  %v1832_v41 = vpop.permute.xlu0 %1831  ;;  %v8291_v10 = vld [vmem:[%s13142_s8 + $0x1cc] ss:$16 sps:$4 sm:$0xff]   ;;  %v8289_v29 = vld [vmem:[%s13142_s8 + $0x1c8] ss:$16 sps:$4 sm:$0xff]  }
 0x517   :  { %v8219_v34 = vunpack.i.h.bf16 %v8217_v53  ;;  %v8218_v55 = vunpack.i.l.bf16 %v8217_v53  ;;  %v8265_v53 = vld [vmem:[%s13142_s8 + $0x48] ss:$16 sps:$4 sm:$0xff]  }
 0x519   :  { %v1842_v3 = vsel %vm1841_vm7, %v1839_v14, %v8218_v55  ;;  %v1843_v50 = vsel %vm1841_vm7, %v1840_v42, %v8219_v34  ;;  %v8285_v34 = vld [vmem:[%s13142_s8 + $0x1ec] ss:$16 sps:$4 sm:$0xff]   ;;  %v8283_v55 = vld [vmem:[%s13142_s8 + $0x1e8] ss:$16 sps:$4 sm:$0xff]  }
 0x51a   :  { %v8222_v19 = vpop.permute.xlu1 %8221  ;;  %v8295_v14 = vld [vmem:[%s13142_s8 + $0x1a8] ss:$16 sps:$4 sm:$0xff]   ;;  %v8303_v42 = vld [vmem:[%s13142_s8 + $0x18c] ss:$16 sps:$4 sm:$0xff]  }
 0x51b   :  { %v8224_v58 = vunpack.i.h.bf16 %v8222_v19  ;;  %v8223_v31 = vunpack.i.l.bf16 %v8222_v19  ;;  %v8297_v19 = vld [vmem:[%s13142_s8 + $0x1ac] ss:$16 sps:$4 sm:$0xff]  }
 0x51c   :  { %v1826_v45 = vpop.permute.xlu0 %1825 }
 0x51d   :  { %v1845_v59 = vsel %vm1844_vm8, %v1842_v3, %v8223_v31  ;;  %v1846_v61 = vsel %vm1844_vm8, %v1843_v50, %v8224_v58  ;;  %v8301_v58 = vld [vmem:[%s13142_s8 + $0x188] ss:$16 sps:$4 sm:$0xff]   ;;  %v8309_v31 = vld [vmem:[%s13142_s8 + $0x16c] ss:$16 sps:$4 sm:$0xff]   ;;  %v8310_v50 = vld [vmem:[%s13142_s8 + $0x140] ss:$16 sps:$4 sm:$0xff]  }
 0x51e   :  { %v1818_v7 = vpop.permute.xlu1 %1817  ;;  %v1848_v16 = vsel %vm1847_vm9, %v1845_v59, %v1816_v21  ;;  %v8249_v21 = vld [vmem:[%s13142_s8 + $0xac] ss:$16 sps:$4 sm:$0xff]   ;;  %v8307_v3 = vld [vmem:[%s13142_s8 + $0x168] ss:$16 sps:$4 sm:$0xff]  }
 0x51f   :  { %v1849_v2 = vsel %vm1847_vm9, %v1846_v61, %v1818_v7  ;;  %v1851_v12 = vsel %vm1850_vm10, %v1848_v16, %v1824_v57  ;;  %v8313_v59 = vld [vmem:[%s13142_s8 + $0x148] ss:$16 sps:$4 sm:$0xff]   ;;  %v8315_v61 = vld [vmem:[%s13142_s8 + $0x14c] ss:$16 sps:$4 sm:$0xff]   ;;  %v8316_v7 = vld [vmem:[%s13142_s8 + $0x120] ss:$16 sps:$4 sm:$0xff]  }
 0x520   :  { %v1854_v5 = vsel %vm1853_vm11, %v1851_v12, %v1832_v41  ;;  %v1852_v22 = vsel %vm1850_vm10, %v1849_v2, %v1826_v45  ;;  %v8312_v41 = vld [vmem:[%s13142_s8 + $0x144] ss:$16 sps:$4 sm:$0xff]   ;;  %v8321_v2 = vld [vmem:[%s13142_s8 + $0x12c] ss:$16 sps:$4 sm:$0xff]   ;;  %v8325_v45 = vld [vmem:[%s13142_s8 + $0x108] ss:$16 sps:$4 sm:$0xff]  }
 0x521   :  { %1965 = vmatmul.mubr.f32.vlgmr.msra.gmra.mxu0 %v1854_v5  ;;  %2393 = vmatprep.subr.bf16.mxu1 %v8312_v41  ;;  %v8318_v16 = vld [vmem:[%s13142_s8 + $0x124] ss:$16 sps:$4 sm:$0xff]   ;;  %v8322_v5 = vld [vmem:[%s13142_s8 + $0x100] ss:$16 sps:$4 sm:$0xff]  }
 0x522   :  { %v1834_v26 = vpop.permute.xlu1 %1833  ;;  %1970 = vmatprep.mubr.f32.mxu0 %v11634_v51  ;;  %2411 = vmatpush1.bf16.msra.mxu0 %v8235_v33  ;;  %v8319_v33 = vld [vmem:[%s13142_s8 + $0x128] ss:$16 sps:$4 sm:$0xff]   ;;  %v8324_v12 = vld [vmem:[%s13142_s8 + $0x104] ss:$16 sps:$4 sm:$0xff]   ;;  %v2453_v41 = vld [vmem:[%s13143_s9] sm:$0xf] }
 0x523   :  { %v1855_v57 = vsel %vm1853_vm11, %v1852_v22, %v1834_v26  ;;  %2412 = vmatprep.subr.bf16.mxu0 %v8243_v63  ;;  %2394 = vmatpush2.bf16.msra.mxu1 %v8310_v50  ;;  %v8327_v63 = vld [vmem:[%s13142_s8 + $0x10c] ss:$16 sps:$4 sm:$0xff]   ;;  %v1888_v26 = vld [vmem:[%s13141_s7] sm:$0x3] }
 0x524   :  { %2395 = vmatprep.subr.bf16.mxu1 %v8318_v16  ;;  %v11761_v50 = vld [vmem:[%s13136_s2 + $0x8] sm:$0xff] }
 0x525   :  { %1971 = vmatmul.mubr.f32.gmra.mxu0 %v1855_v57  ;;  %v1893_v57 = vrot.slane %v1888_v26, %v11302_v54 }
 0x526   :  { %2413 = vmatpush1.bf16.msra.mxu0 %v8241_v0  ;;  %v1897_v0 = vrot.slane %v1888_v26, %v11293_v39 }
 0x527   :  { %2414 = vmatprep.subr.bf16.mxu0 %v8249_v21  ;;  %2396 = vmatpush2.bf16.msra.mxu1 %v8316_v7 }
 0x528   :  { %2397 = vmatprep.subr.bf16.mxu1 %v8324_v12 }
 0x52a   :  { %2415 = vmatpush1.bf16.msra.mxu0 %v8247_v25 }
 0x52b   :  { %2416 = vmatprep.subr.bf16.mxu0 %v8255_v20  ;;  %2398 = vmatpush2.bf16.msra.mxu1 %v8322_v5 }
 0x52e   :  { %2417 = vmatpush1.bf16.msra.mxu0 %v8253_v4 }
 0x52f   :  { %2418 = vmatprep.subr.bf16.mxu0 %v8261_v37 }
 0x532   :  { %2419 = vmatpush1.bf16.msra.mxu0 %v8259_v43 }
 0x533   :  { %2420 = vmatprep.subr.bf16.mxu0 %v8267_v8 }
 0x536   :  { %2421 = vmatpush1.bf16.msra.mxu0 %v8265_v53 }
 0x537   :  { %2422 = vmatprep.subr.bf16.mxu0 %v8273_v15 }
 0x53a   :  { %2423 = vmatpush1.bf16.msra.mxu0 %v8271_v35 }
 0x53b   :  { %2424 = vmatprep.subr.bf16.mxu0 %v8279_v18 }
 0x53e   :  { %2425 = vmatpush1.bf16.msra.mxu0 %v8277_v13 }
 0x53f   :  { %2426 = vmatprep.subr.bf16.mxu0 %v8285_v34 }
 0x542   :  { %2427 = vmatpush2.bf16.msra.mxu0 %v8283_v55 }
 0x543   :  { %2428 = vmatprep.subr.bf16.mxu0 %v8291_v10 }
 0x546   :  { %2429 = vmatpush2.bf16.msra.mxu0 %v8289_v29 }
 0x547   :  { %2430 = vmatprep.subr.bf16.mxu0 %v8297_v19 }
 0x54a   :  { %2431 = vmatpush2.bf16.msra.mxu0 %v8295_v14 }
 0x54b   :  { %2432 = vmatprep.subr.bf16.mxu0 %v8303_v42 }
 0x54e   :  { %2433 = vmatpush2.bf16.msra.mxu0 %v8301_v58 }
 0x54f   :  { %2434 = vmatprep.subr.bf16.mxu0 %v8309_v31  ;;  %v11753_v31 = vld [vmem:[%s13136_s2] sm:$0xff] }
 0x552   :  { %2435 = vmatpush2.bf16.msra.mxu0 %v8307_v3 }
 0x553   :  { %2436 = vmatprep.subr.bf16.mxu0 %v8315_v61  ;;  %v2462_v61 = vrot.slane %v2453_v41, %v11293_v39 }
 0x556   :  { %2437 = vmatpush2.bf16.msra.mxu0 %v8313_v59  ;;  %v2458_v59 = vrot.slane %v2453_v41, %v11302_v54 }
 0x557   :  { %2438 = vmatprep.subr.bf16.mxu0 %v8321_v2 }
 0x55a   :  { %2439 = vmatpush2.bf16.msra.mxu0 %v8319_v33 }
 0x55b   :  { %2440 = vmatprep.subr.bf16.mxu0 %v8327_v63 }
 0x55e   :  { %2441 = vmatpush2.bf16.msra.mxu0 %v8325_v45  ;;  %v2466_v45 = vrot.slane %v2453_v41, %v11290_v27 }
 0x5e1   :  { %v1966_v22 = vpop.f32.mrf.mxu0 }
 0x5e2   :  { %v1967_v37 = vadd.f32 %v1966_v22, %v1893_v57 }
 0x5e3   :  { %v1968_v21 = vpop.f32.mrf.mxu0 }
 0x5e4   :  { %v1969_v20 = vadd.f32 %v1968_v21, %v1897_v0  ;;  %v1977_v18 = vmax.f32 %v1967_v37, 0.0 }
 0x5e5   :  { %v1972_v25 = vpop.f32.mrf.mxu0 }
 0x5e6   :  { %v1973_v4 = vadd.f32 %v1972_v25, %v1893_v57  ;;  %v1978_v15 = vmax.f32 %v1969_v20, 0.0  ;;  %v2470_v57 = vrot.slane %v2453_v41, %v11297_v49 }
 0x5e7   :  { %v1974_v43 = vpop.f32.mrf.mxu0 }
 0x5e8   :  { %v1975_v8 = vadd.f32 %v1974_v43, %v1897_v0  ;;  %v1979_v53 = vmax.f32 %v1973_v4, 0.0 }
 0x5ea   :  { %v1980_v35 = vmax.f32 %v1975_v8, 0.0  ;;  %v1981_v34 = vpack.c.bf16 %v1979_v53, %v1977_v18 }
 0x5ec   :  { %v1982_v13 = vpack.c.bf16 %v1980_v35, %v1978_v15 }
 0x5ee   :  { %2399 = vmatprep.mubr.bf16.mxu1 %v1982_v13  ;;  %2442 = vmatprep.mubr.bf16.mxu0 %v1982_v13 }
 0x5ef   :  { %2400 = vmatmul.mubr.bf16.vlgmr.msra.gmra.mxu1 %v1981_v34  ;;  %2443 = vmatmul.mubr.bf16.vlgmr.msra.gmra.mxu0 %v1981_v34 }
 0x5f0   :  { %2545 = vmatprep.mubr.f32.mxu1 %v11634_v51 }
 0x6af   :  { %v2401_v55 = vpop.f32.mrf.mxu1  ;;  %v2444_v10 = vpop.f32.mrf.mxu0 }
 0x6b1   :  { %v2403_v29 = vpop.f32.mrf.mxu1  ;;  %v2446_v19 = vpop.f32.mrf.mxu0 }
 0x6b3   :  { %v2405_v14 = vpop.f32.mrf.mxu1  ;;  %v2448_v42 = vpop.f32.mrf.mxu0 }
 0x6b5   :  { %v2407_v58 = vpop.f32.mrf.mxu1  ;;  %v2450_v3 = vpop.f32.mrf.mxu0 }
 0x6b6   :  { %2509 = vmatprep.subr.mxu1 %v2407_v58 }
 0x6b7   :  { %2510 = vmatpush1.msra.mxu1 %v2405_v14 }
 0x6b8   :  { %2511 = vmatprep.subr.mxu1 %v2403_v29  ;;  %v7624_v29 = vcombine.low %v8828_v56, %v8848_v60 }
 0x6b9   :  { %2512 = vmatpush1.msra.mxu1 %v2401_v55  ;;  %v7625_v55 = vcombine.high %v8828_v56, %v8848_v60 }
 0x6ba   :  { %2586 = vmatprep.subr.mxu1 %v2450_v3  ;;  %7564 = vmatmul.mubr.msk.f32.vlgmr.msra.gmra.mxu1 %vm1431_vm4, %v11753_v31 }
 0x6bb   :  { %2587 = vmatpush1.msra.mxu1 %v2448_v42  ;;  %2551 = vmatprep.mubr.f32.mxu1 %v11634_v51 }
 0x6bc   :  { %2588 = vmatprep.subr.mxu1 %v2446_v19  ;;  %v7752_v19 = vcombine.low %v9468_v17, %v9488_v23 }
 0x6bd   :  { %2589 = vmatpush1.msra.mxu1 %v2444_v10  ;;  %v7753_v10 = vcombine.high %v9468_v17, %v9488_v23 }
 0x6be   :  { %7565 = vmatmul.mubr.msk.f32.gmra.mxu1 %vm1431_vm4, %v11761_v50 }
 0x6bf   :  { %2622 = vmatprep.mubr.f32.mxu1 %v11634_v51 }
 0x6c2   :  { %7566 = vmatmul.mubr.msk.f32.vlgmr.msra.gmra.mxu1 %vm1431_vm4, %v11753_v31 }
 0x6c3   :  { %2628 = vmatprep.mubr.f32.mxu1 %v11634_v51 }
 0x6c6   :  { %7567 = vmatmul.mubr.msk.f32.gmra.mxu1 %vm1431_vm4, %v11761_v50 }
 0x77a   :  { %v2547_v7 = vpop.f32.mrf.mxu1 }
 0x77b   :  { %v11776_v16 = vadd.f32 %v2547_v7, %v2458_v59 }
 0x77c   :  { %v2549_v33 = vpop.f32.mrf.mxu1 }
 0x77d   :  { %v2635_v2 = vmax.f32 %v11776_v16, 0.0  ;;  %v11779_v12 = vadd.f32 %v2549_v33, %v2462_v61 }
 0x77e   :  { %v2553_v51 = vpop.f32.mrf.mxu1 }
 0x77f   :  { %v2636_v63 = vmax.f32 %v11779_v12, 0.0  ;;  %v11782_v5 = vadd.f32 %v2553_v51, %v2458_v59 }
 0x780   :  { %v2555_v26 = vpop.f32.mrf.mxu1 }
 0x781   :  { %v2639_v22 = vmax.f32 %v11782_v5, 0.0  ;;  %v2556_v0 = vadd.f32 %v2555_v26, %v2462_v61 }
 0x782   :  { %v2624_v21 = vpop.f32.mrf.mxu1 }
 0x783   :  { %v2640_v25 = vmax.f32 %v2556_v0, 0.0  ;;  %v11787_v20 = vadd.f32 %v2624_v21, %v2466_v45 }
 0x784   :  { %v2626_v4 = vpop.f32.mrf.mxu1 }
 0x785   :  { %v2637_v37 = vmax.f32 %v11787_v20, 0.0  ;;  %v2627_v43 = vadd.f32 %v2626_v4, %v2470_v57 }
 0x786   :  { %v2630_v8 = vpop.f32.mrf.mxu1 }
 0x787   :  { %v2638_v53 = vmax.f32 %v2627_v43, 0.0  ;;  %v11790_v15 = vadd.f32 %v2630_v8, %v2466_v45 }
 0x788   :  { %v2632_v35 = vpop.f32.mrf.mxu1 }
 0x789   :  { %v2641_v18 = vmax.f32 %v11790_v15, 0.0  ;;  %v2633_v13 = vadd.f32 %v2632_v35, %v2470_v57 }
 0x78b   :  { %v2642_v34 = vmax.f32 %v2633_v13, 0.0 }
 0x78c   :  { %8435 = dma.done.wait [#allocation5], 32768 }
 0x78d   :  { %8436 = vsyncadd [#allocation5], 4294934528  ;;  %v14146_v14 = vmov 0   ;;  %v7617_v42 = vcombine.high %v8788_v48, %v8808_v52  ;;  %v7745_v58 = vcombine.high %v9428_v9, %v9448_v38  ;;  %4187 = vmatprep.subr.bf16.mxu1 %v7625_v55  ;;  %4230 = vmatprep.subr.bf16.mxu0 %v7753_v10  ;;  %v7616_v56 = vcombine.low %v8788_v48, %v8808_v52  ;;  %v14150_v59 = vld [vmem:[#allocation147_spill] sm:$0xff]  ;;  %v14155_v57 = vld [vmem:[#allocation17_spill] sm:$0xff] }
 0x78e   :  { %8394 = vset.pattern.permute.xlu1 %v14146_v14  ;;  %8393 = vset.pattern.permute.xlu0 %v14146_v14  ;;  %v7744_v17 = vcombine.low %v9428_v9, %v9448_v38  ;;  %v7609_v23 = vcombine.high %v8748_v40, %v8768_v44  ;;  %v7737_v60 = vcombine.high %v9388_v1, %v9408_v6  ;;  %v14153_v45 = vld [vmem:[#allocation143_spill] sm:$0xff]  ;;  %v14156_v21 = vld [vmem:[#allocation13_spill] sm:$0xff]  ;;  %v14195_v16 = vld [vmem:[#allocation58_spill] sm:$0xff]  ;;  %vm4898_vm0 = vcmask 123904  }
 0x78f   :  { %4188 = vmatpush1.bf16.msra.mxu1 %v7624_v29  ;;  %4231 = vmatpush1.bf16.msra.mxu0 %v7752_v19  ;;  %v7608_v3 = vcombine.low %v8748_v40, %v8768_v44  ;;  %v7736_v41 = vcombine.low %v9388_v1, %v9408_v6  ;;  %v7601_v9 = vcombine.high %v8708_v32, %v8728_v36  ;;  %v14154_v26 = vld [vmem:[#allocation139_spill] sm:$0xff]  ;;  %v14161_v10 = vld [vmem:[#allocation245_spill] sm:$0xff]  ;;  %vm5364_vm3 = vcmask 1040384  }
 0x790   :  { %4189 = vmatprep.subr.bf16.mxu1 %v7617_v42  ;;  %4232 = vmatprep.subr.bf16.mxu0 %v7745_v58  ;;  %v7729_v38 = vcombine.high %v9348_v62, %v9368_v47  ;;  %v7600_v48 = vcombine.low %v8708_v32, %v8728_v36  ;;  %v7728_v52 = vcombine.low %v9348_v62, %v9368_v47  ;;  %v14147_v32 = vld [vmem:[#allocation33_spill] sm:$0xff]  ;;  %v14149_v62 = vld [vmem:[#allocation151_spill] sm:$0xff] }
 0x791   :  { %v7593_v1 = vcombine.high %v8668_v24, %v8688_v28  ;;  %v7721_v6 = vcombine.high %v9308_v30, %v9328_v46  ;;  %v7592_v40 = vcombine.low %v8668_v24, %v8688_v28  ;;  %v7720_v44 = vcombine.low %v9308_v30, %v9328_v46  ;;  %v14148_v36 = vld [vmem:[#allocation29_spill] sm:$0xff]  ;;  %v14157_v4 = vld [vmem:[#allocation135_spill] sm:$0xff] }
 0x792   :  { %v7585_v47 = vcombine.high %v14148_v36, %v14147_v32  ;;  %v7713_v61 = vcombine.high %v14150_v59, %v14149_v62  ;;  %v11841_v7 = vpack.c.bf16 %v2640_v25, %v2636_v63  ;;  %v11843_v33 = vpack.c.bf16 %v2642_v34, %v2638_v53  ;;  %v14151_v30 = vld [vmem:[#allocation25_spill] sm:$0xff]  ;;  %v14158_v43 = vld [vmem:[#allocation131_spill] sm:$0xff] }
 0x793   :  { %4190 = vmatpush1.bf16.msra.mxu1 %v7616_v56  ;;  %4233 = vmatpush1.bf16.msra.mxu0 %v7744_v17  ;;  %v7584_v24 = vcombine.low %v14148_v36, %v14147_v32  ;;  %v7712_v28 = vcombine.low %v14150_v59, %v14149_v62  ;;  %v14152_v46 = vld [vmem:[#allocation21_spill] sm:$0xff]  ;;  %v7705_v12 = vcombine.high %v14154_v26, %v14153_v45  ;;  %v14159_v13 = vld [vmem:[#allocation127_spill] sm:$0xff] }
 0x794   :  { %4191 = vmatprep.subr.bf16.mxu1 %v7609_v23  ;;  %4234 = vmatprep.subr.bf16.mxu0 %v7737_v60  ;;  %v7577_v51 = vcombine.high %v14152_v46, %v14151_v30  ;;  %v7576_v63 = vcombine.low %v14152_v46, %v14151_v30  ;;  %v7704_v0 = vcombine.low %v14154_v26, %v14153_v45  ;;  %v14160_v34 = vld [vmem:[#allocation123_spill] sm:$0xff]  ;;  %v14162_v29 = vld [vmem:[#allocation241_spill] sm:$0xff] }
 0x795   :  { %4219 = vmatprep.mubr.bf16.mxu1 %v11841_v7  ;;  %4262 = vmatprep.mubr.bf16.mxu0 %v11843_v33  ;;  %v7569_v25 = vcombine.high %v14156_v21, %v14155_v57  ;;  %v7697_v8 = vcombine.high %v14158_v43, %v14157_v4  ;;  %v7568_v53 = vcombine.low %v14156_v21, %v14155_v57  ;;  %v14163_v56 = vld [vmem:[#allocation119_spill] sm:$0xff]  ;;  %v14165_v60 = vld [vmem:[#allocation237_spill] sm:$0xff] }
 0x796   :  { %v7696_v35 = vcombine.low %v14158_v43, %v14157_v4  ;;  %v7689_v55 = vcombine.high %v14160_v34, %v14159_v13  ;;  %v7817_v19 = vcombine.high %v14162_v29, %v14161_v10  ;;  %v7688_v42 = vcombine.low %v14160_v34, %v14159_v13  ;;  %v14164_v17 = vld [vmem:[#allocation115_spill] sm:$0xff] }
 0x797   :  { %4192 = vmatpush1.bf16.msra.mxu1 %v7608_v3  ;;  %4235 = vmatpush1.bf16.msra.mxu0 %v7736_v41  ;;  %v7816_v58 = vcombine.low %v14162_v29, %v14161_v10  ;;  %v7681_v23 = vcombine.high %v14164_v17, %v14163_v56  ;;  %v14166_v3 = vld [vmem:[#allocation233_spill] sm:$0xff]  ;;  %v14172_v62 = vld [vmem:[#allocation99_spill] sm:$0xff] }
 0x798   :  { %4193 = vmatprep.subr.bf16.mxu1 %v7601_v9  ;;  %4236 = vmatprep.subr.bf16.mxu0 %v7729_v38  ;;  %v7809_v41 = vcombine.high %v14166_v3, %v14165_v60  ;;  %v7680_v9 = vcombine.low %v14164_v17, %v14163_v56  ;;  %v7808_v38 = vcombine.low %v14166_v3, %v14165_v60  ;;  %v14176_v45 = vld [vmem:[#allocation91_spill] sm:$0xff] }
 0x799   :  { %v14180_v4 = vld [vmem:[#allocation83_spill] sm:$0xff] }
 0x79a   :  { %v14184_v10 = vld [vmem:[#allocation75_spill] sm:$0xff] }
 0x79b   :  { %4194 = vmatpush1.bf16.msra.mxu1 %v7600_v48  ;;  %4237 = vmatpush1.bf16.msra.mxu0 %v7728_v52  ;;  %v14167_v48 = vld [vmem:[#allocation111_spill] sm:$0xff] }
 0x79c   :  { %4195 = vmatprep.subr.bf16.mxu1 %v7593_v1  ;;  %4238 = vmatprep.subr.bf16.mxu0 %v7721_v6  ;;  %v14168_v52 = vld [vmem:[#allocation107_spill] sm:$0xff]  ;;  %v14169_v6 = vld [vmem:[#allocation229_spill] sm:$0xff] }
 0x79d   :  { %v7673_v1 = vcombine.high %v14168_v52, %v14167_v48  ;;  %v7672_v32 = vcombine.low %v14168_v52, %v14167_v48  ;;  %v14188_v60 = vld [vmem:[#allocation67_spill] sm:$0xff] }
 0x79e   :  { %v14196_v5 = vld [vmem:[#allocation55_spill] sm:$0xff] }
 0x79f   :  { %4196 = vmatpush1.bf16.msra.mxu1 %v7592_v40  ;;  %4239 = vmatpush1.bf16.msra.mxu0 %v7720_v44  ;;  %v14170_v40 = vld [vmem:[#allocation225_spill] sm:$0xff] }
 0x7a0   :  { %4197 = vmatprep.subr.bf16.mxu1 %v7585_v47  ;;  %4240 = vmatprep.subr.bf16.mxu0 %v7713_v61  ;;  %v7801_v44 = vcombine.high %v14170_v40, %v14169_v6  ;;  %v7800_v36 = vcombine.low %v14170_v40, %v14169_v6  ;;  %v14171_v47 = vld [vmem:[#allocation103_spill] sm:$0xff]  ;;  %v14173_v61 = vld [vmem:[#allocation221_spill] sm:$0xff] }
 0x7a1   :  { %v7665_v59 = vcombine.high %v14172_v62, %v14171_v47  ;;  %v7664_v30 = vcombine.low %v14172_v62, %v14171_v47  ;;  %v14192_v6 = vld [vmem:[#allocation61_spill] sm:$0xff]  ;;  %v11939_v47 = vpack.c.bf16 %v2639_v22, %v2635_v2  ;;  %v11945_v62 = vpack.c.bf16 %v2641_v18, %v2637_v37  ;;  %v14197_v22 = vld [vmem:[#allocation176_spill] sm:$0xff] }
 0x7a2   :  { %v7619_v2 = vcombine.high %v14196_v5, %v14195_v16  ;;  %v7618_v37 = vcombine.low %v14196_v5, %v14195_v16  ;;  %v14199_v18 = vld [vmem:[#allocation52_spill] sm:$0xff] }
 0x7a3   :  { %4198 = vmatpush1.bf16.msra.mxu1 %v7584_v24  ;;  %4241 = vmatpush1.bf16.msra.mxu0 %v7712_v28  ;;  %v14174_v24 = vld [vmem:[#allocation217_spill] sm:$0xff]  ;;  %v14222_v16 = vld [vmem:[#allocation132_spill] sm:$0xff] }
 0x7a4   :  { %4199 = vmatprep.subr.bf16.mxu1 %v7577_v51  ;;  %4242 = vmatprep.subr.bf16.mxu0 %v7705_v12  ;;  %v7793_v28 = vcombine.high %v14174_v24, %v14173_v61  ;;  %v7792_v46 = vcombine.low %v14174_v24, %v14173_v61  ;;  %v14175_v51 = vld [vmem:[#allocation95_spill] sm:$0xff]  ;;  %v14177_v12 = vld [vmem:[#allocation213_spill] sm:$0xff] }
 0x7a5   :  { %v7657_v26 = vcombine.high %v14176_v45, %v14175_v51  ;;  %v7656_v57 = vcombine.low %v14176_v45, %v14175_v51  ;;  %v14198_v24 = vld [vmem:[#allocation173_spill] sm:$0xff]  ;;  %v14202_v51 = vld [vmem:[#allocation167_spill] sm:$0xff] }
 0x7a6   :  { %v7747_v20 = vcombine.high %v14198_v24, %v14197_v22  ;;  %v7746_v15 = vcombine.low %v14198_v24, %v14197_v22  ;;  %v14223_v24 = vld [vmem:[#allocation128_spill] sm:$0xff] }
 0x7a7   :  { %4200 = vmatpush1.bf16.msra.mxu1 %v7576_v63  ;;  %4243 = vmatpush1.bf16.msra.mxu0 %v7704_v0  ;;  %v14178_v63 = vld [vmem:[#allocation209_spill] sm:$0xff] }
 0x7a8   :  { %4201 = vmatprep.subr.bf16.mxu1 %v7569_v25  ;;  %4244 = vmatprep.subr.bf16.mxu0 %v7697_v8  ;;  %v7785_v0 = vcombine.high %v14178_v63, %v14177_v12  ;;  %v7784_v21 = vcombine.low %v14178_v63, %v14177_v12  ;;  %v14179_v25 = vld [vmem:[#allocation87_spill] sm:$0xff]  ;;  %v14181_v8 = vld [vmem:[#allocation205_spill] sm:$0xff]  ;;  %v14203_v63 = vld [vmem:[#allocation46_spill] sm:$0xff] }
 0x7a9   :  { %v7649_v43 = vcombine.high %v14180_v4, %v14179_v25  ;;  %v7648_v13 = vcombine.low %v14180_v4, %v14179_v25  ;;  %v14206_v25 = vld [vmem:[#allocation161_spill] sm:$0xff] }
 0x7ab   :  { %4202 = vmatpush1.bf16.msra.mxu1 %v7568_v53  ;;  %4245 = vmatpush1.bf16.msra.mxu0 %v7696_v35  ;;  %v14182_v53 = vld [vmem:[#allocation201_spill] sm:$0xff] }
 0x7ac   :  { %4203 = vmatprep.subr.bf16.mxu1 %v7689_v55  ;;  %4246 = vmatprep.subr.bf16.mxu0 %v7817_v19  ;;  %v7777_v35 = vcombine.high %v14182_v53, %v14181_v8  ;;  %v7776_v34 = vcombine.low %v14182_v53, %v14181_v8  ;;  %v14183_v55 = vld [vmem:[#allocation79_spill] sm:$0xff]  ;;  %v14185_v19 = vld [vmem:[#allocation197_spill] sm:$0xff]  ;;  %v14207_v53 = vld [vmem:[#allocation40_spill] sm:$0xff] }
 0x7ad   :  { %v7641_v29 = vcombine.high %v14184_v10, %v14183_v55  ;;  %v7640_v56 = vcombine.low %v14184_v10, %v14183_v55  ;;  %v14210_v55 = vld [vmem:[#allocation155_spill] sm:$0xff] }
 0x7af   :  { %4204 = vmatpush2.bf16.msra.mxu1 %v7688_v42  ;;  %4247 = vmatpush2.bf16.msra.mxu0 %v7816_v58  ;;  %v14186_v42 = vld [vmem:[#allocation193_spill] sm:$0xff] }
 0x7b0   :  { %4205 = vmatprep.subr.bf16.mxu1 %v7681_v23  ;;  %4248 = vmatprep.subr.bf16.mxu0 %v7809_v41  ;;  %v7769_v58 = vcombine.high %v14186_v42, %v14185_v19  ;;  %v7768_v17 = vcombine.low %v14186_v42, %v14185_v19  ;;  %v14187_v23 = vld [vmem:[#allocation71_spill] sm:$0xff]  ;;  %v14189_v41 = vld [vmem:[#allocation189_spill] sm:$0xff]  ;;  %v14211_v42 = vld [vmem:[#allocation34_spill] sm:$0xff] }
 0x7b1   :  { %v7633_v3 = vcombine.high %v14188_v60, %v14187_v23  ;;  %v7632_v48 = vcombine.low %v14188_v60, %v14187_v23  ;;  %v14214_v23 = vld [vmem:[#allocation148_spill] sm:$0xff] }
 0x7b3   :  { %4206 = vmatpush2.bf16.msra.mxu1 %v7680_v9  ;;  %4249 = vmatpush2.bf16.msra.mxu0 %v7808_v38  ;;  %v14190_v9 = vld [vmem:[#allocation185_spill] sm:$0xff] }
 0x7b4   :  { %4207 = vmatprep.subr.bf16.mxu1 %v7673_v1  ;;  %4250 = vmatprep.subr.bf16.mxu0 %v7801_v44  ;;  %v7761_v38 = vcombine.high %v14190_v9, %v14189_v41  ;;  %v7760_v52 = vcombine.low %v14190_v9, %v14189_v41  ;;  %v14191_v1 = vld [vmem:[#allocation64_spill] sm:$0xff]  ;;  %v14193_v44 = vld [vmem:[#allocation182_spill] sm:$0xff] }
 0x7b5   :  { %v7627_v40 = vcombine.high %v14192_v6, %v14191_v1  ;;  %v14215_v9 = vld [vmem:[#allocation26_spill] sm:$0xff] }
 0x7b7   :  { %4208 = vmatpush2.bf16.msra.mxu1 %v7672_v32  ;;  %4251 = vmatpush2.bf16.msra.mxu0 %v7800_v36  ;;  %v14194_v32 = vld [vmem:[#allocation179_spill] sm:$0xff] }
 0x7b8   :  { %4209 = vmatprep.subr.bf16.mxu1 %v7665_v59  ;;  %4252 = vmatprep.subr.bf16.mxu0 %v7793_v28  ;;  %v7755_v36 = vcombine.high %v14194_v32, %v14193_v44  ;;  %v7626_v59 = vcombine.low %v14192_v6, %v14191_v1  ;;  %v7754_v61 = vcombine.low %v14194_v32, %v14193_v44  ;;  %v14200_v28 = vld [vmem:[#allocation49_spill] sm:$0xff]  ;;  %v14218_v1 = vld [vmem:[#allocation140_spill] sm:$0xff]  ;;  %v14219_v32 = vld [vmem:[#allocation18_spill] sm:$0xff] }
 0x7bb   :  { %4210 = vmatpush2.bf16.msra.mxu1 %v7664_v30  ;;  %4253 = vmatpush2.bf16.msra.mxu0 %v7792_v46  ;;  %v7611_v30 = vcombine.high %v14200_v28, %v14199_v18  ;;  %v14201_v46 = vld [vmem:[#allocation170_spill] sm:$0xff] }
 0x7bc   :  { %4211 = vmatprep.subr.bf16.mxu1 %v7657_v26  ;;  %4254 = vmatprep.subr.bf16.mxu0 %v7785_v0  ;;  %v7739_v45 = vcombine.high %v14202_v51, %v14201_v46  ;;  %v7610_v26 = vcombine.low %v14200_v28, %v14199_v18  ;;  %v7738_v12 = vcombine.low %v14202_v51, %v14201_v46  ;;  %v14204_v0 = vld [vmem:[#allocation43_spill] sm:$0xff]  ;;  %v14226_v18 = vld [vmem:[#allocation242_spill] sm:$0xff]  ;;  %v14227_v51 = vld [vmem:[#allocation120_spill] sm:$0xff] }
 0x7bf   :  { %4212 = vmatpush2.bf16.msra.mxu1 %v7656_v57  ;;  %4255 = vmatpush2.bf16.msra.mxu0 %v7784_v21  ;;  %v7603_v57 = vcombine.high %v14204_v0, %v14203_v63  ;;  %v14205_v21 = vld [vmem:[#allocation164_spill] sm:$0xff] }
 0x7c0   :  { %4213 = vmatprep.subr.bf16.mxu1 %v7649_v43  ;;  %4256 = vmatprep.subr.bf16.mxu0 %v7777_v35  ;;  %v7731_v4 = vcombine.high %v14206_v25, %v14205_v21  ;;  %v7602_v43 = vcombine.low %v14204_v0, %v14203_v63  ;;  %v7730_v8 = vcombine.low %v14206_v25, %v14205_v21  ;;  %v14208_v35 = vld [vmem:[#allocation37_spill] sm:$0xff]  ;;  %v14230_v63 = vld [vmem:[#allocation234_spill] sm:$0xff]  ;;  %v14231_v25 = vld [vmem:[#allocation112_spill] sm:$0xff] }
 0x7c3   :  { %4214 = vmatpush2.bf16.msra.mxu1 %v7648_v13  ;;  %4257 = vmatpush2.bf16.msra.mxu0 %v7776_v34  ;;  %v7595_v13 = vcombine.high %v14208_v35, %v14207_v53  ;;  %v14209_v34 = vld [vmem:[#allocation158_spill] sm:$0xff] }
 0x7c4   :  { %4215 = vmatprep.subr.bf16.mxu1 %v7641_v29  ;;  %4258 = vmatprep.subr.bf16.mxu0 %v7769_v58  ;;  %v7723_v10 = vcombine.high %v14210_v55, %v14209_v34  ;;  %v7594_v29 = vcombine.low %v14208_v35, %v14207_v53  ;;  %v7722_v19 = vcombine.low %v14210_v55, %v14209_v34  ;;  %v14212_v58 = vld [vmem:[#allocation30_spill] sm:$0xff]  ;;  %v14235_v55 = vld [vmem:[#allocation104_spill] sm:$0xff] }
 0x7c5   :  { %v14234_v53 = vld [vmem:[#allocation226_spill] sm:$0xff] }
 0x7c7   :  { %4216 = vmatpush2.bf16.msra.mxu1 %v7640_v56  ;;  %4259 = vmatpush2.bf16.msra.mxu0 %v7768_v17  ;;  %v7587_v56 = vcombine.high %v14212_v58, %v14211_v42  ;;  %v14213_v17 = vld [vmem:[#allocation152_spill] sm:$0xff] }
 0x7c8   :  { %4217 = vmatprep.subr.bf16.mxu1 %v7633_v3  ;;  %4260 = vmatprep.subr.bf16.mxu0 %v7761_v38  ;;  %v7715_v60 = vcombine.high %v14214_v23, %v14213_v17  ;;  %v7586_v3 = vcombine.low %v14212_v58, %v14211_v42  ;;  %v7714_v41 = vcombine.low %v14214_v23, %v14213_v17  ;;  %v14216_v38 = vld [vmem:[#allocation22_spill] sm:$0xff]  ;;  %v14239_v23 = vld [vmem:[#allocation96_spill] sm:$0xff] }
 0x7c9   :  { %v14238_v42 = vld [vmem:[#allocation218_spill] sm:$0xff] }
 0x7cb   :  { %4218 = vmatpush2.bf16.msra.mxu1 %v7632_v48  ;;  %4261 = vmatpush2.bf16.msra.mxu0 %v7760_v52  ;;  %v7579_v48 = vcombine.high %v14216_v38, %v14215_v9  ;;  %v14217_v52 = vld [vmem:[#allocation144_spill] sm:$0xff] }
 0x7cc   :  { %4273 = vmatprep.subr.bf16.mxu1 %v7627_v40  ;;  %4316 = vmatprep.subr.bf16.mxu0 %v7755_v36  ;;  %v7707_v6 = vcombine.high %v14218_v1, %v14217_v52  ;;  %v7578_v40 = vcombine.low %v14216_v38, %v14215_v9  ;;  %v7706_v44 = vcombine.low %v14218_v1, %v14217_v52  ;;  %v14220_v36 = vld [vmem:[#allocation14_spill] sm:$0xff]  ;;  %v14243_v1 = vld [vmem:[#allocation88_spill] sm:$0xff] }
 0x7cd   :  { %v14242_v9 = vld [vmem:[#allocation210_spill] sm:$0xff] }
 0x7ce   :  { %4220 = vmatmul.mubr.bf16.vlgmr.msra.gmra.mxu1 %v11939_v47  ;;  %4263 = vmatmul.mubr.bf16.vlgmr.msra.gmra.mxu0 %v11945_v62 }
 0x7cf   :  { %4274 = vmatpush1.bf16.msra.mxu1 %v7626_v59  ;;  %4317 = vmatpush1.bf16.msra.mxu0 %v7754_v61  ;;  %v7571_v59 = vcombine.high %v14220_v36, %v14219_v32  ;;  %v14221_v61 = vld [vmem:[#allocation136_spill] sm:$0xff] }
 0x7d0   :  { %4275 = vmatprep.subr.bf16.mxu1 %v7619_v2  ;;  %4318 = vmatprep.subr.bf16.mxu0 %v7747_v20  ;;  %v7699_v5 = vcombine.high %v14222_v16, %v14221_v61  ;;  %v7570_v2 = vcombine.low %v14220_v36, %v14219_v32  ;;  %v7698_v22 = vcombine.low %v14222_v16, %v14221_v61  ;;  %v14224_v20 = vld [vmem:[#allocation124_spill] sm:$0xff]  ;;  %v14246_v32 = vld [vmem:[#allocation202_spill] sm:$0xff] }
 0x7d1   :  { %4305 = vmatprep.mubr.bf16.mxu1 %v11841_v7  ;;  %4348 = vmatprep.mubr.bf16.mxu0 %v11843_v33  ;;  %v14247_v16 = vld [vmem:[#allocation80_spill] sm:$0xff] }
 0x7d3   :  { %4276 = vmatpush1.bf16.msra.mxu1 %v7618_v37  ;;  %4319 = vmatpush1.bf16.msra.mxu0 %v7746_v15  ;;  %v7691_v37 = vcombine.high %v14224_v20, %v14223_v24  ;;  %v14225_v15 = vld [vmem:[#allocation246_spill] sm:$0xff] }
 0x7d4   :  { %4277 = vmatprep.subr.bf16.mxu1 %v7611_v30  ;;  %4320 = vmatprep.subr.bf16.mxu0 %v7739_v45  ;;  %v7819_v28 = vcombine.high %v14226_v18, %v14225_v15  ;;  %v7690_v30 = vcombine.low %v14224_v20, %v14223_v24  ;;  %v7818_v46 = vcombine.low %v14226_v18, %v14225_v15  ;;  %v14228_v45 = vld [vmem:[#allocation116_spill] sm:$0xff]  ;;  %v14250_v24 = vld [vmem:[#allocation194_spill] sm:$0xff] }
 0x7d5   :  { %v14251_v18 = vld [vmem:[#allocation72_spill] sm:$0xff] }
 0x7d7   :  { %4278 = vmatpush1.bf16.msra.mxu1 %v7610_v26  ;;  %4321 = vmatpush1.bf16.msra.mxu0 %v7738_v12  ;;  %v7683_v26 = vcombine.high %v14228_v45, %v14227_v51  ;;  %v14229_v12 = vld [vmem:[#allocation238_spill] sm:$0xff] }
 0x7d8   :  { %4279 = vmatprep.subr.bf16.mxu1 %v7603_v57  ;;  %4322 = vmatprep.subr.bf16.mxu0 %v7731_v4  ;;  %v7811_v0 = vcombine.high %v14230_v63, %v14229_v12  ;;  %v7682_v57 = vcombine.low %v14228_v45, %v14227_v51  ;;  %v7810_v21 = vcombine.low %v14230_v63, %v14229_v12  ;;  %v14232_v4 = vld [vmem:[#allocation108_spill] sm:$0xff]  ;;  %v14254_v51 = vld [vmem:[#allocation186_spill] sm:$0xff]  ;;  %v14255_v63 = vld [vmem:[#allocation65_spill] sm:$0xff] }
 0x7db   :  { %4280 = vmatpush1.bf16.msra.mxu1 %v7602_v43  ;;  %4323 = vmatpush1.bf16.msra.mxu0 %v7730_v8  ;;  %v7675_v43 = vcombine.high %v14232_v4, %v14231_v25  ;;  %v14233_v8 = vld [vmem:[#allocation230_spill] sm:$0xff] }
 0x7dc   :  { %4281 = vmatprep.subr.bf16.mxu1 %v7595_v13  ;;  %4324 = vmatprep.subr.bf16.mxu0 %v7723_v10  ;;  %v7803_v35 = vcombine.high %v14234_v53, %v14233_v8  ;;  %v7674_v13 = vcombine.low %v14232_v4, %v14231_v25  ;;  %v7802_v34 = vcombine.low %v14234_v53, %v14233_v8  ;;  %v14236_v10 = vld [vmem:[#allocation100_spill] sm:$0xff]  ;;  %v14259_v53 = vld [vmem:[#allocation59_spill] sm:$0xff] }
 0x7dd   :  { %v14258_v25 = vld [vmem:[#allocation180_spill] sm:$0xff] }
 0x7df   :  { %4282 = vmatpush1.bf16.msra.mxu1 %v7594_v29  ;;  %4325 = vmatpush1.bf16.msra.mxu0 %v7722_v19  ;;  %v7667_v29 = vcombine.high %v14236_v10, %v14235_v55  ;;  %v14237_v19 = vld [vmem:[#allocation222_spill] sm:$0xff] }
 0x7e0   :  { %4283 = vmatprep.subr.bf16.mxu1 %v7587_v56  ;;  %4326 = vmatprep.subr.bf16.mxu0 %v7715_v60  ;;  %v7795_v58 = vcombine.high %v14238_v42, %v14237_v19  ;;  %v7666_v56 = vcombine.low %v14236_v10, %v14235_v55  ;;  %v7794_v17 = vcombine.low %v14238_v42, %v14237_v19  ;;  %v14240_v60 = vld [vmem:[#allocation92_spill] sm:$0xff]  ;;  %v14262_v55 = vld [vmem:[#allocation174_spill] sm:$0xff]  ;;  %v14263_v42 = vld [vmem:[#allocation53_spill] sm:$0xff] }
 0x7e3   :  { %4284 = vmatpush1.bf16.msra.mxu1 %v7586_v3  ;;  %4327 = vmatpush1.bf16.msra.mxu0 %v7714_v41  ;;  %v7659_v3 = vcombine.high %v14240_v60, %v14239_v23  ;;  %v14241_v41 = vld [vmem:[#allocation214_spill] sm:$0xff] }
 0x7e4   :  { %4285 = vmatprep.subr.bf16.mxu1 %v7579_v48  ;;  %4328 = vmatprep.subr.bf16.mxu0 %v7707_v6  ;;  %v7787_v38 = vcombine.high %v14242_v9, %v14241_v41  ;;  %v7658_v48 = vcombine.low %v14240_v60, %v14239_v23  ;;  %v7786_v52 = vcombine.low %v14242_v9, %v14241_v41  ;;  %v14244_v6 = vld [vmem:[#allocation84_spill] sm:$0xff]  ;;  %v14267_v9 = vld [vmem:[#allocation47_spill] sm:$0xff] }
 0x7e5   :  { %v14266_v23 = vld [vmem:[#allocation168_spill] sm:$0xff] }
 0x7e7   :  { %4286 = vmatpush1.bf16.msra.mxu1 %v7578_v40  ;;  %4329 = vmatpush1.bf16.msra.mxu0 %v7706_v44  ;;  %v7651_v40 = vcombine.high %v14244_v6, %v14243_v1  ;;  %v14245_v44 = vld [vmem:[#allocation206_spill] sm:$0xff] }
 0x7e8   :  { %4287 = vmatprep.subr.bf16.mxu1 %v7571_v59  ;;  %4330 = vmatprep.subr.bf16.mxu0 %v7699_v5  ;;  %v7779_v36 = vcombine.high %v14246_v32, %v14245_v44  ;;  %v7650_v59 = vcombine.low %v14244_v6, %v14243_v1  ;;  %v7778_v61 = vcombine.low %v14246_v32, %v14245_v44  ;;  %v14248_v5 = vld [vmem:[#allocation76_spill] sm:$0xff]  ;;  %v14270_v1 = vld [vmem:[#allocation162_spill] sm:$0xff]  ;;  %v14271_v32 = vld [vmem:[#allocation41_spill] sm:$0xff] }
 0x7eb   :  { %4288 = vmatpush1.bf16.msra.mxu1 %v7570_v2  ;;  %4331 = vmatpush1.bf16.msra.mxu0 %v7698_v22  ;;  %v7643_v2 = vcombine.high %v14248_v5, %v14247_v16  ;;  %v14249_v22 = vld [vmem:[#allocation198_spill] sm:$0xff] }
 0x7ec   :  { %4289 = vmatprep.subr.bf16.mxu1 %v7691_v37  ;;  %4332 = vmatprep.subr.bf16.mxu0 %v7819_v28  ;;  %v7771_v20 = vcombine.high %v14250_v24, %v14249_v22  ;;  %v7642_v37 = vcombine.low %v14248_v5, %v14247_v16  ;;  %v7770_v15 = vcombine.low %v14250_v24, %v14249_v22  ;;  %v14252_v28 = vld [vmem:[#allocation68_spill] sm:$0xff]  ;;  %v14275_v24 = vld [vmem:[#allocation35_spill] sm:$0xff] }
 0x7ed   :  { %v14274_v16 = vld [vmem:[#allocation156_spill] sm:$0xff] }
 0x7ef   :  { %4290 = vmatpush2.bf16.msra.mxu1 %v7690_v30  ;;  %4333 = vmatpush2.bf16.msra.mxu0 %v7818_v46  ;;  %v7635_v30 = vcombine.high %v14252_v28, %v14251_v18  ;;  %v14253_v46 = vld [vmem:[#allocation190_spill] sm:$0xff] }
 0x7f0   :  { %4291 = vmatprep.subr.bf16.mxu1 %v7683_v26  ;;  %4334 = vmatprep.subr.bf16.mxu0 %v7811_v0  ;;  %v7763_v45 = vcombine.high %v14254_v51, %v14253_v46  ;;  %v7634_v26 = vcombine.low %v14252_v28, %v14251_v18  ;;  %v7762_v12 = vcombine.low %v14254_v51, %v14253_v46  ;;  %v14256_v0 = vld [vmem:[#allocation62_spill] sm:$0xff]  ;;  %v14278_v18 = vld [vmem:[#allocation149_spill] sm:$0xff]  ;;  %v14279_v51 = vld [vmem:[#allocation27_spill] sm:$0xff] }
 0x7f3   :  { %4292 = vmatpush2.bf16.msra.mxu1 %v7682_v57  ;;  %4335 = vmatpush2.bf16.msra.mxu0 %v7810_v21  ;;  %v7629_v57 = vcombine.high %v14256_v0, %v14255_v63  ;;  %v14257_v21 = vld [vmem:[#allocation183_spill] sm:$0xff] }
 0x7f4   :  { %4293 = vmatprep.subr.bf16.mxu1 %v7675_v43  ;;  %4336 = vmatprep.subr.bf16.mxu0 %v7803_v35  ;;  %v7757_v4 = vcombine.high %v14258_v25, %v14257_v21  ;;  %v7628_v43 = vcombine.low %v14256_v0, %v14255_v63  ;;  %v7756_v8 = vcombine.low %v14258_v25, %v14257_v21  ;;  %v14260_v35 = vld [vmem:[#allocation56_spill] sm:$0xff]  ;;  %v14282_v63 = vld [vmem:[#allocation141_spill] sm:$0xff]  ;;  %v14283_v25 = vld [vmem:[#allocation19_spill] sm:$0xff] }
 0x7f7   :  { %4294 = vmatpush2.bf16.msra.mxu1 %v7674_v13  ;;  %4337 = vmatpush2.bf16.msra.mxu0 %v7802_v34  ;;  %v7621_v13 = vcombine.high %v14260_v35, %v14259_v53  ;;  %v14261_v34 = vld [vmem:[#allocation177_spill] sm:$0xff] }
 0x7f8   :  { %4295 = vmatprep.subr.bf16.mxu1 %v7667_v29  ;;  %4338 = vmatprep.subr.bf16.mxu0 %v7795_v58  ;;  %v7749_v10 = vcombine.high %v14262_v55, %v14261_v34  ;;  %v7620_v29 = vcombine.low %v14260_v35, %v14259_v53  ;;  %v7748_v19 = vcombine.low %v14262_v55, %v14261_v34  ;;  %v14264_v58 = vld [vmem:[#allocation50_spill] sm:$0xff]  ;;  %v14286_v53 = vld [vmem:[#allocation133_spill] sm:$0xff] }
 0x7f9   :  { %v14287_v55 = vld [vmem:[#allocation129_spill] sm:$0xff] }
 0x7fb   :  { %4296 = vmatpush2.bf16.msra.mxu1 %v7666_v56  ;;  %4339 = vmatpush2.bf16.msra.mxu0 %v7794_v17  ;;  %v7613_v56 = vcombine.high %v14264_v58, %v14263_v42  ;;  %v14265_v17 = vld [vmem:[#allocation171_spill] sm:$0xff] }
 0x7fc   :  { %4297 = vmatprep.subr.bf16.mxu1 %v7659_v3  ;;  %4340 = vmatprep.subr.bf16.mxu0 %v7787_v38  ;;  %v7741_v60 = vcombine.high %v14266_v23, %v14265_v17  ;;  %v7612_v3 = vcombine.low %v14264_v58, %v14263_v42  ;;  %v7740_v41 = vcombine.low %v14266_v23, %v14265_v17  ;;  %v14268_v38 = vld [vmem:[#allocation44_spill] sm:$0xff]  ;;  %v14290_v42 = vld [vmem:[#allocation243_spill] sm:$0xff]  ;;  %v14291_v23 = vld [vmem:[#allocation121_spill] sm:$0xff] }
 0x7ff   :  { %4298 = vmatpush2.bf16.msra.mxu1 %v7658_v48  ;;  %4341 = vmatpush2.bf16.msra.mxu0 %v7786_v52  ;;  %v7605_v48 = vcombine.high %v14268_v38, %v14267_v9  ;;  %v14269_v52 = vld [vmem:[#allocation165_spill] sm:$0xff] }
 0x800   :  { %4299 = vmatprep.subr.bf16.mxu1 %v7651_v40  ;;  %4342 = vmatprep.subr.bf16.mxu0 %v7779_v36  ;;  %v7733_v6 = vcombine.high %v14270_v1, %v14269_v52  ;;  %v7604_v40 = vcombine.low %v14268_v38, %v14267_v9  ;;  %v7732_v44 = vcombine.low %v14270_v1, %v14269_v52  ;;  %v14272_v36 = vld [vmem:[#allocation38_spill] sm:$0xff]  ;;  %v14294_v9 = vld [vmem:[#allocation235_spill] sm:$0xff]  ;;  %v14295_v1 = vld [vmem:[#allocation113_spill] sm:$0xff] }
 0x803   :  { %4300 = vmatpush2.bf16.msra.mxu1 %v7650_v59  ;;  %4343 = vmatpush2.bf16.msra.mxu0 %v7778_v61  ;;  %v7597_v59 = vcombine.high %v14272_v36, %v14271_v32  ;;  %v14273_v61 = vld [vmem:[#allocation159_spill] sm:$0xff] }
 0x804   :  { %4301 = vmatprep.subr.bf16.mxu1 %v7643_v2  ;;  %4344 = vmatprep.subr.bf16.mxu0 %v7771_v20  ;;  %v7725_v5 = vcombine.high %v14274_v16, %v14273_v61  ;;  %v7596_v2 = vcombine.low %v14272_v36, %v14271_v32  ;;  %v7724_v22 = vcombine.low %v14274_v16, %v14273_v61  ;;  %v14276_v20 = vld [vmem:[#allocation31_spill] sm:$0xff]  ;;  %v14299_v16 = vld [vmem:[#allocation105_spill] sm:$0xff] }
 0x805   :  { %v14298_v32 = vld [vmem:[#allocation227_spill] sm:$0xff] }
 0x807   :  { %4302 = vmatpush2.bf16.msra.mxu1 %v7642_v37  ;;  %4345 = vmatpush2.bf16.msra.mxu0 %v7770_v15  ;;  %v7589_v37 = vcombine.high %v14276_v20, %v14275_v24  ;;  %v14277_v15 = vld [vmem:[#allocation153_spill] sm:$0xff] }
 0x808   :  { %4303 = vmatprep.subr.bf16.mxu1 %v7635_v30  ;;  %4346 = vmatprep.subr.bf16.mxu0 %v7763_v45  ;;  %v7717_v28 = vcombine.high %v14278_v18, %v14277_v15  ;;  %v7588_v30 = vcombine.low %v14276_v20, %v14275_v24  ;;  %v7716_v46 = vcombine.low %v14278_v18, %v14277_v15  ;;  %v14280_v45 = vld [vmem:[#allocation23_spill] sm:$0xff]  ;;  %v14303_v18 = vld [vmem:[#allocation97_spill] sm:$0xff] }
 0x809   :  { %v14302_v24 = vld [vmem:[#allocation219_spill] sm:$0xff] }
 0x80b   :  { %4304 = vmatpush2.bf16.msra.mxu1 %v7634_v26  ;;  %4347 = vmatpush2.bf16.msra.mxu0 %v7762_v12  ;;  %v7581_v26 = vcombine.high %v14280_v45, %v14279_v51  ;;  %v14281_v12 = vld [vmem:[#allocation145_spill] sm:$0xff] }
 0x80c   :  { %4359 = vmatprep.subr.bf16.mxu1 %v7629_v57  ;;  %4402 = vmatprep.subr.bf16.mxu0 %v7757_v4  ;;  %v7709_v0 = vcombine.high %v14282_v63, %v14281_v12  ;;  %v7580_v57 = vcombine.low %v14280_v45, %v14279_v51  ;;  %v7708_v21 = vcombine.low %v14282_v63, %v14281_v12  ;;  %v14284_v4 = vld [vmem:[#allocation15_spill] sm:$0xff]  ;;  %v14307_v63 = vld [vmem:[#allocation89_spill] sm:$0xff] }
 0x80d   :  { %v14306_v51 = vld [vmem:[#allocation211_spill] sm:$0xff] }
 0x80e   :  { %4306 = vmatmul.mubr.bf16.vlgmr.msra.gmra.mxu1 %v11939_v47  ;;  %4349 = vmatmul.mubr.bf16.vlgmr.msra.gmra.mxu0 %v11945_v62 }
 0x80f   :  { %4360 = vmatpush1.bf16.msra.mxu1 %v7628_v43  ;;  %4403 = vmatpush1.bf16.msra.mxu0 %v7756_v8  ;;  %v7573_v43 = vcombine.high %v14284_v4, %v14283_v25  ;;  %v14285_v8 = vld [vmem:[#allocation137_spill] sm:$0xff] }
 0x810   :  { %4361 = vmatprep.subr.bf16.mxu1 %v7621_v13  ;;  %4404 = vmatprep.subr.bf16.mxu0 %v7749_v10  ;;  %v7701_v35 = vcombine.high %v14286_v53, %v14285_v8  ;;  %v7572_v13 = vcombine.low %v14284_v4, %v14283_v25  ;;  %v7700_v34 = vcombine.low %v14286_v53, %v14285_v8  ;;  %v14288_v10 = vld [vmem:[#allocation125_spill] sm:$0xff]  ;;  %v14310_v25 = vld [vmem:[#allocation203_spill] sm:$0xff] }
 0x811   :  { %4391 = vmatprep.mubr.bf16.mxu1 %v11841_v7  ;;  %4434 = vmatprep.mubr.bf16.mxu0 %v11843_v33  ;;  %v14311_v53 = vld [vmem:[#allocation81_spill] sm:$0xff] }
 0x813   :  { %4362 = vmatpush1.bf16.msra.mxu1 %v7620_v29  ;;  %4405 = vmatpush1.bf16.msra.mxu0 %v7748_v19  ;;  %v7693_v29 = vcombine.high %v14288_v10, %v14287_v55  ;;  %v14289_v19 = vld [vmem:[#allocation247_spill] sm:$0xff] }
 0x814   :  { %4363 = vmatprep.subr.bf16.mxu1 %v7613_v56  ;;  %4406 = vmatprep.subr.bf16.mxu0 %v7741_v60  ;;  %v7821_v58 = vcombine.high %v14290_v42, %v14289_v19  ;;  %v7692_v56 = vcombine.low %v14288_v10, %v14287_v55  ;;  %v7820_v17 = vcombine.low %v14290_v42, %v14289_v19  ;;  %v14292_v60 = vld [vmem:[#allocation117_spill] sm:$0xff]  ;;  %v14314_v55 = vld [vmem:[#allocation195_spill] sm:$0xff] }
 0x815   :  { %v14315_v42 = vld [vmem:[#allocation73_spill] sm:$0xff] }
 0x817   :  { %4364 = vmatpush1.bf16.msra.mxu1 %v7612_v3  ;;  %4407 = vmatpush1.bf16.msra.mxu0 %v7740_v41  ;;  %v7685_v3 = vcombine.high %v14292_v60, %v14291_v23  ;;  %v14293_v41 = vld [vmem:[#allocation239_spill] sm:$0xff] }
 0x818   :  { %4365 = vmatprep.subr.bf16.mxu1 %v7605_v48  ;;  %4408 = vmatprep.subr.bf16.mxu0 %v7733_v6  ;;  %v7813_v38 = vcombine.high %v14294_v9, %v14293_v41  ;;  %v7684_v48 = vcombine.low %v14292_v60, %v14291_v23  ;;  %v7812_v52 = vcombine.low %v14294_v9, %v14293_v41  ;;  %v14296_v6 = vld [vmem:[#allocation109_spill] sm:$0xff]  ;;  %v14318_v23 = vld [vmem:[#allocation187_spill] sm:$0xff]  ;;  %v14319_v9 = vld [vmem:[#allocation66_spill] sm:$0xff] }
 0x81b   :  { %4366 = vmatpush1.bf16.msra.mxu1 %v7604_v40  ;;  %4409 = vmatpush1.bf16.msra.mxu0 %v7732_v44  ;;  %v7677_v40 = vcombine.high %v14296_v6, %v14295_v1  ;;  %v14297_v44 = vld [vmem:[#allocation231_spill] sm:$0xff] }
 0x81c   :  { %4367 = vmatprep.subr.bf16.mxu1 %v7597_v59  ;;  %4410 = vmatprep.subr.bf16.mxu0 %v7725_v5  ;;  %v7805_v36 = vcombine.high %v14298_v32, %v14297_v44  ;;  %v7676_v59 = vcombine.low %v14296_v6, %v14295_v1  ;;  %v7804_v61 = vcombine.low %v14298_v32, %v14297_v44  ;;  %v14300_v5 = vld [vmem:[#allocation101_spill] sm:$0xff]  ;;  %v14323_v32 = vld [vmem:[#allocation60_spill] sm:$0xff] }
 0x81d   :  { %v14322_v1 = vld [vmem:[#allocation181_spill] sm:$0xff] }
 0x81f   :  { %4368 = vmatpush1.bf16.msra.mxu1 %v7596_v2  ;;  %4411 = vmatpush1.bf16.msra.mxu0 %v7724_v22  ;;  %v7669_v2 = vcombine.high %v14300_v5, %v14299_v16  ;;  %v14301_v22 = vld [vmem:[#allocation223_spill] sm:$0xff] }
 0x820   :  { %4369 = vmatprep.subr.bf16.mxu1 %v7589_v37  ;;  %4412 = vmatprep.subr.bf16.mxu0 %v7717_v28  ;;  %v7797_v20 = vcombine.high %v14302_v24, %v14301_v22  ;;  %v7668_v37 = vcombine.low %v14300_v5, %v14299_v16  ;;  %v7796_v15 = vcombine.low %v14302_v24, %v14301_v22  ;;  %v14304_v28 = vld [vmem:[#allocation93_spill] sm:$0xff]  ;;  %v14326_v16 = vld [vmem:[#allocation175_spill] sm:$0xff]  ;;  %v14327_v24 = vld [vmem:[#allocation54_spill] sm:$0xff] }
 0x823   :  { %4370 = vmatpush1.bf16.msra.mxu1 %v7588_v30  ;;  %4413 = vmatpush1.bf16.msra.mxu0 %v7716_v46  ;;  %v7661_v30 = vcombine.high %v14304_v28, %v14303_v18  ;;  %v14305_v46 = vld [vmem:[#allocation215_spill] sm:$0xff] }
 0x824   :  { %4371 = vmatprep.subr.bf16.mxu1 %v7581_v26  ;;  %4414 = vmatprep.subr.bf16.mxu0 %v7709_v0  ;;  %v7789_v45 = vcombine.high %v14306_v51, %v14305_v46  ;;  %v7660_v26 = vcombine.low %v14304_v28, %v14303_v18  ;;  %v7788_v12 = vcombine.low %v14306_v51, %v14305_v46  ;;  %v14308_v0 = vld [vmem:[#allocation85_spill] sm:$0xff]  ;;  %v14331_v51 = vld [vmem:[#allocation48_spill] sm:$0xff] }
 0x825   :  { %v14330_v18 = vld [vmem:[#allocation169_spill] sm:$0xff] }
 0x827   :  { %4372 = vmatpush1.bf16.msra.mxu1 %v7580_v57  ;;  %4415 = vmatpush1.bf16.msra.mxu0 %v7708_v21  ;;  %v7653_v57 = vcombine.high %v14308_v0, %v14307_v63  ;;  %v14309_v21 = vld [vmem:[#allocation207_spill] sm:$0xff] }
 0x828   :  { %4373 = vmatprep.subr.bf16.mxu1 %v7573_v43  ;;  %4416 = vmatprep.subr.bf16.mxu0 %v7701_v35  ;;  %v7781_v4 = vcombine.high %v14310_v25, %v14309_v21  ;;  %v7652_v43 = vcombine.low %v14308_v0, %v14307_v63  ;;  %v7780_v8 = vcombine.low %v14310_v25, %v14309_v21  ;;  %v14312_v35 = vld [vmem:[#allocation77_spill] sm:$0xff]  ;;  %v14334_v63 = vld [vmem:[#allocation163_spill] sm:$0xff] }
 0x829   :  { %v14336_v21 = vld [vmem:[#allocation39_spill] sm:$0xff] }
 0x82b   :  { %4374 = vmatpush1.bf16.msra.mxu1 %v7572_v13  ;;  %4417 = vmatpush1.bf16.msra.mxu0 %v7700_v34  ;;  %v7645_v13 = vcombine.high %v14312_v35, %v14311_v53  ;;  %v14313_v34 = vld [vmem:[#allocation199_spill] sm:$0xff] }
 0x82c   :  { %4375 = vmatprep.subr.bf16.mxu1 %v7693_v29  ;;  %4418 = vmatprep.subr.bf16.mxu0 %v7821_v58  ;;  %v7773_v10 = vcombine.high %v14314_v55, %v14313_v34  ;;  %v7644_v29 = vcombine.low %v14312_v35, %v14311_v53  ;;  %v7772_v19 = vcombine.low %v14314_v55, %v14313_v34  ;;  %v14316_v58 = vld [vmem:[#allocation69_spill] sm:$0xff]  ;;  %v14340_v34 = vld [vmem:[#allocation32_spill] sm:$0xff] }
 0x82f   :  { %4376 = vmatpush2.bf16.msra.mxu1 %v7692_v56  ;;  %4419 = vmatpush2.bf16.msra.mxu0 %v7820_v17  ;;  %v7637_v56 = vcombine.high %v14316_v58, %v14315_v42  ;;  %v14317_v17 = vld [vmem:[#allocation191_spill] sm:$0xff] }
 0x830   :  { %4377 = vmatprep.subr.bf16.mxu1 %v7685_v3  ;;  %4420 = vmatprep.subr.bf16.mxu0 %v7813_v38  ;;  %v7765_v60 = vcombine.high %v14318_v23, %v14317_v17  ;;  %v7636_v3 = vcombine.low %v14316_v58, %v14315_v42  ;;  %v7764_v41 = vcombine.low %v14318_v23, %v14317_v17  ;;  %v14320_v38 = vld [vmem:[#allocation63_spill] sm:$0xff]  ;;  %v14344_v17 = vld [vmem:[#allocation24_spill] sm:$0xff] }
 0x833   :  { %4378 = vmatpush2.bf16.msra.mxu1 %v7684_v48  ;;  %4421 = vmatpush2.bf16.msra.mxu0 %v7812_v52  ;;  %v7631_v48 = vcombine.high %v14320_v38, %v14319_v9  ;;  %v14321_v52 = vld [vmem:[#allocation184_spill] sm:$0xff] }
 0x834   :  { %4379 = vmatprep.subr.bf16.mxu1 %v7677_v40  ;;  %4422 = vmatprep.subr.bf16.mxu0 %v7805_v36  ;;  %v7759_v6 = vcombine.high %v14322_v1, %v14321_v52  ;;  %v7630_v40 = vcombine.low %v14320_v38, %v14319_v9  ;;  %v7758_v44 = vcombine.low %v14322_v1, %v14321_v52  ;;  %v14324_v36 = vld [vmem:[#allocation57_spill] sm:$0xff]  ;;  %v14348_v52 = vld [vmem:[#allocation16_spill] sm:$0xff] }
 0x837   :  { %4380 = vmatpush2.bf16.msra.mxu1 %v7676_v59  ;;  %4423 = vmatpush2.bf16.msra.mxu0 %v7804_v61  ;;  %v7623_v59 = vcombine.high %v14324_v36, %v14323_v32  ;;  %v14325_v61 = vld [vmem:[#allocation178_spill] sm:$0xff] }
 0x838   :  { %4381 = vmatprep.subr.bf16.mxu1 %v7669_v2  ;;  %4424 = vmatprep.subr.bf16.mxu0 %v7797_v20  ;;  %v7751_v5 = vcombine.high %v14326_v16, %v14325_v61  ;;  %v7622_v2 = vcombine.low %v14324_v36, %v14323_v32  ;;  %v7750_v22 = vcombine.low %v14326_v16, %v14325_v61  ;;  %v14328_v20 = vld [vmem:[#allocation51_spill] sm:$0xff]  ;;  %v14352_v61 = vld [vmem:[#allocation126_spill] sm:$0xff] }
 0x83b   :  { %4382 = vmatpush2.bf16.msra.mxu1 %v7668_v37  ;;  %4425 = vmatpush2.bf16.msra.mxu0 %v7796_v15  ;;  %v7615_v37 = vcombine.high %v14328_v20, %v14327_v24  ;;  %v14329_v15 = vld [vmem:[#allocation172_spill] sm:$0xff] }
 0x83c   :  { %4383 = vmatprep.subr.bf16.mxu1 %v7661_v30  ;;  %4426 = vmatprep.subr.bf16.mxu0 %v7789_v45  ;;  %v7743_v28 = vcombine.high %v14330_v18, %v14329_v15  ;;  %v7614_v30 = vcombine.low %v14328_v20, %v14327_v24  ;;  %v7742_v46 = vcombine.low %v14330_v18, %v14329_v15  ;;  %v14332_v45 = vld [vmem:[#allocation45_spill] sm:$0xff]  ;;  %v14356_v15 = vld [vmem:[#allocation118_spill] sm:$0xff] }
 0x83f   :  { %4384 = vmatpush2.bf16.msra.mxu1 %v7660_v26  ;;  %4427 = vmatpush2.bf16.msra.mxu0 %v7788_v12  ;;  %v7607_v26 = vcombine.high %v14332_v45, %v14331_v51  ;;  %v14333_v12 = vld [vmem:[#allocation166_spill] sm:$0xff] }
 0x840   :  { %4385 = vmatprep.subr.bf16.mxu1 %v7653_v57  ;;  %4428 = vmatprep.subr.bf16.mxu0 %v7781_v4  ;;  %v7735_v0 = vcombine.high %v14334_v63, %v14333_v12  ;;  %v14335_v57 = vld [vmem:[#allocation42_spill] sm:$0xff]  ;;  %v14337_v4 = vld [vmem:[#allocation160_spill] sm:$0xff] }
 0x841   :  { %v7599_v25 = vcombine.high %v14336_v21, %v14335_v57  ;;  %v7598_v53 = vcombine.low %v14336_v21, %v14335_v57 }
 0x843   :  { %4386 = vmatpush2.bf16.msra.mxu1 %v7652_v43  ;;  %4429 = vmatpush2.bf16.msra.mxu0 %v7780_v8  ;;  %v14338_v43 = vld [vmem:[#allocation157_spill] sm:$0xff] }
 0x844   :  { %4387 = vmatprep.subr.bf16.mxu1 %v7645_v13  ;;  %4430 = vmatprep.subr.bf16.mxu0 %v7773_v10  ;;  %v7727_v8 = vcombine.high %v14338_v43, %v14337_v4  ;;  %v7726_v35 = vcombine.low %v14338_v43, %v14337_v4  ;;  %v14339_v13 = vld [vmem:[#allocation36_spill] sm:$0xff]  ;;  %v14341_v10 = vld [vmem:[#allocation154_spill] sm:$0xff] }
 0x845   :  { %v7591_v55 = vcombine.high %v14340_v34, %v14339_v13  ;;  %v7590_v42 = vcombine.low %v14340_v34, %v14339_v13  ;;  %v14364_v4 = vld [vmem:[#allocation102_spill] sm:$0xff] }
 0x847   :  { %4388 = vmatpush2.bf16.msra.mxu1 %v7644_v29  ;;  %4431 = vmatpush2.bf16.msra.mxu0 %v7772_v19  ;;  %v14342_v29 = vld [vmem:[#allocation150_spill] sm:$0xff] }
 0x848   :  { %4389 = vmatprep.subr.bf16.mxu1 %v7637_v56  ;;  %4432 = vmatprep.subr.bf16.mxu0 %v7765_v60  ;;  %v7719_v19 = vcombine.high %v14342_v29, %v14341_v10  ;;  %v7718_v58 = vcombine.low %v14342_v29, %v14341_v10  ;;  %v14343_v56 = vld [vmem:[#allocation28_spill] sm:$0xff]  ;;  %v14345_v60 = vld [vmem:[#allocation146_spill] sm:$0xff] }
 0x849   :  { %v7583_v23 = vcombine.high %v14344_v17, %v14343_v56  ;;  %v7582_v9 = vcombine.low %v14344_v17, %v14343_v56  ;;  %v14368_v10 = vld [vmem:[#allocation94_spill] sm:$0xff] }
 0x84b   :  { %4390 = vmatpush2.bf16.msra.mxu1 %v7636_v3  ;;  %4433 = vmatpush2.bf16.msra.mxu0 %v7764_v41  ;;  %v14346_v3 = vld [vmem:[#allocation142_spill] sm:$0xff] }
 0x84c   :  { %4445 = vmatprep.subr.bf16.mxu1 %v7631_v48  ;;  %4488 = vmatprep.subr.bf16.mxu0 %v7759_v6  ;;  %v7711_v41 = vcombine.high %v14346_v3, %v14345_v60  ;;  %v7710_v38 = vcombine.low %v14346_v3, %v14345_v60  ;;  %v14347_v48 = vld [vmem:[#allocation20_spill] sm:$0xff]  ;;  %v14349_v6 = vld [vmem:[#allocation138_spill] sm:$0xff] }
 0x84d   :  { %v7575_v1 = vcombine.high %v14348_v52, %v14347_v48  ;;  %v7574_v32 = vcombine.low %v14348_v52, %v14347_v48  ;;  %v14372_v60 = vld [vmem:[#allocation86_spill] sm:$0xff] }
 0x84e   :  { %4392 = vmatmul.mubr.bf16.vlgmr.msra.gmra.mxu1 %v11939_v47  ;;  %4435 = vmatmul.mubr.bf16.vlgmr.msra.gmra.mxu0 %v11945_v62 }
 0x84f   :  { %4446 = vmatpush1.bf16.msra.mxu1 %v7630_v40  ;;  %4489 = vmatpush1.bf16.msra.mxu0 %v7758_v44  ;;  %v14350_v40 = vld [vmem:[#allocation134_spill] sm:$0xff] }
 0x850   :  { %4447 = vmatprep.subr.bf16.mxu1 %v7623_v59  ;;  %4490 = vmatprep.subr.bf16.mxu0 %v7751_v5  ;;  %v7703_v44 = vcombine.high %v14350_v40, %v14349_v6  ;;  %v7702_v36 = vcombine.low %v14350_v40, %v14349_v6  ;;  %v14351_v59 = vld [vmem:[#allocation130_spill] sm:$0xff]  ;;  %v14353_v5 = vld [vmem:[#allocation248_spill] sm:$0xff] }
 0x851   :  { %4477 = vmatprep.mubr.bf16.mxu1 %v11841_v7  ;;  %4520 = vmatprep.mubr.bf16.mxu0 %v11843_v33  ;;  %v7606_v7 = vcombine.low %v14332_v45, %v14331_v51  ;;  %v7734_v33 = vcombine.low %v14334_v63, %v14333_v12  ;;  %v7695_v16 = vcombine.high %v14352_v61, %v14351_v59  ;;  %v14360_v12 = vld [vmem:[#allocation110_spill] sm:$0xff] }
 0x852   :  { %v7694_v24 = vcombine.low %v14352_v61, %v14351_v59  ;;  %v14376_v6 = vld [vmem:[#allocation78_spill] sm:$0xff] }
 0x853   :  { %4448 = vmatpush1.bf16.msra.mxu1 %v7622_v2  ;;  %4491 = vmatpush1.bf16.msra.mxu0 %v7750_v22  ;;  %v14354_v2 = vld [vmem:[#allocation244_spill] sm:$0xff] }
 0x854   :  { %4449 = vmatprep.subr.bf16.mxu1 %v7615_v37  ;;  %4492 = vmatprep.subr.bf16.mxu0 %v7743_v28  ;;  %v7823_v22 = vcombine.high %v14354_v2, %v14353_v5  ;;  %v7822_v20 = vcombine.low %v14354_v2, %v14353_v5  ;;  %v14355_v37 = vld [vmem:[#allocation122_spill] sm:$0xff]  ;;  %v14357_v28 = vld [vmem:[#allocation240_spill] sm:$0xff] }
 0x855   :  { %v7687_v18 = vcombine.high %v14356_v15, %v14355_v37  ;;  %v7686_v51 = vcombine.low %v14356_v15, %v14355_v37  ;;  %v14380_v5 = vld [vmem:[#allocation70_spill] sm:$0xff] }
 0x857   :  { %4450 = vmatpush1.bf16.msra.mxu1 %v7614_v30  ;;  %4493 = vmatpush1.bf16.msra.mxu0 %v7742_v46  ;;  %v14358_v30 = vld [vmem:[#allocation236_spill] sm:$0xff] }
 0x858   :  { %4451 = vmatprep.subr.bf16.mxu1 %v7607_v26  ;;  %4494 = vmatprep.subr.bf16.mxu0 %v7735_v0  ;;  %v7815_v46 = vcombine.high %v14358_v30, %v14357_v28  ;;  %v7814_v45 = vcombine.low %v14358_v30, %v14357_v28  ;;  %v14359_v26 = vld [vmem:[#allocation114_spill] sm:$0xff]  ;;  %v14361_v0 = vld [vmem:[#allocation232_spill] sm:$0xff]  ;;  %v14383_v30 = vmov 0.0  }
 0x859   :  { %v7679_v63 = vcombine.high %v14360_v12, %v14359_v26  ;;  %v7678_v57 = vcombine.low %v14360_v12, %v14359_v26 }
 0x85b   :  { %4452 = vmatpush1.bf16.msra.mxu1 %v7606_v7  ;;  %4495 = vmatpush1.bf16.msra.mxu0 %v7734_v33  ;;  %v14362_v7 = vld [vmem:[#allocation228_spill] sm:$0xff] }
 0x85c   :  { %4453 = vmatprep.subr.bf16.mxu1 %v7599_v25  ;;  %4496 = vmatprep.subr.bf16.mxu0 %v7727_v8  ;;  %v7807_v33 = vcombine.high %v14362_v7, %v14361_v0  ;;  %v7806_v21 = vcombine.low %v14362_v7, %v14361_v0  ;;  %v14363_v25 = vld [vmem:[#allocation106_spill] sm:$0xff]  ;;  %v14365_v8 = vld [vmem:[#allocation224_spill] sm:$0xff] }
 0x85d   :  { %v7671_v43 = vcombine.high %v14364_v4, %v14363_v25  ;;  %v7670_v13 = vcombine.low %v14364_v4, %v14363_v25 }
 0x85f   :  { %4454 = vmatpush1.bf16.msra.mxu1 %v7598_v53  ;;  %4497 = vmatpush1.bf16.msra.mxu0 %v7726_v35  ;;  %v14366_v53 = vld [vmem:[#allocation220_spill] sm:$0xff] }
 0x860   :  { %4455 = vmatprep.subr.bf16.mxu1 %v7591_v55  ;;  %4498 = vmatprep.subr.bf16.mxu0 %v7719_v19  ;;  %v7799_v35 = vcombine.high %v14366_v53, %v14365_v8  ;;  %v7798_v34 = vcombine.low %v14366_v53, %v14365_v8  ;;  %v14367_v55 = vld [vmem:[#allocation98_spill] sm:$0xff]  ;;  %v14369_v19 = vld [vmem:[#allocation216_spill] sm:$0xff] }
 0x861   :  { %v7663_v29 = vcombine.high %v14368_v10, %v14367_v55  ;;  %v7662_v56 = vcombine.low %v14368_v10, %v14367_v55  ;;  %v12357_v10 = vld [vmem:[%s13137_s3] sm:$0x3] }
 0x863   :  { %4456 = vmatpush1.bf16.msra.mxu1 %v7590_v42  ;;  %4499 = vmatpush1.bf16.msra.mxu0 %v7718_v58  ;;  %v14370_v42 = vld [vmem:[#allocation212_spill] sm:$0xff] }
 0x864   :  { %4457 = vmatprep.subr.bf16.mxu1 %v7583_v23  ;;  %4500 = vmatprep.subr.bf16.mxu0 %v7711_v41  ;;  %v7791_v58 = vcombine.high %v14370_v42, %v14369_v19  ;;  %v7790_v17 = vcombine.low %v14370_v42, %v14369_v19  ;;  %v14371_v23 = vld [vmem:[#allocation90_spill] sm:$0xff]  ;;  %v14373_v41 = vld [vmem:[#allocation208_spill] sm:$0xff]  ;;  %v4899_v42 = vsel %vm4898_vm0, %v12357_v10, 0.0 }
 0x865   :  { %v7655_v3 = vcombine.high %v14372_v60, %v14371_v23  ;;  %v7654_v48 = vcombine.low %v14372_v60, %v14371_v23  ;;  %v5198_v19 = vld [vmem:[%s13138_s4] sm:$0xff]  ;;  %4900 = vadd.xlane.f32.xlu0 %v4899_v42 }
 0x866   :  { %vm5200_vm13 = vcmp.gt.f32.partialorder %v5198_v19, 0.0 }
 0x867   :  { %4458 = vmatpush1.bf16.msra.mxu1 %v7582_v9  ;;  %4501 = vmatpush1.bf16.msra.mxu0 %v7710_v38  ;;  %v14374_v9 = vld [vmem:[#allocation204_spill] sm:$0xff] }
 0x868   :  { %4459 = vmatprep.subr.bf16.mxu1 %v7575_v1  ;;  %4502 = vmatprep.subr.bf16.mxu0 %v7703_v44  ;;  %v7783_v38 = vcombine.high %v14374_v9, %v14373_v41  ;;  %v7782_v52 = vcombine.low %v14374_v9, %v14373_v41  ;;  %v14375_v1 = vld [vmem:[#allocation82_spill] sm:$0xff]  ;;  %v14377_v44 = vld [vmem:[#allocation200_spill] sm:$0xff] }
 0x869   :  { %v7647_v40 = vcombine.high %v14376_v6, %v14375_v1  ;;  %v7646_v59 = vcombine.low %v14376_v6, %v14375_v1 }
 0x86b   :  { %4460 = vmatpush1.bf16.msra.mxu1 %v7574_v32  ;;  %4503 = vmatpush1.bf16.msra.mxu0 %v7702_v36  ;;  %v14378_v32 = vld [vmem:[#allocation196_spill] sm:$0xff] }
 0x86c   :  { %4461 = vmatprep.subr.bf16.mxu1 %v7695_v16  ;;  %4504 = vmatprep.subr.bf16.mxu0 %v7823_v22  ;;  %v7775_v36 = vcombine.high %v14378_v32, %v14377_v44  ;;  %v7774_v61 = vcombine.low %v14378_v32, %v14377_v44  ;;  %v14379_v16 = vld [vmem:[#allocation74_spill] sm:$0xff]  ;;  %v14381_v22 = vld [vmem:[#allocation192_spill] sm:$0xff] }
 0x86d   :  { %v7639_v2 = vcombine.high %v14380_v5, %v14379_v16  ;;  %v7638_v37 = vcombine.low %v14380_v5, %v14379_v16 }
 0x86f   :  { %4462 = vmatpush2.bf16.msra.mxu1 %v7694_v24  ;;  %4505 = vmatpush2.bf16.msra.mxu0 %v7822_v20  ;;  %v14382_v24 = vld [vmem:[#allocation188_spill] sm:$0xff] }
 0x870   :  { %4463 = vmatprep.subr.bf16.mxu1 %v7687_v18  ;;  %4506 = vmatprep.subr.bf16.mxu0 %v7815_v46  ;;  %v7767_v20 = vcombine.high %v14382_v24, %v14381_v22  ;;  %v7766_v15 = vcombine.low %v14382_v24, %v14381_v22 }
 0x873   :  { %4464 = vmatpush2.bf16.msra.mxu1 %v7686_v51  ;;  %4507 = vmatpush2.bf16.msra.mxu0 %v7814_v45 }
 0x874   :  { %4465 = vmatprep.subr.bf16.mxu1 %v7679_v63  ;;  %4508 = vmatprep.subr.bf16.mxu0 %v7807_v33 }
 0x877   :  { %4466 = vmatpush2.bf16.msra.mxu1 %v7678_v57  ;;  %4509 = vmatpush2.bf16.msra.mxu0 %v7806_v21 }
 0x878   :  { %4467 = vmatprep.subr.bf16.mxu1 %v7671_v43  ;;  %4510 = vmatprep.subr.bf16.mxu0 %v7799_v35 }
 0x87b   :  { %4468 = vmatpush2.bf16.msra.mxu1 %v7670_v13  ;;  %4511 = vmatpush2.bf16.msra.mxu0 %v7798_v34 }
 0x87c   :  { %4469 = vmatprep.subr.bf16.mxu1 %v7663_v29  ;;  %4512 = vmatprep.subr.bf16.mxu0 %v7791_v58  ;;  %v5199_v29 = vld [vmem:[%s13138_s4 + $0x8] sm:$0xff] }
 0x87d   :  { %vm5201_vm12 = vcmp.gt.f32.partialorder %v5199_v29, 0.0 }
 0x87e   :  { %v5203_v58 = vsel %vm5201_vm12, 1, %v14146_v14 }
 0x87f   :  { %4470 = vmatpush2.bf16.msra.mxu1 %v7662_v56  ;;  %4513 = vmatpush2.bf16.msra.mxu0 %v7790_v17  ;;  %v5202_v56 = vsel %vm5200_vm13, 1, %v14146_v14  ;;  %v8458_v17 = vmov 1  }
 0x880   :  { %4471 = vmatprep.subr.bf16.mxu1 %v7655_v3  ;;  %4514 = vmatprep.subr.bf16.mxu0 %v7783_v38 }
 0x881   :  { %5208 = vperm.xlu1 %8394, %v5203_v58   ;;  %5205 = vperm.xlu0 %8393, %v5202_v56  }
 0x883   :  { %4472 = vmatpush2.bf16.msra.mxu1 %v7654_v48  ;;  %4515 = vmatpush2.bf16.msra.mxu0 %v7782_v52 }
 0x884   :  { %4473 = vmatprep.subr.bf16.mxu1 %v7647_v40  ;;  %4516 = vmatprep.subr.bf16.mxu0 %v7775_v36 }
 0x885   :  { %8395 = vset.pattern.permute.xlu1 %v8458_v17  ;;  %8396 = vset.pattern.permute.xlu0 %v8458_v17 }
 0x886   :  { %5285 = vperm.xlu1 %8395, %v5202_v56  }
 0x887   :  { %4474 = vmatpush2.bf16.msra.mxu1 %v7646_v59  ;;  %4517 = vmatpush2.bf16.msra.mxu0 %v7774_v61 }
 0x888   :  { %4475 = vmatprep.subr.bf16.mxu1 %v7639_v2  ;;  %4518 = vmatprep.subr.bf16.mxu0 %v7767_v20 }
 0x88a   :  { %5288 = vperm.xlu1 %8395, %v5203_v58  }
 0x88b   :  { %4476 = vmatpush2.bf16.msra.mxu1 %v7638_v37  ;;  %4519 = vmatpush2.bf16.msra.mxu0 %v7766_v15  ;;  %v12378_v37 = vld [vmem:[%s13145_s11] sm:$0xff] }
 0x88e   :  { %v4221_v18 = vpop.f32.mrf.mxu1  ;;  %v4264_v28 = vpop.f32.mrf.mxu0  ;;  %4478 = vmatmul.mubr.bf16.vlgmr.msra.gmra.mxu1 %v11939_v47  ;;  %4521 = vmatmul.mubr.bf16.vlgmr.msra.gmra.mxu0 %v11945_v62 }
 0x88f   :  { %4637 = vmatprep.mubr.f32.mxu1 %v14383_v30  ;;  %4714 = vmatprep.mubr.f32.mxu0 %v14383_v30  ;;  %v4265_v57 = vadd.f32 %v4264_v28, %v4221_v18  ;;  %v4536_v18 = vrot.slane %v12378_v37, %v11302_v54  ;;  %v4540_v28 = vrot.slane %v12378_v37, %v11293_v39 }
 0x890   :  { %v4223_v46 = vpop.f32.mrf.mxu1  ;;  %v4266_v51 = vpop.f32.mrf.mxu0 }
 0x891   :  { %v4267_v33 = vadd.f32 %v4266_v51, %v4223_v46 }
 0x892   :  { %v4225_v45 = vpop.f32.mrf.mxu1  ;;  %v4268_v26 = vpop.f32.mrf.mxu0 }
 0x893   :  { %v4269_v7 = vadd.f32 %v4268_v26, %v4225_v45 }
 0x894   :  { %v4227_v12 = vpop.f32.mrf.mxu1  ;;  %v4270_v63 = vpop.f32.mrf.mxu0 }
 0x895   :  { %v4271_v0 = vadd.f32 %v4270_v63, %v4227_v12 }
 0x897   :  { %4601 = vmatprep.subr.mxu1 %v4271_v0 }
 0x898   :  { %4602 = vmatpush1.msra.mxu1 %v4269_v7 }
 0x899   :  { %4603 = vmatprep.subr.mxu1 %v4267_v33 }
 0x89a   :  { %4604 = vmatpush1.msra.mxu1 %v4265_v57 }
 0x89b   :  { %7824 = vmatmul.mubr.msk.f32.vlgmr.msra.gmra.mxu1 %vm1431_vm4, %v11753_v31 }
 0x89c   :  { %4643 = vmatprep.mubr.f32.mxu1 %v14383_v30 }
 0x89f   :  { %7825 = vmatmul.mubr.msk.f32.gmra.mxu1 %vm1431_vm4, %v11761_v50 }
 0x8a0   :  { %4791 = vmatprep.mubr.f32.mxu1 %v14383_v30 }
 0x8ce   :  { %v4307_v47 = vpop.f32.mrf.mxu1  ;;  %v4350_v62 = vpop.f32.mrf.mxu0 }
 0x8cf   :  { %v4351_v55 = vadd.f32 %v4350_v62, %v4307_v47 }
 0x8d0   :  { %v4309_v21 = vpop.f32.mrf.mxu1  ;;  %v4352_v25 = vpop.f32.mrf.mxu0 }
 0x8d1   :  { %v4353_v34 = vadd.f32 %v4352_v25, %v4309_v21 }
 0x8d2   :  { %v4311_v4 = vpop.f32.mrf.mxu1  ;;  %v4354_v43 = vpop.f32.mrf.mxu0 }
 0x8d3   :  { %v4355_v13 = vadd.f32 %v4354_v43, %v4311_v4 }
 0x8d4   :  { %v4313_v8 = vpop.f32.mrf.mxu1  ;;  %v4356_v53 = vpop.f32.mrf.mxu0 }
 0x8d5   :  { %v4357_v35 = vadd.f32 %v4356_v53, %v4313_v8 }
 0x8d7   :  { %4678 = vmatprep.subr.mxu0 %v4357_v35 }
 0x8d8   :  { %4679 = vmatpush1.msra.mxu0 %v4355_v13 }
 0x8d9   :  { %4680 = vmatprep.subr.mxu0 %v4353_v34 }
 0x8da   :  { %4681 = vmatpush1.msra.mxu0 %v4351_v55 }
 0x8db   :  { %7826 = vmatmul.mubr.msk.f32.vlgmr.msra.gmra.mxu0 %vm1431_vm4, %v11753_v31 }
 0x8dc   :  { %4720 = vmatprep.mubr.f32.mxu0 %v14383_v30 }
 0x8df   :  { %7827 = vmatmul.mubr.msk.f32.gmra.mxu0 %vm1431_vm4, %v11761_v50 }
 0x8e0   :  { %4868 = vmatprep.mubr.f32.mxu0 %v14383_v30 }
 0x8ee   :  { %v12408_v55 = vpop.xlane.xlu0 %4900 }
 0x8ef   :  { %8397 = vrcp.f32 %v12408_v55 }
 0x8fc   :  { %v12387_v51 = vpop.permute.xlu1 %5208  ;;  %v12416_v56 = vpop.permute.xlu0 %5205 }
 0x8fd   :  { %vm5211_vm1 = vcmp.eq.s32.totalorder %v12387_v51, 1  ;;  %vm5210_vm2 = vcmp.eq.s32.totalorder %v12416_v56, 1  ;;  %v8398_v56 = vpop.eup %8397 }
 0x901   :  { %v12392_v47 = vpop.permute.xlu1 %5285 }
 0x902   :  { %vm5290_vm14 = vcmp.eq.s32.totalorder %v12392_v47, 1 }
 0x905   :  { %v12399_v4 = vpop.permute.xlu1 %5288 }
 0x906   :  { %vm5291_vm15 = vcmp.eq.s32.totalorder %v12399_v4, 1 }
 0x90e   :  { %v4393_v23 = vpop.f32.mrf.mxu1  ;;  %v4436_v60 = vpop.f32.mrf.mxu0 }
 0x90f   :  { %v4437_v44 = vadd.f32 %v4436_v60, %v4393_v23 }
 0x910   :  { %v4395_v3 = vpop.f32.mrf.mxu1  ;;  %v4438_v41 = vpop.f32.mrf.mxu0 }
 0x911   :  { %v4439_v40 = vadd.f32 %v4438_v41, %v4395_v3 }
 0x912   :  { %v4397_v9 = vpop.f32.mrf.mxu1  ;;  %v4440_v38 = vpop.f32.mrf.mxu0 }
 0x913   :  { %v4441_v6 = vadd.f32 %v4440_v38, %v4397_v9 }
 0x914   :  { %v4399_v48 = vpop.f32.mrf.mxu1  ;;  %v4442_v52 = vpop.f32.mrf.mxu0 }
 0x915   :  { %v4443_v1 = vadd.f32 %v4442_v52, %v4399_v48 }
 0x917   :  { %4755 = vmatprep.subr.mxu1 %v4443_v1 }
 0x918   :  { %4756 = vmatpush1.msra.mxu1 %v4441_v6 }
 0x919   :  { %4757 = vmatprep.subr.mxu1 %v4439_v40 }
 0x91a   :  { %4758 = vmatpush1.msra.mxu1 %v4437_v44 }
 0x91b   :  { %7828 = vmatmul.mubr.msk.f32.vlgmr.msra.gmra.mxu1 %vm1431_vm4, %v11753_v31 }
 0x91c   :  { %4797 = vmatprep.mubr.f32.mxu1 %v14383_v30 }
 0x91f   :  { %7829 = vmatmul.mubr.msk.f32.gmra.mxu1 %vm1431_vm4, %v11761_v50 }
 0x920   :  { %4969 = vmatprep.mubr.f32.mxu1 %v14383_v30 }
 0x94e   :  { %v4479_v14 = vpop.f32.mrf.mxu1  ;;  %v4522_v32 = vpop.f32.mrf.mxu0 }
 0x94f   :  { %v4523_v15 = vadd.f32 %v4522_v32, %v4479_v14 }
 0x950   :  { %v4481_v36 = vpop.f32.mrf.mxu1  ;;  %v4524_v59 = vpop.f32.mrf.mxu0 }
 0x951   :  { %v4525_v20 = vadd.f32 %v4524_v59, %v4481_v36 }
 0x952   :  { %v4483_v61 = vpop.f32.mrf.mxu1  ;;  %v4526_v16 = vpop.f32.mrf.mxu0 }
 0x953   :  { %v4527_v24 = vadd.f32 %v4526_v16, %v4483_v61 }
 0x954   :  { %v4485_v5 = vpop.f32.mrf.mxu1  ;;  %v4528_v2 = vpop.f32.mrf.mxu0 }
 0x955   :  { %v4529_v22 = vadd.f32 %v4528_v2, %v4485_v5 }
 0x957   :  { %4832 = vmatprep.subr.mxu0 %v4529_v22 }
 0x958   :  { %4833 = vmatpush1.msra.mxu0 %v4527_v24 }
 0x959   :  { %4834 = vmatprep.subr.mxu0 %v4525_v20 }
 0x95a   :  { %4835 = vmatpush1.msra.mxu0 %v4523_v15 }
 0x95b   :  { %7830 = vmatmul.mubr.msk.f32.vlgmr.msra.gmra.mxu0 %vm1431_vm4, %v11753_v31  ;;  %v4639_v46 = vpop.f32.mrf.mxu1 }
 0x95c   :  { %4874 = vmatprep.mubr.f32.mxu0 %v14383_v30  ;;  %v4640_v26 = vadd.f32 %v4639_v46, %v4536_v18  ;;  %v4548_v46 = vrot.slane %v12378_v37, %v11297_v49 }
 0x95d   :  { %v4641_v45 = vpop.f32.mrf.mxu1 }
 0x95e   :  { %v4642_v12 = vadd.f32 %v4641_v45, %v4540_v28  ;;  %v4881_v33 = vmax.f32 %v4640_v26, 0.0 }
 0x95f   :  { %7831 = vmatmul.mubr.msk.f32.gmra.mxu0 %vm1431_vm4, %v11761_v50  ;;  %v4645_v63 = vpop.f32.mrf.mxu1 }
 0x960   :  { %v4646_v0 = vadd.f32 %v4645_v63, %v4536_v18  ;;  %5111 = vmatprep.mubr.f32.mxu0 %v14383_v30  ;;  %v4882_v57 = vmax.f32 %v4642_v12, 0.0  ;;  %v5292_v25 = vsel %vm5290_vm14, %v4881_v33, -3e+38  ;;  %v5212_v60 = vsel %vm5210_vm2, %v4881_v33, -3e+38 }
 0x961   :  { %v4647_v7 = vpop.f32.mrf.mxu1 }
 0x962   :  { %v4648_v31 = vadd.f32 %v4647_v7, %v4540_v28  ;;  %v4889_v62 = vmax.f32 %v4646_v0, 0.0  ;;  %v5293_v50 = vsel %vm5290_vm14, %v4882_v57, -3e+38  ;;  %v5213_v3 = vsel %vm5210_vm2, %v4882_v57, -3e+38 }
 0x963   :  { %v4544_v28 = vrot.slane %v12378_v37, %v11290_v27 }
 0x964   :  { %v4890_v21 = vmax.f32 %v4648_v31, 0.0  ;;  %v5300_v43 = vsel %vm5291_vm15, %v4889_v62, -3e+38  ;;  %v5220_v42 = vsel %vm5211_vm1, %v4889_v62, -3e+38 }
 0x965   :  { %v5308_v53 = vmax.f32 %v5292_v25, %v5300_v43  ;;  %v5228_v41 = vmax.f32 %v5212_v60, %v5220_v42 }
 0x966   :  { %4933 = vmatprep.subr.mxu1 %v4890_v21  ;;  %v5301_v8 = vsel %vm5291_vm15, %v4890_v21, -3e+38  ;;  %v5221_v58 = vsel %vm5211_vm1, %v4890_v21, -3e+38 }
 0x967   :  { %4934 = vmatpush1.msra.mxu1 %v4889_v62  ;;  %v5315_v35 = vmax.f32 %v5293_v50, %v5301_v8  ;;  %v5309_v13 = vrot.slane %v5308_v53, 4  ;;  %v5235_v9 = vmax.f32 %v5213_v3, %v5221_v58  ;;  %v5229_v52 = vrot.slane %v5228_v41, 4 }
 0x968   :  { %4935 = vmatprep.subr.mxu1 %v4882_v57 }
 0x969   :  { %4936 = vmatpush1.msra.mxu1 %v4881_v33  ;;  %v5316_v34 = vrot.slane %v5315_v35, 4  ;;  %v5310_v29 = vmax.f32 %v5308_v53, %v5309_v13  ;;  %v5236_v1 = vrot.slane %v5235_v9, 4  ;;  %v5230_v6 = vmax.f32 %v5228_v41, %v5229_v52 }
 0x96a   :  { %7832 = vmatmul.mubr.msk.f32.vlgmr.msra.gmra.mxu1 %vm1431_vm4, %v12357_v10 }
 0x96b   :  { %5040 = vmatprep.mubr.f32.mxu1 %v14383_v30  ;;  %v5317_v19 = vmax.f32 %v5315_v35, %v5316_v34  ;;  %v5311_v17 = vrot.slane %v5310_v29, 2  ;;  %v5237_v40 = vmax.f32 %v5235_v9, %v5236_v1  ;;  %v5231_v32 = vrot.slane %v5230_v6, 2 }
 0x96d   :  { %v5318_v23 = vrot.slane %v5317_v19, 2  ;;  %v5312_v38 = vmax.f32 %v5310_v29, %v5311_v17  ;;  %v5238_v36 = vrot.slane %v5237_v40, 2  ;;  %v5232_v59 = vmax.f32 %v5230_v6, %v5231_v32 }
 0x96f   :  { %v5319_v48 = vmax.f32 %v5317_v19, %v5318_v23  ;;  %v5313_v44 = vrot.slane %v5312_v38, 1  ;;  %v5239_v61 = vmax.f32 %v5237_v40, %v5238_v36  ;;  %v5233_v2 = vrot.slane %v5232_v59, 1 }
 0x971   :  { %v5320_v14 = vrot.slane %v5319_v48, 1  ;;  %v5314_v16 = vmax.f32 %v5312_v38, %v5313_v44  ;;  %v5240_v22 = vrot.slane %v5239_v61, 1  ;;  %v5234_v24 = vmax.f32 %v5232_v59, %v5233_v2 }
 0x973   :  { %v5321_v5 = vmax.f32 %v5319_v48, %v5320_v14  ;;  %v5241_v20 = vmax.f32 %v5239_v61, %v5240_v22  ;;  %v12424_v15 = vsel %vm5364_vm3, %v5234_v24, %v5314_v16 }
 0x975   :  { %v12427_v18 = vsel %vm5364_vm3, %v5241_v20, %v5321_v5 }
 0x99b   :  { %v4716_v45 = vpop.f32.mrf.mxu0 }
 0x99c   :  { %v4717_v26 = vadd.f32 %v4716_v45, %v4544_v28  ;;  %v14385_v45 = vsub.s32 5, %v11285_v11 }
 0x99d   :  { %v4718_v12 = vpop.f32.mrf.mxu0 }
 0x99e   :  { %v4883_v63 = vmax.f32 %v4717_v26, 0.0  ;;  %v4719_v0 = vadd.f32 %v4718_v12, %v4548_v46  ;;  %v4556_v26 = vrot.slane %v12378_v37, %v14385_v45 }
 0x99f   :  { %v4722_v7 = vpop.f32.mrf.mxu0 }
 0x9a0   :  { %v4884_v33 = vmax.f32 %v4719_v0, 0.0  ;;  %v4723_v57 = vadd.f32 %v4722_v7, %v4544_v28  ;;  %v5294_v62 = vsel %vm5290_vm14, %v4883_v63, -3e+38  ;;  %v5214_v25 = vsel %vm5210_vm2, %v4883_v63, -3e+38 }
 0x9a1   :  { %v4724_v31 = vpop.f32.mrf.mxu0 }
 0x9a2   :  { %v4891_v21 = vmax.f32 %v4723_v57, 0.0  ;;  %v4725_v27 = vadd.f32 %v4724_v31, %v4548_v46  ;;  %v5295_v49 = vsel %vm5290_vm14, %v4884_v33, -3e+38  ;;  %v5215_v50 = vsel %vm5210_vm2, %v4884_v33, -3e+38 }
 0x9a4   :  { %v5222_v43 = vsel %vm5211_vm1, %v4891_v21, -3e+38  ;;  %v5302_v8 = vsel %vm5291_vm15, %v4891_v21, -3e+38  ;;  %v4892_v53 = vmax.f32 %v4725_v27, 0.0 }
 0x9a5   :  { %v5322_v35 = vmax.f32 %v5294_v62, %v5302_v8  ;;  %v5242_v13 = vmax.f32 %v5214_v25, %v5222_v43 }
 0x9a6   :  { %v5223_v34 = vsel %vm5211_vm1, %v4892_v53, -3e+38  ;;  %v5303_v29 = vsel %vm5291_vm15, %v4892_v53, -3e+38  ;;  %5004 = vmatprep.subr.mxu1 %v4892_v53 }
 0x9a7   :  { %v5323_v19 = vrot.slane %v5322_v35, 4  ;;  %v5243_v42 = vrot.slane %v5242_v13, 4  ;;  %v5249_v58 = vmax.f32 %v5215_v50, %v5223_v34  ;;  %v5329_v17 = vmax.f32 %v5295_v49, %v5303_v29  ;;  %5005 = vmatpush1.msra.mxu1 %v4891_v21 }
 0x9a8   :  { %5006 = vmatprep.subr.mxu1 %v4884_v33 }
 0x9a9   :  { %v5324_v23 = vmax.f32 %v5322_v35, %v5323_v19  ;;  %v5244_v60 = vmax.f32 %v5242_v13, %v5243_v42  ;;  %v5250_v3 = vrot.slane %v5249_v58, 4  ;;  %v5330_v41 = vrot.slane %v5329_v17, 4  ;;  %5007 = vmatpush1.msra.mxu1 %v4883_v63 }
 0x9aa   :  { %7833 = vmatmul.mubr.msk.f32.vlgmr.msra.gmra.mxu1 %vm1431_vm4, %v12357_v10 }
 0x9ab   :  { %v5325_v9 = vrot.slane %v5324_v23, 2  ;;  %v5245_v38 = vrot.slane %v5244_v60, 2  ;;  %v5251_v48 = vmax.f32 %v5249_v58, %v5250_v3  ;;  %v5331_v52 = vmax.f32 %v5329_v17, %v5330_v41  ;;  %5182 = vmatprep.mubr.f32.mxu1 %v14383_v30 }
 0x9ac   :  { %v14384_v30 = vsub.s32 4, %v11285_v11 }
 0x9ad   :  { %v5326_v1 = vmax.f32 %v5324_v23, %v5325_v9  ;;  %v5246_v6 = vmax.f32 %v5244_v60, %v5245_v38  ;;  %v5252_v40 = vrot.slane %v5251_v48, 2  ;;  %v5332_v44 = vrot.slane %v5331_v52, 2 }
 0x9ae   :  { %v4552_v46 = vrot.slane %v12378_v37, %v14384_v30 }
 0x9af   :  { %v5327_v14 = vrot.slane %v5326_v1, 1  ;;  %v5247_v32 = vrot.slane %v5246_v6, 1  ;;  %v5253_v36 = vmax.f32 %v5251_v48, %v5252_v40  ;;  %v5333_v59 = vmax.f32 %v5331_v52, %v5332_v44 }
 0x9b1   :  { %v5328_v61 = vmax.f32 %v5326_v1, %v5327_v14  ;;  %v5248_v16 = vmax.f32 %v5246_v6, %v5247_v32  ;;  %v5254_v5 = vrot.slane %v5253_v36, 1  ;;  %v5334_v2 = vrot.slane %v5333_v59, 1 }
 0x9b3   :  { %v12453_v22 = vsel %vm5364_vm3, %v5248_v16, %v5328_v61  ;;  %v5255_v24 = vmax.f32 %v5253_v36, %v5254_v5  ;;  %v5335_v20 = vmax.f32 %v5333_v59, %v5334_v2 }
 0x9b5   :  { %v12456_v28 = vsel %vm5364_vm3, %v5255_v24, %v5335_v20 }
 0x9db   :  { %v4793_v12 = vpop.f32.mrf.mxu1 }
 0x9dc   :  { %v4794_v63 = vadd.f32 %v4793_v12, %v4552_v46  ;;  %v14386_v12 = vsub.s32 6, %v11285_v11 }
 0x9dd   :  { %v4795_v0 = vpop.f32.mrf.mxu1 }
 0x9de   :  { %v4885_v7 = vmax.f32 %v4794_v63, 0.0  ;;  %v4796_v33 = vadd.f32 %v4795_v0, %v4556_v26  ;;  %v4560_v63 = vrot.slane %v12378_v37, %v14386_v12  ;;  %v14387_v0 = vsub.s32 7, %v11285_v11 }
 0x9df   :  { %v4799_v57 = vpop.f32.mrf.mxu1 }
 0x9e0   :  { %v4886_v31 = vmax.f32 %v4796_v33, 0.0  ;;  %v4800_v62 = vadd.f32 %v4799_v57, %v4552_v46  ;;  %v5296_v25 = vsel %vm5290_vm14, %v4885_v7, -3e+38  ;;  %v5216_v49 = vsel %vm5210_vm2, %v4885_v7, -3e+38 }
 0x9e1   :  { %v4801_v21 = vpop.f32.mrf.mxu1 }
 0x9e2   :  { %v4893_v27 = vmax.f32 %v4800_v62, 0.0  ;;  %v4802_v50 = vadd.f32 %v4801_v21, %v4556_v26  ;;  %v5217_v43 = vsel %vm5210_vm2, %v4886_v31, -3e+38  ;;  %v5297_v8 = vsel %vm5290_vm14, %v4886_v31, -3e+38 }
 0x9e4   :  { %v5224_v53 = vsel %vm5211_vm1, %v4893_v27, -3e+38  ;;  %v5304_v35 = vsel %vm5291_vm15, %v4893_v27, -3e+38  ;;  %v4894_v13 = vmax.f32 %v4802_v50, 0.0 }
 0x9e5   :  { %v5256_v34 = vmax.f32 %v5216_v49, %v5224_v53  ;;  %v5336_v29 = vmax.f32 %v5296_v25, %v5304_v35 }
 0x9e6   :  { %v5225_v19 = vsel %vm5211_vm1, %v4894_v13, -3e+38  ;;  %v5305_v42 = vsel %vm5291_vm15, %v4894_v13, -3e+38  ;;  %5075 = vmatprep.subr.mxu0 %v4894_v13 }
 0x9e7   :  { %v5257_v58 = vrot.slane %v5256_v34, 4  ;;  %v5337_v17 = vrot.slane %v5336_v29, 4  ;;  %v5263_v23 = vmax.f32 %v5217_v43, %v5225_v19  ;;  %v5343_v60 = vmax.f32 %v5297_v8, %v5305_v42  ;;  %5076 = vmatpush1.msra.mxu0 %v4893_v27 }
 0x9e8   :  { %5077 = vmatprep.subr.mxu0 %v4886_v31 }
 0x9e9   :  { %v5258_v3 = vmax.f32 %v5256_v34, %v5257_v58  ;;  %v5338_v41 = vmax.f32 %v5336_v29, %v5337_v17  ;;  %v5264_v9 = vrot.slane %v5263_v23, 4  ;;  %v5344_v38 = vrot.slane %v5343_v60, 4  ;;  %5078 = vmatpush1.msra.mxu0 %v4885_v7 }
 0x9ea   :  { %7834 = vmatmul.mubr.msk.f32.vlgmr.msra.gmra.mxu0 %vm1431_vm4, %v12357_v10  ;;  %v4564_v7 = vrot.slane %v12378_v37, %v14387_v0 }
 0x9eb   :  { %v5259_v48 = vrot.slane %v5258_v3, 2  ;;  %v5339_v52 = vrot.slane %v5338_v41, 2  ;;  %v5265_v1 = vmax.f32 %v5263_v23, %v5264_v9  ;;  %v5345_v6 = vmax.f32 %v5343_v60, %v5344_v38 }
 0x9ed   :  { %v5260_v40 = vmax.f32 %v5258_v3, %v5259_v48  ;;  %v5340_v44 = vmax.f32 %v5338_v41, %v5339_v52  ;;  %v5266_v14 = vrot.slane %v5265_v1, 2  ;;  %v5346_v32 = vrot.slane %v5345_v6, 2 }
 0x9ef   :  { %v5261_v36 = vrot.slane %v5260_v40, 1  ;;  %v5341_v59 = vrot.slane %v5340_v44, 1  ;;  %v5267_v61 = vmax.f32 %v5265_v1, %v5266_v14  ;;  %v5347_v16 = vmax.f32 %v5345_v6, %v5346_v32 }
 0x9f1   :  { %v5262_v5 = vmax.f32 %v5260_v40, %v5261_v36  ;;  %v5342_v2 = vmax.f32 %v5340_v44, %v5341_v59  ;;  %v5268_v24 = vrot.slane %v5267_v61, 1  ;;  %v5348_v20 = vrot.slane %v5347_v16, 1 }
 0x9f3   :  { %v12483_v30 = vsel %vm5364_vm3, %v5262_v5, %v5342_v2  ;;  %v5269_v46 = vmax.f32 %v5267_v61, %v5268_v24  ;;  %v5349_v45 = vmax.f32 %v5347_v16, %v5348_v20 }
 0x9f5   :  { %v12486_v26 = vsel %vm5364_vm3, %v5269_v46, %v5349_v45 }
 0xa1b   :  { %v4870_v33 = vpop.f32.mrf.mxu0 }
 0xa1c   :  { %v4871_v57 = vadd.f32 %v4870_v33, %v4560_v63 }
 0xa1d   :  { %v4872_v31 = vpop.f32.mrf.mxu0 }
 0xa1e   :  { %v4873_v62 = vadd.f32 %v4872_v31, %v4564_v7  ;;  %v4887_v21 = vmax.f32 %v4871_v57, 0.0 }
 0xa1f   :  { %v4876_v25 = vpop.f32.mrf.mxu0 }
 0xa20   :  { %v4877_v27 = vadd.f32 %v4876_v25, %v4560_v63  ;;  %v4888_v49 = vmax.f32 %v4873_v62, 0.0  ;;  %v5218_v53 = vsel %vm5210_vm2, %v4887_v21, -3e+38  ;;  %v5298_v11 = vsel %vm5290_vm14, %v4887_v21, -3e+38 }
 0xa21   :  { %v4878_v50 = vpop.f32.mrf.mxu0 }
 0xa22   :  { %v4895_v43 = vmax.f32 %v4877_v27, 0.0  ;;  %v4879_v8 = vadd.f32 %v4878_v50, %v4564_v7  ;;  %v5219_v13 = vsel %vm5210_vm2, %v4888_v49, -3e+38  ;;  %v5299_v19 = vsel %vm5290_vm14, %v4888_v49, -3e+38 }
 0xa24   :  { %v5226_v37 = vsel %vm5211_vm1, %v4895_v43, -3e+38  ;;  %v5306_v55 = vsel %vm5291_vm15, %v4895_v43, -3e+38  ;;  %v4896_v35 = vmax.f32 %v4879_v8, 0.0 }
 0xa25   :  { %v5270_v34 = vmax.f32 %v5218_v53, %v5226_v37  ;;  %v5350_v29 = vmax.f32 %v5298_v11, %v5306_v55  ;;  %v14388_v53 = vld [vmem:[#allocation392_spill] sm:$0xff]  ;;  %v14389_v11 = vld [vmem:[#allocation391_spill] sm:$0xff] }
 0xa26   :  { %v5227_v42 = vsel %vm5211_vm1, %v4896_v35, -3e+38  ;;  %v5307_v58 = vsel %vm5291_vm15, %v4896_v35, -3e+38  ;;  %5146 = vmatprep.subr.mxu1 %v4896_v35  ;;  %v7851_v37 = vcombine.high %v14389_v11, %v14388_v53  ;;  %v14390_v55 = vld [vmem:[#allocation424_spill] sm:$0xff]  ;;  %v14391_v35 = vld [vmem:[#allocation423_spill] sm:$0xff] }
 0xa27   :  { %v5271_v17 = vrot.slane %v5270_v34, 4  ;;  %v5351_v23 = vrot.slane %v5350_v29, 4  ;;  %v5277_v60 = vmax.f32 %v5219_v13, %v5227_v42  ;;  %v5357_v3 = vmax.f32 %v5299_v19, %v5307_v58  ;;  %5147 = vmatpush1.msra.mxu1 %v4895_v43 }
 0xa28   :  { %5148 = vmatprep.subr.mxu1 %v4888_v49  ;;  %v7883_v13 = vcombine.high %v14391_v35, %v14390_v55 }
 0xa29   :  { %v5272_v41 = vmax.f32 %v5270_v34, %v5271_v17  ;;  %v5352_v9 = vmax.f32 %v5350_v29, %v5351_v23  ;;  %v5278_v38 = vrot.slane %v5277_v60, 4  ;;  %v5358_v48 = vrot.slane %v5357_v3, 4  ;;  %5149 = vmatpush1.msra.mxu1 %v4887_v21 }
 0xa2a   :  { %7835 = vmatmul.mubr.msk.f32.vlgmr.msra.gmra.mxu1 %vm1431_vm4, %v12357_v10  ;;  %v4971_v1 = vpop.f32.mrf.mxu1  ;;  %v7850_v34 = vcombine.low %v14389_v11, %v14388_v53  ;;  %v7882_v29 = vcombine.low %v14391_v35, %v14390_v55 }
 0xa2b   :  { %v5273_v51 = vrot.slane %v5272_v41, 2  ;;  %v5353_v47 = vrot.slane %v5352_v9, 2  ;;  %v5279_v4 = vmax.f32 %v5277_v60, %v5278_v38  ;;  %v5359_v52 = vmax.f32 %v5357_v3, %v5358_v48 }
 0xa2c   :  { %v12513_v6 = vmul.f32 %v8398_v56, %v4971_v1  ;;  %v4973_v36 = vpop.f32.mrf.mxu1 }
 0xa2d   :  { %v5274_v40 = vmax.f32 %v5272_v41, %v5273_v51  ;;  %v5354_v44 = vmax.f32 %v5352_v9, %v5353_v47  ;;  %v5280_v14 = vrot.slane %v5279_v4, 2  ;;  %v5360_v32 = vrot.slane %v5359_v52, 2 }
 0xa2e   :  { %v12515_v59 = vmul.f32 %v8398_v56, %v4973_v36 }
 0xa2f   :  { %v5275_v61 = vrot.slane %v5274_v40, 1  ;;  %v5355_v16 = vrot.slane %v5354_v44, 1  ;;  %v5281_v5 = vmax.f32 %v5279_v4, %v5280_v14  ;;  %v5361_v2 = vmax.f32 %v5359_v52, %v5360_v32 }
 0xa31   :  { %v5276_v24 = vmax.f32 %v5274_v40, %v5275_v61  ;;  %v5356_v10 = vmax.f32 %v5354_v44, %v5355_v16  ;;  %v5282_v20 = vrot.slane %v5281_v5, 1  ;;  %v5362_v46 = vrot.slane %v5361_v2, 1 }
 0xa33   :  { %v12518_v45 = vsel %vm5364_vm3, %v5276_v24, %v5356_v10  ;;  %v5283_v12 = vmax.f32 %v5281_v5, %v5282_v20  ;;  %v5363_v63 = vmax.f32 %v5361_v2, %v5362_v46 }
 0xa35   :  { %v12521_v0 = vsel %vm5364_vm3, %v5283_v12, %v5363_v63 }
 0xa6a   :  { %v5042_v7 = vpop.f32.mrf.mxu1 }
 0xa6b   :  { %v12523_v33 = vmul.f32 %v8398_v56, %v5042_v7 }
 0xa6c   :  { %v5044_v57 = vpop.f32.mrf.mxu1 }
 0xa6d   :  { %v5193_v31 = vmul.f32 %v8398_v56, %v5044_v57 }
 0xaaa   :  { %v5113_v62 = vpop.f32.mrf.mxu0 }
 0xaab   :  { %v12525_v21 = vmul.f32 %v8398_v56, %v5113_v62 }
 0xaac   :  { %v5115_v25 = vpop.f32.mrf.mxu0 }
 0xaad   :  { %v12527_v27 = vmul.f32 %v8398_v56, %v5115_v25 }
 0xaea   :  { %v5184_v49 = vpop.f32.mrf.mxu1 }
 0xaeb   :  { %v12529_v50 = vmul.f32 %v8398_v56, %v5184_v49 }
 0xaec   :  { %v5186_v43 = vpop.f32.mrf.mxu1 }
 0xaed   :  { %v12531_v8 = vmul.f32 %v8398_v56, %v5186_v43 }
 0xaee   :  { %8437 = dma.done.wait [#allocation5 + $0x1], 32768 }
 0xaef   :  { %8438 = vsyncadd [#allocation5 + $0x1], 4294934528  ;;  %v14392_v19 = vld [vmem:[#allocation390_spill] sm:$0xff]  ;;  %v14393_v42 = vld [vmem:[#allocation389_spill] sm:$0xff]  ;;  %6289 = vmatprep.subr.bf16.mxu0 %v7851_v37  ;;  %6330 = vmatprep.subr.bf16.mxu1 %v7883_v13  ;;  %v5514_v53 = vpack.c.bf16 %v12515_v59, %v12515_v59  ;;  %v5516_v11 = vpack.c.bf16 %v5193_v31, %v5193_v31  ;;  %s8459_s17 = smov [#allocation6]   ;;  %vm7450_vm4 = vcmask 9216  }
 0xaf0   :  { %v7849_v58 = vcombine.high %v14393_v42, %v14392_v19  ;;  %v14394_v17 = vld [vmem:[#allocation422_spill] sm:$0xff]  ;;  %v14395_v23 = vld [vmem:[#allocation421_spill] sm:$0xff]  ;;  %6290 = vmatpush1.bf16.msra.mxu0 %v7850_v34  ;;  %6331 = vmatpush1.bf16.msra.mxu1 %v7882_v29  ;;  %v7848_v3 = vcombine.low %v14393_v42, %v14392_v19  ;;  %v14396_v41 = vld [vmem:[#allocation388_spill] sm:$0xff]  ;;  %s7458_s24 = sshll.u32 %s8459_s17, 4  ;;  %s7459_s24 = int_to_ptr.vmem [resolvable:$true] %s7458_s24 }
 0xaf1   :  { %v7881_v60 = vcombine.high %v14395_v23, %v14394_v17  ;;  %v7880_v56 = vcombine.low %v14395_v23, %v14394_v17  ;;  %v14397_v9 = vld [vmem:[#allocation387_spill] sm:$0xff]  ;;  %v14398_v48 = vld [vmem:[#allocation420_spill] sm:$0xff]  ;;  %v14400_v1 = vld [vmem:[#allocation386_spill] sm:$0xff]  ;;  %6321 = vmatprep.mubr.bf16.mxu0 %v5514_v53  ;;  %6362 = vmatprep.mubr.bf16.mxu1 %v5516_v11  ;;  %s8415_s25 = scalar_lea.vmem %s7459_s24, 32  ;;  %p8420_p1 = scmp.lt.s32.totalorder %s7459_s24, %s7459_s24 }
 0xaf2   :  { %6291 = vmatprep.subr.bf16.mxu0 %v7849_v58  ;;  %v7847_v38 = vcombine.high %v14397_v9, %v14396_v41  ;;  %v14399_v51 = vld [vmem:[#allocation419_spill] sm:$0xff]  ;;  %v7846_v4 = vcombine.low %v14397_v9, %v14396_v41  ;;  %v14401_v40 = vld [vmem:[#allocation385_spill] sm:$0xff]  ;;  %v14402_v14 = vld [vmem:[#allocation418_spill] sm:$0xff]  ;;  %p8416_p0 = scmp.ne.s32.totalorder %s7459_s24, %s8415_s25  ;;  %p8421_p2 = scmp.lt.s32.totalorder %s8415_s25, %s8415_s25 }
 0xaf3   :  { %6332 = vmatprep.subr.bf16.mxu1 %v7881_v60  ;;  %v7879_v47 = vcombine.high %v14399_v51, %v14398_v48  ;;  %v7878_v52 = vcombine.low %v14399_v51, %v14398_v48  ;;  %v7845_v44 = vcombine.high %v14401_v40, %v14400_v1  ;;  %v14403_v32 = vld [vmem:[#allocation417_spill] sm:$0xff]  ;;  %v7844_v61 = vcombine.low %v14401_v40, %v14400_v1  ;;  %v14404_v5 = vld [vmem:[#allocation384_spill] sm:$0xff]  ;;  %v14405_v2 = vld [vmem:[#allocation383_spill] sm:$0xff] }
 0xaf4   :  { %6292 = vmatpush1.bf16.msra.mxu0 %v7848_v3  ;;  %6333 = vmatpush1.bf16.msra.mxu1 %v7880_v56  ;;  %v7877_v36 = vcombine.high %v14403_v32, %v14402_v14  ;;  %v7876_v16 = vcombine.low %v14403_v32, %v14402_v14  ;;  %v7843_v24 = vcombine.high %v14405_v2, %v14404_v5  ;;  %v14406_v10 = vld [vmem:[#allocation416_spill] sm:$0xff]  ;;  %v14407_v20 = vld [vmem:[#allocation415_spill] sm:$0xff]  ;;  %v14408_v7 = vld [vmem:[#allocation382_spill] sm:$0xff]  ;;  %p8422_p3 = por %p8421_p2, %p8420_p1 }
 0xaf5   :  { %6293 = vmatprep.subr.bf16.mxu0 %v7847_v38  ;;  %6334 = vmatprep.subr.bf16.mxu1 %v7879_v47  ;;  %v7875_v46 = vcombine.high %v14407_v20, %v14406_v10  ;;  %v7842_v12 = vcombine.low %v14405_v2, %v14404_v5  ;;  %v7874_v63 = vcombine.low %v14407_v20, %v14406_v10  ;;  %v14409_v57 = vld [vmem:[#allocation381_spill] sm:$0xff]  ;;  %v14410_v25 = vld [vmem:[#allocation414_spill] sm:$0xff]  ;;  %v14412_v35 = vld [vmem:[#allocation380_spill] sm:$0xff] }
 0xaf6   :  { %v7841_v62 = vcombine.high %v14409_v57, %v14408_v7  ;;  %v14411_v49 = vld [vmem:[#allocation413_spill] sm:$0xff]  ;;  %v7840_v37 = vcombine.low %v14409_v57, %v14408_v7  ;;  %v14413_v13 = vld [vmem:[#allocation379_spill] sm:$0xff]  ;;  %v14414_v29 = vld [vmem:[#allocation412_spill] sm:$0xff]  ;;  %p8423_p4 = pnand %p8422_p3, %p8416_p0 }
 0xaf7   :  { %v7873_v43 = vcombine.high %v14411_v49, %v14410_v25  ;;  %v7872_v55 = vcombine.low %v14411_v49, %v14410_v25  ;;  %v7839_v34 = vcombine.high %v14413_v13, %v14412_v35  ;;  %v14415_v19 = vld [vmem:[#allocation411_spill] sm:$0xff]  ;;  %v7838_v59 = vcombine.low %v14413_v13, %v14412_v35  ;;  %v14416_v58 = vld [vmem:[#allocation378_spill] sm:$0xff]  ;;  %v14417_v17 = vld [vmem:[#allocation377_spill] sm:$0xff] }
 0xaf8   :  { %6294 = vmatpush1.bf16.msra.mxu0 %v7846_v4  ;;  %6335 = vmatpush1.bf16.msra.mxu1 %v7878_v52  ;;  %v7871_v42 = vcombine.high %v14415_v19, %v14414_v29  ;;  %v7870_v31 = vcombine.low %v14415_v19, %v14414_v29  ;;  %v7837_v23 = vcombine.high %v14417_v17, %v14416_v58  ;;  %v14418_v60 = vld [vmem:[#allocation410_spill] sm:$0xff]  ;;  %v14419_v3 = vld [vmem:[#allocation409_spill] sm:$0xff]  ;;  %v14420_v38 = vld [vmem:[#allocation408_spill] sm:$0xff] }
 0xaf9   :  { %6295 = vmatprep.subr.bf16.mxu0 %v7845_v44  ;;  %6336 = vmatprep.subr.bf16.mxu1 %v7877_v36  ;;  %v7869_v56 = vcombine.high %v14419_v3, %v14418_v60  ;;  %v7836_v41 = vcombine.low %v14417_v17, %v14416_v58  ;;  %v7868_v9 = vcombine.low %v14419_v3, %v14418_v60  ;;  %v14421_v48 = vld [vmem:[#allocation407_spill] sm:$0xff]  ;;  %v14422_v47 = vld [vmem:[#allocation440_spill] sm:$0xff]  ;;  %v14424_v44 = vld [vmem:[#allocation406_spill] sm:$0xff] }
 0xafa   :  { %v7867_v51 = vcombine.high %v14421_v48, %v14420_v38  ;;  %v14423_v4 = vld [vmem:[#allocation439_spill] sm:$0xff]  ;;  %v7866_v1 = vcombine.low %v14421_v48, %v14420_v38  ;;  %v14425_v14 = vld [vmem:[#allocation405_spill] sm:$0xff]  ;;  %v14426_v36 = vld [vmem:[#allocation438_spill] sm:$0xff] }
 0xafb   :  { %v7899_v52 = vcombine.high %v14423_v4, %v14422_v47  ;;  %v7898_v40 = vcombine.low %v14423_v4, %v14422_v47  ;;  %v7865_v32 = vcombine.high %v14425_v14, %v14424_v44  ;;  %v7864_v5 = vcombine.low %v14425_v14, %v14424_v44  ;;  %v14429_v10 = vld [vmem:[#allocation403_spill] sm:$0xff]  ;;  %v14433_v25 = vld [vmem:[#allocation401_spill] sm:$0xff]  ;;  %v14436_v35 = vld [vmem:[#allocation400_spill] sm:$0xff] }
 0xafc   :  { %6296 = vmatpush1.bf16.msra.mxu0 %v7844_v61  ;;  %6337 = vmatpush1.bf16.msra.mxu1 %v7876_v16  ;;  %v14427_v61 = vld [vmem:[#allocation437_spill] sm:$0xff]  ;;  %v14437_v13 = vld [vmem:[#allocation399_spill] sm:$0xff]  ;;  %v14438_v29 = vld [vmem:[#allocation432_spill] sm:$0xff] }
 0xafd   :  { %6297 = vmatprep.subr.bf16.mxu0 %v7843_v24  ;;  %6338 = vmatprep.subr.bf16.mxu1 %v7875_v46  ;;  %v7897_v16 = vcombine.high %v14427_v61, %v14426_v36  ;;  %v7896_v2 = vcombine.low %v14427_v61, %v14426_v36  ;;  %v14428_v24 = vld [vmem:[#allocation404_spill] sm:$0xff]  ;;  %v14435_v53 = vld [vmem:[#allocation433_spill] sm:$0xff]  ;;  %v14439_v19 = vld [vmem:[#allocation431_spill] sm:$0xff] }
 0xafe   :  { %v7863_v20 = vcombine.high %v14429_v10, %v14428_v24  ;;  %v14430_v46 = vld [vmem:[#allocation436_spill] sm:$0xff]  ;;  %v7862_v7 = vcombine.low %v14429_v10, %v14428_v24  ;;  %v14440_v58 = vld [vmem:[#allocation398_spill] sm:$0xff]  ;;  %v14441_v17 = vld [vmem:[#allocation397_spill] sm:$0xff] }
 0xaff   :  { %v14442_v60 = vld [vmem:[#allocation430_spill] sm:$0xff]  ;;  %v14443_v3 = vld [vmem:[#allocation429_spill] sm:$0xff]  ;;  %v14444_v38 = vld [vmem:[#allocation396_spill] sm:$0xff] }
 0xb00   :  { %6298 = vmatpush1.bf16.msra.mxu0 %v7842_v12  ;;  %6339 = vmatpush1.bf16.msra.mxu1 %v7874_v63  ;;  %v14431_v12 = vld [vmem:[#allocation435_spill] sm:$0xff]  ;;  %v14446_v47 = vld [vmem:[#allocation428_spill] sm:$0xff]  ;;  %v14448_v44 = vld [vmem:[#allocation394_spill] sm:$0xff] }
 0xb01   :  { %6299 = vmatprep.subr.bf16.mxu0 %v7841_v62  ;;  %6340 = vmatprep.subr.bf16.mxu1 %v7873_v43  ;;  %v7895_v63 = vcombine.high %v14431_v12, %v14430_v46  ;;  %v7894_v57 = vcombine.low %v14431_v12, %v14430_v46  ;;  %v14432_v62 = vld [vmem:[#allocation402_spill] sm:$0xff]  ;;  %v14445_v48 = vld [vmem:[#allocation395_spill] sm:$0xff]  ;;  %v14449_v14 = vld [vmem:[#allocation393_spill] sm:$0xff] }
 0xb02   :  { %v7861_v49 = vcombine.high %v14433_v25, %v14432_v62  ;;  %v14434_v43 = vld [vmem:[#allocation434_spill] sm:$0xff]  ;;  %v14447_v4 = vld [vmem:[#allocation427_spill] sm:$0xff]  ;;  %v14451_v61 = vld [vmem:[#allocation425_spill] sm:$0xff] }
 0xb03   :  { %v7893_v11 = vcombine.high %v14435_v53, %v14434_v43  ;;  %v14450_v36 = vld [vmem:[#allocation426_spill] sm:$0xff]  ;;  %v14452_v24 = vld [vmem:[#allocation456_spill] sm:$0xff]  ;;  %v14453_v10 = vld [vmem:[#allocation455_spill] sm:$0xff] }
 0xb04   :  { %6300 = vmatpush1.bf16.msra.mxu0 %v7840_v37  ;;  %6341 = vmatpush1.bf16.msra.mxu1 %v7872_v55  ;;  %v7860_v37 = vcombine.low %v14433_v25, %v14432_v62  ;;  %v7892_v55 = vcombine.low %v14435_v53, %v14434_v43  ;;  %v14454_v46 = vld [vmem:[#allocation488_spill] sm:$0xff]  ;;  %v14455_v12 = vld [vmem:[#allocation487_spill] sm:$0xff]  ;;  %v7914_v62 = vcombine.low %v14453_v10, %v14452_v24  ;;  %v14457_v43 = vld [vmem:[#allocation453_spill] sm:$0xff] }
 0xb05   :  { %6301 = vmatprep.subr.bf16.mxu0 %v7839_v34  ;;  %6342 = vmatprep.subr.bf16.mxu1 %v7871_v42  ;;  %v7859_v34 = vcombine.high %v14437_v13, %v14436_v35  ;;  %v7891_v42 = vcombine.high %v14439_v19, %v14438_v29  ;;  %v7946_v25 = vcombine.low %v14455_v12, %v14454_v46 }
 0xb08   :  { %6302 = vmatpush1.bf16.msra.mxu0 %v7838_v59  ;;  %6343 = vmatpush1.bf16.msra.mxu1 %v7870_v31  ;;  %v7858_v59 = vcombine.low %v14437_v13, %v14436_v35  ;;  %v7890_v31 = vcombine.low %v14439_v19, %v14438_v29  ;;  %v14461_v29 = vld [vmem:[#allocation451_spill] sm:$0xff] }
 0xb09   :  { %6303 = vmatprep.subr.bf16.mxu0 %v7837_v23  ;;  %6344 = vmatprep.subr.bf16.mxu1 %v7869_v56  ;;  %v7857_v23 = vcombine.high %v14441_v17, %v14440_v58  ;;  %v7889_v56 = vcombine.high %v14443_v3, %v14442_v60 }
 0xb0c   :  { %6304 = vmatpush1.bf16.msra.mxu0 %v7836_v41  ;;  %6345 = vmatpush1.bf16.msra.mxu1 %v7868_v9  ;;  %v7856_v41 = vcombine.low %v14441_v17, %v14440_v58  ;;  %v7888_v9 = vcombine.low %v14443_v3, %v14442_v60  ;;  %v14464_v58 = vld [vmem:[#allocation450_spill] sm:$0xff]  ;;  %v14465_v17 = vld [vmem:[#allocation449_spill] sm:$0xff] }
 0xb0d   :  { %6305 = vmatprep.subr.bf16.mxu0 %v7867_v51  ;;  %6346 = vmatprep.subr.bf16.mxu1 %v7899_v52  ;;  %v7855_v51 = vcombine.high %v14445_v48, %v14444_v38  ;;  %v7887_v52 = vcombine.high %v14447_v4, %v14446_v47  ;;  %v14466_v60 = vld [vmem:[#allocation482_spill] sm:$0xff]  ;;  %v14467_v3 = vld [vmem:[#allocation481_spill] sm:$0xff] }
 0xb10   :  { %6306 = vmatpush2.bf16.msra.mxu0 %v7866_v1  ;;  %6347 = vmatpush2.bf16.msra.mxu1 %v7898_v40  ;;  %v7854_v1 = vcombine.low %v14445_v48, %v14444_v38  ;;  %v7886_v40 = vcombine.low %v14447_v4, %v14446_v47  ;;  %v14468_v38 = vld [vmem:[#allocation448_spill] sm:$0xff]  ;;  %v14469_v48 = vld [vmem:[#allocation447_spill] sm:$0xff] }
 0xb11   :  { %6307 = vmatprep.subr.bf16.mxu0 %v7865_v32  ;;  %6348 = vmatprep.subr.bf16.mxu1 %v7897_v16  ;;  %v7853_v32 = vcombine.high %v14449_v14, %v14448_v44  ;;  %v7885_v16 = vcombine.high %v14451_v61, %v14450_v36  ;;  %v14470_v47 = vld [vmem:[#allocation480_spill] sm:$0xff]  ;;  %v14471_v4 = vld [vmem:[#allocation479_spill] sm:$0xff] }
 0xb14   :  { %6308 = vmatpush2.bf16.msra.mxu0 %v7864_v5  ;;  %6349 = vmatpush2.bf16.msra.mxu1 %v7896_v2  ;;  %v7852_v5 = vcombine.low %v14449_v14, %v14448_v44  ;;  %v7884_v2 = vcombine.low %v14451_v61, %v14450_v36  ;;  %v14472_v44 = vld [vmem:[#allocation446_spill] sm:$0xff]  ;;  %v14473_v14 = vld [vmem:[#allocation445_spill] sm:$0xff] }
 0xb15   :  { %6309 = vmatprep.subr.bf16.mxu0 %v7863_v20  ;;  %6350 = vmatprep.subr.bf16.mxu1 %v7895_v63  ;;  %v7915_v20 = vcombine.high %v14453_v10, %v14452_v24  ;;  %v7947_v63 = vcombine.high %v14455_v12, %v14454_v46  ;;  %v14474_v36 = vld [vmem:[#allocation478_spill] sm:$0xff]  ;;  %v14475_v61 = vld [vmem:[#allocation477_spill] sm:$0xff]  ;;  %v14476_v24 = vld [vmem:[#allocation444_spill] sm:$0xff] }
 0xb16   :  { %v14477_v10 = vld [vmem:[#allocation443_spill] sm:$0xff]  ;;  %v14478_v46 = vld [vmem:[#allocation476_spill] sm:$0xff] }
 0xb17   :  { %v14479_v12 = vld [vmem:[#allocation475_spill] sm:$0xff] }
 0xb18   :  { %6310 = vmatpush2.bf16.msra.mxu0 %v7862_v7  ;;  %6351 = vmatpush2.bf16.msra.mxu1 %v7894_v57  ;;  %v5513_v7 = vpack.c.bf16 %v12513_v6, %v12513_v6  ;;  %v5515_v57 = vpack.c.bf16 %v12523_v33, %v12523_v33  ;;  %v5518_v6 = vpack.c.bf16 %v12527_v27, %v12527_v27  ;;  %v14463_v27 = vld [vmem:[#allocation483_spill] sm:$0xff] }
 0xb19   :  { %6311 = vmatprep.subr.bf16.mxu0 %v7861_v49  ;;  %6352 = vmatprep.subr.bf16.mxu1 %v7893_v11  ;;  %v14456_v49 = vld [vmem:[#allocation454_spill] sm:$0xff]  ;;  %v5520_v33 = vpack.c.bf16 %v12531_v8, %v12531_v8 }
 0xb1a   :  { %v7913_v53 = vcombine.high %v14457_v43, %v14456_v49  ;;  %v14458_v11 = vld [vmem:[#allocation486_spill] sm:$0xff]  ;;  %v7912_v35 = vcombine.low %v14457_v43, %v14456_v49 }
 0xb1b   :  { %v14482_v43 = vld [vmem:[#allocation474_spill] sm:$0xff] }
 0xb1c   :  { %6312 = vmatpush2.bf16.msra.mxu0 %v7860_v37  ;;  %6353 = vmatpush2.bf16.msra.mxu1 %v7892_v55  ;;  %v14459_v37 = vld [vmem:[#allocation485_spill] sm:$0xff] }
 0xb1d   :  { %6313 = vmatprep.subr.bf16.mxu0 %v7859_v34  ;;  %6354 = vmatprep.subr.bf16.mxu1 %v7891_v42  ;;  %v7945_v55 = vcombine.high %v14459_v37, %v14458_v11  ;;  %v7944_v13 = vcombine.low %v14459_v37, %v14458_v11  ;;  %v14460_v34 = vld [vmem:[#allocation452_spill] sm:$0xff] }
 0xb1e   :  { %v7911_v19 = vcombine.high %v14461_v29, %v14460_v34  ;;  %v14462_v42 = vld [vmem:[#allocation484_spill] sm:$0xff]  ;;  %v7910_v8 = vcombine.low %v14461_v29, %v14460_v34  ;;  %v14487_v34 = vld [vmem:[#allocation503_spill] sm:$0xff] }
 0xb20   :  { %6314 = vmatpush2.bf16.msra.mxu0 %v7858_v59  ;;  %6355 = vmatpush2.bf16.msra.mxu1 %v7890_v31  ;;  %v7943_v59 = vcombine.high %v14463_v27, %v14462_v42  ;;  %v7942_v31 = vcombine.low %v14463_v27, %v14462_v42  ;;  %v14488_v27 = vld [vmem:[#allocation470_spill] sm:$0xff] }
 0xb21   :  { %6315 = vmatprep.subr.bf16.mxu0 %v7857_v23  ;;  %6356 = vmatprep.subr.bf16.mxu1 %v7889_v56  ;;  %v7909_v23 = vcombine.high %v14465_v17, %v14464_v58  ;;  %v7941_v56 = vcombine.high %v14467_v3, %v14466_v60 }
 0xb24   :  { %6316 = vmatpush2.bf16.msra.mxu0 %v7856_v41  ;;  %6357 = vmatpush2.bf16.msra.mxu1 %v7888_v9  ;;  %v7908_v41 = vcombine.low %v14465_v17, %v14464_v58  ;;  %v7940_v9 = vcombine.low %v14467_v3, %v14466_v60  ;;  %v14491_v58 = vld [vmem:[#allocation501_spill] sm:$0xff]  ;;  %v14492_v3 = vld [vmem:[#allocation468_spill] sm:$0xff] }
 0xb25   :  { %6317 = vmatprep.subr.bf16.mxu0 %v7855_v51  ;;  %6358 = vmatprep.subr.bf16.mxu1 %v7887_v52  ;;  %v7907_v51 = vcombine.high %v14469_v48, %v14468_v38  ;;  %v7939_v52 = vcombine.high %v14471_v4, %v14470_v47 }
 0xb28   :  { %6318 = vmatpush2.bf16.msra.mxu0 %v7854_v1  ;;  %6359 = vmatpush2.bf16.msra.mxu1 %v7886_v40  ;;  %v7906_v1 = vcombine.low %v14469_v48, %v14468_v38  ;;  %v7938_v40 = vcombine.low %v14471_v4, %v14470_v47  ;;  %v14495_v38 = vld [vmem:[#allocation499_spill] sm:$0xff]  ;;  %v14496_v4 = vld [vmem:[#allocation466_spill] sm:$0xff] }
 0xb29   :  { %6319 = vmatprep.subr.bf16.mxu0 %v7853_v32  ;;  %6360 = vmatprep.subr.bf16.mxu1 %v7885_v16  ;;  %v7905_v32 = vcombine.high %v14473_v14, %v14472_v44  ;;  %v7937_v16 = vcombine.high %v14475_v61, %v14474_v36 }
 0xb2c   :  { %6320 = vmatpush2.bf16.msra.mxu0 %v7852_v5  ;;  %6361 = vmatpush2.bf16.msra.mxu1 %v7884_v2  ;;  %v7904_v5 = vcombine.low %v14473_v14, %v14472_v44  ;;  %v7936_v2 = vcombine.low %v14475_v61, %v14474_v36  ;;  %v14499_v44 = vld [vmem:[#allocation497_spill] sm:$0xff]  ;;  %v14500_v61 = vld [vmem:[#allocation464_spill] sm:$0xff] }
 0xb2d   :  { %6371 = vmatprep.subr.bf16.mxu0 %v7915_v20  ;;  %6412 = vmatprep.subr.bf16.mxu1 %v7947_v63  ;;  %v7903_v20 = vcombine.high %v14477_v10, %v14476_v24  ;;  %v7935_v63 = vcombine.high %v14479_v12, %v14478_v46 }
 0xb2f   :  { %6322 = vmatmul.mubr.bf16.vlgmr.msra.gmra.mxu0 %v5513_v7  ;;  %6363 = vmatmul.mubr.bf16.vlgmr.msra.gmra.mxu1 %v5515_v57  ;;  %v7902_v7 = vcombine.low %v14477_v10, %v14476_v24  ;;  %v7934_v57 = vcombine.low %v14479_v12, %v14478_v46  ;;  %v14503_v24 = vld [vmem:[#allocation495_spill] sm:$0xff]  ;;  %v14504_v12 = vld [vmem:[#allocation462_spill] sm:$0xff] }
 0xb30   :  { %6372 = vmatpush1.bf16.msra.mxu0 %v7914_v62  ;;  %6413 = vmatpush1.bf16.msra.mxu1 %v7946_v25  ;;  %v14480_v62 = vld [vmem:[#allocation442_spill] sm:$0xff]  ;;  %v14481_v25 = vld [vmem:[#allocation441_spill] sm:$0xff] }
 0xb31   :  { %6373 = vmatprep.subr.bf16.mxu0 %v7913_v53  ;;  %6414 = vmatprep.subr.bf16.mxu1 %v7945_v55  ;;  %v7901_v49 = vcombine.high %v14481_v25, %v14480_v62  ;;  %v14483_v53 = vld [vmem:[#allocation473_spill] sm:$0xff]  ;;  %v7900_v37 = vcombine.low %v14481_v25, %v14480_v62 }
 0xb32   :  { %6403 = vmatprep.mubr.bf16.mxu0 %v5518_v6  ;;  %6444 = vmatprep.mubr.bf16.mxu1 %v5520_v33  ;;  %v7933_v11 = vcombine.high %v14483_v53, %v14482_v43  ;;  %v7932_v55 = vcombine.low %v14483_v53, %v14482_v43  ;;  %v14484_v6 = vld [vmem:[#allocation472_spill] sm:$0xff]  ;;  %v14485_v33 = vld [vmem:[#allocation471_spill] sm:$0xff]  ;;  %v14507_v62 = vld [vmem:[#allocation493_spill] sm:$0xff] }
 0xb33   :  { %v14508_v53 = vld [vmem:[#allocation460_spill] sm:$0xff] }
 0xb34   :  { %6374 = vmatpush1.bf16.msra.mxu0 %v7912_v35  ;;  %6415 = vmatpush1.bf16.msra.mxu1 %v7944_v13  ;;  %v7931_v35 = vcombine.high %v14485_v33, %v14484_v6  ;;  %v14486_v13 = vld [vmem:[#allocation504_spill] sm:$0xff] }
 0xb35   :  { %6375 = vmatprep.subr.bf16.mxu0 %v7911_v19  ;;  %6416 = vmatprep.subr.bf16.mxu1 %v7943_v59  ;;  %v7963_v29 = vcombine.high %v14487_v34, %v14486_v13  ;;  %v7930_v19 = vcombine.low %v14485_v33, %v14484_v6  ;;  %v7962_v42 = vcombine.low %v14487_v34, %v14486_v13  ;;  %v14489_v59 = vld [vmem:[#allocation469_spill] sm:$0xff]  ;;  %v14511_v6 = vld [vmem:[#allocation491_spill] sm:$0xff]  ;;  %v14512_v34 = vld [vmem:[#allocation458_spill] sm:$0xff] }
 0xb38   :  { %6376 = vmatpush1.bf16.msra.mxu0 %v7910_v8  ;;  %6417 = vmatpush1.bf16.msra.mxu1 %v7942_v31  ;;  %v7929_v8 = vcombine.high %v14489_v59, %v14488_v27  ;;  %v14490_v31 = vld [vmem:[#allocation502_spill] sm:$0xff] }
 0xb39   :  { %6377 = vmatprep.subr.bf16.mxu0 %v7909_v23  ;;  %6418 = vmatprep.subr.bf16.mxu1 %v7941_v56  ;;  %v7961_v17 = vcombine.high %v14491_v58, %v14490_v31  ;;  %v7928_v23 = vcombine.low %v14489_v59, %v14488_v27  ;;  %v7960_v60 = vcombine.low %v14491_v58, %v14490_v31  ;;  %v14493_v56 = vld [vmem:[#allocation467_spill] sm:$0xff]  ;;  %v14515_v27 = vld [vmem:[#allocation489_spill] sm:$0xff]  ;;  %v14516_v58 = vld [vmem:[#allocation264_spill] sm:$0xff] }
 0xb3c   :  { %6378 = vmatpush1.bf16.msra.mxu0 %v7908_v41  ;;  %6419 = vmatpush1.bf16.msra.mxu1 %v7940_v9  ;;  %v7927_v41 = vcombine.high %v14493_v56, %v14492_v3  ;;  %v14494_v9 = vld [vmem:[#allocation500_spill] sm:$0xff] }
 0xb3d   :  { %6379 = vmatprep.subr.bf16.mxu0 %v7907_v51  ;;  %6420 = vmatprep.subr.bf16.mxu1 %v7939_v52  ;;  %v7959_v48 = vcombine.high %v14495_v38, %v14494_v9  ;;  %v7926_v51 = vcombine.low %v14493_v56, %v14492_v3  ;;  %v7958_v47 = vcombine.low %v14495_v38, %v14494_v9  ;;  %v14497_v52 = vld [vmem:[#allocation465_spill] sm:$0xff]  ;;  %v14519_v3 = vld [vmem:[#allocation295_spill] sm:$0xff] }
 0xb3e   :  { %v5519_v9 = vpack.c.bf16 %v12529_v50, %v12529_v50  ;;  %v5380_v50 = vpack.c.bf16 %v12456_v28, %v12456_v28 }
 0xb40   :  { %6380 = vmatpush1.bf16.msra.mxu0 %v7906_v1  ;;  %6421 = vmatpush1.bf16.msra.mxu1 %v7938_v40  ;;  %v7925_v1 = vcombine.high %v14497_v52, %v14496_v4  ;;  %v14498_v40 = vld [vmem:[#allocation498_spill] sm:$0xff] }
 0xb41   :  { %6381 = vmatprep.subr.bf16.mxu0 %v7905_v32  ;;  %6422 = vmatprep.subr.bf16.mxu1 %v7937_v16  ;;  %v7957_v14 = vcombine.high %v14499_v44, %v14498_v40  ;;  %v7924_v32 = vcombine.low %v14497_v52, %v14496_v4  ;;  %v7956_v36 = vcombine.low %v14499_v44, %v14498_v40  ;;  %v14501_v16 = vld [vmem:[#allocation463_spill] sm:$0xff]  ;;  %v14522_v52 = vld [vmem:[#allocation294_spill] sm:$0xff] }
 0xb44   :  { %6382 = vmatpush1.bf16.msra.mxu0 %v7904_v5  ;;  %6423 = vmatpush1.bf16.msra.mxu1 %v7936_v2  ;;  %v7923_v5 = vcombine.high %v14501_v16, %v14500_v61  ;;  %v14502_v2 = vld [vmem:[#allocation496_spill] sm:$0xff] }
 0xb45   :  { %6383 = vmatprep.subr.bf16.mxu0 %v7903_v20  ;;  %6424 = vmatprep.subr.bf16.mxu1 %v7935_v63  ;;  %v7955_v10 = vcombine.high %v14503_v24, %v14502_v2  ;;  %v7922_v20 = vcombine.low %v14501_v16, %v14500_v61  ;;  %v7954_v46 = vcombine.low %v14503_v24, %v14502_v2  ;;  %v14505_v63 = vld [vmem:[#allocation461_spill] sm:$0xff]  ;;  %v14526_v16 = vld [vmem:[#allocation292_spill] sm:$0xff]  ;;  %v14528_v24 = vld [vmem:[#allocation258_spill] sm:$0xff] }
 0xb48   :  { %6384 = vmatpush1.bf16.msra.mxu0 %v7902_v7  ;;  %6425 = vmatpush1.bf16.msra.mxu1 %v7934_v57  ;;  %v7921_v7 = vcombine.high %v14505_v63, %v14504_v12  ;;  %v14506_v57 = vld [vmem:[#allocation494_spill] sm:$0xff] }
 0xb49   :  { %6385 = vmatprep.subr.bf16.mxu0 %v7901_v49  ;;  %6426 = vmatprep.subr.bf16.mxu1 %v7933_v11  ;;  %v7953_v25 = vcombine.high %v14507_v62, %v14506_v57  ;;  %v7920_v49 = vcombine.low %v14505_v63, %v14504_v12  ;;  %v7952_v43 = vcombine.low %v14507_v62, %v14506_v57  ;;  %v14509_v11 = vld [vmem:[#allocation459_spill] sm:$0xff]  ;;  %v14531_v12 = vld [vmem:[#allocation289_spill] sm:$0xff]  ;;  %v14532_v62 = vld [vmem:[#allocation256_spill] sm:$0xff] }
 0xb4c   :  { %6386 = vmatpush1.bf16.msra.mxu0 %v7900_v37  ;;  %6427 = vmatpush1.bf16.msra.mxu1 %v7932_v55  ;;  %v7919_v37 = vcombine.high %v14509_v11, %v14508_v53  ;;  %v14510_v55 = vld [vmem:[#allocation492_spill] sm:$0xff] }
 0xb4d   :  { %6387 = vmatprep.subr.bf16.mxu0 %v7931_v35  ;;  %6428 = vmatprep.subr.bf16.mxu1 %v7963_v29  ;;  %v7951_v33 = vcombine.high %v14511_v6, %v14510_v55  ;;  %v7918_v35 = vcombine.low %v14509_v11, %v14508_v53  ;;  %v7950_v13 = vcombine.low %v14511_v6, %v14510_v55  ;;  %v14513_v29 = vld [vmem:[#allocation457_spill] sm:$0xff]  ;;  %v14535_v53 = vld [vmem:[#allocation287_spill] sm:$0xff]  ;;  %v14536_v6 = vld [vmem:[#allocation254_spill] sm:$0xff] }
 0xb50   :  { %6388 = vmatpush2.bf16.msra.mxu0 %v7930_v19  ;;  %6429 = vmatpush2.bf16.msra.mxu1 %v7962_v42  ;;  %v7917_v19 = vcombine.high %v14513_v29, %v14512_v34  ;;  %v14514_v42 = vld [vmem:[#allocation490_spill] sm:$0xff] }
 0xb51   :  { %6389 = vmatprep.subr.bf16.mxu0 %v7929_v8  ;;  %6430 = vmatprep.subr.bf16.mxu1 %v7961_v17  ;;  %v7949_v59 = vcombine.high %v14515_v27, %v14514_v42  ;;  %v7916_v8 = vcombine.low %v14513_v29, %v14512_v34  ;;  %v7948_v31 = vcombine.low %v14515_v27, %v14514_v42  ;;  %v14517_v17 = vld [vmem:[#allocation263_spill] sm:$0xff]  ;;  %v14539_v34 = vld [vmem:[#allocation285_spill] sm:$0xff]  ;;  %v14540_v27 = vld [vmem:[#allocation252_spill] sm:$0xff] }
 0xb52   :  { %v7978_v38 = vcombine.low %v14517_v17, %v14516_v58 }
 0xb54   :  { %6390 = vmatpush2.bf16.msra.mxu0 %v7928_v23  ;;  %6431 = vmatpush2.bf16.msra.mxu1 %v7960_v60  ;;  %v7979_v23 = vcombine.high %v14517_v17, %v14516_v58  ;;  %v14518_v60 = vld [vmem:[#allocation296_spill] sm:$0xff]  ;;  %v14543_v58 = vld [vmem:[#allocation283_spill] sm:$0xff] }
 0xb55   :  { %6391 = vmatprep.subr.bf16.mxu0 %v7927_v41  ;;  %6432 = vmatprep.subr.bf16.mxu1 %v7959_v48  ;;  %v8011_v56 = vcombine.high %v14519_v3, %v14518_v60  ;;  %v5517_v41 = vpack.c.bf16 %v12525_v21, %v12525_v21  ;;  %v8010_v48 = vcombine.low %v14519_v3, %v14518_v60  ;;  %v14544_v3 = vld [vmem:[#allocation250_spill] sm:$0xff] }
 0xb56   :  { %v5378_v21 = vpack.c.bf16 %v12427_v18, %v12427_v18  ;;  %v14527_v18 = vld [vmem:[#allocation291_spill] sm:$0xff] }
 0xb57   :  { %v8006_v2 = vcombine.low %v14527_v18, %v14526_v16 }
 0xb58   :  { %6392 = vmatpush2.bf16.msra.mxu0 %v7926_v51  ;;  %6433 = vmatpush2.bf16.msra.mxu1 %v7958_v47  ;;  %v14520_v51 = vld [vmem:[#allocation262_spill] sm:$0xff]  ;;  %v14521_v47 = vld [vmem:[#allocation261_spill] sm:$0xff] }
 0xb59   :  { %6393 = vmatprep.subr.bf16.mxu0 %v7925_v1  ;;  %6434 = vmatprep.subr.bf16.mxu1 %v7957_v14  ;;  %v7977_v4 = vcombine.high %v14521_v47, %v14520_v51  ;;  %v14523_v1 = vld [vmem:[#allocation293_spill] sm:$0xff]  ;;  %v7976_v44 = vcombine.low %v14521_v47, %v14520_v51 }
 0xb5a   :  { %v8009_v40 = vcombine.high %v14523_v1, %v14522_v52  ;;  %v8008_v14 = vcombine.low %v14523_v1, %v14522_v52  ;;  %v14549_v52 = vld [vmem:[#allocation279_spill] sm:$0xff] }
 0xb5c   :  { %6394 = vmatpush2.bf16.msra.mxu0 %v7924_v32  ;;  %6435 = vmatpush2.bf16.msra.mxu1 %v7956_v36  ;;  %v14524_v32 = vld [vmem:[#allocation260_spill] sm:$0xff]  ;;  %v14525_v36 = vld [vmem:[#allocation259_spill] sm:$0xff] }
 0xb5d   :  { %6395 = vmatprep.subr.bf16.mxu0 %v7923_v5  ;;  %6436 = vmatprep.subr.bf16.mxu1 %v7955_v10  ;;  %v7975_v61 = vcombine.high %v14525_v36, %v14524_v32  ;;  %v8007_v5 = vcombine.high %v14527_v18, %v14526_v16  ;;  %v7974_v28 = vcombine.low %v14525_v36, %v14524_v32  ;;  %v14529_v10 = vld [vmem:[#allocation257_spill] sm:$0xff]  ;;  %v14552_v32 = vld [vmem:[#allocation278_spill] sm:$0xff] }
 0xb5e   :  { %v14553_v36 = vld [vmem:[#allocation277_spill] sm:$0xff]  ;;  %v14554_v16 = vld [vmem:[#allocation310_spill] sm:$0xff] }
 0xb5f   :  { %v14555_v18 = vld [vmem:[#allocation309_spill] sm:$0xff] }
 0xb60   :  { %6396 = vmatpush2.bf16.msra.mxu0 %v7922_v20  ;;  %6437 = vmatpush2.bf16.msra.mxu1 %v7954_v46  ;;  %v7973_v20 = vcombine.high %v14529_v10, %v14528_v24  ;;  %v14530_v46 = vld [vmem:[#allocation290_spill] sm:$0xff] }
 0xb61   :  { %6397 = vmatprep.subr.bf16.mxu0 %v7921_v7  ;;  %6438 = vmatprep.subr.bf16.mxu1 %v7953_v25  ;;  %v8005_v63 = vcombine.high %v14531_v12, %v14530_v46  ;;  %v7972_v7 = vcombine.low %v14529_v10, %v14528_v24  ;;  %v8004_v57 = vcombine.low %v14531_v12, %v14530_v46  ;;  %v14533_v25 = vld [vmem:[#allocation255_spill] sm:$0xff]  ;;  %v14556_v24 = vld [vmem:[#allocation276_spill] sm:$0xff] }
 0xb62   :  { %v14557_v10 = vld [vmem:[#allocation275_spill] sm:$0xff]  ;;  %v14558_v46 = vld [vmem:[#allocation308_spill] sm:$0xff] }
 0xb63   :  { %v14559_v12 = vld [vmem:[#allocation307_spill] sm:$0xff] }
 0xb64   :  { %6398 = vmatpush2.bf16.msra.mxu0 %v7920_v49  ;;  %6439 = vmatpush2.bf16.msra.mxu1 %v7952_v43  ;;  %v7971_v49 = vcombine.high %v14533_v25, %v14532_v62  ;;  %v14534_v43 = vld [vmem:[#allocation288_spill] sm:$0xff] }
 0xb65   :  { %6399 = vmatprep.subr.bf16.mxu0 %v7919_v37  ;;  %6440 = vmatprep.subr.bf16.mxu1 %v7951_v33  ;;  %v8003_v11 = vcombine.high %v14535_v53, %v14534_v43  ;;  %v7970_v37 = vcombine.low %v14533_v25, %v14532_v62  ;;  %v8002_v55 = vcombine.low %v14535_v53, %v14534_v43  ;;  %v14537_v33 = vld [vmem:[#allocation253_spill] sm:$0xff]  ;;  %v14560_v62 = vld [vmem:[#allocation274_spill] sm:$0xff] }
 0xb66   :  { %v14561_v25 = vld [vmem:[#allocation273_spill] sm:$0xff]  ;;  %v14562_v43 = vld [vmem:[#allocation306_spill] sm:$0xff] }
 0xb67   :  { %v14563_v53 = vld [vmem:[#allocation305_spill] sm:$0xff] }
 0xb68   :  { %6400 = vmatpush2.bf16.msra.mxu0 %v7918_v35  ;;  %6441 = vmatpush2.bf16.msra.mxu1 %v7950_v13  ;;  %v7969_v35 = vcombine.high %v14537_v33, %v14536_v6  ;;  %v14538_v13 = vld [vmem:[#allocation286_spill] sm:$0xff] }
 0xb69   :  { %6401 = vmatprep.subr.bf16.mxu0 %v7917_v19  ;;  %6442 = vmatprep.subr.bf16.mxu1 %v7949_v59  ;;  %v8001_v29 = vcombine.high %v14539_v34, %v14538_v13  ;;  %v7968_v19 = vcombine.low %v14537_v33, %v14536_v6  ;;  %v8000_v42 = vcombine.low %v14539_v34, %v14538_v13  ;;  %v14541_v59 = vld [vmem:[#allocation251_spill] sm:$0xff]  ;;  %v14564_v6 = vld [vmem:[#allocation272_spill] sm:$0xff] }
 0xb6a   :  { %v14565_v33 = vld [vmem:[#allocation271_spill] sm:$0xff]  ;;  %v14566_v13 = vld [vmem:[#allocation304_spill] sm:$0xff] }
 0xb6b   :  { %v14567_v34 = vld [vmem:[#allocation303_spill] sm:$0xff] }
 0xb6c   :  { %6402 = vmatpush2.bf16.msra.mxu0 %v7916_v8  ;;  %6443 = vmatpush2.bf16.msra.mxu1 %v7948_v31  ;;  %v7967_v8 = vcombine.high %v14541_v59, %v14540_v27  ;;  %v14542_v31 = vld [vmem:[#allocation284_spill] sm:$0xff] }
 0xb6d   :  { %7093 = vmatprep.subr.bf16.mxu0 %v7979_v23  ;;  %7134 = vmatprep.subr.bf16.mxu1 %v8011_v56  ;;  %v7999_v17 = vcombine.high %v14543_v58, %v14542_v31  ;;  %v7966_v23 = vcombine.low %v14541_v59, %v14540_v27  ;;  %v7998_v60 = vcombine.low %v14543_v58, %v14542_v31  ;;  %v14545_v56 = vld [vmem:[#allocation249_spill] sm:$0xff]  ;;  %v14568_v27 = vld [vmem:[#allocation270_spill] sm:$0xff] }
 0xb6e   :  { %v7964_v51 = vcombine.low %v14545_v56, %v14544_v3  ;;  %v14569_v59 = vld [vmem:[#allocation269_spill] sm:$0xff]  ;;  %v14570_v31 = vld [vmem:[#allocation302_spill] sm:$0xff] }
 0xb6f   :  { %6404 = vmatmul.mubr.bf16.vlgmr.msra.gmra.mxu0 %v5517_v41  ;;  %6445 = vmatmul.mubr.bf16.vlgmr.msra.gmra.mxu1 %v5519_v9  ;;  %v7965_v41 = vcombine.high %v14545_v56, %v14544_v3  ;;  %v14546_v9 = vld [vmem:[#allocation282_spill] sm:$0xff]  ;;  %v14571_v58 = vld [vmem:[#allocation301_spill] sm:$0xff]  ;;  %v14572_v3 = vld [vmem:[#allocation268_spill] sm:$0xff] }
 0xb70   :  { %7094 = vmatpush1.bf16.msra.mxu0 %v7978_v38  ;;  %7135 = vmatpush1.bf16.msra.mxu1 %v8010_v48  ;;  %v14547_v38 = vld [vmem:[#allocation281_spill] sm:$0xff]  ;;  %v14573_v56 = vld [vmem:[#allocation267_spill] sm:$0xff] }
 0xb71   :  { %7095 = vmatprep.subr.bf16.mxu0 %v7977_v4  ;;  %7136 = vmatprep.subr.bf16.mxu1 %v8009_v40  ;;  %v7997_v48 = vcombine.high %v14547_v38, %v14546_v9  ;;  %v7996_v47 = vcombine.low %v14547_v38, %v14546_v9  ;;  %v14548_v4 = vld [vmem:[#allocation280_spill] sm:$0xff]  ;;  %v14575_v38 = vld [vmem:[#allocation299_spill] sm:$0xff] }
 0xb72   :  { %7125 = vmatprep.mubr.bf16.mxu0 %v5378_v21  ;;  %7166 = vmatprep.mubr.bf16.mxu1 %v5380_v50  ;;  %v7995_v1 = vcombine.high %v14549_v52, %v14548_v4  ;;  %v14550_v40 = vld [vmem:[#allocation312_spill] sm:$0xff]  ;;  %v14551_v21 = vld [vmem:[#allocation311_spill] sm:$0xff] }
 0xb73   :  { %v8027_v50 = vcombine.high %v14551_v21, %v14550_v40  ;;  %v14574_v9 = vld [vmem:[#allocation300_spill] sm:$0xff] }
 0xb74   :  { %7096 = vmatpush1.bf16.msra.mxu0 %v7976_v44  ;;  %7137 = vmatpush1.bf16.msra.mxu1 %v8008_v14  ;;  %v7994_v44 = vcombine.low %v14549_v52, %v14548_v4  ;;  %v8026_v14 = vcombine.low %v14551_v21, %v14550_v40  ;;  %v14576_v4 = vld [vmem:[#allocation266_spill] sm:$0xff]  ;;  %v14577_v52 = vld [vmem:[#allocation265_spill] sm:$0xff] }
 0xb75   :  { %7097 = vmatprep.subr.bf16.mxu0 %v7975_v61  ;;  %7138 = vmatprep.subr.bf16.mxu1 %v8007_v5  ;;  %v7993_v61 = vcombine.high %v14553_v36, %v14552_v32  ;;  %v8025_v5 = vcombine.high %v14555_v18, %v14554_v16  ;;  %v14578_v40 = vld [vmem:[#allocation298_spill] sm:$0xff]  ;;  %v14579_v21 = vld [vmem:[#allocation297_spill] sm:$0xff] }
 0xb78   :  { %7098 = vmatpush1.bf16.msra.mxu0 %v7974_v28  ;;  %7139 = vmatpush1.bf16.msra.mxu1 %v8006_v2  ;;  %v7992_v28 = vcombine.low %v14553_v36, %v14552_v32  ;;  %v8024_v2 = vcombine.low %v14555_v18, %v14554_v16  ;;  %v14580_v32 = vld [vmem:[#allocation328_spill] sm:$0xff]  ;;  %v14581_v36 = vld [vmem:[#allocation327_spill] sm:$0xff] }
 0xb79   :  { %7099 = vmatprep.subr.bf16.mxu0 %v7973_v20  ;;  %7140 = vmatprep.subr.bf16.mxu1 %v8005_v63  ;;  %v7991_v20 = vcombine.high %v14557_v10, %v14556_v24  ;;  %v8023_v63 = vcombine.high %v14559_v12, %v14558_v46  ;;  %v14582_v16 = vld [vmem:[#allocation360_spill] sm:$0xff]  ;;  %v14583_v18 = vld [vmem:[#allocation359_spill] sm:$0xff] }
 0xb7c   :  { %7100 = vmatpush1.bf16.msra.mxu0 %v7972_v7  ;;  %7141 = vmatpush1.bf16.msra.mxu1 %v8004_v57  ;;  %v7990_v7 = vcombine.low %v14557_v10, %v14556_v24  ;;  %v8022_v57 = vcombine.low %v14559_v12, %v14558_v46  ;;  %v8042_v24 = vcombine.low %v14581_v36, %v14580_v32  ;;  %v14585_v46 = vld [vmem:[#allocation325_spill] sm:$0xff] }
 0xb7d   :  { %7101 = vmatprep.subr.bf16.mxu0 %v7971_v49  ;;  %7142 = vmatprep.subr.bf16.mxu1 %v8003_v11  ;;  %v7989_v49 = vcombine.high %v14561_v25, %v14560_v62  ;;  %v8021_v11 = vcombine.high %v14563_v53, %v14562_v43  ;;  %v8074_v10 = vcombine.low %v14583_v18, %v14582_v16 }
 0xb80   :  { %7102 = vmatpush1.bf16.msra.mxu0 %v7970_v37  ;;  %7143 = vmatpush1.bf16.msra.mxu1 %v8002_v55  ;;  %v7988_v37 = vcombine.low %v14561_v25, %v14560_v62  ;;  %v8020_v55 = vcombine.low %v14563_v53, %v14562_v43  ;;  %v14589_v43 = vld [vmem:[#allocation323_spill] sm:$0xff] }
 0xb81   :  { %7103 = vmatprep.subr.bf16.mxu0 %v7969_v35  ;;  %7144 = vmatprep.subr.bf16.mxu1 %v8001_v29  ;;  %v7987_v35 = vcombine.high %v14565_v33, %v14564_v6  ;;  %v8019_v29 = vcombine.high %v14567_v34, %v14566_v13 }
 0xb84   :  { %7104 = vmatpush1.bf16.msra.mxu0 %v7968_v19  ;;  %7145 = vmatpush1.bf16.msra.mxu1 %v8000_v42  ;;  %v7986_v19 = vcombine.low %v14565_v33, %v14564_v6  ;;  %v8018_v42 = vcombine.low %v14567_v34, %v14566_v13  ;;  %v14592_v6 = vld [vmem:[#allocation322_spill] sm:$0xff]  ;;  %v14593_v33 = vld [vmem:[#allocation321_spill] sm:$0xff] }
 0xb85   :  { %7105 = vmatprep.subr.bf16.mxu0 %v7967_v8  ;;  %7146 = vmatprep.subr.bf16.mxu1 %v7999_v17  ;;  %v7985_v8 = vcombine.high %v14569_v59, %v14568_v27  ;;  %v8017_v17 = vcombine.high %v14571_v58, %v14570_v31  ;;  %v14594_v13 = vld [vmem:[#allocation354_spill] sm:$0xff]  ;;  %v14595_v34 = vld [vmem:[#allocation353_spill] sm:$0xff] }
 0xb88   :  { %7106 = vmatpush1.bf16.msra.mxu0 %v7966_v23  ;;  %7147 = vmatpush1.bf16.msra.mxu1 %v7998_v60  ;;  %v7984_v23 = vcombine.low %v14569_v59, %v14568_v27  ;;  %v8016_v60 = vcombine.low %v14571_v58, %v14570_v31  ;;  %v14596_v27 = vld [vmem:[#allocation320_spill] sm:$0xff]  ;;  %v14597_v59 = vld [vmem:[#allocation319_spill] sm:$0xff] }
 0xb89   :  { %7107 = vmatprep.subr.bf16.mxu0 %v7965_v41  ;;  %7148 = vmatprep.subr.bf16.mxu1 %v7997_v48  ;;  %v7983_v41 = vcombine.high %v14573_v56, %v14572_v3  ;;  %v8015_v48 = vcombine.high %v14575_v38, %v14574_v9  ;;  %v14598_v31 = vld [vmem:[#allocation352_spill] sm:$0xff]  ;;  %v14599_v58 = vld [vmem:[#allocation351_spill] sm:$0xff] }
 0xb8c   :  { %7108 = vmatpush1.bf16.msra.mxu0 %v7964_v51  ;;  %7149 = vmatpush1.bf16.msra.mxu1 %v7996_v47  ;;  %v7982_v51 = vcombine.low %v14573_v56, %v14572_v3  ;;  %v8014_v47 = vcombine.low %v14575_v38, %v14574_v9  ;;  %v14600_v3 = vld [vmem:[#allocation318_spill] sm:$0xff]  ;;  %v14601_v56 = vld [vmem:[#allocation317_spill] sm:$0xff] }
 0xb8d   :  { %7109 = vmatprep.subr.bf16.mxu0 %v7995_v1  ;;  %7150 = vmatprep.subr.bf16.mxu1 %v8027_v50  ;;  %v7981_v1 = vcombine.high %v14577_v52, %v14576_v4  ;;  %v8013_v50 = vcombine.high %v14579_v21, %v14578_v40  ;;  %v14602_v9 = vld [vmem:[#allocation350_spill] sm:$0xff]  ;;  %v14603_v38 = vld [vmem:[#allocation349_spill] sm:$0xff] }
 0xb90   :  { %7110 = vmatpush2.bf16.msra.mxu0 %v7994_v44  ;;  %7151 = vmatpush2.bf16.msra.mxu1 %v8026_v14  ;;  %v7980_v44 = vcombine.low %v14577_v52, %v14576_v4  ;;  %v8012_v14 = vcombine.low %v14579_v21, %v14578_v40  ;;  %v14604_v4 = vld [vmem:[#allocation316_spill] sm:$0xff]  ;;  %v14605_v52 = vld [vmem:[#allocation315_spill] sm:$0xff] }
 0xb91   :  { %7111 = vmatprep.subr.bf16.mxu0 %v7993_v61  ;;  %7152 = vmatprep.subr.bf16.mxu1 %v8025_v5  ;;  %v8043_v61 = vcombine.high %v14581_v36, %v14580_v32  ;;  %v8075_v5 = vcombine.high %v14583_v18, %v14582_v16  ;;  %v14606_v40 = vld [vmem:[#allocation348_spill] sm:$0xff]  ;;  %v14607_v21 = vld [vmem:[#allocation347_spill] sm:$0xff]  ;;  %v14608_v32 = vld [vmem:[#allocation314_spill] sm:$0xff] }
 0xb92   :  { %v14609_v36 = vld [vmem:[#allocation313_spill] sm:$0xff]  ;;  %v14610_v16 = vld [vmem:[#allocation346_spill] sm:$0xff] }
 0xb93   :  { %v14611_v18 = vld [vmem:[#allocation345_spill] sm:$0xff] }
 0xb94   :  { %7112 = vmatpush2.bf16.msra.mxu0 %v7992_v28  ;;  %7153 = vmatpush2.bf16.msra.mxu1 %v8024_v2  ;;  %v5377_v28 = vpack.c.bf16 %v12424_v15, %v12424_v15  ;;  %v5379_v2 = vpack.c.bf16 %v12453_v22, %v12453_v22  ;;  %v5382_v15 = vpack.c.bf16 %v12486_v26, %v12486_v26  ;;  %v14591_v26 = vld [vmem:[#allocation355_spill] sm:$0xff] }
 0xb95   :  { %7113 = vmatprep.subr.bf16.mxu0 %v7991_v20  ;;  %7154 = vmatprep.subr.bf16.mxu1 %v8023_v63  ;;  %v14584_v20 = vld [vmem:[#allocation326_spill] sm:$0xff]  ;;  %v5384_v22 = vpack.c.bf16 %v12521_v0, %v12521_v0 }
 0xb96   :  { %v8041_v12 = vcombine.high %v14585_v46, %v14584_v20  ;;  %v14586_v63 = vld [vmem:[#allocation358_spill] sm:$0xff]  ;;  %v8040_v62 = vcombine.low %v14585_v46, %v14584_v20  ;;  %v14614_v46 = vld [vmem:[#allocation376_spill] sm:$0xff] }
 0xb98   :  { %7114 = vmatpush2.bf16.msra.mxu0 %v7990_v7  ;;  %7155 = vmatpush2.bf16.msra.mxu1 %v8022_v57  ;;  %v14587_v7 = vld [vmem:[#allocation357_spill] sm:$0xff] }
 0xb99   :  { %7115 = vmatprep.subr.bf16.mxu0 %v7989_v49  ;;  %7156 = vmatprep.subr.bf16.mxu1 %v8021_v11  ;;  %v8073_v57 = vcombine.high %v14587_v7, %v14586_v63  ;;  %v8072_v25 = vcombine.low %v14587_v7, %v14586_v63  ;;  %v14588_v49 = vld [vmem:[#allocation324_spill] sm:$0xff] }
 0xb9a   :  { %v8039_v53 = vcombine.high %v14589_v43, %v14588_v49  ;;  %v14590_v11 = vld [vmem:[#allocation356_spill] sm:$0xff]  ;;  %v8038_v0 = vcombine.low %v14589_v43, %v14588_v49  ;;  %v14619_v49 = vld [vmem:[#allocation373_spill] sm:$0xff] }
 0xb9c   :  { %7116 = vmatpush2.bf16.msra.mxu0 %v7988_v37  ;;  %7157 = vmatpush2.bf16.msra.mxu1 %v8020_v55  ;;  %v8071_v37 = vcombine.high %v14591_v26, %v14590_v11  ;;  %v8070_v55 = vcombine.low %v14591_v26, %v14590_v11  ;;  %v14620_v26 = vld [vmem:[#allocation340_spill] sm:$0xff] }
 0xb9d   :  { %7117 = vmatprep.subr.bf16.mxu0 %v7987_v35  ;;  %7158 = vmatprep.subr.bf16.mxu1 %v8019_v29  ;;  %v8037_v35 = vcombine.high %v14593_v33, %v14592_v6  ;;  %v8069_v29 = vcombine.high %v14595_v34, %v14594_v13 }
 0xba0   :  { %7118 = vmatpush2.bf16.msra.mxu0 %v7986_v19  ;;  %7159 = vmatpush2.bf16.msra.mxu1 %v8018_v42  ;;  %v8036_v19 = vcombine.low %v14593_v33, %v14592_v6  ;;  %v8068_v42 = vcombine.low %v14595_v34, %v14594_v13  ;;  %v14623_v6 = vld [vmem:[#allocation371_spill] sm:$0xff]  ;;  %v14624_v34 = vld [vmem:[#allocation338_spill] sm:$0xff] }
 0xba1   :  { %7119 = vmatprep.subr.bf16.mxu0 %v7985_v8  ;;  %7160 = vmatprep.subr.bf16.mxu1 %v8017_v17  ;;  %v8035_v8 = vcombine.high %v14597_v59, %v14596_v27  ;;  %v8067_v17 = vcombine.high %v14599_v58, %v14598_v31 }
 0xba4   :  { %7120 = vmatpush2.bf16.msra.mxu0 %v7984_v23  ;;  %7161 = vmatpush2.bf16.msra.mxu1 %v8016_v60  ;;  %v8034_v23 = vcombine.low %v14597_v59, %v14596_v27  ;;  %v8066_v60 = vcombine.low %v14599_v58, %v14598_v31  ;;  %v14627_v27 = vld [vmem:[#allocation369_spill] sm:$0xff]  ;;  %v14628_v58 = vld [vmem:[#allocation336_spill] sm:$0xff] }
 0xba5   :  { %7121 = vmatprep.subr.bf16.mxu0 %v7983_v41  ;;  %7162 = vmatprep.subr.bf16.mxu1 %v8015_v48  ;;  %v8033_v41 = vcombine.high %v14601_v56, %v14600_v3  ;;  %v8065_v48 = vcombine.high %v14603_v38, %v14602_v9 }
 0xba8   :  { %7122 = vmatpush2.bf16.msra.mxu0 %v7982_v51  ;;  %7163 = vmatpush2.bf16.msra.mxu1 %v8014_v47  ;;  %v8032_v51 = vcombine.low %v14601_v56, %v14600_v3  ;;  %v8064_v47 = vcombine.low %v14603_v38, %v14602_v9  ;;  %v14631_v3 = vld [vmem:[#allocation367_spill] sm:$0xff]  ;;  %v14632_v38 = vld [vmem:[#allocation334_spill] sm:$0xff] }
 0xba9   :  { %7123 = vmatprep.subr.bf16.mxu0 %v7981_v1  ;;  %7164 = vmatprep.subr.bf16.mxu1 %v8013_v50  ;;  %v8031_v1 = vcombine.high %v14605_v52, %v14604_v4  ;;  %v8063_v50 = vcombine.high %v14607_v21, %v14606_v40 }
 0xbac   :  { %7124 = vmatpush2.bf16.msra.mxu0 %v7980_v44  ;;  %7165 = vmatpush2.bf16.msra.mxu1 %v8012_v14  ;;  %v8030_v44 = vcombine.low %v14605_v52, %v14604_v4  ;;  %v8062_v14 = vcombine.low %v14607_v21, %v14606_v40  ;;  %v14635_v4 = vld [vmem:[#allocation365_spill] sm:$0xff]  ;;  %v14636_v21 = vld [vmem:[#allocation332_spill] sm:$0xff] }
 0xbad   :  { %7175 = vmatprep.subr.bf16.mxu0 %v8043_v61  ;;  %7216 = vmatprep.subr.bf16.mxu1 %v8075_v5  ;;  %v8029_v61 = vcombine.high %v14609_v36, %v14608_v32  ;;  %v8061_v5 = vcombine.high %v14611_v18, %v14610_v16 }
 0xbaf   :  { %7126 = vmatmul.mubr.bf16.vlgmr.msra.gmra.mxu0 %v5377_v28  ;;  %7167 = vmatmul.mubr.bf16.vlgmr.msra.gmra.mxu1 %v5379_v2  ;;  %v8028_v28 = vcombine.low %v14609_v36, %v14608_v32  ;;  %v8060_v2 = vcombine.low %v14611_v18, %v14610_v16  ;;  %v14639_v32 = vld [vmem:[#allocation363_spill] sm:$0xff]  ;;  %v14640_v18 = vld [vmem:[#allocation330_spill] sm:$0xff] }
 0xbb0   :  { %7176 = vmatpush1.bf16.msra.mxu0 %v8042_v24  ;;  %7217 = vmatpush1.bf16.msra.mxu1 %v8074_v10  ;;  %v14612_v24 = vld [vmem:[#allocation344_spill] sm:$0xff]  ;;  %v14613_v10 = vld [vmem:[#allocation343_spill] sm:$0xff] }
 0xbb1   :  { %7177 = vmatprep.subr.bf16.mxu0 %v8041_v12  ;;  %7218 = vmatprep.subr.bf16.mxu1 %v8073_v57  ;;  %v8059_v20 = vcombine.high %v14613_v10, %v14612_v24  ;;  %v14615_v12 = vld [vmem:[#allocation375_spill] sm:$0xff]  ;;  %v8058_v7 = vcombine.low %v14613_v10, %v14612_v24  ;;  %v14643_v24 = vld [vmem:[#allocation361_spill] sm:$0xff] }
 0xbb2   :  { %7207 = vmatprep.mubr.bf16.mxu0 %v5382_v15  ;;  %7248 = vmatprep.mubr.bf16.mxu1 %v5384_v22  ;;  %v8091_v63 = vcombine.high %v14615_v12, %v14614_v46  ;;  %v8090_v57 = vcombine.low %v14615_v12, %v14614_v46  ;;  %v14616_v15 = vld [vmem:[#allocation342_spill] sm:$0xff]  ;;  %v14617_v22 = vld [vmem:[#allocation341_spill] sm:$0xff]  ;;  %v5381_v12 = vpack.c.bf16 %v12483_v30, %v12483_v30  ;;  %v8399_v30 = vld [vmem:[%s13148_s14 + $0x78] sm:$0xff]  }
 0xbb4   :  { %7178 = vmatpush1.bf16.msra.mxu0 %v8040_v62  ;;  %7219 = vmatpush1.bf16.msra.mxu1 %v8072_v25  ;;  %v8057_v62 = vcombine.high %v14617_v22, %v14616_v15  ;;  %v14618_v25 = vld [vmem:[#allocation374_spill] sm:$0xff] }
 0xbb5   :  { %7179 = vmatprep.subr.bf16.mxu0 %v8039_v53  ;;  %7220 = vmatprep.subr.bf16.mxu1 %v8071_v37  ;;  %v8089_v43 = vcombine.high %v14619_v49, %v14618_v25  ;;  %v8056_v53 = vcombine.low %v14617_v22, %v14616_v15  ;;  %v8088_v11 = vcombine.low %v14619_v49, %v14618_v25  ;;  %v14621_v37 = vld [vmem:[#allocation339_spill] sm:$0xff] }
 0xbb8   :  { %7180 = vmatpush1.bf16.msra.mxu0 %v8038_v0  ;;  %7221 = vmatpush1.bf16.msra.mxu1 %v8070_v55  ;;  %v8055_v0 = vcombine.high %v14621_v37, %v14620_v26  ;;  %v14622_v55 = vld [vmem:[#allocation372_spill] sm:$0xff] }
 0xbb9   :  { %7181 = vmatprep.subr.bf16.mxu0 %v8037_v35  ;;  %7222 = vmatprep.subr.bf16.mxu1 %v8069_v29  ;;  %v8087_v33 = vcombine.high %v14623_v6, %v14622_v55  ;;  %v8054_v35 = vcombine.low %v14621_v37, %v14620_v26  ;;  %v8086_v13 = vcombine.low %v14623_v6, %v14622_v55  ;;  %v14625_v29 = vld [vmem:[#allocation337_spill] sm:$0xff]  ;;  %v8401_v26 = vld [vmem:[%s13148_s14 + $0x70] sm:$0xff]  }
 0xbba   :  { %v8402_v37 = vld [vmem:[%s13148_s14 + $0x30] sm:$0xff]   ;;  %v8404_v55 = vld [vmem:[%s13148_s14 + $0x28] sm:$0xff]   ;;  %v8405_v6 = vld [vmem:[%s13148_s14 + $0x60] sm:$0xff]  }
 0xbbc   :  { %7182 = vmatpush1.bf16.msra.mxu0 %v8036_v19  ;;  %7223 = vmatpush1.bf16.msra.mxu1 %v8068_v42  ;;  %v8053_v19 = vcombine.high %v14625_v29, %v14624_v34  ;;  %v14626_v42 = vld [vmem:[#allocation370_spill] sm:$0xff] }
 0xbbd   :  { %7183 = vmatprep.subr.bf16.mxu0 %v8035_v8  ;;  %7224 = vmatprep.subr.bf16.mxu1 %v8067_v17  ;;  %v8085_v59 = vcombine.high %v14627_v27, %v14626_v42  ;;  %v8052_v8 = vcombine.low %v14625_v29, %v14624_v34  ;;  %v8084_v31 = vcombine.low %v14627_v27, %v14626_v42  ;;  %v14629_v17 = vld [vmem:[#allocation335_spill] sm:$0xff] }
 0xbbe   :  { %v8410_v27 = vld [vmem:[%s13148_s14 + $0x10] sm:$0xff]  }
 0xbc0   :  { %7184 = vmatpush1.bf16.msra.mxu0 %v8034_v23  ;;  %7225 = vmatpush1.bf16.msra.mxu1 %v8066_v60  ;;  %v8051_v23 = vcombine.high %v14629_v17, %v14628_v58  ;;  %v14630_v60 = vld [vmem:[#allocation368_spill] sm:$0xff] }
 0xbc1   :  { %7185 = vmatprep.subr.bf16.mxu0 %v8033_v41  ;;  %7226 = vmatprep.subr.bf16.mxu1 %v8065_v48  ;;  %v8083_v56 = vcombine.high %v14631_v3, %v14630_v60  ;;  %v8050_v41 = vcombine.low %v14629_v17, %v14628_v58  ;;  %v8082_v9 = vcombine.low %v14631_v3, %v14630_v60  ;;  %v14633_v48 = vld [vmem:[#allocation333_spill] sm:$0xff] }
 0xbc2   :  { %v8411_v60 = vld [vmem:[%s13148_s14 + $0x48] sm:$0xff]  }
 0xbc4   :  { %7186 = vmatpush1.bf16.msra.mxu0 %v8032_v51  ;;  %7227 = vmatpush1.bf16.msra.mxu1 %v8064_v47  ;;  %v8049_v51 = vcombine.high %v14633_v48, %v14632_v38  ;;  %v14634_v47 = vld [vmem:[#allocation366_spill] sm:$0xff] }
 0xbc5   :  { %7187 = vmatprep.subr.bf16.mxu0 %v8031_v1  ;;  %7228 = vmatprep.subr.bf16.mxu1 %v8063_v50  ;;  %v8081_v52 = vcombine.high %v14635_v4, %v14634_v47  ;;  %v8048_v1 = vcombine.low %v14633_v48, %v14632_v38  ;;  %v8080_v40 = vcombine.low %v14635_v4, %v14634_v47  ;;  %v14637_v50 = vld [vmem:[#allocation331_spill] sm:$0xff]  ;;  %v8413_v38 = vld [vmem:[%s13148_s14 + $0x40] sm:$0xff]  }
 0xbc6   :  { %v8414_v48 = vld [vmem:[%s13148_s14] sm:$0xff]  }
 0xbc8   :  { %7188 = vmatpush1.bf16.msra.mxu0 %v8030_v44  ;;  %7229 = vmatpush1.bf16.msra.mxu1 %v8062_v14  ;;  %v8047_v44 = vcombine.high %v14637_v50, %v14636_v21  ;;  %v14638_v14 = vld [vmem:[#allocation364_spill] sm:$0xff] }
 0xbc9   :  { %7189 = vmatprep.subr.bf16.mxu0 %v8029_v61  ;;  %7230 = vmatprep.subr.bf16.mxu1 %v8061_v5  ;;  %v8079_v36 = vcombine.high %v14639_v32, %v14638_v14  ;;  %v8046_v61 = vcombine.low %v14637_v50, %v14636_v21  ;;  %v8078_v16 = vcombine.low %v14639_v32, %v14638_v14  ;;  %v14641_v5 = vld [vmem:[#allocation329_spill] sm:$0xff] }
 0xbcc   :  { %7190 = vmatpush1.bf16.msra.mxu0 %v8028_v28  ;;  %7231 = vmatpush1.bf16.msra.mxu1 %v8060_v2  ;;  %v8045_v28 = vcombine.high %v14641_v5, %v14640_v18  ;;  %v14642_v2 = vld [vmem:[#allocation362_spill] sm:$0xff] }
 0xbcd   :  { %7191 = vmatprep.subr.bf16.mxu0 %v8059_v20  ;;  %7232 = vmatprep.subr.bf16.mxu1 %v8091_v63  ;;  %v8077_v10 = vcombine.high %v14643_v24, %v14642_v2  ;;  %v8044_v20 = vcombine.low %v14641_v5, %v14640_v18  ;;  %v8076_v46 = vcombine.low %v14643_v24, %v14642_v2 }
 0xbce   :  { %v5383_v63 = vpack.c.bf16 %v12518_v45, %v12518_v45  ;;  %v8400_v45 = vld [vmem:[%s13148_s14 + $0x38] sm:$0xff]  }
 0xbd0   :  { %7192 = vmatpush2.bf16.msra.mxu0 %v8058_v7  ;;  %7233 = vmatpush2.bf16.msra.mxu1 %v8090_v57 }
 0xbd1   :  { %7193 = vmatprep.subr.bf16.mxu0 %v8057_v62  ;;  %7234 = vmatprep.subr.bf16.mxu1 %v8089_v43 }
 0xbd4   :  { %7194 = vmatpush2.bf16.msra.mxu0 %v8056_v53  ;;  %7235 = vmatpush2.bf16.msra.mxu1 %v8088_v11 }
 0xbd5   :  { %7195 = vmatprep.subr.bf16.mxu0 %v8055_v0  ;;  %7236 = vmatprep.subr.bf16.mxu1 %v8087_v33  ;;  %v8403_v0 = vld [vmem:[%s13148_s14 + $0x68] sm:$0xff]   ;;  %v8406_v33 = vld [vmem:[%s13148_s14 + $0x20] sm:$0xff]  }
 0xbd8   :  { %7196 = vmatpush2.bf16.msra.mxu0 %v8054_v35  ;;  %7237 = vmatpush2.bf16.msra.mxu1 %v8086_v13  ;;  %v8407_v35 = vld [vmem:[%s13148_s14 + $0x58] sm:$0xff]  }
 0xbd9   :  { %7197 = vmatprep.subr.bf16.mxu0 %v8053_v19  ;;  %7238 = vmatprep.subr.bf16.mxu1 %v8085_v59  ;;  %v8408_v13 = vld [vmem:[%s13148_s14 + $0x18] sm:$0xff]   ;;  %v8409_v19 = vld [vmem:[%s13148_s14 + $0x50] sm:$0xff]  }
 0xbdc   :  { %7198 = vmatpush2.bf16.msra.mxu0 %v8052_v8  ;;  %7239 = vmatpush2.bf16.msra.mxu1 %v8084_v31 }
 0xbdd   :  { %7199 = vmatprep.subr.bf16.mxu0 %v8051_v23  ;;  %7240 = vmatprep.subr.bf16.mxu1 %v8083_v56  ;;  %v8412_v56 = vld [vmem:[%s13148_s14 + $0x8] sm:$0xff]  }
 0xbe0   :  { %7200 = vmatpush2.bf16.msra.mxu0 %v8050_v41  ;;  %7241 = vmatpush2.bf16.msra.mxu1 %v8082_v9 }
 0xbe1   :  { %7201 = vmatprep.subr.bf16.mxu0 %v8049_v51  ;;  %7242 = vmatprep.subr.bf16.mxu1 %v8081_v52 }
 0xbe4   :  { %7202 = vmatpush2.bf16.msra.mxu0 %v8048_v1  ;;  %7243 = vmatpush2.bf16.msra.mxu1 %v8080_v40 }
 0xbe5   :  { %7203 = vmatprep.subr.bf16.mxu0 %v8047_v44  ;;  %7244 = vmatprep.subr.bf16.mxu1 %v8079_v36  ;;  %v7257_v36 = vld [vmem:[%s13147_s13] sm:$0x3] }
 0xbe8   :  { %7204 = vmatpush2.bf16.msra.mxu0 %v8046_v61  ;;  %7245 = vmatpush2.bf16.msra.mxu1 %v8078_v16 }
 0xbe9   :  { %7205 = vmatprep.subr.bf16.mxu0 %v8045_v28  ;;  %7246 = vmatprep.subr.bf16.mxu1 %v8077_v10  ;;  %v7262_v28 = vrot.slane %v7257_v36, %v11302_v54 }
 0xbec   :  { %7206 = vmatpush2.bf16.msra.mxu0 %v8044_v20  ;;  %7247 = vmatpush2.bf16.msra.mxu1 %v8076_v46  ;;  %v7266_v46 = vrot.slane %v7257_v36, %v11293_v39 }
 0xbed   :  { %8149 = vmatprep.subr.bf16.mxu0 %v8399_v30 }
 0xbef   :  { %v6323_v7 = vpop.f32.mrf.mxu0  ;;  %v6364_v57 = vpop.f32.mrf.mxu1  ;;  %7208 = vmatmul.mubr.bf16.vlgmr.msra.gmra.mxu0 %v5381_v12  ;;  %7249 = vmatmul.mubr.bf16.vlgmr.msra.gmra.mxu1 %v5383_v63 }
 0xbf0   :  { %v6365_v15 = vadd.f32 %v6364_v57, %v6323_v7  ;;  %8150 = vmatpush3.bf16.msra.mxu0 %v8400_v45 }
 0xbf1   :  { %v6325_v22 = vpop.f32.mrf.mxu0  ;;  %v6366_v62 = vpop.f32.mrf.mxu1  ;;  %8151 = vmatprep.subr.bf16.mxu0 %v8401_v26 }
 0xbf2   :  { %v6367_v25 = vadd.f32 %v6366_v62, %v6325_v22 }
 0xbf3   :  { %v6327_v49 = vpop.f32.mrf.mxu0  ;;  %v6368_v43 = vpop.f32.mrf.mxu1 }
 0xbf4   :  { %8152 = vmatpush3.bf16.msra.mxu0 %v8402_v37 }
 0xbf5   :  { %v6328_v53 = vpop.f32.mrf.mxu0  ;;  %v6369_v11 = vpop.f32.mrf.mxu1  ;;  %8153 = vmatprep.subr.bf16.mxu0 %v8403_v0 }
 0xbf6   :  { %v8092_v11 = vld [vmem:[%s13149_s15] ss:$0 sm:$0xff] }
 0xbf8   :  { %8154 = vmatpush3.bf16.msra.mxu0 %v8404_v55 }
 0xbf9   :  { %8155 = vmatprep.subr.bf16.mxu0 %v8405_v6 }
 0xbfc   :  { %8156 = vmatpush3.bf16.msra.mxu0 %v8406_v33 }
 0xbfd   :  { %8157 = vmatprep.subr.bf16.mxu0 %v8407_v35 }
 0xc00   :  { %8158 = vmatpush3.bf16.msra.mxu0 %v8408_v13 }
 0xc01   :  { %8159 = vmatprep.subr.bf16.mxu0 %v8409_v19 }
 0xc04   :  { %8160 = vmatpush3.bf16.msra.mxu0 %v8410_v27 }
 0xc05   :  { %8161 = vmatprep.subr.bf16.mxu0 %v8411_v60 }
 0xc08   :  { %8162 = vmatpush3.bf16.msra.mxu0 %v8412_v56 }
 0xc09   :  { %8163 = vmatprep.subr.bf16.mxu0 %v8413_v38 }
 0xc0c   :  { %8164 = vmatpush3.bf16.msra.mxu0 %v8414_v48 }
 0xc2f   :  { %v6405_v34 = vpop.f32.mrf.mxu0  ;;  %v6446_v29 = vpop.f32.mrf.mxu1 }
 0xc30   :  { %v6406_v42 = vadd.f32 %v6405_v34, %v6365_v15 }
 0xc31   :  { %v6407_v59 = vpop.f32.mrf.mxu0  ;;  %v6448_v8 = vpop.f32.mrf.mxu1 }
 0xc32   :  { %v6447_v31 = vadd.f32 %v6446_v29, %v6406_v42  ;;  %v6408_v58 = vadd.f32 %v6407_v59, %v6367_v25 }
 0xc33   :  { %v6409_v17 = vpop.f32.mrf.mxu0  ;;  %v6450_v23 = vpop.f32.mrf.mxu1 }
 0xc34   :  { %v6449_v3 = vadd.f32 %v6448_v8, %v6408_v58 }
 0xc35   :  { %v6410_v41 = vpop.f32.mrf.mxu0  ;;  %v6451_v9 = vpop.f32.mrf.mxu1 }
 0xc6f   :  { %v7127_v51 = vpop.f32.mrf.mxu0  ;;  %v7168_v47 = vpop.f32.mrf.mxu1 }
 0xc70   :  { %v7128_v4 = vadd.f32 %v7127_v51, %v6447_v31 }
 0xc71   :  { %v7129_v52 = vpop.f32.mrf.mxu0  ;;  %v7170_v1 = vpop.f32.mrf.mxu1 }
 0xc72   :  { %v7169_v40 = vadd.f32 %v7168_v47, %v7128_v4  ;;  %v7130_v32 = vadd.f32 %v7129_v52, %v6449_v3 }
 0xc73   :  { %v7131_v21 = vpop.f32.mrf.mxu0  ;;  %v7172_v50 = vpop.f32.mrf.mxu1 }
 0xc74   :  { %v7171_v18 = vadd.f32 %v7170_v1, %v7130_v32 }
 0xc75   :  { %v7132_v44 = vpop.f32.mrf.mxu0  ;;  %v7173_v14 = vpop.f32.mrf.mxu1 }
 0xcaf   :  { %v7209_v61 = vpop.f32.mrf.mxu0  ;;  %v7250_v16 = vpop.f32.mrf.mxu1 }
 0xcb0   :  { %v7210_v5 = vadd.f32 %v7209_v61, %v7169_v40 }
 0xcb1   :  { %v7211_v2 = vpop.f32.mrf.mxu0  ;;  %v7252_v24 = vpop.f32.mrf.mxu1 }
 0xcb2   :  { %v7251_v10 = vadd.f32 %v7250_v16, %v7210_v5  ;;  %v7212_v20 = vadd.f32 %v7211_v2, %v7171_v18 }
 0xcb3   :  { %v7213_v12 = vpop.f32.mrf.mxu0  ;;  %v7254_v63 = vpop.f32.mrf.mxu1 }
 0xcb4   :  { %v7269_v7 = vadd.f32 %v7262_v28, %v7251_v10  ;;  %v7253_v57 = vadd.f32 %v7252_v24, %v7212_v20 }
 0xcb5   :  { %v7214_v15 = vpop.f32.mrf.mxu0  ;;  %v7255_v22 = vpop.f32.mrf.mxu1 }
 0xcb6   :  { %v7270_v62 = vadd.f32 %v7266_v46, %v7253_v57  ;;  %v7271_v25 = vmax.f32 %v7269_v7, 0.0 }
 0xcb8   :  { %v7272_v49 = vmax.f32 %v7270_v62, 0.0  ;;  %v7273_v53 = vpack.c.bf16 %v7271_v25, %v7271_v25 }
 0xcba   :  { %v7274_v43 = vpack.c.bf16 %v7272_v49, %v7272_v49 }
 0xcbc   :  { %7442 = vmatprep.mubr.bf16.mxu0 %v7274_v43 }
 0xcbd   :  { %7443 = vmatmul.mubr.bf16.vlgmr.msra.gmra.mxu0 %v7273_v53 }
 0xd7d   :  { %v8165_v54 = vpop.f32.mrf.mxu0 }
 0xd7f   :  { %v8166_v30 = vpop.f32.mrf.mxu0 }
 0xd80   :  { %v8167_v39 = vadd.f32 %v8166_v30, %v8165_v54 }
 0xd81   :  { %v8168_v45 = vpop.f32.mrf.mxu0 }
 0xd82   :  { %v7445_v26 = vadd.f32 %v8167_v39, %v8092_v11 }
 0xd83   :  { %v8169_v37 = vpop.f32.mrf.mxu0 }
 0xd84   :  { %7451 = vst.msk [vmem:[#allocation6] sm:$0x3] %vm7450_vm4, %v7445_v26 }
 0xd85   :  { %8426 = shalt.err (!%p8423_p4)
}
 0xd86   :  { %7461 = dma.vmem_to_hbm [thread:$0]  %s7459_s24, 32, %s13150_s16, [#allocation7]  }
 0xd87   :  { %8439 = dma.done.wait [#allocation7], 32  }
 0xd88   :  { %8440 = vsyncadd [#allocation7], 4294967264 }
 0xd89   :  { %7465 = vsyncpa [#allocation7], 1 }
 0xd8a   :  { %7466 = vsyncmov [#allocation5] }
 0xd8d   :  { %s7467_s15 = vpop.sfrf %7466 }
 0xd8e   :  { %p8109_p5 = scmp.ne.s32.totalorder %s7467_s15, 0 }
 0xd90   :  { %7471 = shalt.err (%p8109_p5)  }
 0xd91   :  { %7473 = vsyncmov [#allocation5 + $0x1] }
 0xd94   :  { %s7474_s6 = vpop.sfrf %7473 }
 0xd95   :  { %p8110_p6 = scmp.ne.s32.totalorder %s7474_s6, 0 }
 0xd97   :  { %7478 = shalt.err (%p8110_p6)  }

</bundles_post_ra>
